<compile_context>
chip_gen: v7x
topology: tpu7x:2x2x1
jax: 0.10.0
libtpu: 0.0.40
codegen_flags: <defaults>
</compile_context>

<pallas_src>
import jax
import jax.numpy as jnp
from jax.experimental import pallas as pl
from jax.experimental.pallas import tpu as pltpu

TM_MAX = 256        # max row tile for the fused conv matmul (multiple of 8*r for any r)
POOL_TR_MAX = 512   # max packed-row tile for the avg-pool VPU kernel


# ----------------------------------------------------------------------------- #
# small helpers
# ----------------------------------------------------------------------------- #
def _round_up(x, m):
    return ((x + m - 1) // m) * m


def _cdiv(a, b):
    return -(-a // b)


def _lane_pack_factor(n):
    """How many row-chunks to pack into the 128-lane dim for an n-channel output."""
    if n < 128 and 128 % n == 0:
        return min(128 // n, 32)
    return 1


def _pack_rows(mat, grid_m, tm, r):
    """Logical [grid_m*tm, n] -> lane-dense [grid_m*tm//r, r*n].

    Within each tm-row tile, row chunk j (tm//r rows) goes to lanes [j*n,(j+1)*n),
    matching the packing done inside the fused conv kernel."""
    if r == 1:
        return mat
    n = mat.shape[1]
    tmr = tm // r
    return (mat.reshape(grid_m, r, tmr, n)
               .transpose(0, 2, 1, 3)
               .reshape(grid_m * tmr, r * n))


def _unpack_rows(mat, grid_m, tm, r, n):
    """Inverse of _pack_rows (pure layout plumbing; fuses under jit)."""
    if r == 1:
        return mat
    tmr = tm // r
    return (mat.reshape(grid_m, tmr, r, n)
               .transpose(0, 2, 1, 3)
               .reshape(grid_m * tm, n))


# ----------------------------------------------------------------------------- #
# Pallas kernels
# ----------------------------------------------------------------------------- #
def _make_conv_kernel(groups, r, tmr, add_residual, apply_silu):
    """Fused: per-group bf16 matmul -> fp32 acc -> +shift [+res] [SiLU] -> lane-dense store."""

    def kernel(x_ref, w_ref, shift_ref, *rest):
        if add_residual:
            res_ref, o_ref = rest
        else:
            (o_ref,) = rest
        # Per-group MXU matmuls with fp32 accumulation (bf16 operands).
        accs = [jnp.dot(x_ref[g], w_ref[g], preferred_element_type=jnp.float32)
                for g in range(groups)]                         # each [TM, Ng]
        if groups == 1 and r == 1:
            acc = accs[0]                                       # [TM, N]
        else:
            # Assemble lane-dense [TM//r, r*N]: row chunk j -> lane block j,
            # groups laid out in output-channel order inside each block.
            acc = jnp.concatenate(
                [accs[g][j * tmr:(j + 1) * tmr, :]
                 for j in range(r) for g in range(groups)], axis=-1)
        y = acc + shift_ref[...]          # folded-BN shift / linear bias (fp32)
        if add_residual:
            y = y + res_ref[...]          # residual stays fp32 in the epilogue
        if apply_silu:
            y = y * jax.nn.sigmoid(y)     # SiLU epilogue
        o_ref[...] = y.astype(o_ref.dtype)

    return kernel


def _make_pool_kernel(kk, inv):
    """VPU-only average pool: sum of kk pre-shifted slices scaled by 1/kk."""

    def kernel(s_ref, o_ref):
        acc = s_ref[0]
        for i in range(1, kk):
            acc = acc + s_ref[i]
        o_ref[...] = acc * inv

    return kernel


# ----------------------------------------------------------------------------- #
# Kernel wrappers
# ----------------------------------------------------------------------------- #
def fused_conv_matmul(x_g, w_packed, shift, residual=None, apply_silu=False):
    """y[M, N] = [silu]( concat_g(x_g[g] @ w_packed[g]) + shift [+ residual] ).

    x_g:      [G, M, Kg]  per-group im2col patches (any float dtype; cast to bf16)
    w_packed: [G, Kg, Ng] per-group weights with BN scale already folded in
    shift:    [N]         folded BN shift (or linear bias)
    residual: [M, N]      optional residual added in the fp32 epilogue
    """
    groups, m, kg = x_g.shape
    gw, kgw, ng = w_packed.shape
    assert groups == gw and kg == kgw
    n = groups * ng

    r = _lane_pack_factor(n)             # rows packed into the lane dimension
    align = 8 * r
    tm = min(TM_MAX, _round_up(m, align))
    grid_m = _cdiv(m, tm)
    mp = grid_m * tm
    tmr = tm // r
    lane_n = r * n

    x_p = jnp.pad(x_g, ((0, 0), (0, mp - m), (0, 0))).astype(jnp.bfloat16)
    w_bf = w_packed.astype(jnp.bfloat16)
    shift_l = jnp.tile(shift.astype(jnp.float32).reshape(1, n), (1, r))

    add_residual = residual is not None
    inputs = [x_p, w_bf, shift_l]
    in_specs = [
        pl.BlockSpec((groups, tm, kg), lambda i: (0, i, 0)),
        pl.BlockSpec((groups, kg, ng), lambda i: (0, 0, 0)),
        pl.BlockSpec((1, lane_n), lambda i: (0, 0)),
    ]
    if add_residual:
        res_p = jnp.pad(residual.astype(jnp.float32), ((0, mp - m), (0, 0)))
        inputs.append(_pack_rows(res_p, grid_m, tm, r))
        in_specs.append(pl.BlockSpec((tmr, lane_n), lambda i: (i, 0)))

    out = pl.pallas_call(
        _make_conv_kernel(groups, r, tmr, add_residual, apply_silu),
        out_shape=jax.ShapeDtypeStruct((mp // r, lane_n), jnp.float32),
        grid=(grid_m,),
        in_specs=in_specs,
        out_specs=pl.BlockSpec((tmr, lane_n), lambda i: (i, 0)),
        compiler_params=pltpu.CompilerParams(dimension_semantics=("parallel",)),
    )(*inputs)

    return _unpack_rows(out, grid_m, tm, r, n)[:m]


def avg_pool(x, k, stride, pad):
    """AvgPool2d(k, stride, pad, count_include_pad=True) as a VPU sum kernel."""
    n, h, w, c = x.shape
    xp = jnp.pad(x, ((0, 0), (pad, pad), (pad, pad), (0, 0)))
    oh = (h + 2 * pad - k) // stride + 1
    ow = (w + 2 * pad - k) // stride + 1
    kk = k * k
    m = n * oh * ow

    slices = [xp[:, kh:kh + (oh - 1) * stride + 1:stride,
                 kw:kw + (ow - 1) * stride + 1:stride, :].reshape(m, c)
              for kh in range(k) for kw in range(k)]
    s = jnp.stack(slices, axis=0).astype(jnp.float32)        # [kk, m, c]

    r = _lane_pack_factor(c)
    lane = r * c
    pr_needed = _cdiv(m, r)
    tpr = min(POOL_TR_MAX, _round_up(pr_needed, 8))
    grid = _cdiv(pr_needed, tpr)
    pr = grid * tpr
    mp = pr * r

    s = jnp.pad(s, ((0, 0), (0, mp - m), (0, 0)))
    s = s.reshape(kk, pr, lane)                              # free contiguous packing

    out = pl.pallas_call(
        _make_pool_kernel(kk, 1.0 / kk),
        out_shape=jax.ShapeDtypeStruct((pr, lane), jnp.float32),
        grid=(grid,),
        in_specs=[pl.BlockSpec((kk, tpr, lane), lambda i: (0, i, 0))],
        out_specs=pl.BlockSpec((tpr, lane), lambda i: (i, 0)),
        compiler_params=pltpu.CompilerParams(dimension_semantics=("parallel",)),
    )(s)

    return out.reshape(mp, c)[:m].reshape(n, oh, ow, c)


# ----------------------------------------------------------------------------- #
# Glue: patch extraction + weight packing (plain JAX, fuses under jit)
# ----------------------------------------------------------------------------- #
def extract_patches_grouped(x, k, stride, pad, groups):
    """x: [N,H,W,C] -> ([groups, N*OH*OW, k*k*C/groups], OH, OW).

    Per-group K order is (kh, kw, c_within_group)."""
    n, h, w, c = x.shape
    cg = c // groups
    oh = (h + 2 * pad - k) // stride + 1
    ow = (w + 2 * pad - k) // stride + 1
    if k == 1 and stride == 1 and pad == 0:
        p = x.reshape(n * h * w, groups, cg)
        return jnp.transpose(p, (1, 0, 2)), oh, ow
    xp = jnp.pad(x, ((0, 0), (pad, pad), (pad, pad), (0, 0)))
    cols = [xp[:, kh:kh + (oh - 1) * stride + 1:stride,
               kw:kw + (ow - 1) * stride + 1:stride, :]
            for kh in range(k) for kw in range(k)]
    p = jnp.stack(cols, axis=3)                               # [n, oh, ow, kk, c]
    p = p.reshape(n, oh, ow, k * k, groups, cg)
    p = jnp.transpose(p, (4, 0, 1, 2, 3, 5))                  # [g, n, oh, ow, kk, cg]
    return p.reshape(groups, n * oh * ow, k * k * cg), oh, ow


def pack_conv_weight(w, groups, scale):
    """PyTorch [Cout, Cin/g, KH, KW] (+ folded BN scale) -> [G, KH*KW*Cin/g, Cout/g]."""
    cout, cin_g, kh, kw = w.shape
    ng = cout // groups
    ws = w * scale[:, None, None, None]                       # fold BN scale into weights
    ws = ws.reshape(groups, ng, cin_g, kh, kw)
    ws = jnp.transpose(ws, (0, 3, 4, 2, 1))                   # [g, kh, kw, cin_g, ng]
    return ws.reshape(groups, kh * kw * cin_g, ng)


def conv_bn(x, p, *, stride=1, apply_silu=True, residual=None):
    """conv(k, pad=(k-1)//2, stride) + folded BN [+ residual] [+ SiLU], fused in-kernel."""
    k = p['k']
    pad = (k - 1) // 2
    patches, oh, ow = extract_patches_grouped(x, k, stride, pad, p['groups'])
    nb = x.shape[0]
    res_mat = None if residual is None else residual.reshape(nb * oh * ow, -1)
    y = fused_conv_matmul(patches, p['w'], p['shift'],
                          residual=res_mat, apply_silu=apply_silu)
    return y.reshape(nb, oh, ow, -1)


# ----------------------------------------------------------------------------- #
# Parameter initialization (deterministic, mirrors the PyTorch constructor)
# ----------------------------------------------------------------------------- #
def init_conv_bn(key, cin, cout, k, groups=1):
    kw_, kg, kb, km, kv = jax.random.split(key, 5)
    w = jax.random.normal(kw_, (cout, cin // groups, k, k), jnp.float32) * 0.1
    gamma = jax.random.uniform(kg, (cout,), jnp.float32, 0.5, 1.5)
    beta = jax.random.normal(kb, (cout,), jnp.float32) * 0.1
    rmean = jax.random.normal(km, (cout,), jnp.float32) * 0.1
    rvar = jax.random.uniform(kv, (cout,), jnp.float32, 0.5, 1.5)
    scale = gamma / jnp.sqrt(rvar + 1e-5)          # BN folded (eval mode)
    shift = beta - rmean * scale
    return {'w': pack_conv_weight(w, groups, scale), 'shift': shift,
            'k': k, 'groups': groups}


def init_model(key, blockspecs, in_chans, num_classes):
    channels = [max(4, b[0] - b[0] % 4) for b in blockspecs]
    depths = [b[1] for b in blockspecs]
    attns = [b[6] for b in blockspecs]
    module_types = ['basic', 'basic', 'bottleneck', 'bottleneck'][:len(channels)]
    expansion = {'basic': 1, 'bottleneck': 2}

    keys = iter(jax.random.split(key, 128))
    inplanes = 32
    params = {
        'stem': {
            'conv1': init_conv_bn(next(keys), in_chans, inplanes, 3, 1),
            'conv2': init_conv_bn(next(keys), inplanes, inplanes, 3, 4),
        }
    }
    stages = []
    for i, (ch, dep, attn) in enumerate(zip(channels, depths, attns)):
        mtype = module_types[i]
        exp = expansion[mtype]
        stage_stride = 1 if i == 0 else 2
        blocks = []
        for d in range(dep):
            stride = stage_stride if d == 0 else 1
            downsample, ds_pool = None, False
            if d == 0:
                if stride != 1:
                    downsample = init_conv_bn(next(keys), inplanes, ch * exp, 1, 1)
                    ds_pool = True
                elif inplanes != ch * exp:
                    downsample = init_conv_bn(next(keys), inplanes, ch * exp, 1, 1)
            if mtype == 'basic':
                blk = {'type': 'basic', 'stride': stride, 'attn': attn,
                       'downsample': downsample, 'ds_pool': ds_pool,
                       'conv1': init_conv_bn(next(keys), inplanes, ch, 3, 4),
                       'conv2': init_conv_bn(next(keys), ch, ch, 3, 4)}
            else:
                width = ch  # base_width=64, groups=1
                blk = {'type': 'bottleneck', 'stride': stride, 'attn': attn,
                       'downsample': downsample, 'ds_pool': ds_pool,
                       'conv1': init_conv_bn(next(keys), inplanes, width, 1, 1),
                       'conv2': init_conv_bn(next(keys), width, width, 3, 4),
                       'conv3': init_conv_bn(next(keys), width, ch * exp, 1, 1)}
            inplanes = ch * exp
            blocks.append(blk)
        stages.append(blocks)
    params['stages'] = stages

    c_final = channels[-1] * expansion[module_types[-1]]
    khw, khb = jax.random.split(next(keys))
    params['head'] = {
        'w': jax.random.normal(khw, (c_final, num_classes), jnp.float32) * 0.1,
        'b': jax.random.normal(khb, (num_classes,), jnp.float32) * 0.1,
    }
    return params


# ----------------------------------------------------------------------------- #
# Forward pass (mirrors DarwinStemIN / Basic / Bottleneck / ResHead)
# ----------------------------------------------------------------------------- #
def stem_forward(x, p):
    h = conv_bn(x, p['conv1'], stride=2, apply_silu=True)   # 3x3 s2 + BN + SiLU
    h = conv_bn(h, p['conv2'], stride=1, apply_silu=True)   # 3x3 g4 + BN + SiLU
    return avg_pool(h, 3, 2, 1)                             # AvgPool 3x3 s2 p1


def basic_block(x, p):
    h = avg_pool(x, 2, 2, 0) if p['stride'] != 1 else x
    h = conv_bn(h, p['conv1'], stride=1, apply_silu=True)
    identity = x
    if p['downsample'] is not None:
        idn = avg_pool(x, 2, 2, 0) if p['ds_pool'] else x
        identity = conv_bn(idn, p['downsample'], stride=1, apply_silu=False)
    if p['attn'] and p['downsample'] is not None:
        # attn merge kept in plain JAX (not exercised by the default blockspecs).
        # torch softmax default dim on 4D is dim=1 (channels) == NHWC axis -1.
        h = conv_bn(h, p['conv2'], stride=1, apply_silu=False)
        h = jax.nn.softmax(h, axis=-1) * identity
        return h * jax.nn.sigmoid(h)
    # bn2 + residual add + final SiLU fused into the kernel epilogue
    return conv_bn(h, p['conv2'], stride=1, apply_silu=True, residual=identity)


def bottleneck_block(x, p):
    h = conv_bn(x, p['conv1'], stride=1, apply_silu=True)    # 1x1 + BN + SiLU
    if p['stride'] != 1:
        h = avg_pool(h, 2, 2, 0)
    h = conv_bn(h, p['conv2'], stride=1, apply_silu=True)    # 3x3 g4 + BN + SiLU
    identity = x
    if p['downsample'] is not None:
        idn = avg_pool(x, 2, 2, 0) if p['ds_pool'] else x
        identity = conv_bn(idn, p['downsample'], stride=1, apply_silu=False)
    if p['attn'] and p['downsample'] is not None:
        h = conv_bn(h, p['conv3'], stride=1, apply_silu=False)
        h = jax.nn.softmax(h, axis=-1) * identity
        return h * jax.nn.sigmoid(h)
    return conv_bn(h, p['conv3'], stride=1, apply_silu=True, residual=identity)


def head_forward(x, p):
    g = jnp.mean(x, axis=(1, 2))  # global average pool (tiny reduction kept as glue)
    return fused_conv_matmul(g[None, :, :], p['w'][None, :, :], p['b'])


def darwinnet_forward(x_nchw, params):
    x = jnp.transpose(x_nchw, (0, 2, 3, 1))  # NCHW (PyTorch input) -> NHWC (kernel layout)
    h = stem_forward(x, params['stem'])
    for blocks in params['stages']:
        for blk in blocks:
            h = basic_block(h, blk) if blk['type'] == 'basic' else bottleneck_block(h, blk)
    return head_forward(h, params['head'])


# ----------------------------------------------------------------------------- #
if __name__ == "__main__":
    key = jax.random.PRNGKey(0)
    kx, kp = jax.random.split(key)

    # blockspec format used by DarwinNetV2: [channels, depth, _, _, _, _, attn]
    blockspecs = [[8, 1, 0, 0, 0, 0, False],
                  [16, 1, 0, 0, 0, 0, False],
                  [16, 1, 0, 0, 0, 0, False],
                  [32, 1, 0, 0, 0, 0, False]]
    num_classes = 10

    x = jax.random.normal(kx, (2, 3, 32, 32), jnp.float32)  # NCHW, like the PyTorch module
    params = init_model(kp, blockspecs, in_chans=3, num_classes=num_classes)

    # jit the whole forward so patch extraction / padding / bf16 casts fuse into the
    # kernel inputs and the many small pallas_calls are dispatched from one program.
    forward = jax.jit(lambda inp: darwinnet_forward(inp, params))

    out = jax.block_until_ready(forward(x))
    assert out.shape == (2, num_classes) and out.dtype == jnp.float32
    print("KERNEL_OK")
</pallas_src>

<mosaic_0001>
module attributes {stable_mosaic.version = 11 : i64} {
  func.func @kernel(%arg0: i32, %arg1: memref<1x256x27xbf16, #tpu.memory_space<vmem>>, %arg2: memref<1x27x32xbf16, #tpu.memory_space<vmem>>, %arg3: memref<1x128xf32, #tpu.memory_space<vmem>>, %arg4: memref<64x128xf32, #tpu.memory_space<vmem>>) attributes {dimension_semantics = [#tpu.dimension_semantics<parallel>], iteration_bounds = array<i64: 2>, scalar_prefetch = 0 : i64, scratch_operands = 0 : i64, tpu.core_type = #tpu.core_type<tc>, window_params = [{transform_indices = @transform_0, window_bounds = array<i64: 1, 256, 27>}, {pipeline_mode = #tpu.pipeline_mode<synchronous>, transform_indices = @transform_1, window_bounds = array<i64: 1, 27, 32>}, {pipeline_mode = #tpu.pipeline_mode<synchronous>, transform_indices = @transform_2, window_bounds = array<i64: 1, 128>}, {transform_indices = @transform_3, window_bounds = array<i64: 64, 128>}]} {
    %c0 = arith.constant 0 : index
    %c0_0 = arith.constant 0 : index
    %c0_1 = arith.constant 0 : index
    %0 = vector.load %arg1[%c0, %c0_0, %c0_1] : memref<1x256x27xbf16, #tpu.memory_space<vmem>>, vector<1x256x27xbf16>
    %1 = vector.shape_cast %0 : vector<1x256x27xbf16> to vector<256x27xbf16>
    %c0_2 = arith.constant 0 : index
    %c0_3 = arith.constant 0 : index
    %c0_4 = arith.constant 0 : index
    %2 = vector.load %arg2[%c0_2, %c0_3, %c0_4] : memref<1x27x32xbf16, #tpu.memory_space<vmem>>, vector<1x27x32xbf16>
    %3 = vector.shape_cast %2 : vector<1x27x32xbf16> to vector<27x32xbf16>
    %cst = arith.constant dense<0.000000e+00> : vector<256x32xf32>
    %4 = tpu.matmul %1, %3, %cst {dimension_numbers = #tpu.dot_dimension_numbers<[1], [0], [0], [1], [0, 0, 1, 1], [], []>} : vector<256x27xbf16>, vector<27x32xbf16>, vector<256x32xf32> -> vector<256x32xf32>
    %5 = vector.extract_strided_slice %4 {offsets = [0, 0], sizes = [64, 32], strides = [1, 1]} : vector<256x32xf32> to vector<64x32xf32>
    %6 = vector.extract_strided_slice %4 {offsets = [64, 0], sizes = [64, 32], strides = [1, 1]} : vector<256x32xf32> to vector<64x32xf32>
    %7 = vector.extract_strided_slice %4 {offsets = [128, 0], sizes = [64, 32], strides = [1, 1]} : vector<256x32xf32> to vector<64x32xf32>
    %8 = vector.extract_strided_slice %4 {offsets = [192, 0], sizes = [64, 32], strides = [1, 1]} : vector<256x32xf32> to vector<64x32xf32>
    %9 = tpu.concatenate %5, %6, %7, %8 in 1 : vector<64x32xf32>, vector<64x32xf32>, vector<64x32xf32>, vector<64x32xf32> -> vector<64x128xf32>
    %c0_5 = arith.constant 0 : index
    %c0_6 = arith.constant 0 : index
    %10 = vector.load %arg3[%c0_5, %c0_6] : memref<1x128xf32, #tpu.memory_space<vmem>>, vector<1x128xf32>
    %11 = vector.broadcast %10 : vector<1x128xf32> to vector<64x128xf32>
    %12 = arith.addf %9, %11 : vector<64x128xf32>
    %13 = arith.negf %12 : vector<64x128xf32>
    %14 = math.exp %13 : vector<64x128xf32>
    %cst_7 = arith.constant 1.000000e+00 : f32
    %15 = vector.broadcast %cst_7 : f32 to vector<64x128xf32>
    %16 = arith.addf %15, %14 : vector<64x128xf32>
    %17 = arith.divf %15, %16 : vector<64x128xf32>
    %18 = arith.mulf %12, %17 : vector<64x128xf32>
    %c0_8 = arith.constant 0 : index
    %c0_9 = arith.constant 0 : index
    %19 = vector.load %arg4[%c0_8, %c0_9] : memref<64x128xf32, #tpu.memory_space<vmem>>, vector<64x128xf32>
    tpu.vector_store %arg4[%c0_8, %c0_9], %18 {strides = array<i32>} : memref<64x128xf32, #tpu.memory_space<vmem>>, vector<64x128xf32>,
    return
  }
  func.func @transform_0(%arg0: i32) -> (i32, i32, i32) {
    %c0_i32 = arith.constant 0 : i32
    %c0_i32_0 = arith.constant 0 : i32
    %c0_i32_1 = arith.constant 0 : i32
    return %c0_i32, %arg0, %c0_i32_0 : i32, i32, i32
  }
  func.func @transform_1(%arg0: i32) -> (i32, i32, i32) {
    %c0_i32 = arith.constant 0 : i32
    %c0_i32_0 = arith.constant 0 : i32
    %c0_i32_1 = arith.constant 0 : i32
    %c0_i32_2 = arith.constant 0 : i32
    return %c0_i32, %c0_i32_0, %c0_i32_1 : i32, i32, i32
  }
  func.func @transform_2(%arg0: i32) -> (i32, i32) {
    %c0_i32 = arith.constant 0 : i32
    %c0_i32_0 = arith.constant 0 : i32
    %c0_i32_1 = arith.constant 0 : i32
    return %c0_i32, %c0_i32_0 : i32, i32
  }
  func.func @transform_3(%arg0: i32) -> (i32, i32) {
    %c0_i32 = arith.constant 0 : i32
    %c0_i32_0 = arith.constant 0 : i32
    return %arg0, %c0_i32 : i32, i32
  }
}

module attributes {stable_mosaic.version = 11 : i64} {
  func.func @kernel(%arg0: i32, %arg1: memref<4x256x72xbf16, #tpu.memory_space<vmem>>, %arg2: memref<4x72x8xbf16, #tpu.memory_space<vmem>>, %arg3: memref<1x128xf32, #tpu.memory_space<vmem>>, %arg4: memref<64x128xf32, #tpu.memory_space<vmem>>) attributes {dimension_semantics = [#tpu.dimension_semantics<parallel>], iteration_bounds = array<i64: 2>, scalar_prefetch = 0 : i64, scratch_operands = 0 : i64, tpu.core_type = #tpu.core_type<tc>, window_params = [{transform_indices = @transform_0, window_bounds = array<i64: 4, 256, 72>}, {pipeline_mode = #tpu.pipeline_mode<synchronous>, transform_indices = @transform_1, window_bounds = array<i64: 4, 72, 8>}, {pipeline_mode = #tpu.pipeline_mode<synchronous>, transform_indices = @transform_2, window_bounds = array<i64: 1, 128>}, {transform_indices = @transform_3, window_bounds = array<i64: 64, 128>}]} {
    %c0 = arith.constant 0 : index
    %c0_0 = arith.constant 0 : index
    %c0_1 = arith.constant 0 : index
    %0 = vector.load %arg1[%c0, %c0_0, %c0_1] : memref<4x256x72xbf16, #tpu.memory_space<vmem>>, vector<1x256x72xbf16>
    %1 = vector.shape_cast %0 : vector<1x256x72xbf16> to vector<256x72xbf16>
    %c0_2 = arith.constant 0 : index
    %c0_3 = arith.constant 0 : index
    %c0_4 = arith.constant 0 : index
    %2 = vector.load %arg2[%c0_2, %c0_3, %c0_4] : memref<4x72x8xbf16, #tpu.memory_space<vmem>>, vector<1x72x8xbf16>
    %3 = vector.shape_cast %2 : vector<1x72x8xbf16> to vector<72x8xbf16>
    %cst = arith.constant dense<0.000000e+00> : vector<256x8xf32>
    %4 = tpu.matmul %1, %3, %cst {dimension_numbers = #tpu.dot_dimension_numbers<[1], [0], [0], [1], [0, 0, 1, 1], [], []>} : vector<256x72xbf16>, vector<72x8xbf16>, vector<256x8xf32> -> vector<256x8xf32>
    %c1 = arith.constant 1 : index
    %c0_5 = arith.constant 0 : index
    %c0_6 = arith.constant 0 : index
    %5 = vector.load %arg1[%c1, %c0_5, %c0_6] : memref<4x256x72xbf16, #tpu.memory_space<vmem>>, vector<1x256x72xbf16>
    %6 = vector.shape_cast %5 : vector<1x256x72xbf16> to vector<256x72xbf16>
    %c1_7 = arith.constant 1 : index
    %c0_8 = arith.constant 0 : index
    %c0_9 = arith.constant 0 : index
    %7 = vector.load %arg2[%c1_7, %c0_8, %c0_9] : memref<4x72x8xbf16, #tpu.memory_space<vmem>>, vector<1x72x8xbf16>
    %8 = vector.shape_cast %7 : vector<1x72x8xbf16> to vector<72x8xbf16>
    %cst_10 = arith.constant dense<0.000000e+00> : vector<256x8xf32>
    %9 = tpu.matmul %6, %8, %cst_10 {dimension_numbers = #tpu.dot_dimension_numbers<[1], [0], [0], [1], [0, 0, 1, 1], [], []>} : vector<256x72xbf16>, vector<72x8xbf16>, vector<256x8xf32> -> vector<256x8xf32>
    %c2 = arith.constant 2 : index
    %c0_11 = arith.constant 0 : index
    %c0_12 = arith.constant 0 : index
    %10 = vector.load %arg1[%c2, %c0_11, %c0_12] : memref<4x256x72xbf16, #tpu.memory_space<vmem>>, vector<1x256x72xbf16>
    %11 = vector.shape_cast %10 : vector<1x256x72xbf16> to vector<256x72xbf16>
    %c2_13 = arith.constant 2 : index
    %c0_14 = arith.constant 0 : index
    %c0_15 = arith.constant 0 : index
    %12 = vector.load %arg2[%c2_13, %c0_14, %c0_15] : memref<4x72x8xbf16, #tpu.memory_space<vmem>>, vector<1x72x8xbf16>
    %13 = vector.shape_cast %12 : vector<1x72x8xbf16> to vector<72x8xbf16>
    %cst_16 = arith.constant dense<0.000000e+00> : vector<256x8xf32>
    %14 = tpu.matmul %11, %13, %cst_16 {dimension_numbers = #tpu.dot_dimension_numbers<[1], [0], [0], [1], [0, 0, 1, 1], [], []>} : vector<256x72xbf16>, vector<72x8xbf16>, vector<256x8xf32> -> vector<256x8xf32>
    %c3 = arith.constant 3 : index
    %c0_17 = arith.constant 0 : index
    %c0_18 = arith.constant 0 : index
    %15 = vector.load %arg1[%c3, %c0_17, %c0_18] : memref<4x256x72xbf16, #tpu.memory_space<vmem>>, vector<1x256x72xbf16>
    %16 = vector.shape_cast %15 : vector<1x256x72xbf16> to vector<256x72xbf16>
    %c3_19 = arith.constant 3 : index
    %c0_20 = arith.constant 0 : index
    %c0_21 = arith.constant 0 : index
    %17 = vector.load %arg2[%c3_19, %c0_20, %c0_21] : memref<4x72x8xbf16, #tpu.memory_space<vmem>>, vector<1x72x8xbf16>
    %18 = vector.shape_cast %17 : vector<1x72x8xbf16> to vector<72x8xbf16>
    %cst_22 = arith.constant dense<0.000000e+00> : vector<256x8xf32>
    %19 = tpu.matmul %16, %18, %cst_22 {dimension_numbers = #tpu.dot_dimension_numbers<[1], [0], [0], [1], [0, 0, 1, 1], [], []>} : vector<256x72xbf16>, vector<72x8xbf16>, vector<256x8xf32> -> vector<256x8xf32>
    %20 = vector.extract_strided_slice %4 {offsets = [0, 0], sizes = [64, 8], strides = [1, 1]} : vector<256x8xf32> to vector<64x8xf32>
    %21 = vector.extract_strided_slice %9 {offsets = [0, 0], sizes = [64, 8], strides = [1, 1]} : vector<256x8xf32> to vector<64x8xf32>
    %22 = vector.extract_strided_slice %14 {offsets = [0, 0], sizes = [64, 8], strides = [1, 1]} : vector<256x8xf32> to vector<64x8xf32>
    %23 = vector.extract_strided_slice %19 {offsets = [0, 0], sizes = [64, 8], strides = [1, 1]} : vector<256x8xf32> to vector<64x8xf32>
    %24 = vector.extract_strided_slice %4 {offsets = [64, 0], sizes = [64, 8], strides = [1, 1]} : vector<256x8xf32> to vector<64x8xf32>
    %25 = vector.extract_strided_slice %9 {offsets = [64, 0], sizes = [64, 8], strides = [1, 1]} : vector<256x8xf32> to vector<64x8xf32>
    %26 = vector.extract_strided_slice %14 {offsets = [64, 0], sizes = [64, 8], strides = [1, 1]} : vector<256x8xf32> to vector<64x8xf32>
    %27 = vector.extract_strided_slice %19 {offsets = [64, 0], sizes = [64, 8], strides = [1, 1]} : vector<256x8xf32> to vector<64x8xf32>
    %28 = vector.extract_strided_slice %4 {offsets = [128, 0], sizes = [64, 8], strides = [1, 1]} : vector<256x8xf32> to vector<64x8xf32>
    %29 = vector.extract_strided_slice %9 {offsets = [128, 0], sizes = [64, 8], strides = [1, 1]} : vector<256x8xf32> to vector<64x8xf32>
    %30 = vector.extract_strided_slice %14 {offsets = [128, 0], sizes = [64, 8], strides = [1, 1]} : vector<256x8xf32> to vector<64x8xf32>
    %31 = vector.extract_strided_slice %19 {offsets = [128, 0], sizes = [64, 8], strides = [1, 1]} : vector<256x8xf32> to vector<64x8xf32>
    %32 = vector.extract_strided_slice %4 {offsets = [192, 0], sizes = [64, 8], strides = [1, 1]} : vector<256x8xf32> to vector<64x8xf32>
    %33 = vector.extract_strided_slice %9 {offsets = [192, 0], sizes = [64, 8], strides = [1, 1]} : vector<256x8xf32> to vector<64x8xf32>
    %34 = vector.extract_strided_slice %14 {offsets = [192, 0], sizes = [64, 8], strides = [1, 1]} : vector<256x8xf32> to vector<64x8xf32>
    %35 = vector.extract_strided_slice %19 {offsets = [192, 0], sizes = [64, 8], strides = [1, 1]} : vector<256x8xf32> to vector<64x8xf32>
    %36 = tpu.concatenate %20, %21, %22, %23, %24, %25, %26, %27, %28, %29, %30, %31, %32, %33, %34, %35 in 1 : vector<64x8xf32>, vector<64x8xf32>, vector<64x8xf32>, vector<64x8xf32>, vector<64x8xf32>, vector<64x8xf32>, vector<64x8xf32>, vector<64x8xf32>, vector<64x8xf32>, vector<64x8xf32>, vector<64x8xf32>, vector<64x8xf32>, vector<64x8xf32>, vector<64x8xf32>, vector<64x8xf32>, vector<64x8xf32> -> vector<64x128xf32>
    %c0_23 = arith.constant 0 : index
    %c0_24 = arith.constant 0 : index
    %37 = vector.load %arg3[%c0_23, %c0_24] : memref<1x128xf32, #tpu.memory_space<vmem>>, vector<1x128xf32>
    %38 = vector.broadcast %37 : vector<1x128xf32> to vector<64x128xf32>
    %39 = arith.addf %36, %38 : vector<64x128xf32>
    %40 = arith.negf %39 : vector<64x128xf32>
    %41 = math.exp %40 : vector<64x128xf32>
    %cst_25 = arith.constant 1.000000e+00 : f32
    %42 = vector.broadcast %cst_25 : f32 to vector<64x128xf32>
    %43 = arith.addf %42, %41 : vector<64x128xf32>
    %44 = arith.divf %42, %43 : vector<64x128xf32>
    %45 = arith.mulf %39, %44 : vector<64x128xf32>
    %c0_26 = arith.constant 0 : index
    %c0_27 = arith.constant 0 : index
    %46 = vector.load %arg4[%c0_26, %c0_27] : memref<64x128xf32, #tpu.memory_space<vmem>>, vector<64x128xf32>
    tpu.vector_store %arg4[%c0_26, %c0_27], %45 {strides = array<i32>} : memref<64x128xf32, #tpu.memory_space<vmem>>, vector<64x128xf32>,
    return
  }
  func.func @transform_0(%arg0: i32) -> (i32, i32, i32) {
    %c0_i32 = arith.constant 0 : i32
    %c0_i32_0 = arith.constant 0 : i32
    %c0_i32_1 = arith.constant 0 : i32
    return %c0_i32, %arg0, %c0_i32_0 : i32, i32, i32
  }
  func.func @transform_1(%arg0: i32) -> (i32, i32, i32) {
    %c0_i32 = arith.constant 0 : i32
    %c0_i32_0 = arith.constant 0 : i32
    %c0_i32_1 = arith.constant 0 : i32
    %c0_i32_2 = arith.constant 0 : i32
    return %c0_i32, %c0_i32_0, %c0_i32_1 : i32, i32, i32
  }
  func.func @transform_2(%arg0: i32) -> (i32, i32) {
    %c0_i32 = arith.constant 0 : i32
    %c0_i32_0 = arith.constant 0 : i32
    %c0_i32_1 = arith.constant 0 : i32
    return %c0_i32, %c0_i32_0 : i32, i32
  }
  func.func @transform_3(%arg0: i32) -> (i32, i32) {
    %c0_i32 = arith.constant 0 : i32
    %c0_i32_0 = arith.constant 0 : i32
    return %arg0, %c0_i32 : i32, i32
  }
}

module attributes {stable_mosaic.version = 11 : i64} {
  func.func @kernel(%arg0: i32, %arg1: memref<9x32x128xf32, #tpu.memory_space<vmem>>, %arg2: memref<32x128xf32, #tpu.memory_space<vmem>>) attributes {dimension_semantics = [#tpu.dimension_semantics<parallel>], iteration_bounds = array<i64: 1>, scalar_prefetch = 0 : i64, scratch_operands = 0 : i64, tpu.core_type = #tpu.core_type<tc>, window_params = [{transform_indices = @transform_0, window_bounds = array<i64: 9, 32, 128>}, {transform_indices = @transform_1, window_bounds = array<i64: 32, 128>}]} {
    %c0 = arith.constant 0 : index
    %c0_0 = arith.constant 0 : index
    %c0_1 = arith.constant 0 : index
    %0 = vector.load %arg1[%c0, %c0_0, %c0_1] : memref<9x32x128xf32, #tpu.memory_space<vmem>>, vector<1x32x128xf32>
    %1 = vector.shape_cast %0 : vector<1x32x128xf32> to vector<32x128xf32>
    %c1 = arith.constant 1 : index
    %c0_2 = arith.constant 0 : index
    %c0_3 = arith.constant 0 : index
    %2 = vector.load %arg1[%c1, %c0_2, %c0_3] : memref<9x32x128xf32, #tpu.memory_space<vmem>>, vector<1x32x128xf32>
    %3 = vector.shape_cast %2 : vector<1x32x128xf32> to vector<32x128xf32>
    %4 = arith.addf %1, %3 : vector<32x128xf32>
    %c2 = arith.constant 2 : index
    %c0_4 = arith.constant 0 : index
    %c0_5 = arith.constant 0 : index
    %5 = vector.load %arg1[%c2, %c0_4, %c0_5] : memref<9x32x128xf32, #tpu.memory_space<vmem>>, vector<1x32x128xf32>
    %6 = vector.shape_cast %5 : vector<1x32x128xf32> to vector<32x128xf32>
    %7 = arith.addf %4, %6 : vector<32x128xf32>
    %c3 = arith.constant 3 : index
    %c0_6 = arith.constant 0 : index
    %c0_7 = arith.constant 0 : index
    %8 = vector.load %arg1[%c3, %c0_6, %c0_7] : memref<9x32x128xf32, #tpu.memory_space<vmem>>, vector<1x32x128xf32>
    %9 = vector.shape_cast %8 : vector<1x32x128xf32> to vector<32x128xf32>
    %10 = arith.addf %7, %9 : vector<32x128xf32>
    %c4 = arith.constant 4 : index
    %c0_8 = arith.constant 0 : index
    %c0_9 = arith.constant 0 : index
    %11 = vector.load %arg1[%c4, %c0_8, %c0_9] : memref<9x32x128xf32, #tpu.memory_space<vmem>>, vector<1x32x128xf32>
    %12 = vector.shape_cast %11 : vector<1x32x128xf32> to vector<32x128xf32>
    %13 = arith.addf %10, %12 : vector<32x128xf32>
    %c5 = arith.constant 5 : index
    %c0_10 = arith.constant 0 : index
    %c0_11 = arith.constant 0 : index
    %14 = vector.load %arg1[%c5, %c0_10, %c0_11] : memref<9x32x128xf32, #tpu.memory_space<vmem>>, vector<1x32x128xf32>
    %15 = vector.shape_cast %14 : vector<1x32x128xf32> to vector<32x128xf32>
    %16 = arith.addf %13, %15 : vector<32x128xf32>
    %c6 = arith.constant 6 : index
    %c0_12 = arith.constant 0 : index
    %c0_13 = arith.constant 0 : index
    %17 = vector.load %arg1[%c6, %c0_12, %c0_13] : memref<9x32x128xf32, #tpu.memory_space<vmem>>, vector<1x32x128xf32>
    %18 = vector.shape_cast %17 : vector<1x32x128xf32> to vector<32x128xf32>
    %19 = arith.addf %16, %18 : vector<32x128xf32>
    %c7 = arith.constant 7 : index
    %c0_14 = arith.constant 0 : index
    %c0_15 = arith.constant 0 : index
    %20 = vector.load %arg1[%c7, %c0_14, %c0_15] : memref<9x32x128xf32, #tpu.memory_space<vmem>>, vector<1x32x128xf32>
    %21 = vector.shape_cast %20 : vector<1x32x128xf32> to vector<32x128xf32>
    %22 = arith.addf %19, %21 : vector<32x128xf32>
    %c8 = arith.constant 8 : index
    %c0_16 = arith.constant 0 : index
    %c0_17 = arith.constant 0 : index
    %23 = vector.load %arg1[%c8, %c0_16, %c0_17] : memref<9x32x128xf32, #tpu.memory_space<vmem>>, vector<1x32x128xf32>
    %24 = vector.shape_cast %23 : vector<1x32x128xf32> to vector<32x128xf32>
    %25 = arith.addf %22, %24 : vector<32x128xf32>
    %cst = arith.constant 0.111111112 : f32
    %26 = vector.broadcast %cst : f32 to vector<32x128xf32>
    %27 = arith.mulf %25, %26 : vector<32x128xf32>
    %c0_18 = arith.constant 0 : index
    %c0_19 = arith.constant 0 : index
    %28 = vector.load %arg2[%c0_18, %c0_19] : memref<32x128xf32, #tpu.memory_space<vmem>>, vector<32x128xf32>
    tpu.vector_store %arg2[%c0_18, %c0_19], %27 {strides = array<i32>} : memref<32x128xf32, #tpu.memory_space<vmem>>, vector<32x128xf32>,
    return
  }
  func.func @transform_0(%arg0: i32) -> (i32, i32, i32) {
    %c0_i32 = arith.constant 0 : i32
    %c0_i32_0 = arith.constant 0 : i32
    %c0_i32_1 = arith.constant 0 : i32
    return %c0_i32, %arg0, %c0_i32_0 : i32, i32, i32
  }
  func.func @transform_1(%arg0: i32) -> (i32, i32) {
    %c0_i32 = arith.constant 0 : i32
    %c0_i32_0 = arith.constant 0 : i32
    return %arg0, %c0_i32 : i32, i32
  }
}

module attributes {stable_mosaic.version = 11 : i64} {
  func.func @kernel(%arg0: i32, %arg1: memref<4x128x72xbf16, #tpu.memory_space<vmem>>, %arg2: memref<4x72x2xbf16, #tpu.memory_space<vmem>>, %arg3: memref<1x128xf32, #tpu.memory_space<vmem>>, %arg4: memref<8x128xf32, #tpu.memory_space<vmem>>) attributes {dimension_semantics = [#tpu.dimension_semantics<parallel>], iteration_bounds = array<i64: 1>, scalar_prefetch = 0 : i64, scratch_operands = 0 : i64, tpu.core_type = #tpu.core_type<tc>, window_params = [{transform_indices = @transform_0, window_bounds = array<i64: 4, 128, 72>}, {pipeline_mode = #tpu.pipeline_mode<synchronous>, transform_indices = @transform_1, window_bounds = array<i64: 4, 72, 2>}, {pipeline_mode = #tpu.pipeline_mode<synchronous>, transform_indices = @transform_2, window_bounds = array<i64: 1, 128>}, {transform_indices = @transform_3, window_bounds = array<i64: 8, 128>}]} {
    %c0 = arith.constant 0 : index
    %c0_0 = arith.constant 0 : index
    %c0_1 = arith.constant 0 : index
    %0 = vector.load %arg1[%c0, %c0_0, %c0_1] : memref<4x128x72xbf16, #tpu.memory_space<vmem>>, vector<1x128x72xbf16>
    %1 = vector.shape_cast %0 : vector<1x128x72xbf16> to vector<128x72xbf16>
    %c0_2 = arith.constant 0 : index
    %c0_3 = arith.constant 0 : index
    %c0_4 = arith.constant 0 : index
    %2 = vector.load %arg2[%c0_2, %c0_3, %c0_4] : memref<4x72x2xbf16, #tpu.memory_space<vmem>>, vector<1x72x2xbf16>
    %3 = vector.shape_cast %2 : vector<1x72x2xbf16> to vector<72x2xbf16>
    %cst = arith.constant dense<0.000000e+00> : vector<128x2xf32>
    %4 = tpu.matmul %1, %3, %cst {dimension_numbers = #tpu.dot_dimension_numbers<[1], [0], [0], [1], [0, 0, 1, 1], [], []>} : vector<128x72xbf16>, vector<72x2xbf16>, vector<128x2xf32> -> vector<128x2xf32>
    %c1 = arith.constant 1 : index
    %c0_5 = arith.constant 0 : index
    %c0_6 = arith.constant 0 : index
    %5 = vector.load %arg1[%c1, %c0_5, %c0_6] : memref<4x128x72xbf16, #tpu.memory_space<vmem>>, vector<1x128x72xbf16>
    %6 = vector.shape_cast %5 : vector<1x128x72xbf16> to vector<128x72xbf16>
    %c1_7 = arith.constant 1 : index
    %c0_8 = arith.constant 0 : index
    %c0_9 = arith.constant 0 : index
    %7 = vector.load %arg2[%c1_7, %c0_8, %c0_9] : memref<4x72x2xbf16, #tpu.memory_space<vmem>>, vector<1x72x2xbf16>
    %8 = vector.shape_cast %7 : vector<1x72x2xbf16> to vector<72x2xbf16>
    %cst_10 = arith.constant dense<0.000000e+00> : vector<128x2xf32>
    %9 = tpu.matmul %6, %8, %cst_10 {dimension_numbers = #tpu.dot_dimension_numbers<[1], [0], [0], [1], [0, 0, 1, 1], [], []>} : vector<128x72xbf16>, vector<72x2xbf16>, vector<128x2xf32> -> vector<128x2xf32>
    %c2 = arith.constant 2 : index
    %c0_11 = arith.constant 0 : index
    %c0_12 = arith.constant 0 : index
    %10 = vector.load %arg1[%c2, %c0_11, %c0_12] : memref<4x128x72xbf16, #tpu.memory_space<vmem>>, vector<1x128x72xbf16>
    %11 = vector.shape_cast %10 : vector<1x128x72xbf16> to vector<128x72xbf16>
    %c2_13 = arith.constant 2 : index
    %c0_14 = arith.constant 0 : index
    %c0_15 = arith.constant 0 : index
    %12 = vector.load %arg2[%c2_13, %c0_14, %c0_15] : memref<4x72x2xbf16, #tpu.memory_space<vmem>>, vector<1x72x2xbf16>
    %13 = vector.shape_cast %12 : vector<1x72x2xbf16> to vector<72x2xbf16>
    %cst_16 = arith.constant dense<0.000000e+00> : vector<128x2xf32>
    %14 = tpu.matmul %11, %13, %cst_16 {dimension_numbers = #tpu.dot_dimension_numbers<[1], [0], [0], [1], [0, 0, 1, 1], [], []>} : vector<128x72xbf16>, vector<72x2xbf16>, vector<128x2xf32> -> vector<128x2xf32>
    %c3 = arith.constant 3 : index
    %c0_17 = arith.constant 0 : index
    %c0_18 = arith.constant 0 : index
    %15 = vector.load %arg1[%c3, %c0_17, %c0_18] : memref<4x128x72xbf16, #tpu.memory_space<vmem>>, vector<1x128x72xbf16>
    %16 = vector.shape_cast %15 : vector<1x128x72xbf16> to vector<128x72xbf16>
    %c3_19 = arith.constant 3 : index
    %c0_20 = arith.constant 0 : index
    %c0_21 = arith.constant 0 : index
    %17 = vector.load %arg2[%c3_19, %c0_20, %c0_21] : memref<4x72x2xbf16, #tpu.memory_space<vmem>>, vector<1x72x2xbf16>
    %18 = vector.shape_cast %17 : vector<1x72x2xbf16> to vector<72x2xbf16>
    %cst_22 = arith.constant dense<0.000000e+00> : vector<128x2xf32>
    %19 = tpu.matmul %16, %18, %cst_22 {dimension_numbers = #tpu.dot_dimension_numbers<[1], [0], [0], [1], [0, 0, 1, 1], [], []>} : vector<128x72xbf16>, vector<72x2xbf16>, vector<128x2xf32> -> vector<128x2xf32>
    %20 = vector.extract_strided_slice %4 {offsets = [0, 0], sizes = [8, 2], strides = [1, 1]} : vector<128x2xf32> to vector<8x2xf32>
    %21 = vector.extract_strided_slice %9 {offsets = [0, 0], sizes = [8, 2], strides = [1, 1]} : vector<128x2xf32> to vector<8x2xf32>
    %22 = vector.extract_strided_slice %14 {offsets = [0, 0], sizes = [8, 2], strides = [1, 1]} : vector<128x2xf32> to vector<8x2xf32>
    %23 = vector.extract_strided_slice %19 {offsets = [0, 0], sizes = [8, 2], strides = [1, 1]} : vector<128x2xf32> to vector<8x2xf32>
    %24 = vector.extract_strided_slice %4 {offsets = [8, 0], sizes = [8, 2], strides = [1, 1]} : vector<128x2xf32> to vector<8x2xf32>
    %25 = vector.extract_strided_slice %9 {offsets = [8, 0], sizes = [8, 2], strides = [1, 1]} : vector<128x2xf32> to vector<8x2xf32>
    %26 = vector.extract_strided_slice %14 {offsets = [8, 0], sizes = [8, 2], strides = [1, 1]} : vector<128x2xf32> to vector<8x2xf32>
    %27 = vector.extract_strided_slice %19 {offsets = [8, 0], sizes = [8, 2], strides = [1, 1]} : vector<128x2xf32> to vector<8x2xf32>
    %28 = vector.extract_strided_slice %4 {offsets = [16, 0], sizes = [8, 2], strides = [1, 1]} : vector<128x2xf32> to vector<8x2xf32>
    %29 = vector.extract_strided_slice %9 {offsets = [16, 0], sizes = [8, 2], strides = [1, 1]} : vector<128x2xf32> to vector<8x2xf32>
    %30 = vector.extract_strided_slice %14 {offsets = [16, 0], sizes = [8, 2], strides = [1, 1]} : vector<128x2xf32> to vector<8x2xf32>
    %31 = vector.extract_strided_slice %19 {offsets = [16, 0], sizes = [8, 2], strides = [1, 1]} : vector<128x2xf32> to vector<8x2xf32>
    %32 = vector.extract_strided_slice %4 {offsets = [24, 0], sizes = [8, 2], strides = [1, 1]} : vector<128x2xf32> to vector<8x2xf32>
    %33 = vector.extract_strided_slice %9 {offsets = [24, 0], sizes = [8, 2], strides = [1, 1]} : vector<128x2xf32> to vector<8x2xf32>
    %34 = vector.extract_strided_slice %14 {offsets = [24, 0], sizes = [8, 2], strides = [1, 1]} : vector<128x2xf32> to vector<8x2xf32>
    %35 = vector.extract_strided_slice %19 {offsets = [24, 0], sizes = [8, 2], strides = [1, 1]} : vector<128x2xf32> to vector<8x2xf32>
    %36 = vector.extract_strided_slice %4 {offsets = [32, 0], sizes = [8, 2], strides = [1, 1]} : vector<128x2xf32> to vector<8x2xf32>
    %37 = vector.extract_strided_slice %9 {offsets = [32, 0], sizes = [8, 2], strides = [1, 1]} : vector<128x2xf32> to vector<8x2xf32>
    %38 = vector.extract_strided_slice %14 {offsets = [32, 0], sizes = [8, 2], strides = [1, 1]} : vector<128x2xf32> to vector<8x2xf32>
    %39 = vector.extract_strided_slice %19 {offsets = [32, 0], sizes = [8, 2], strides = [1, 1]} : vector<128x2xf32> to vector<8x2xf32>
    %40 = vector.extract_strided_slice %4 {offsets = [40, 0], sizes = [8, 2], strides = [1, 1]} : vector<128x2xf32> to vector<8x2xf32>
    %41 = vector.extract_strided_slice %9 {offsets = [40, 0], sizes = [8, 2], strides = [1, 1]} : vector<128x2xf32> to vector<8x2xf32>
    %42 = vector.extract_strided_slice %14 {offsets = [40, 0], sizes = [8, 2], strides = [1, 1]} : vector<128x2xf32> to vector<8x2xf32>
    %43 = vector.extract_strided_slice %19 {offsets = [40, 0], sizes = [8, 2], strides = [1, 1]} : vector<128x2xf32> to vector<8x2xf32>
    %44 = vector.extract_strided_slice %4 {offsets = [48, 0], sizes = [8, 2], strides = [1, 1]} : vector<128x2xf32> to vector<8x2xf32>
    %45 = vector.extract_strided_slice %9 {offsets = [48, 0], sizes = [8, 2], strides = [1, 1]} : vector<128x2xf32> to vector<8x2xf32>
    %46 = vector.extract_strided_slice %14 {offsets = [48, 0], sizes = [8, 2], strides = [1, 1]} : vector<128x2xf32> to vector<8x2xf32>
    %47 = vector.extract_strided_slice %19 {offsets = [48, 0], sizes = [8, 2], strides = [1, 1]} : vector<128x2xf32> to vector<8x2xf32>
    %48 = vector.extract_strided_slice %4 {offsets = [56, 0], sizes = [8, 2], strides = [1, 1]} : vector<128x2xf32> to vector<8x2xf32>
    %49 = vector.extract_strided_slice %9 {offsets = [56, 0], sizes = [8, 2], strides = [1, 1]} : vector<128x2xf32> to vector<8x2xf32>
    %50 = vector.extract_strided_slice %14 {offsets = [56, 0], sizes = [8, 2], strides = [1, 1]} : vector<128x2xf32> to vector<8x2xf32>
    %51 = vector.extract_strided_slice %19 {offsets = [56, 0], sizes = [8, 2], strides = [1, 1]} : vector<128x2xf32> to vector<8x2xf32>
    %52 = vector.extract_strided_slice %4 {offsets = [64, 0], sizes = [8, 2], strides = [1, 1]} : vector<128x2xf32> to vector<8x2xf32>
    %53 = vector.extract_strided_slice %9 {offsets = [64, 0], sizes = [8, 2], strides = [1, 1]} : vector<128x2xf32> to vector<8x2xf32>
    %54 = vector.extract_strided_slice %14 {offsets = [64, 0], sizes = [8, 2], strides = [1, 1]} : vector<128x2xf32> to vector<8x2xf32>
    %55 = vector.extract_strided_slice %19 {offsets = [64, 0], sizes = [8, 2], strides = [1, 1]} : vector<128x2xf32> to vector<8x2xf32>
    %56 = vector.extract_strided_slice %4 {offsets = [72, 0], sizes = [8, 2], strides = [1, 1]} : vector<128x2xf32> to vector<8x2xf32>
    %57 = vector.extract_strided_slice %9 {offsets = [72, 0], sizes = [8, 2], strides = [1, 1]} : vector<128x2xf32> to vector<8x2xf32>
    %58 = vector.extract_strided_slice %14 {offsets = [72, 0], sizes = [8, 2], strides = [1, 1]} : vector<128x2xf32> to vector<8x2xf32>
    %59 = vector.extract_strided_slice %19 {offsets = [72, 0], sizes = [8, 2], strides = [1, 1]} : vector<128x2xf32> to vector<8x2xf32>
    %60 = vector.extract_strided_slice %4 {offsets = [80, 0], sizes = [8, 2], strides = [1, 1]} : vector<128x2xf32> to vector<8x2xf32>
    %61 = vector.extract_strided_slice %9 {offsets = [80, 0], sizes = [8, 2], strides = [1, 1]} : vector<128x2xf32> to vector<8x2xf32>
    %62 = vector.extract_strided_slice %14 {offsets = [80, 0], sizes = [8, 2], strides = [1, 1]} : vector<128x2xf32> to vector<8x2xf32>
    %63 = vector.extract_strided_slice %19 {offsets = [80, 0], sizes = [8, 2], strides = [1, 1]} : vector<128x2xf32> to vector<8x2xf32>
    %64 = vector.extract_strided_slice %4 {offsets = [88, 0], sizes = [8, 2], strides = [1, 1]} : vector<128x2xf32> to vector<8x2xf32>
    %65 = vector.extract_strided_slice %9 {offsets = [88, 0], sizes = [8, 2], strides = [1, 1]} : vector<128x2xf32> to vector<8x2xf32>
    %66 = vector.extract_strided_slice %14 {offsets = [88, 0], sizes = [8, 2], strides = [1, 1]} : vector<128x2xf32> to vector<8x2xf32>
    %67 = vector.extract_strided_slice %19 {offsets = [88, 0], sizes = [8, 2], strides = [1, 1]} : vector<128x2xf32> to vector<8x2xf32>
    %68 = vector.extract_strided_slice %4 {offsets = [96, 0], sizes = [8, 2], strides = [1, 1]} : vector<128x2xf32> to vector<8x2xf32>
    %69 = vector.extract_strided_slice %9 {offsets = [96, 0], sizes = [8, 2], strides = [1, 1]} : vector<128x2xf32> to vector<8x2xf32>
    %70 = vector.extract_strided_slice %14 {offsets = [96, 0], sizes = [8, 2], strides = [1, 1]} : vector<128x2xf32> to vector<8x2xf32>
    %71 = vector.extract_strided_slice %19 {offsets = [96, 0], sizes = [8, 2], strides = [1, 1]} : vector<128x2xf32> to vector<8x2xf32>
    %72 = vector.extract_strided_slice %4 {offsets = [104, 0], sizes = [8, 2], strides = [1, 1]} : vector<128x2xf32> to vector<8x2xf32>
    %73 = vector.extract_strided_slice %9 {offsets = [104, 0], sizes = [8, 2], strides = [1, 1]} : vector<128x2xf32> to vector<8x2xf32>
    %74 = vector.extract_strided_slice %14 {offsets = [104, 0], sizes = [8, 2], strides = [1, 1]} : vector<128x2xf32> to vector<8x2xf32>
    %75 = vector.extract_strided_slice %19 {offsets = [104, 0], sizes = [8, 2], strides = [1, 1]} : vector<128x2xf32> to vector<8x2xf32>
    %76 = vector.extract_strided_slice %4 {offsets = [112, 0], sizes = [8, 2], strides = [1, 1]} : vector<128x2xf32> to vector<8x2xf32>
    %77 = vector.extract_strided_slice %9 {offsets = [112, 0], sizes = [8, 2], strides = [1, 1]} : vector<128x2xf32> to vector<8x2xf32>
    %78 = vector.extract_strided_slice %14 {offsets = [112, 0], sizes = [8, 2], strides = [1, 1]} : vector<128x2xf32> to vector<8x2xf32>
    %79 = vector.extract_strided_slice %19 {offsets = [112, 0], sizes = [8, 2], strides = [1, 1]} : vector<128x2xf32> to vector<8x2xf32>
    %80 = vector.extract_strided_slice %4 {offsets = [120, 0], sizes = [8, 2], strides = [1, 1]} : vector<128x2xf32> to vector<8x2xf32>
    %81 = vector.extract_strided_slice %9 {offsets = [120, 0], sizes = [8, 2], strides = [1, 1]} : vector<128x2xf32> to vector<8x2xf32>
    %82 = vector.extract_strided_slice %14 {offsets = [120, 0], sizes = [8, 2], strides = [1, 1]} : vector<128x2xf32> to vector<8x2xf32>
    %83 = vector.extract_strided_slice %19 {offsets = [120, 0], sizes = [8, 2], strides = [1, 1]} : vector<128x2xf32> to vector<8x2xf32>
    %84 = tpu.concatenate %20, %21, %22, %23, %24, %25, %26, %27, %28, %29, %30, %31, %32, %33, %34, %35 in 1 : vector<8x2xf32>, vector<8x2xf32>, vector<8x2xf32>, vector<8x2xf32>, vector<8x2xf32>, vector<8x2xf32>, vector<8x2xf32>, vector<8x2xf32>, vector<8x2xf32>, vector<8x2xf32>, vector<8x2xf32>, vector<8x2xf32>, vector<8x2xf32>, vector<8x2xf32>, vector<8x2xf32>, vector<8x2xf32> -> vector<8x32xf32>
    %85 = tpu.concatenate %36, %37, %38, %39, %40, %41, %42, %43, %44, %45, %46, %47, %48, %49, %50, %51 in 1 : vector<8x2xf32>, vector<8x2xf32>, vector<8x2xf32>, vector<8x2xf32>, vector<8x2xf32>, vector<8x2xf32>, vector<8x2xf32>, vector<8x2xf32>, vector<8x2xf32>, vector<8x2xf32>, vector<8x2xf32>, vector<8x2xf32>, vector<8x2xf32>, vector<8x2xf32>, vector<8x2xf32>, vector<8x2xf32> -> vector<8x32xf32>
    %86 = tpu.concatenate %52, %53, %54, %55, %56, %57, %58, %59, %60, %61, %62, %63, %64, %65, %66, %67 in 1 : vector<8x2xf32>, vector<8x2xf32>, vector<8x2xf32>, vector<8x2xf32>, vector<8x2xf32>, vector<8x2xf32>, vector<8x2xf32>, vector<8x2xf32>, vector<8x2xf32>, vector<8x2xf32>, vector<8x2xf32>, vector<8x2xf32>, vector<8x2xf32>, vector<8x2xf32>, vector<8x2xf32>, vector<8x2xf32> -> vector<8x32xf32>
    %87 = tpu.concatenate %68, %69, %70, %71, %72, %73, %74, %75, %76, %77, %78, %79, %80, %81, %82, %83 in 1 : vector<8x2xf32>, vector<8x2xf32>, vector<8x2xf32>, vector<8x2xf32>, vector<8x2xf32>, vector<8x2xf32>, vector<8x2xf32>, vector<8x2xf32>, vector<8x2xf32>, vector<8x2xf32>, vector<8x2xf32>, vector<8x2xf32>, vector<8x2xf32>, vector<8x2xf32>, vector<8x2xf32>, vector<8x2xf32> -> vector<8x32xf32>
    %88 = tpu.concatenate %84, %85, %86, %87 in 1 : vector<8x32xf32>, vector<8x32xf32>, vector<8x32xf32>, vector<8x32xf32> -> vector<8x128xf32>
    %c0_23 = arith.constant 0 : index
    %c0_24 = arith.constant 0 : index
    %89 = vector.load %arg3[%c0_23, %c0_24] : memref<1x128xf32, #tpu.memory_space<vmem>>, vector<1x128xf32>
    %90 = vector.broadcast %89 : vector<1x128xf32> to vector<8x128xf32>
    %91 = arith.addf %88, %90 : vector<8x128xf32>
    %92 = arith.negf %91 : vector<8x128xf32>
    %93 = math.exp %92 : vector<8x128xf32>
    %cst_25 = arith.constant 1.000000e+00 : f32
    %94 = vector.broadcast %cst_25 : f32 to vector<8x128xf32>
    %95 = arith.addf %94, %93 : vector<8x128xf32>
    %96 = arith.divf %94, %95 : vector<8x128xf32>
    %97 = arith.mulf %91, %96 : vector<8x128xf32>
    %c0_26 = arith.constant 0 : index
    %c0_27 = arith.constant 0 : index
    %98 = vector.load %arg4[%c0_26, %c0_27] : memref<8x128xf32, #tpu.memory_space<vmem>>, vector<8x128xf32>
    tpu.vector_store %arg4[%c0_26, %c0_27], %97 {strides = array<i32>} : memref<8x128xf32, #tpu.memory_space<vmem>>, vector<8x128xf32>,
    return
  }
  func.func @transform_0(%arg0: i32) -> (i32, i32, i32) {
    %c0_i32 = arith.constant 0 : i32
    %c0_i32_0 = arith.constant 0 : i32
    %c0_i32_1 = arith.constant 0 : i32
    return %c0_i32, %arg0, %c0_i32_0 : i32, i32, i32
  }
  func.func @transform_1(%arg0: i32) -> (i32, i32, i32) {
    %c0_i32 = arith.constant 0 : i32
    %c0_i32_0 = arith.constant 0 : i32
    %c0_i32_1 = arith.constant 0 : i32
    %c0_i32_2 = arith.constant 0 : i32
    return %c0_i32, %c0_i32_0, %c0_i32_1 : i32, i32, i32
  }
  func.func @transform_2(%arg0: i32) -> (i32, i32) {
    %c0_i32 = arith.constant 0 : i32
    %c0_i32_0 = arith.constant 0 : i32
    %c0_i32_1 = arith.constant 0 : i32
    return %c0_i32, %c0_i32_0 : i32, i32
  }
  func.func @transform_3(%arg0: i32) -> (i32, i32) {
    %c0_i32 = arith.constant 0 : i32
    %c0_i32_0 = arith.constant 0 : i32
    return %arg0, %c0_i32 : i32, i32
  }
}

module attributes {stable_mosaic.version = 11 : i64} {
  func.func @kernel(%arg0: i32, %arg1: memref<1x128x32xbf16, #tpu.memory_space<vmem>>, %arg2: memref<1x32x8xbf16, #tpu.memory_space<vmem>>, %arg3: memref<1x128xf32, #tpu.memory_space<vmem>>, %arg4: memref<8x128xf32, #tpu.memory_space<vmem>>) attributes {dimension_semantics = [#tpu.dimension_semantics<parallel>], iteration_bounds = array<i64: 1>, scalar_prefetch = 0 : i64, scratch_operands = 0 : i64, tpu.core_type = #tpu.core_type<tc>, window_params = [{transform_indices = @transform_0, window_bounds = array<i64: 1, 128, 32>}, {pipeline_mode = #tpu.pipeline_mode<synchronous>, transform_indices = @transform_1, window_bounds = array<i64: 1, 32, 8>}, {pipeline_mode = #tpu.pipeline_mode<synchronous>, transform_indices = @transform_2, window_bounds = array<i64: 1, 128>}, {transform_indices = @transform_3, window_bounds = array<i64: 8, 128>}]} {
    %c0 = arith.constant 0 : index
    %c0_0 = arith.constant 0 : index
    %c0_1 = arith.constant 0 : index
    %0 = vector.load %arg1[%c0, %c0_0, %c0_1] : memref<1x128x32xbf16, #tpu.memory_space<vmem>>, vector<1x128x32xbf16>
    %1 = vector.shape_cast %0 : vector<1x128x32xbf16> to vector<128x32xbf16>
    %c0_2 = arith.constant 0 : index
    %c0_3 = arith.constant 0 : index
    %c0_4 = arith.constant 0 : index
    %2 = vector.load %arg2[%c0_2, %c0_3, %c0_4] : memref<1x32x8xbf16, #tpu.memory_space<vmem>>, vector<1x32x8xbf16>
    %3 = vector.shape_cast %2 : vector<1x32x8xbf16> to vector<32x8xbf16>
    %cst = arith.constant dense<0.000000e+00> : vector<128x8xf32>
    %4 = tpu.matmul %1, %3, %cst {dimension_numbers = #tpu.dot_dimension_numbers<[1], [0], [0], [1], [0, 0, 1, 1], [], []>} : vector<128x32xbf16>, vector<32x8xbf16>, vector<128x8xf32> -> vector<128x8xf32>
    %5 = vector.extract_strided_slice %4 {offsets = [0, 0], sizes = [8, 8], strides = [1, 1]} : vector<128x8xf32> to vector<8x8xf32>
    %6 = vector.extract_strided_slice %4 {offsets = [8, 0], sizes = [8, 8], strides = [1, 1]} : vector<128x8xf32> to vector<8x8xf32>
    %7 = vector.extract_strided_slice %4 {offsets = [16, 0], sizes = [8, 8], strides = [1, 1]} : vector<128x8xf32> to vector<8x8xf32>
    %8 = vector.extract_strided_slice %4 {offsets = [24, 0], sizes = [8, 8], strides = [1, 1]} : vector<128x8xf32> to vector<8x8xf32>
    %9 = vector.extract_strided_slice %4 {offsets = [32, 0], sizes = [8, 8], strides = [1, 1]} : vector<128x8xf32> to vector<8x8xf32>
    %10 = vector.extract_strided_slice %4 {offsets = [40, 0], sizes = [8, 8], strides = [1, 1]} : vector<128x8xf32> to vector<8x8xf32>
    %11 = vector.extract_strided_slice %4 {offsets = [48, 0], sizes = [8, 8], strides = [1, 1]} : vector<128x8xf32> to vector<8x8xf32>
    %12 = vector.extract_strided_slice %4 {offsets = [56, 0], sizes = [8, 8], strides = [1, 1]} : vector<128x8xf32> to vector<8x8xf32>
    %13 = vector.extract_strided_slice %4 {offsets = [64, 0], sizes = [8, 8], strides = [1, 1]} : vector<128x8xf32> to vector<8x8xf32>
    %14 = vector.extract_strided_slice %4 {offsets = [72, 0], sizes = [8, 8], strides = [1, 1]} : vector<128x8xf32> to vector<8x8xf32>
    %15 = vector.extract_strided_slice %4 {offsets = [80, 0], sizes = [8, 8], strides = [1, 1]} : vector<128x8xf32> to vector<8x8xf32>
    %16 = vector.extract_strided_slice %4 {offsets = [88, 0], sizes = [8, 8], strides = [1, 1]} : vector<128x8xf32> to vector<8x8xf32>
    %17 = vector.extract_strided_slice %4 {offsets = [96, 0], sizes = [8, 8], strides = [1, 1]} : vector<128x8xf32> to vector<8x8xf32>
    %18 = vector.extract_strided_slice %4 {offsets = [104, 0], sizes = [8, 8], strides = [1, 1]} : vector<128x8xf32> to vector<8x8xf32>
    %19 = vector.extract_strided_slice %4 {offsets = [112, 0], sizes = [8, 8], strides = [1, 1]} : vector<128x8xf32> to vector<8x8xf32>
    %20 = vector.extract_strided_slice %4 {offsets = [120, 0], sizes = [8, 8], strides = [1, 1]} : vector<128x8xf32> to vector<8x8xf32>
    %21 = tpu.concatenate %5, %6, %7, %8, %9, %10, %11, %12, %13, %14, %15, %16, %17, %18, %19, %20 in 1 : vector<8x8xf32>, vector<8x8xf32>, vector<8x8xf32>, vector<8x8xf32>, vector<8x8xf32>, vector<8x8xf32>, vector<8x8xf32>, vector<8x8xf32>, vector<8x8xf32>, vector<8x8xf32>, vector<8x8xf32>, vector<8x8xf32>, vector<8x8xf32>, vector<8x8xf32>, vector<8x8xf32>, vector<8x8xf32> -> vector<8x128xf32>
    %c0_5 = arith.constant 0 : index
    %c0_6 = arith.constant 0 : index
    %22 = vector.load %arg3[%c0_5, %c0_6] : memref<1x128xf32, #tpu.memory_space<vmem>>, vector<1x128xf32>
    %23 = vector.broadcast %22 : vector<1x128xf32> to vector<8x128xf32>
    %24 = arith.addf %21, %23 : vector<8x128xf32>
    %c0_7 = arith.constant 0 : index
    %c0_8 = arith.constant 0 : index
    %25 = vector.load %arg4[%c0_7, %c0_8] : memref<8x128xf32, #tpu.memory_space<vmem>>, vector<8x128xf32>
    tpu.vector_store %arg4[%c0_7, %c0_8], %24 {strides = array<i32>} : memref<8x128xf32, #tpu.memory_space<vmem>>, vector<8x128xf32>,
    return
  }
  func.func @transform_0(%arg0: i32) -> (i32, i32, i32) {
    %c0_i32 = arith.constant 0 : i32
    %c0_i32_0 = arith.constant 0 : i32
    %c0_i32_1 = arith.constant 0 : i32
    return %c0_i32, %arg0, %c0_i32_0 : i32, i32, i32
  }
  func.func @transform_1(%arg0: i32) -> (i32, i32, i32) {
    %c0_i32 = arith.constant 0 : i32
    %c0_i32_0 = arith.constant 0 : i32
    %c0_i32_1 = arith.constant 0 : i32
    %c0_i32_2 = arith.constant 0 : i32
    return %c0_i32, %c0_i32_0, %c0_i32_1 : i32, i32, i32
  }
  func.func @transform_2(%arg0: i32) -> (i32, i32) {
    %c0_i32 = arith.constant 0 : i32
    %c0_i32_0 = arith.constant 0 : i32
    %c0_i32_1 = arith.constant 0 : i32
    return %c0_i32, %c0_i32_0 : i32, i32
  }
  func.func @transform_3(%arg0: i32) -> (i32, i32) {
    %c0_i32 = arith.constant 0 : i32
    %c0_i32_0 = arith.constant 0 : i32
    return %arg0, %c0_i32 : i32, i32
  }
}

module attributes {stable_mosaic.version = 11 : i64} {
  func.func @kernel(%arg0: i32, %arg1: memref<4x128x18xbf16, #tpu.memory_space<vmem>>, %arg2: memref<4x18x2xbf16, #tpu.memory_space<vmem>>, %arg3: memref<1x128xf32, #tpu.memory_space<vmem>>, %arg4: memref<8x128xf32, #tpu.memory_space<vmem>>, %arg5: memref<8x128xf32, #tpu.memory_space<vmem>>) attributes {dimension_semantics = [#tpu.dimension_semantics<parallel>], iteration_bounds = array<i64: 1>, scalar_prefetch = 0 : i64, scratch_operands = 0 : i64, tpu.core_type = #tpu.core_type<tc>, window_params = [{transform_indices = @transform_0, window_bounds = array<i64: 4, 128, 18>}, {pipeline_mode = #tpu.pipeline_mode<synchronous>, transform_indices = @transform_1, window_bounds = array<i64: 4, 18, 2>}, {pipeline_mode = #tpu.pipeline_mode<synchronous>, transform_indices = @transform_2, window_bounds = array<i64: 1, 128>}, {transform_indices = @transform_3, window_bounds = array<i64: 8, 128>}, {transform_indices = @transform_4, window_bounds = array<i64: 8, 128>}]} {
    %c0 = arith.constant 0 : index
    %c0_0 = arith.constant 0 : index
    %c0_1 = arith.constant 0 : index
    %0 = vector.load %arg1[%c0, %c0_0, %c0_1] : memref<4x128x18xbf16, #tpu.memory_space<vmem>>, vector<1x128x18xbf16>
    %1 = vector.shape_cast %0 : vector<1x128x18xbf16> to vector<128x18xbf16>
    %c0_2 = arith.constant 0 : index
    %c0_3 = arith.constant 0 : index
    %c0_4 = arith.constant 0 : index
    %2 = vector.load %arg2[%c0_2, %c0_3, %c0_4] : memref<4x18x2xbf16, #tpu.memory_space<vmem>>, vector<1x18x2xbf16>
    %3 = vector.shape_cast %2 : vector<1x18x2xbf16> to vector<18x2xbf16>
    %cst = arith.constant dense<0.000000e+00> : vector<128x2xf32>
    %4 = tpu.matmul %1, %3, %cst {dimension_numbers = #tpu.dot_dimension_numbers<[1], [0], [0], [1], [0, 0, 1, 1], [], []>} : vector<128x18xbf16>, vector<18x2xbf16>, vector<128x2xf32> -> vector<128x2xf32>
    %c1 = arith.constant 1 : index
    %c0_5 = arith.constant 0 : index
    %c0_6 = arith.constant 0 : index
    %5 = vector.load %arg1[%c1, %c0_5, %c0_6] : memref<4x128x18xbf16, #tpu.memory_space<vmem>>, vector<1x128x18xbf16>
    %6 = vector.shape_cast %5 : vector<1x128x18xbf16> to vector<128x18xbf16>
    %c1_7 = arith.constant 1 : index
    %c0_8 = arith.constant 0 : index
    %c0_9 = arith.constant 0 : index
    %7 = vector.load %arg2[%c1_7, %c0_8, %c0_9] : memref<4x18x2xbf16, #tpu.memory_space<vmem>>, vector<1x18x2xbf16>
    %8 = vector.shape_cast %7 : vector<1x18x2xbf16> to vector<18x2xbf16>
    %cst_10 = arith.constant dense<0.000000e+00> : vector<128x2xf32>
    %9 = tpu.matmul %6, %8, %cst_10 {dimension_numbers = #tpu.dot_dimension_numbers<[1], [0], [0], [1], [0, 0, 1, 1], [], []>} : vector<128x18xbf16>, vector<18x2xbf16>, vector<128x2xf32> -> vector<128x2xf32>
    %c2 = arith.constant 2 : index
    %c0_11 = arith.constant 0 : index
    %c0_12 = arith.constant 0 : index
    %10 = vector.load %arg1[%c2, %c0_11, %c0_12] : memref<4x128x18xbf16, #tpu.memory_space<vmem>>, vector<1x128x18xbf16>
    %11 = vector.shape_cast %10 : vector<1x128x18xbf16> to vector<128x18xbf16>
    %c2_13 = arith.constant 2 : index
    %c0_14 = arith.constant 0 : index
    %c0_15 = arith.constant 0 : index
    %12 = vector.load %arg2[%c2_13, %c0_14, %c0_15] : memref<4x18x2xbf16, #tpu.memory_space<vmem>>, vector<1x18x2xbf16>
    %13 = vector.shape_cast %12 : vector<1x18x2xbf16> to vector<18x2xbf16>
    %cst_16 = arith.constant dense<0.000000e+00> : vector<128x2xf32>
    %14 = tpu.matmul %11, %13, %cst_16 {dimension_numbers = #tpu.dot_dimension_numbers<[1], [0], [0], [1], [0, 0, 1, 1], [], []>} : vector<128x18xbf16>, vector<18x2xbf16>, vector<128x2xf32> -> vector<128x2xf32>
    %c3 = arith.constant 3 : index
    %c0_17 = arith.constant 0 : index
    %c0_18 = arith.constant 0 : index
    %15 = vector.load %arg1[%c3, %c0_17, %c0_18] : memref<4x128x18xbf16, #tpu.memory_space<vmem>>, vector<1x128x18xbf16>
    %16 = vector.shape_cast %15 : vector<1x128x18xbf16> to vector<128x18xbf16>
    %c3_19 = arith.constant 3 : index
    %c0_20 = arith.constant 0 : index
    %c0_21 = arith.constant 0 : index
    %17 = vector.load %arg2[%c3_19, %c0_20, %c0_21] : memref<4x18x2xbf16, #tpu.memory_space<vmem>>, vector<1x18x2xbf16>
    %18 = vector.shape_cast %17 : vector<1x18x2xbf16> to vector<18x2xbf16>
    %cst_22 = arith.constant dense<0.000000e+00> : vector<128x2xf32>
    %19 = tpu.matmul %16, %18, %cst_22 {dimension_numbers = #tpu.dot_dimension_numbers<[1], [0], [0], [1], [0, 0, 1, 1], [], []>} : vector<128x18xbf16>, vector<18x2xbf16>, vector<128x2xf32> -> vector<128x2xf32>
    %20 = vector.extract_strided_slice %4 {offsets = [0, 0], sizes = [8, 2], strides = [1, 1]} : vector<128x2xf32> to vector<8x2xf32>
    %21 = vector.extract_strided_slice %9 {offsets = [0, 0], sizes = [8, 2], strides = [1, 1]} : vector<128x2xf32> to vector<8x2xf32>
    %22 = vector.extract_strided_slice %14 {offsets = [0, 0], sizes = [8, 2], strides = [1, 1]} : vector<128x2xf32> to vector<8x2xf32>
    %23 = vector.extract_strided_slice %19 {offsets = [0, 0], sizes = [8, 2], strides = [1, 1]} : vector<128x2xf32> to vector<8x2xf32>
    %24 = vector.extract_strided_slice %4 {offsets = [8, 0], sizes = [8, 2], strides = [1, 1]} : vector<128x2xf32> to vector<8x2xf32>
    %25 = vector.extract_strided_slice %9 {offsets = [8, 0], sizes = [8, 2], strides = [1, 1]} : vector<128x2xf32> to vector<8x2xf32>
    %26 = vector.extract_strided_slice %14 {offsets = [8, 0], sizes = [8, 2], strides = [1, 1]} : vector<128x2xf32> to vector<8x2xf32>
    %27 = vector.extract_strided_slice %19 {offsets = [8, 0], sizes = [8, 2], strides = [1, 1]} : vector<128x2xf32> to vector<8x2xf32>
    %28 = vector.extract_strided_slice %4 {offsets = [16, 0], sizes = [8, 2], strides = [1, 1]} : vector<128x2xf32> to vector<8x2xf32>
    %29 = vector.extract_strided_slice %9 {offsets = [16, 0], sizes = [8, 2], strides = [1, 1]} : vector<128x2xf32> to vector<8x2xf32>
    %30 = vector.extract_strided_slice %14 {offsets = [16, 0], sizes = [8, 2], strides = [1, 1]} : vector<128x2xf32> to vector<8x2xf32>
    %31 = vector.extract_strided_slice %19 {offsets = [16, 0], sizes = [8, 2], strides = [1, 1]} : vector<128x2xf32> to vector<8x2xf32>
    %32 = vector.extract_strided_slice %4 {offsets = [24, 0], sizes = [8, 2], strides = [1, 1]} : vector<128x2xf32> to vector<8x2xf32>
    %33 = vector.extract_strided_slice %9 {offsets = [24, 0], sizes = [8, 2], strides = [1, 1]} : vector<128x2xf32> to vector<8x2xf32>
    %34 = vector.extract_strided_slice %14 {offsets = [24, 0], sizes = [8, 2], strides = [1, 1]} : vector<128x2xf32> to vector<8x2xf32>
    %35 = vector.extract_strided_slice %19 {offsets = [24, 0], sizes = [8, 2], strides = [1, 1]} : vector<128x2xf32> to vector<8x2xf32>
    %36 = vector.extract_strided_slice %4 {offsets = [32, 0], sizes = [8, 2], strides = [1, 1]} : vector<128x2xf32> to vector<8x2xf32>
    %37 = vector.extract_strided_slice %9 {offsets = [32, 0], sizes = [8, 2], strides = [1, 1]} : vector<128x2xf32> to vector<8x2xf32>
    %38 = vector.extract_strided_slice %14 {offsets = [32, 0], sizes = [8, 2], strides = [1, 1]} : vector<128x2xf32> to vector<8x2xf32>
    %39 = vector.extract_strided_slice %19 {offsets = [32, 0], sizes = [8, 2], strides = [1, 1]} : vector<128x2xf32> to vector<8x2xf32>
    %40 = vector.extract_strided_slice %4 {offsets = [40, 0], sizes = [8, 2], strides = [1, 1]} : vector<128x2xf32> to vector<8x2xf32>
    %41 = vector.extract_strided_slice %9 {offsets = [40, 0], sizes = [8, 2], strides = [1, 1]} : vector<128x2xf32> to vector<8x2xf32>
    %42 = vector.extract_strided_slice %14 {offsets = [40, 0], sizes = [8, 2], strides = [1, 1]} : vector<128x2xf32> to vector<8x2xf32>
    %43 = vector.extract_strided_slice %19 {offsets = [40, 0], sizes = [8, 2], strides = [1, 1]} : vector<128x2xf32> to vector<8x2xf32>
    %44 = vector.extract_strided_slice %4 {offsets = [48, 0], sizes = [8, 2], strides = [1, 1]} : vector<128x2xf32> to vector<8x2xf32>
    %45 = vector.extract_strided_slice %9 {offsets = [48, 0], sizes = [8, 2], strides = [1, 1]} : vector<128x2xf32> to vector<8x2xf32>
    %46 = vector.extract_strided_slice %14 {offsets = [48, 0], sizes = [8, 2], strides = [1, 1]} : vector<128x2xf32> to vector<8x2xf32>
    %47 = vector.extract_strided_slice %19 {offsets = [48, 0], sizes = [8, 2], strides = [1, 1]} : vector<128x2xf32> to vector<8x2xf32>
    %48 = vector.extract_strided_slice %4 {offsets = [56, 0], sizes = [8, 2], strides = [1, 1]} : vector<128x2xf32> to vector<8x2xf32>
    %49 = vector.extract_strided_slice %9 {offsets = [56, 0], sizes = [8, 2], strides = [1, 1]} : vector<128x2xf32> to vector<8x2xf32>
    %50 = vector.extract_strided_slice %14 {offsets = [56, 0], sizes = [8, 2], strides = [1, 1]} : vector<128x2xf32> to vector<8x2xf32>
    %51 = vector.extract_strided_slice %19 {offsets = [56, 0], sizes = [8, 2], strides = [1, 1]} : vector<128x2xf32> to vector<8x2xf32>
    %52 = vector.extract_strided_slice %4 {offsets = [64, 0], sizes = [8, 2], strides = [1, 1]} : vector<128x2xf32> to vector<8x2xf32>
    %53 = vector.extract_strided_slice %9 {offsets = [64, 0], sizes = [8, 2], strides = [1, 1]} : vector<128x2xf32> to vector<8x2xf32>
    %54 = vector.extract_strided_slice %14 {offsets = [64, 0], sizes = [8, 2], strides = [1, 1]} : vector<128x2xf32> to vector<8x2xf32>
    %55 = vector.extract_strided_slice %19 {offsets = [64, 0], sizes = [8, 2], strides = [1, 1]} : vector<128x2xf32> to vector<8x2xf32>
    %56 = vector.extract_strided_slice %4 {offsets = [72, 0], sizes = [8, 2], strides = [1, 1]} : vector<128x2xf32> to vector<8x2xf32>
    %57 = vector.extract_strided_slice %9 {offsets = [72, 0], sizes = [8, 2], strides = [1, 1]} : vector<128x2xf32> to vector<8x2xf32>
    %58 = vector.extract_strided_slice %14 {offsets = [72, 0], sizes = [8, 2], strides = [1, 1]} : vector<128x2xf32> to vector<8x2xf32>
    %59 = vector.extract_strided_slice %19 {offsets = [72, 0], sizes = [8, 2], strides = [1, 1]} : vector<128x2xf32> to vector<8x2xf32>
    %60 = vector.extract_strided_slice %4 {offsets = [80, 0], sizes = [8, 2], strides = [1, 1]} : vector<128x2xf32> to vector<8x2xf32>
    %61 = vector.extract_strided_slice %9 {offsets = [80, 0], sizes = [8, 2], strides = [1, 1]} : vector<128x2xf32> to vector<8x2xf32>
    %62 = vector.extract_strided_slice %14 {offsets = [80, 0], sizes = [8, 2], strides = [1, 1]} : vector<128x2xf32> to vector<8x2xf32>
    %63 = vector.extract_strided_slice %19 {offsets = [80, 0], sizes = [8, 2], strides = [1, 1]} : vector<128x2xf32> to vector<8x2xf32>
    %64 = vector.extract_strided_slice %4 {offsets = [88, 0], sizes = [8, 2], strides = [1, 1]} : vector<128x2xf32> to vector<8x2xf32>
    %65 = vector.extract_strided_slice %9 {offsets = [88, 0], sizes = [8, 2], strides = [1, 1]} : vector<128x2xf32> to vector<8x2xf32>
    %66 = vector.extract_strided_slice %14 {offsets = [88, 0], sizes = [8, 2], strides = [1, 1]} : vector<128x2xf32> to vector<8x2xf32>
    %67 = vector.extract_strided_slice %19 {offsets = [88, 0], sizes = [8, 2], strides = [1, 1]} : vector<128x2xf32> to vector<8x2xf32>
    %68 = vector.extract_strided_slice %4 {offsets = [96, 0], sizes = [8, 2], strides = [1, 1]} : vector<128x2xf32> to vector<8x2xf32>
    %69 = vector.extract_strided_slice %9 {offsets = [96, 0], sizes = [8, 2], strides = [1, 1]} : vector<128x2xf32> to vector<8x2xf32>
    %70 = vector.extract_strided_slice %14 {offsets = [96, 0], sizes = [8, 2], strides = [1, 1]} : vector<128x2xf32> to vector<8x2xf32>
    %71 = vector.extract_strided_slice %19 {offsets = [96, 0], sizes = [8, 2], strides = [1, 1]} : vector<128x2xf32> to vector<8x2xf32>
    %72 = vector.extract_strided_slice %4 {offsets = [104, 0], sizes = [8, 2], strides = [1, 1]} : vector<128x2xf32> to vector<8x2xf32>
    %73 = vector.extract_strided_slice %9 {offsets = [104, 0], sizes = [8, 2], strides = [1, 1]} : vector<128x2xf32> to vector<8x2xf32>
    %74 = vector.extract_strided_slice %14 {offsets = [104, 0], sizes = [8, 2], strides = [1, 1]} : vector<128x2xf32> to vector<8x2xf32>
    %75 = vector.extract_strided_slice %19 {offsets = [104, 0], sizes = [8, 2], strides = [1, 1]} : vector<128x2xf32> to vector<8x2xf32>
    %76 = vector.extract_strided_slice %4 {offsets = [112, 0], sizes = [8, 2], strides = [1, 1]} : vector<128x2xf32> to vector<8x2xf32>
    %77 = vector.extract_strided_slice %9 {offsets = [112, 0], sizes = [8, 2], strides = [1, 1]} : vector<128x2xf32> to vector<8x2xf32>
    %78 = vector.extract_strided_slice %14 {offsets = [112, 0], sizes = [8, 2], strides = [1, 1]} : vector<128x2xf32> to vector<8x2xf32>
    %79 = vector.extract_strided_slice %19 {offsets = [112, 0], sizes = [8, 2], strides = [1, 1]} : vector<128x2xf32> to vector<8x2xf32>
    %80 = vector.extract_strided_slice %4 {offsets = [120, 0], sizes = [8, 2], strides = [1, 1]} : vector<128x2xf32> to vector<8x2xf32>
    %81 = vector.extract_strided_slice %9 {offsets = [120, 0], sizes = [8, 2], strides = [1, 1]} : vector<128x2xf32> to vector<8x2xf32>
    %82 = vector.extract_strided_slice %14 {offsets = [120, 0], sizes = [8, 2], strides = [1, 1]} : vector<128x2xf32> to vector<8x2xf32>
    %83 = vector.extract_strided_slice %19 {offsets = [120, 0], sizes = [8, 2], strides = [1, 1]} : vector<128x2xf32> to vector<8x2xf32>
    %84 = tpu.concatenate %20, %21, %22, %23, %24, %25, %26, %27, %28, %29, %30, %31, %32, %33, %34, %35 in 1 : vector<8x2xf32>, vector<8x2xf32>, vector<8x2xf32>, vector<8x2xf32>, vector<8x2xf32>, vector<8x2xf32>, vector<8x2xf32>, vector<8x2xf32>, vector<8x2xf32>, vector<8x2xf32>, vector<8x2xf32>, vector<8x2xf32>, vector<8x2xf32>, vector<8x2xf32>, vector<8x2xf32>, vector<8x2xf32> -> vector<8x32xf32>
    %85 = tpu.concatenate %36, %37, %38, %39, %40, %41, %42, %43, %44, %45, %46, %47, %48, %49, %50, %51 in 1 : vector<8x2xf32>, vector<8x2xf32>, vector<8x2xf32>, vector<8x2xf32>, vector<8x2xf32>, vector<8x2xf32>, vector<8x2xf32>, vector<8x2xf32>, vector<8x2xf32>, vector<8x2xf32>, vector<8x2xf32>, vector<8x2xf32>, vector<8x2xf32>, vector<8x2xf32>, vector<8x2xf32>, vector<8x2xf32> -> vector<8x32xf32>
    %86 = tpu.concatenate %52, %53, %54, %55, %56, %57, %58, %59, %60, %61, %62, %63, %64, %65, %66, %67 in 1 : vector<8x2xf32>, vector<8x2xf32>, vector<8x2xf32>, vector<8x2xf32>, vector<8x2xf32>, vector<8x2xf32>, vector<8x2xf32>, vector<8x2xf32>, vector<8x2xf32>, vector<8x2xf32>, vector<8x2xf32>, vector<8x2xf32>, vector<8x2xf32>, vector<8x2xf32>, vector<8x2xf32>, vector<8x2xf32> -> vector<8x32xf32>
    %87 = tpu.concatenate %68, %69, %70, %71, %72, %73, %74, %75, %76, %77, %78, %79, %80, %81, %82, %83 in 1 : vector<8x2xf32>, vector<8x2xf32>, vector<8x2xf32>, vector<8x2xf32>, vector<8x2xf32>, vector<8x2xf32>, vector<8x2xf32>, vector<8x2xf32>, vector<8x2xf32>, vector<8x2xf32>, vector<8x2xf32>, vector<8x2xf32>, vector<8x2xf32>, vector<8x2xf32>, vector<8x2xf32>, vector<8x2xf32> -> vector<8x32xf32>
    %88 = tpu.concatenate %84, %85, %86, %87 in 1 : vector<8x32xf32>, vector<8x32xf32>, vector<8x32xf32>, vector<8x32xf32> -> vector<8x128xf32>
    %c0_23 = arith.constant 0 : index
    %c0_24 = arith.constant 0 : index
    %89 = vector.load %arg3[%c0_23, %c0_24] : memref<1x128xf32, #tpu.memory_space<vmem>>, vector<1x128xf32>
    %90 = vector.broadcast %89 : vector<1x128xf32> to vector<8x128xf32>
    %91 = arith.addf %88, %90 : vector<8x128xf32>
    %c0_25 = arith.constant 0 : index
    %c0_26 = arith.constant 0 : index
    %92 = vector.load %arg4[%c0_25, %c0_26] : memref<8x128xf32, #tpu.memory_space<vmem>>, vector<8x128xf32>
    %93 = arith.addf %91, %92 : vector<8x128xf32>
    %94 = arith.negf %93 : vector<8x128xf32>
    %95 = math.exp %94 : vector<8x128xf32>
    %cst_27 = arith.constant 1.000000e+00 : f32
    %96 = vector.broadcast %cst_27 : f32 to vector<8x128xf32>
    %97 = arith.addf %96, %95 : vector<8x128xf32>
    %98 = arith.divf %96, %97 : vector<8x128xf32>
    %99 = arith.mulf %93, %98 : vector<8x128xf32>
    %c0_28 = arith.constant 0 : index
    %c0_29 = arith.constant 0 : index
    %100 = vector.load %arg5[%c0_28, %c0_29] : memref<8x128xf32, #tpu.memory_space<vmem>>, vector<8x128xf32>
    tpu.vector_store %arg5[%c0_28, %c0_29], %99 {strides = array<i32>} : memref<8x128xf32, #tpu.memory_space<vmem>>, vector<8x128xf32>,
    return
  }
  func.func @transform_0(%arg0: i32) -> (i32, i32, i32) {
    %c0_i32 = arith.constant 0 : i32
    %c0_i32_0 = arith.constant 0 : i32
    %c0_i32_1 = arith.constant 0 : i32
    return %c0_i32, %arg0, %c0_i32_0 : i32, i32, i32
  }
  func.func @transform_1(%arg0: i32) -> (i32, i32, i32) {
    %c0_i32 = arith.constant 0 : i32
    %c0_i32_0 = arith.constant 0 : i32
    %c0_i32_1 = arith.constant 0 : i32
    %c0_i32_2 = arith.constant 0 : i32
    return %c0_i32, %c0_i32_0, %c0_i32_1 : i32, i32, i32
  }
  func.func @transform_2(%arg0: i32) -> (i32, i32) {
    %c0_i32 = arith.constant 0 : i32
    %c0_i32_0 = arith.constant 0 : i32
    %c0_i32_1 = arith.constant 0 : i32
    return %c0_i32, %c0_i32_0 : i32, i32
  }
  func.func @transform_3(%arg0: i32) -> (i32, i32) {
    %c0_i32 = arith.constant 0 : i32
    %c0_i32_0 = arith.constant 0 : i32
    return %arg0, %c0_i32 : i32, i32
  }
  func.func @transform_4(%arg0: i32) -> (i32, i32) {
    %c0_i32 = arith.constant 0 : i32
    %c0_i32_0 = arith.constant 0 : i32
    return %arg0, %c0_i32 : i32, i32
  }
}

module attributes {stable_mosaic.version = 11 : i64} {
  func.func @kernel(%arg0: i32, %arg1: memref<4x8x128xf32, #tpu.memory_space<vmem>>, %arg2: memref<8x128xf32, #tpu.memory_space<vmem>>) attributes {dimension_semantics = [#tpu.dimension_semantics<parallel>], iteration_bounds = array<i64: 1>, scalar_prefetch = 0 : i64, scratch_operands = 0 : i64, tpu.core_type = #tpu.core_type<tc>, window_params = [{transform_indices = @transform_0, window_bounds = array<i64: 4, 8, 128>}, {transform_indices = @transform_1, window_bounds = array<i64: 8, 128>}]} {
    %c0 = arith.constant 0 : index
    %c0_0 = arith.constant 0 : index
    %c0_1 = arith.constant 0 : index
    %0 = vector.load %arg1[%c0, %c0_0, %c0_1] : memref<4x8x128xf32, #tpu.memory_space<vmem>>, vector<1x8x128xf32>
    %1 = vector.shape_cast %0 : vector<1x8x128xf32> to vector<8x128xf32>
    %c1 = arith.constant 1 : index
    %c0_2 = arith.constant 0 : index
    %c0_3 = arith.constant 0 : index
    %2 = vector.load %arg1[%c1, %c0_2, %c0_3] : memref<4x8x128xf32, #tpu.memory_space<vmem>>, vector<1x8x128xf32>
    %3 = vector.shape_cast %2 : vector<1x8x128xf32> to vector<8x128xf32>
    %4 = arith.addf %1, %3 : vector<8x128xf32>
    %c2 = arith.constant 2 : index
    %c0_4 = arith.constant 0 : index
    %c0_5 = arith.constant 0 : index
    %5 = vector.load %arg1[%c2, %c0_4, %c0_5] : memref<4x8x128xf32, #tpu.memory_space<vmem>>, vector<1x8x128xf32>
    %6 = vector.shape_cast %5 : vector<1x8x128xf32> to vector<8x128xf32>
    %7 = arith.addf %4, %6 : vector<8x128xf32>
    %c3 = arith.constant 3 : index
    %c0_6 = arith.constant 0 : index
    %c0_7 = arith.constant 0 : index
    %8 = vector.load %arg1[%c3, %c0_6, %c0_7] : memref<4x8x128xf32, #tpu.memory_space<vmem>>, vector<1x8x128xf32>
    %9 = vector.shape_cast %8 : vector<1x8x128xf32> to vector<8x128xf32>
    %10 = arith.addf %7, %9 : vector<8x128xf32>
    %cst = arith.constant 2.500000e-01 : f32
    %11 = vector.broadcast %cst : f32 to vector<8x128xf32>
    %12 = arith.mulf %10, %11 : vector<8x128xf32>
    %c0_8 = arith.constant 0 : index
    %c0_9 = arith.constant 0 : index
    %13 = vector.load %arg2[%c0_8, %c0_9] : memref<8x128xf32, #tpu.memory_space<vmem>>, vector<8x128xf32>
    tpu.vector_store %arg2[%c0_8, %c0_9], %12 {strides = array<i32>} : memref<8x128xf32, #tpu.memory_space<vmem>>, vector<8x128xf32>,
    return
  }
  func.func @transform_0(%arg0: i32) -> (i32, i32, i32) {
    %c0_i32 = arith.constant 0 : i32
    %c0_i32_0 = arith.constant 0 : i32
    %c0_i32_1 = arith.constant 0 : i32
    return %c0_i32, %arg0, %c0_i32_0 : i32, i32, i32
  }
  func.func @transform_1(%arg0: i32) -> (i32, i32) {
    %c0_i32 = arith.constant 0 : i32
    %c0_i32_0 = arith.constant 0 : i32
    return %arg0, %c0_i32 : i32, i32
  }
}

module attributes {stable_mosaic.version = 11 : i64} {
  func.func @kernel(%arg0: i32, %arg1: memref<4x64x18xbf16, #tpu.memory_space<vmem>>, %arg2: memref<4x18x4xbf16, #tpu.memory_space<vmem>>, %arg3: memref<1x128xf32, #tpu.memory_space<vmem>>, %arg4: memref<8x128xf32, #tpu.memory_space<vmem>>) attributes {dimension_semantics = [#tpu.dimension_semantics<parallel>], iteration_bounds = array<i64: 1>, scalar_prefetch = 0 : i64, scratch_operands = 0 : i64, tpu.core_type = #tpu.core_type<tc>, window_params = [{transform_indices = @transform_0, window_bounds = array<i64: 4, 64, 18>}, {pipeline_mode = #tpu.pipeline_mode<synchronous>, transform_indices = @transform_1, window_bounds = array<i64: 4, 18, 4>}, {pipeline_mode = #tpu.pipeline_mode<synchronous>, transform_indices = @transform_2, window_bounds = array<i64: 1, 128>}, {transform_indices = @transform_3, window_bounds = array<i64: 8, 128>}]} {
    %c0 = arith.constant 0 : index
    %c0_0 = arith.constant 0 : index
    %c0_1 = arith.constant 0 : index
    %0 = vector.load %arg1[%c0, %c0_0, %c0_1] : memref<4x64x18xbf16, #tpu.memory_space<vmem>>, vector<1x64x18xbf16>
    %1 = vector.shape_cast %0 : vector<1x64x18xbf16> to vector<64x18xbf16>
    %c0_2 = arith.constant 0 : index
    %c0_3 = arith.constant 0 : index
    %c0_4 = arith.constant 0 : index
    %2 = vector.load %arg2[%c0_2, %c0_3, %c0_4] : memref<4x18x4xbf16, #tpu.memory_space<vmem>>, vector<1x18x4xbf16>
    %3 = vector.shape_cast %2 : vector<1x18x4xbf16> to vector<18x4xbf16>
    %cst = arith.constant dense<0.000000e+00> : vector<64x4xf32>
    %4 = tpu.matmul %1, %3, %cst {dimension_numbers = #tpu.dot_dimension_numbers<[1], [0], [0], [1], [0, 0, 1, 1], [], []>} : vector<64x18xbf16>, vector<18x4xbf16>, vector<64x4xf32> -> vector<64x4xf32>
    %c1 = arith.constant 1 : index
    %c0_5 = arith.constant 0 : index
    %c0_6 = arith.constant 0 : index
    %5 = vector.load %arg1[%c1, %c0_5, %c0_6] : memref<4x64x18xbf16, #tpu.memory_space<vmem>>, vector<1x64x18xbf16>
    %6 = vector.shape_cast %5 : vector<1x64x18xbf16> to vector<64x18xbf16>
    %c1_7 = arith.constant 1 : index
    %c0_8 = arith.constant 0 : index
    %c0_9 = arith.constant 0 : index
    %7 = vector.load %arg2[%c1_7, %c0_8, %c0_9] : memref<4x18x4xbf16, #tpu.memory_space<vmem>>, vector<1x18x4xbf16>
    %8 = vector.shape_cast %7 : vector<1x18x4xbf16> to vector<18x4xbf16>
    %cst_10 = arith.constant dense<0.000000e+00> : vector<64x4xf32>
    %9 = tpu.matmul %6, %8, %cst_10 {dimension_numbers = #tpu.dot_dimension_numbers<[1], [0], [0], [1], [0, 0, 1, 1], [], []>} : vector<64x18xbf16>, vector<18x4xbf16>, vector<64x4xf32> -> vector<64x4xf32>
    %c2 = arith.constant 2 : index
    %c0_11 = arith.constant 0 : index
    %c0_12 = arith.constant 0 : index
    %10 = vector.load %arg1[%c2, %c0_11, %c0_12] : memref<4x64x18xbf16, #tpu.memory_space<vmem>>, vector<1x64x18xbf16>
    %11 = vector.shape_cast %10 : vector<1x64x18xbf16> to vector<64x18xbf16>
    %c2_13 = arith.constant 2 : index
    %c0_14 = arith.constant 0 : index
    %c0_15 = arith.constant 0 : index
    %12 = vector.load %arg2[%c2_13, %c0_14, %c0_15] : memref<4x18x4xbf16, #tpu.memory_space<vmem>>, vector<1x18x4xbf16>
    %13 = vector.shape_cast %12 : vector<1x18x4xbf16> to vector<18x4xbf16>
    %cst_16 = arith.constant dense<0.000000e+00> : vector<64x4xf32>
    %14 = tpu.matmul %11, %13, %cst_16 {dimension_numbers = #tpu.dot_dimension_numbers<[1], [0], [0], [1], [0, 0, 1, 1], [], []>} : vector<64x18xbf16>, vector<18x4xbf16>, vector<64x4xf32> -> vector<64x4xf32>
    %c3 = arith.constant 3 : index
    %c0_17 = arith.constant 0 : index
    %c0_18 = arith.constant 0 : index
    %15 = vector.load %arg1[%c3, %c0_17, %c0_18] : memref<4x64x18xbf16, #tpu.memory_space<vmem>>, vector<1x64x18xbf16>
    %16 = vector.shape_cast %15 : vector<1x64x18xbf16> to vector<64x18xbf16>
    %c3_19 = arith.constant 3 : index
    %c0_20 = arith.constant 0 : index
    %c0_21 = arith.constant 0 : index
    %17 = vector.load %arg2[%c3_19, %c0_20, %c0_21] : memref<4x18x4xbf16, #tpu.memory_space<vmem>>, vector<1x18x4xbf16>
    %18 = vector.shape_cast %17 : vector<1x18x4xbf16> to vector<18x4xbf16>
    %cst_22 = arith.constant dense<0.000000e+00> : vector<64x4xf32>
    %19 = tpu.matmul %16, %18, %cst_22 {dimension_numbers = #tpu.dot_dimension_numbers<[1], [0], [0], [1], [0, 0, 1, 1], [], []>} : vector<64x18xbf16>, vector<18x4xbf16>, vector<64x4xf32> -> vector<64x4xf32>
    %20 = vector.extract_strided_slice %4 {offsets = [0, 0], sizes = [8, 4], strides = [1, 1]} : vector<64x4xf32> to vector<8x4xf32>
    %21 = vector.extract_strided_slice %9 {offsets = [0, 0], sizes = [8, 4], strides = [1, 1]} : vector<64x4xf32> to vector<8x4xf32>
    %22 = vector.extract_strided_slice %14 {offsets = [0, 0], sizes = [8, 4], strides = [1, 1]} : vector<64x4xf32> to vector<8x4xf32>
    %23 = vector.extract_strided_slice %19 {offsets = [0, 0], sizes = [8, 4], strides = [1, 1]} : vector<64x4xf32> to vector<8x4xf32>
    %24 = vector.extract_strided_slice %4 {offsets = [8, 0], sizes = [8, 4], strides = [1, 1]} : vector<64x4xf32> to vector<8x4xf32>
    %25 = vector.extract_strided_slice %9 {offsets = [8, 0], sizes = [8, 4], strides = [1, 1]} : vector<64x4xf32> to vector<8x4xf32>
    %26 = vector.extract_strided_slice %14 {offsets = [8, 0], sizes = [8, 4], strides = [1, 1]} : vector<64x4xf32> to vector<8x4xf32>
    %27 = vector.extract_strided_slice %19 {offsets = [8, 0], sizes = [8, 4], strides = [1, 1]} : vector<64x4xf32> to vector<8x4xf32>
    %28 = vector.extract_strided_slice %4 {offsets = [16, 0], sizes = [8, 4], strides = [1, 1]} : vector<64x4xf32> to vector<8x4xf32>
    %29 = vector.extract_strided_slice %9 {offsets = [16, 0], sizes = [8, 4], strides = [1, 1]} : vector<64x4xf32> to vector<8x4xf32>
    %30 = vector.extract_strided_slice %14 {offsets = [16, 0], sizes = [8, 4], strides = [1, 1]} : vector<64x4xf32> to vector<8x4xf32>
    %31 = vector.extract_strided_slice %19 {offsets = [16, 0], sizes = [8, 4], strides = [1, 1]} : vector<64x4xf32> to vector<8x4xf32>
    %32 = vector.extract_strided_slice %4 {offsets = [24, 0], sizes = [8, 4], strides = [1, 1]} : vector<64x4xf32> to vector<8x4xf32>
    %33 = vector.extract_strided_slice %9 {offsets = [24, 0], sizes = [8, 4], strides = [1, 1]} : vector<64x4xf32> to vector<8x4xf32>
    %34 = vector.extract_strided_slice %14 {offsets = [24, 0], sizes = [8, 4], strides = [1, 1]} : vector<64x4xf32> to vector<8x4xf32>
    %35 = vector.extract_strided_slice %19 {offsets = [24, 0], sizes = [8, 4], strides = [1, 1]} : vector<64x4xf32> to vector<8x4xf32>
    %36 = vector.extract_strided_slice %4 {offsets = [32, 0], sizes = [8, 4], strides = [1, 1]} : vector<64x4xf32> to vector<8x4xf32>
    %37 = vector.extract_strided_slice %9 {offsets = [32, 0], sizes = [8, 4], strides = [1, 1]} : vector<64x4xf32> to vector<8x4xf32>
    %38 = vector.extract_strided_slice %14 {offsets = [32, 0], sizes = [8, 4], strides = [1, 1]} : vector<64x4xf32> to vector<8x4xf32>
    %39 = vector.extract_strided_slice %19 {offsets = [32, 0], sizes = [8, 4], strides = [1, 1]} : vector<64x4xf32> to vector<8x4xf32>
    %40 = vector.extract_strided_slice %4 {offsets = [40, 0], sizes = [8, 4], strides = [1, 1]} : vector<64x4xf32> to vector<8x4xf32>
    %41 = vector.extract_strided_slice %9 {offsets = [40, 0], sizes = [8, 4], strides = [1, 1]} : vector<64x4xf32> to vector<8x4xf32>
    %42 = vector.extract_strided_slice %14 {offsets = [40, 0], sizes = [8, 4], strides = [1, 1]} : vector<64x4xf32> to vector<8x4xf32>
    %43 = vector.extract_strided_slice %19 {offsets = [40, 0], sizes = [8, 4], strides = [1, 1]} : vector<64x4xf32> to vector<8x4xf32>
    %44 = vector.extract_strided_slice %4 {offsets = [48, 0], sizes = [8, 4], strides = [1, 1]} : vector<64x4xf32> to vector<8x4xf32>
    %45 = vector.extract_strided_slice %9 {offsets = [48, 0], sizes = [8, 4], strides = [1, 1]} : vector<64x4xf32> to vector<8x4xf32>
    %46 = vector.extract_strided_slice %14 {offsets = [48, 0], sizes = [8, 4], strides = [1, 1]} : vector<64x4xf32> to vector<8x4xf32>
    %47 = vector.extract_strided_slice %19 {offsets = [48, 0], sizes = [8, 4], strides = [1, 1]} : vector<64x4xf32> to vector<8x4xf32>
    %48 = vector.extract_strided_slice %4 {offsets = [56, 0], sizes = [8, 4], strides = [1, 1]} : vector<64x4xf32> to vector<8x4xf32>
    %49 = vector.extract_strided_slice %9 {offsets = [56, 0], sizes = [8, 4], strides = [1, 1]} : vector<64x4xf32> to vector<8x4xf32>
    %50 = vector.extract_strided_slice %14 {offsets = [56, 0], sizes = [8, 4], strides = [1, 1]} : vector<64x4xf32> to vector<8x4xf32>
    %51 = vector.extract_strided_slice %19 {offsets = [56, 0], sizes = [8, 4], strides = [1, 1]} : vector<64x4xf32> to vector<8x4xf32>
    %52 = tpu.concatenate %20, %21, %22, %23, %24, %25, %26, %27, %28, %29, %30, %31, %32, %33, %34, %35 in 1 : vector<8x4xf32>, vector<8x4xf32>, vector<8x4xf32>, vector<8x4xf32>, vector<8x4xf32>, vector<8x4xf32>, vector<8x4xf32>, vector<8x4xf32>, vector<8x4xf32>, vector<8x4xf32>, vector<8x4xf32>, vector<8x4xf32>, vector<8x4xf32>, vector<8x4xf32>, vector<8x4xf32>, vector<8x4xf32> -> vector<8x64xf32>
    %53 = tpu.concatenate %36, %37, %38, %39, %40, %41, %42, %43, %44, %45, %46, %47, %48, %49, %50, %51 in 1 : vector<8x4xf32>, vector<8x4xf32>, vector<8x4xf32>, vector<8x4xf32>, vector<8x4xf32>, vector<8x4xf32>, vector<8x4xf32>, vector<8x4xf32>, vector<8x4xf32>, vector<8x4xf32>, vector<8x4xf32>, vector<8x4xf32>, vector<8x4xf32>, vector<8x4xf32>, vector<8x4xf32>, vector<8x4xf32> -> vector<8x64xf32>
    %54 = tpu.concatenate %52, %53 in 1 : vector<8x64xf32>, vector<8x64xf32> -> vector<8x128xf32>
    %c0_23 = arith.constant 0 : index
    %c0_24 = arith.constant 0 : index
    %55 = vector.load %arg3[%c0_23, %c0_24] : memref<1x128xf32, #tpu.memory_space<vmem>>, vector<1x128xf32>
    %56 = vector.broadcast %55 : vector<1x128xf32> to vector<8x128xf32>
    %57 = arith.addf %54, %56 : vector<8x128xf32>
    %58 = arith.negf %57 : vector<8x128xf32>
    %59 = math.exp %58 : vector<8x128xf32>
    %cst_25 = arith.constant 1.000000e+00 : f32
    %60 = vector.broadcast %cst_25 : f32 to vector<8x128xf32>
    %61 = arith.addf %60, %59 : vector<8x128xf32>
    %62 = arith.divf %60, %61 : vector<8x128xf32>
    %63 = arith.mulf %57, %62 : vector<8x128xf32>
    %c0_26 = arith.constant 0 : index
    %c0_27 = arith.constant 0 : index
    %64 = vector.load %arg4[%c0_26, %c0_27] : memref<8x128xf32, #tpu.memory_space<vmem>>, vector<8x128xf32>
    tpu.vector_store %arg4[%c0_26, %c0_27], %63 {strides = array<i32>} : memref<8x128xf32, #tpu.memory_space<vmem>>, vector<8x128xf32>,
    return
  }
  func.func @transform_0(%arg0: i32) -> (i32, i32, i32) {
    %c0_i32 = arith.constant 0 : i32
    %c0_i32_0 = arith.constant 0 : i32
    %c0_i32_1 = arith.constant 0 : i32
    return %c0_i32, %arg0, %c0_i32_0 : i32, i32, i32
  }
  func.func @transform_1(%arg0: i32) -> (i32, i32, i32) {
    %c0_i32 = arith.constant 0 : i32
    %c0_i32_0 = arith.constant 0 : i32
    %c0_i32_1 = arith.constant 0 : i32
    %c0_i32_2 = arith.constant 0 : i32
    return %c0_i32, %c0_i32_0, %c0_i32_1 : i32, i32, i32
  }
  func.func @transform_2(%arg0: i32) -> (i32, i32) {
    %c0_i32 = arith.constant 0 : i32
    %c0_i32_0 = arith.constant 0 : i32
    %c0_i32_1 = arith.constant 0 : i32
    return %c0_i32, %c0_i32_0 : i32, i32
  }
  func.func @transform_3(%arg0: i32) -> (i32, i32) {
    %c0_i32 = arith.constant 0 : i32
    %c0_i32_0 = arith.constant 0 : i32
    return %arg0, %c0_i32 : i32, i32
  }
}

module attributes {stable_mosaic.version = 11 : i64} {
  func.func @kernel(%arg0: i32, %arg1: memref<1x64x8xbf16, #tpu.memory_space<vmem>>, %arg2: memref<1x8x16xbf16, #tpu.memory_space<vmem>>, %arg3: memref<1x128xf32, #tpu.memory_space<vmem>>, %arg4: memref<8x128xf32, #tpu.memory_space<vmem>>) attributes {dimension_semantics = [#tpu.dimension_semantics<parallel>], iteration_bounds = array<i64: 1>, scalar_prefetch = 0 : i64, scratch_operands = 0 : i64, tpu.core_type = #tpu.core_type<tc>, window_params = [{transform_indices = @transform_0, window_bounds = array<i64: 1, 64, 8>}, {pipeline_mode = #tpu.pipeline_mode<synchronous>, transform_indices = @transform_1, window_bounds = array<i64: 1, 8, 16>}, {pipeline_mode = #tpu.pipeline_mode<synchronous>, transform_indices = @transform_2, window_bounds = array<i64: 1, 128>}, {transform_indices = @transform_3, window_bounds = array<i64: 8, 128>}]} {
    %c0 = arith.constant 0 : index
    %c0_0 = arith.constant 0 : index
    %c0_1 = arith.constant 0 : index
    %0 = vector.load %arg1[%c0, %c0_0, %c0_1] : memref<1x64x8xbf16, #tpu.memory_space<vmem>>, vector<1x64x8xbf16>
    %1 = vector.shape_cast %0 : vector<1x64x8xbf16> to vector<64x8xbf16>
    %c0_2 = arith.constant 0 : index
    %c0_3 = arith.constant 0 : index
    %c0_4 = arith.constant 0 : index
    %2 = vector.load %arg2[%c0_2, %c0_3, %c0_4] : memref<1x8x16xbf16, #tpu.memory_space<vmem>>, vector<1x8x16xbf16>
    %3 = vector.shape_cast %2 : vector<1x8x16xbf16> to vector<8x16xbf16>
    %cst = arith.constant dense<0.000000e+00> : vector<64x16xf32>
    %4 = tpu.matmul %1, %3, %cst {dimension_numbers = #tpu.dot_dimension_numbers<[1], [0], [0], [1], [0, 0, 1, 1], [], []>} : vector<64x8xbf16>, vector<8x16xbf16>, vector<64x16xf32> -> vector<64x16xf32>
    %5 = vector.extract_strided_slice %4 {offsets = [0, 0], sizes = [8, 16], strides = [1, 1]} : vector<64x16xf32> to vector<8x16xf32>
    %6 = vector.extract_strided_slice %4 {offsets = [8, 0], sizes = [8, 16], strides = [1, 1]} : vector<64x16xf32> to vector<8x16xf32>
    %7 = vector.extract_strided_slice %4 {offsets = [16, 0], sizes = [8, 16], strides = [1, 1]} : vector<64x16xf32> to vector<8x16xf32>
    %8 = vector.extract_strided_slice %4 {offsets = [24, 0], sizes = [8, 16], strides = [1, 1]} : vector<64x16xf32> to vector<8x16xf32>
    %9 = vector.extract_strided_slice %4 {offsets = [32, 0], sizes = [8, 16], strides = [1, 1]} : vector<64x16xf32> to vector<8x16xf32>
    %10 = vector.extract_strided_slice %4 {offsets = [40, 0], sizes = [8, 16], strides = [1, 1]} : vector<64x16xf32> to vector<8x16xf32>
    %11 = vector.extract_strided_slice %4 {offsets = [48, 0], sizes = [8, 16], strides = [1, 1]} : vector<64x16xf32> to vector<8x16xf32>
    %12 = vector.extract_strided_slice %4 {offsets = [56, 0], sizes = [8, 16], strides = [1, 1]} : vector<64x16xf32> to vector<8x16xf32>
    %13 = tpu.concatenate %5, %6, %7, %8, %9, %10, %11, %12 in 1 : vector<8x16xf32>, vector<8x16xf32>, vector<8x16xf32>, vector<8x16xf32>, vector<8x16xf32>, vector<8x16xf32>, vector<8x16xf32>, vector<8x16xf32> -> vector<8x128xf32>
    %c0_5 = arith.constant 0 : index
    %c0_6 = arith.constant 0 : index
    %14 = vector.load %arg3[%c0_5, %c0_6] : memref<1x128xf32, #tpu.memory_space<vmem>>, vector<1x128xf32>
    %15 = vector.broadcast %14 : vector<1x128xf32> to vector<8x128xf32>
    %16 = arith.addf %13, %15 : vector<8x128xf32>
    %c0_7 = arith.constant 0 : index
    %c0_8 = arith.constant 0 : index
    %17 = vector.load %arg4[%c0_7, %c0_8] : memref<8x128xf32, #tpu.memory_space<vmem>>, vector<8x128xf32>
    tpu.vector_store %arg4[%c0_7, %c0_8], %16 {strides = array<i32>} : memref<8x128xf32, #tpu.memory_space<vmem>>, vector<8x128xf32>,
    return
  }
  func.func @transform_0(%arg0: i32) -> (i32, i32, i32) {
    %c0_i32 = arith.constant 0 : i32
    %c0_i32_0 = arith.constant 0 : i32
    %c0_i32_1 = arith.constant 0 : i32
    return %c0_i32, %arg0, %c0_i32_0 : i32, i32, i32
  }
  func.func @transform_1(%arg0: i32) -> (i32, i32, i32) {
    %c0_i32 = arith.constant 0 : i32
    %c0_i32_0 = arith.constant 0 : i32
    %c0_i32_1 = arith.constant 0 : i32
    %c0_i32_2 = arith.constant 0 : i32
    return %c0_i32, %c0_i32_0, %c0_i32_1 : i32, i32, i32
  }
  func.func @transform_2(%arg0: i32) -> (i32, i32) {
    %c0_i32 = arith.constant 0 : i32
    %c0_i32_0 = arith.constant 0 : i32
    %c0_i32_1 = arith.constant 0 : i32
    return %c0_i32, %c0_i32_0 : i32, i32
  }
  func.func @transform_3(%arg0: i32) -> (i32, i32) {
    %c0_i32 = arith.constant 0 : i32
    %c0_i32_0 = arith.constant 0 : i32
    return %arg0, %c0_i32 : i32, i32
  }
}

module attributes {stable_mosaic.version = 11 : i64} {
  func.func @kernel(%arg0: i32, %arg1: memref<4x64x36xbf16, #tpu.memory_space<vmem>>, %arg2: memref<4x36x4xbf16, #tpu.memory_space<vmem>>, %arg3: memref<1x128xf32, #tpu.memory_space<vmem>>, %arg4: memref<8x128xf32, #tpu.memory_space<vmem>>, %arg5: memref<8x128xf32, #tpu.memory_space<vmem>>) attributes {dimension_semantics = [#tpu.dimension_semantics<parallel>], iteration_bounds = array<i64: 1>, scalar_prefetch = 0 : i64, scratch_operands = 0 : i64, tpu.core_type = #tpu.core_type<tc>, window_params = [{transform_indices = @transform_0, window_bounds = array<i64: 4, 64, 36>}, {pipeline_mode = #tpu.pipeline_mode<synchronous>, transform_indices = @transform_1, window_bounds = array<i64: 4, 36, 4>}, {pipeline_mode = #tpu.pipeline_mode<synchronous>, transform_indices = @transform_2, window_bounds = array<i64: 1, 128>}, {transform_indices = @transform_3, window_bounds = array<i64: 8, 128>}, {transform_indices = @transform_4, window_bounds = array<i64: 8, 128>}]} {
    %c0 = arith.constant 0 : index
    %c0_0 = arith.constant 0 : index
    %c0_1 = arith.constant 0 : index
    %0 = vector.load %arg1[%c0, %c0_0, %c0_1] : memref<4x64x36xbf16, #tpu.memory_space<vmem>>, vector<1x64x36xbf16>
    %1 = vector.shape_cast %0 : vector<1x64x36xbf16> to vector<64x36xbf16>
    %c0_2 = arith.constant 0 : index
    %c0_3 = arith.constant 0 : index
    %c0_4 = arith.constant 0 : index
    %2 = vector.load %arg2[%c0_2, %c0_3, %c0_4] : memref<4x36x4xbf16, #tpu.memory_space<vmem>>, vector<1x36x4xbf16>
    %3 = vector.shape_cast %2 : vector<1x36x4xbf16> to vector<36x4xbf16>
    %cst = arith.constant dense<0.000000e+00> : vector<64x4xf32>
    %4 = tpu.matmul %1, %3, %cst {dimension_numbers = #tpu.dot_dimension_numbers<[1], [0], [0], [1], [0, 0, 1, 1], [], []>} : vector<64x36xbf16>, vector<36x4xbf16>, vector<64x4xf32> -> vector<64x4xf32>
    %c1 = arith.constant 1 : index
    %c0_5 = arith.constant 0 : index
    %c0_6 = arith.constant 0 : index
    %5 = vector.load %arg1[%c1, %c0_5, %c0_6] : memref<4x64x36xbf16, #tpu.memory_space<vmem>>, vector<1x64x36xbf16>
    %6 = vector.shape_cast %5 : vector<1x64x36xbf16> to vector<64x36xbf16>
    %c1_7 = arith.constant 1 : index
    %c0_8 = arith.constant 0 : index
    %c0_9 = arith.constant 0 : index
    %7 = vector.load %arg2[%c1_7, %c0_8, %c0_9] : memref<4x36x4xbf16, #tpu.memory_space<vmem>>, vector<1x36x4xbf16>
    %8 = vector.shape_cast %7 : vector<1x36x4xbf16> to vector<36x4xbf16>
    %cst_10 = arith.constant dense<0.000000e+00> : vector<64x4xf32>
    %9 = tpu.matmul %6, %8, %cst_10 {dimension_numbers = #tpu.dot_dimension_numbers<[1], [0], [0], [1], [0, 0, 1, 1], [], []>} : vector<64x36xbf16>, vector<36x4xbf16>, vector<64x4xf32> -> vector<64x4xf32>
    %c2 = arith.constant 2 : index
    %c0_11 = arith.constant 0 : index
    %c0_12 = arith.constant 0 : index
    %10 = vector.load %arg1[%c2, %c0_11, %c0_12] : memref<4x64x36xbf16, #tpu.memory_space<vmem>>, vector<1x64x36xbf16>
    %11 = vector.shape_cast %10 : vector<1x64x36xbf16> to vector<64x36xbf16>
    %c2_13 = arith.constant 2 : index
    %c0_14 = arith.constant 0 : index
    %c0_15 = arith.constant 0 : index
    %12 = vector.load %arg2[%c2_13, %c0_14, %c0_15] : memref<4x36x4xbf16, #tpu.memory_space<vmem>>, vector<1x36x4xbf16>
    %13 = vector.shape_cast %12 : vector<1x36x4xbf16> to vector<36x4xbf16>
    %cst_16 = arith.constant dense<0.000000e+00> : vector<64x4xf32>
    %14 = tpu.matmul %11, %13, %cst_16 {dimension_numbers = #tpu.dot_dimension_numbers<[1], [0], [0], [1], [0, 0, 1, 1], [], []>} : vector<64x36xbf16>, vector<36x4xbf16>, vector<64x4xf32> -> vector<64x4xf32>
    %c3 = arith.constant 3 : index
    %c0_17 = arith.constant 0 : index
    %c0_18 = arith.constant 0 : index
    %15 = vector.load %arg1[%c3, %c0_17, %c0_18] : memref<4x64x36xbf16, #tpu.memory_space<vmem>>, vector<1x64x36xbf16>
    %16 = vector.shape_cast %15 : vector<1x64x36xbf16> to vector<64x36xbf16>
    %c3_19 = arith.constant 3 : index
    %c0_20 = arith.constant 0 : index
    %c0_21 = arith.constant 0 : index
    %17 = vector.load %arg2[%c3_19, %c0_20, %c0_21] : memref<4x36x4xbf16, #tpu.memory_space<vmem>>, vector<1x36x4xbf16>
    %18 = vector.shape_cast %17 : vector<1x36x4xbf16> to vector<36x4xbf16>
    %cst_22 = arith.constant dense<0.000000e+00> : vector<64x4xf32>
    %19 = tpu.matmul %16, %18, %cst_22 {dimension_numbers = #tpu.dot_dimension_numbers<[1], [0], [0], [1], [0, 0, 1, 1], [], []>} : vector<64x36xbf16>, vector<36x4xbf16>, vector<64x4xf32> -> vector<64x4xf32>
    %20 = vector.extract_strided_slice %4 {offsets = [0, 0], sizes = [8, 4], strides = [1, 1]} : vector<64x4xf32> to vector<8x4xf32>
    %21 = vector.extract_strided_slice %9 {offsets = [0, 0], sizes = [8, 4], strides = [1, 1]} : vector<64x4xf32> to vector<8x4xf32>
    %22 = vector.extract_strided_slice %14 {offsets = [0, 0], sizes = [8, 4], strides = [1, 1]} : vector<64x4xf32> to vector<8x4xf32>
    %23 = vector.extract_strided_slice %19 {offsets = [0, 0], sizes = [8, 4], strides = [1, 1]} : vector<64x4xf32> to vector<8x4xf32>
    %24 = vector.extract_strided_slice %4 {offsets = [8, 0], sizes = [8, 4], strides = [1, 1]} : vector<64x4xf32> to vector<8x4xf32>
    %25 = vector.extract_strided_slice %9 {offsets = [8, 0], sizes = [8, 4], strides = [1, 1]} : vector<64x4xf32> to vector<8x4xf32>
    %26 = vector.extract_strided_slice %14 {offsets = [8, 0], sizes = [8, 4], strides = [1, 1]} : vector<64x4xf32> to vector<8x4xf32>
    %27 = vector.extract_strided_slice %19 {offsets = [8, 0], sizes = [8, 4], strides = [1, 1]} : vector<64x4xf32> to vector<8x4xf32>
    %28 = vector.extract_strided_slice %4 {offsets = [16, 0], sizes = [8, 4], strides = [1, 1]} : vector<64x4xf32> to vector<8x4xf32>
    %29 = vector.extract_strided_slice %9 {offsets = [16, 0], sizes = [8, 4], strides = [1, 1]} : vector<64x4xf32> to vector<8x4xf32>
    %30 = vector.extract_strided_slice %14 {offsets = [16, 0], sizes = [8, 4], strides = [1, 1]} : vector<64x4xf32> to vector<8x4xf32>
    %31 = vector.extract_strided_slice %19 {offsets = [16, 0], sizes = [8, 4], strides = [1, 1]} : vector<64x4xf32> to vector<8x4xf32>
    %32 = vector.extract_strided_slice %4 {offsets = [24, 0], sizes = [8, 4], strides = [1, 1]} : vector<64x4xf32> to vector<8x4xf32>
    %33 = vector.extract_strided_slice %9 {offsets = [24, 0], sizes = [8, 4], strides = [1, 1]} : vector<64x4xf32> to vector<8x4xf32>
    %34 = vector.extract_strided_slice %14 {offsets = [24, 0], sizes = [8, 4], strides = [1, 1]} : vector<64x4xf32> to vector<8x4xf32>
    %35 = vector.extract_strided_slice %19 {offsets = [24, 0], sizes = [8, 4], strides = [1, 1]} : vector<64x4xf32> to vector<8x4xf32>
    %36 = vector.extract_strided_slice %4 {offsets = [32, 0], sizes = [8, 4], strides = [1, 1]} : vector<64x4xf32> to vector<8x4xf32>
    %37 = vector.extract_strided_slice %9 {offsets = [32, 0], sizes = [8, 4], strides = [1, 1]} : vector<64x4xf32> to vector<8x4xf32>
    %38 = vector.extract_strided_slice %14 {offsets = [32, 0], sizes = [8, 4], strides = [1, 1]} : vector<64x4xf32> to vector<8x4xf32>
    %39 = vector.extract_strided_slice %19 {offsets = [32, 0], sizes = [8, 4], strides = [1, 1]} : vector<64x4xf32> to vector<8x4xf32>
    %40 = vector.extract_strided_slice %4 {offsets = [40, 0], sizes = [8, 4], strides = [1, 1]} : vector<64x4xf32> to vector<8x4xf32>
    %41 = vector.extract_strided_slice %9 {offsets = [40, 0], sizes = [8, 4], strides = [1, 1]} : vector<64x4xf32> to vector<8x4xf32>
    %42 = vector.extract_strided_slice %14 {offsets = [40, 0], sizes = [8, 4], strides = [1, 1]} : vector<64x4xf32> to vector<8x4xf32>
    %43 = vector.extract_strided_slice %19 {offsets = [40, 0], sizes = [8, 4], strides = [1, 1]} : vector<64x4xf32> to vector<8x4xf32>
    %44 = vector.extract_strided_slice %4 {offsets = [48, 0], sizes = [8, 4], strides = [1, 1]} : vector<64x4xf32> to vector<8x4xf32>
    %45 = vector.extract_strided_slice %9 {offsets = [48, 0], sizes = [8, 4], strides = [1, 1]} : vector<64x4xf32> to vector<8x4xf32>
    %46 = vector.extract_strided_slice %14 {offsets = [48, 0], sizes = [8, 4], strides = [1, 1]} : vector<64x4xf32> to vector<8x4xf32>
    %47 = vector.extract_strided_slice %19 {offsets = [48, 0], sizes = [8, 4], strides = [1, 1]} : vector<64x4xf32> to vector<8x4xf32>
    %48 = vector.extract_strided_slice %4 {offsets = [56, 0], sizes = [8, 4], strides = [1, 1]} : vector<64x4xf32> to vector<8x4xf32>
    %49 = vector.extract_strided_slice %9 {offsets = [56, 0], sizes = [8, 4], strides = [1, 1]} : vector<64x4xf32> to vector<8x4xf32>
    %50 = vector.extract_strided_slice %14 {offsets = [56, 0], sizes = [8, 4], strides = [1, 1]} : vector<64x4xf32> to vector<8x4xf32>
    %51 = vector.extract_strided_slice %19 {offsets = [56, 0], sizes = [8, 4], strides = [1, 1]} : vector<64x4xf32> to vector<8x4xf32>
    %52 = tpu.concatenate %20, %21, %22, %23, %24, %25, %26, %27, %28, %29, %30, %31, %32, %33, %34, %35 in 1 : vector<8x4xf32>, vector<8x4xf32>, vector<8x4xf32>, vector<8x4xf32>, vector<8x4xf32>, vector<8x4xf32>, vector<8x4xf32>, vector<8x4xf32>, vector<8x4xf32>, vector<8x4xf32>, vector<8x4xf32>, vector<8x4xf32>, vector<8x4xf32>, vector<8x4xf32>, vector<8x4xf32>, vector<8x4xf32> -> vector<8x64xf32>
    %53 = tpu.concatenate %36, %37, %38, %39, %40, %41, %42, %43, %44, %45, %46, %47, %48, %49, %50, %51 in 1 : vector<8x4xf32>, vector<8x4xf32>, vector<8x4xf32>, vector<8x4xf32>, vector<8x4xf32>, vector<8x4xf32>, vector<8x4xf32>, vector<8x4xf32>, vector<8x4xf32>, vector<8x4xf32>, vector<8x4xf32>, vector<8x4xf32>, vector<8x4xf32>, vector<8x4xf32>, vector<8x4xf32>, vector<8x4xf32> -> vector<8x64xf32>
    %54 = tpu.concatenate %52, %53 in 1 : vector<8x64xf32>, vector<8x64xf32> -> vector<8x128xf32>
    %c0_23 = arith.constant 0 : index
    %c0_24 = arith.constant 0 : index
    %55 = vector.load %arg3[%c0_23, %c0_24] : memref<1x128xf32, #tpu.memory_space<vmem>>, vector<1x128xf32>
    %56 = vector.broadcast %55 : vector<1x128xf32> to vector<8x128xf32>
    %57 = arith.addf %54, %56 : vector<8x128xf32>
    %c0_25 = arith.constant 0 : index
    %c0_26 = arith.constant 0 : index
    %58 = vector.load %arg4[%c0_25, %c0_26] : memref<8x128xf32, #tpu.memory_space<vmem>>, vector<8x128xf32>
    %59 = arith.addf %57, %58 : vector<8x128xf32>
    %60 = arith.negf %59 : vector<8x128xf32>
    %61 = math.exp %60 : vector<8x128xf32>
    %cst_27 = arith.constant 1.000000e+00 : f32
    %62 = vector.broadcast %cst_27 : f32 to vector<8x128xf32>
    %63 = arith.addf %62, %61 : vector<8x128xf32>
    %64 = arith.divf %62, %63 : vector<8x128xf32>
    %65 = arith.mulf %59, %64 : vector<8x128xf32>
    %c0_28 = arith.constant 0 : index
    %c0_29 = arith.constant 0 : index
    %66 = vector.load %arg5[%c0_28, %c0_29] : memref<8x128xf32, #tpu.memory_space<vmem>>, vector<8x128xf32>
    tpu.vector_store %arg5[%c0_28, %c0_29], %65 {strides = array<i32>} : memref<8x128xf32, #tpu.memory_space<vmem>>, vector<8x128xf32>,
    return
  }
  func.func @transform_0(%arg0: i32) -> (i32, i32, i32) {
    %c0_i32 = arith.constant 0 : i32
    %c0_i32_0 = arith.constant 0 : i32
    %c0_i32_1 = arith.constant 0 : i32
    return %c0_i32, %arg0, %c0_i32_0 : i32, i32, i32
  }
  func.func @transform_1(%arg0: i32) -> (i32, i32, i32) {
    %c0_i32 = arith.constant 0 : i32
    %c0_i32_0 = arith.constant 0 : i32
    %c0_i32_1 = arith.constant 0 : i32
    %c0_i32_2 = arith.constant 0 : i32
    return %c0_i32, %c0_i32_0, %c0_i32_1 : i32, i32, i32
  }
  func.func @transform_2(%arg0: i32) -> (i32, i32) {
    %c0_i32 = arith.constant 0 : i32
    %c0_i32_0 = arith.constant 0 : i32
    %c0_i32_1 = arith.constant 0 : i32
    return %c0_i32, %c0_i32_0 : i32, i32
  }
  func.func @transform_3(%arg0: i32) -> (i32, i32) {
    %c0_i32 = arith.constant 0 : i32
    %c0_i32_0 = arith.constant 0 : i32
    return %arg0, %c0_i32 : i32, i32
  }
  func.func @transform_4(%arg0: i32) -> (i32, i32) {
    %c0_i32 = arith.constant 0 : i32
    %c0_i32_0 = arith.constant 0 : i32
    return %arg0, %c0_i32 : i32, i32
  }
}

module attributes {stable_mosaic.version = 11 : i64} {
  func.func @kernel(%arg0: i32, %arg1: memref<1x64x16xbf16, #tpu.memory_space<vmem>>, %arg2: memref<1x16x16xbf16, #tpu.memory_space<vmem>>, %arg3: memref<1x128xf32, #tpu.memory_space<vmem>>, %arg4: memref<8x128xf32, #tpu.memory_space<vmem>>) attributes {dimension_semantics = [#tpu.dimension_semantics<parallel>], iteration_bounds = array<i64: 1>, scalar_prefetch = 0 : i64, scratch_operands = 0 : i64, tpu.core_type = #tpu.core_type<tc>, window_params = [{transform_indices = @transform_0, window_bounds = array<i64: 1, 64, 16>}, {pipeline_mode = #tpu.pipeline_mode<synchronous>, transform_indices = @transform_1, window_bounds = array<i64: 1, 16, 16>}, {pipeline_mode = #tpu.pipeline_mode<synchronous>, transform_indices = @transform_2, window_bounds = array<i64: 1, 128>}, {transform_indices = @transform_3, window_bounds = array<i64: 8, 128>}]} {
    %c0 = arith.constant 0 : index
    %c0_0 = arith.constant 0 : index
    %c0_1 = arith.constant 0 : index
    %0 = vector.load %arg1[%c0, %c0_0, %c0_1] : memref<1x64x16xbf16, #tpu.memory_space<vmem>>, vector<1x64x16xbf16>
    %1 = vector.shape_cast %0 : vector<1x64x16xbf16> to vector<64x16xbf16>
    %c0_2 = arith.constant 0 : index
    %c0_3 = arith.constant 0 : index
    %c0_4 = arith.constant 0 : index
    %2 = vector.load %arg2[%c0_2, %c0_3, %c0_4] : memref<1x16x16xbf16, #tpu.memory_space<vmem>>, vector<1x16x16xbf16>
    %3 = vector.shape_cast %2 : vector<1x16x16xbf16> to vector<16x16xbf16>
    %cst = arith.constant dense<0.000000e+00> : vector<64x16xf32>
    %4 = tpu.matmul %1, %3, %cst {dimension_numbers = #tpu.dot_dimension_numbers<[1], [0], [0], [1], [0, 0, 1, 1], [], []>} : vector<64x16xbf16>, vector<16x16xbf16>, vector<64x16xf32> -> vector<64x16xf32>
    %5 = vector.extract_strided_slice %4 {offsets = [0, 0], sizes = [8, 16], strides = [1, 1]} : vector<64x16xf32> to vector<8x16xf32>
    %6 = vector.extract_strided_slice %4 {offsets = [8, 0], sizes = [8, 16], strides = [1, 1]} : vector<64x16xf32> to vector<8x16xf32>
    %7 = vector.extract_strided_slice %4 {offsets = [16, 0], sizes = [8, 16], strides = [1, 1]} : vector<64x16xf32> to vector<8x16xf32>
    %8 = vector.extract_strided_slice %4 {offsets = [24, 0], sizes = [8, 16], strides = [1, 1]} : vector<64x16xf32> to vector<8x16xf32>
    %9 = vector.extract_strided_slice %4 {offsets = [32, 0], sizes = [8, 16], strides = [1, 1]} : vector<64x16xf32> to vector<8x16xf32>
    %10 = vector.extract_strided_slice %4 {offsets = [40, 0], sizes = [8, 16], strides = [1, 1]} : vector<64x16xf32> to vector<8x16xf32>
    %11 = vector.extract_strided_slice %4 {offsets = [48, 0], sizes = [8, 16], strides = [1, 1]} : vector<64x16xf32> to vector<8x16xf32>
    %12 = vector.extract_strided_slice %4 {offsets = [56, 0], sizes = [8, 16], strides = [1, 1]} : vector<64x16xf32> to vector<8x16xf32>
    %13 = tpu.concatenate %5, %6, %7, %8, %9, %10, %11, %12 in 1 : vector<8x16xf32>, vector<8x16xf32>, vector<8x16xf32>, vector<8x16xf32>, vector<8x16xf32>, vector<8x16xf32>, vector<8x16xf32>, vector<8x16xf32> -> vector<8x128xf32>
    %c0_5 = arith.constant 0 : index
    %c0_6 = arith.constant 0 : index
    %14 = vector.load %arg3[%c0_5, %c0_6] : memref<1x128xf32, #tpu.memory_space<vmem>>, vector<1x128xf32>
    %15 = vector.broadcast %14 : vector<1x128xf32> to vector<8x128xf32>
    %16 = arith.addf %13, %15 : vector<8x128xf32>
    %17 = arith.negf %16 : vector<8x128xf32>
    %18 = math.exp %17 : vector<8x128xf32>
    %cst_7 = arith.constant 1.000000e+00 : f32
    %19 = vector.broadcast %cst_7 : f32 to vector<8x128xf32>
    %20 = arith.addf %19, %18 : vector<8x128xf32>
    %21 = arith.divf %19, %20 : vector<8x128xf32>
    %22 = arith.mulf %16, %21 : vector<8x128xf32>
    %c0_8 = arith.constant 0 : index
    %c0_9 = arith.constant 0 : index
    %23 = vector.load %arg4[%c0_8, %c0_9] : memref<8x128xf32, #tpu.memory_space<vmem>>, vector<8x128xf32>
    tpu.vector_store %arg4[%c0_8, %c0_9], %22 {strides = array<i32>} : memref<8x128xf32, #tpu.memory_space<vmem>>, vector<8x128xf32>,
    return
  }
  func.func @transform_0(%arg0: i32) -> (i32, i32, i32) {
    %c0_i32 = arith.constant 0 : i32
    %c0_i32_0 = arith.constant 0 : i32
    %c0_i32_1 = arith.constant 0 : i32
    return %c0_i32, %arg0, %c0_i32_0 : i32, i32, i32
  }
  func.func @transform_1(%arg0: i32) -> (i32, i32, i32) {
    %c0_i32 = arith.constant 0 : i32
    %c0_i32_0 = arith.constant 0 : i32
    %c0_i32_1 = arith.constant 0 : i32
    %c0_i32_2 = arith.constant 0 : i32
    return %c0_i32, %c0_i32_0, %c0_i32_1 : i32, i32, i32
  }
  func.func @transform_2(%arg0: i32) -> (i32, i32) {
    %c0_i32 = arith.constant 0 : i32
    %c0_i32_0 = arith.constant 0 : i32
    %c0_i32_1 = arith.constant 0 : i32
    return %c0_i32, %c0_i32_0 : i32, i32
  }
  func.func @transform_3(%arg0: i32) -> (i32, i32) {
    %c0_i32 = arith.constant 0 : i32
    %c0_i32_0 = arith.constant 0 : i32
    return %arg0, %c0_i32 : i32, i32
  }
}

module attributes {stable_mosaic.version = 11 : i64} {
  func.func @kernel(%arg0: i32, %arg1: memref<4x64x36xbf16, #tpu.memory_space<vmem>>, %arg2: memref<4x36x4xbf16, #tpu.memory_space<vmem>>, %arg3: memref<1x128xf32, #tpu.memory_space<vmem>>, %arg4: memref<8x128xf32, #tpu.memory_space<vmem>>) attributes {dimension_semantics = [#tpu.dimension_semantics<parallel>], iteration_bounds = array<i64: 1>, scalar_prefetch = 0 : i64, scratch_operands = 0 : i64, tpu.core_type = #tpu.core_type<tc>, window_params = [{transform_indices = @transform_0, window_bounds = array<i64: 4, 64, 36>}, {pipeline_mode = #tpu.pipeline_mode<synchronous>, transform_indices = @transform_1, window_bounds = array<i64: 4, 36, 4>}, {pipeline_mode = #tpu.pipeline_mode<synchronous>, transform_indices = @transform_2, window_bounds = array<i64: 1, 128>}, {transform_indices = @transform_3, window_bounds = array<i64: 8, 128>}]} {
    %c0 = arith.constant 0 : index
    %c0_0 = arith.constant 0 : index
    %c0_1 = arith.constant 0 : index
    %0 = vector.load %arg1[%c0, %c0_0, %c0_1] : memref<4x64x36xbf16, #tpu.memory_space<vmem>>, vector<1x64x36xbf16>
    %1 = vector.shape_cast %0 : vector<1x64x36xbf16> to vector<64x36xbf16>
    %c0_2 = arith.constant 0 : index
    %c0_3 = arith.constant 0 : index
    %c0_4 = arith.constant 0 : index
    %2 = vector.load %arg2[%c0_2, %c0_3, %c0_4] : memref<4x36x4xbf16, #tpu.memory_space<vmem>>, vector<1x36x4xbf16>
    %3 = vector.shape_cast %2 : vector<1x36x4xbf16> to vector<36x4xbf16>
    %cst = arith.constant dense<0.000000e+00> : vector<64x4xf32>
    %4 = tpu.matmul %1, %3, %cst {dimension_numbers = #tpu.dot_dimension_numbers<[1], [0], [0], [1], [0, 0, 1, 1], [], []>} : vector<64x36xbf16>, vector<36x4xbf16>, vector<64x4xf32> -> vector<64x4xf32>
    %c1 = arith.constant 1 : index
    %c0_5 = arith.constant 0 : index
    %c0_6 = arith.constant 0 : index
    %5 = vector.load %arg1[%c1, %c0_5, %c0_6] : memref<4x64x36xbf16, #tpu.memory_space<vmem>>, vector<1x64x36xbf16>
    %6 = vector.shape_cast %5 : vector<1x64x36xbf16> to vector<64x36xbf16>
    %c1_7 = arith.constant 1 : index
    %c0_8 = arith.constant 0 : index
    %c0_9 = arith.constant 0 : index
    %7 = vector.load %arg2[%c1_7, %c0_8, %c0_9] : memref<4x36x4xbf16, #tpu.memory_space<vmem>>, vector<1x36x4xbf16>
    %8 = vector.shape_cast %7 : vector<1x36x4xbf16> to vector<36x4xbf16>
    %cst_10 = arith.constant dense<0.000000e+00> : vector<64x4xf32>
    %9 = tpu.matmul %6, %8, %cst_10 {dimension_numbers = #tpu.dot_dimension_numbers<[1], [0], [0], [1], [0, 0, 1, 1], [], []>} : vector<64x36xbf16>, vector<36x4xbf16>, vector<64x4xf32> -> vector<64x4xf32>
    %c2 = arith.constant 2 : index
    %c0_11 = arith.constant 0 : index
    %c0_12 = arith.constant 0 : index
    %10 = vector.load %arg1[%c2, %c0_11, %c0_12] : memref<4x64x36xbf16, #tpu.memory_space<vmem>>, vector<1x64x36xbf16>
    %11 = vector.shape_cast %10 : vector<1x64x36xbf16> to vector<64x36xbf16>
    %c2_13 = arith.constant 2 : index
    %c0_14 = arith.constant 0 : index
    %c0_15 = arith.constant 0 : index
    %12 = vector.load %arg2[%c2_13, %c0_14, %c0_15] : memref<4x36x4xbf16, #tpu.memory_space<vmem>>, vector<1x36x4xbf16>
    %13 = vector.shape_cast %12 : vector<1x36x4xbf16> to vector<36x4xbf16>
    %cst_16 = arith.constant dense<0.000000e+00> : vector<64x4xf32>
    %14 = tpu.matmul %11, %13, %cst_16 {dimension_numbers = #tpu.dot_dimension_numbers<[1], [0], [0], [1], [0, 0, 1, 1], [], []>} : vector<64x36xbf16>, vector<36x4xbf16>, vector<64x4xf32> -> vector<64x4xf32>
    %c3 = arith.constant 3 : index
    %c0_17 = arith.constant 0 : index
    %c0_18 = arith.constant 0 : index
    %15 = vector.load %arg1[%c3, %c0_17, %c0_18] : memref<4x64x36xbf16, #tpu.memory_space<vmem>>, vector<1x64x36xbf16>
    %16 = vector.shape_cast %15 : vector<1x64x36xbf16> to vector<64x36xbf16>
    %c3_19 = arith.constant 3 : index
    %c0_20 = arith.constant 0 : index
    %c0_21 = arith.constant 0 : index
    %17 = vector.load %arg2[%c3_19, %c0_20, %c0_21] : memref<4x36x4xbf16, #tpu.memory_space<vmem>>, vector<1x36x4xbf16>
    %18 = vector.shape_cast %17 : vector<1x36x4xbf16> to vector<36x4xbf16>
    %cst_22 = arith.constant dense<0.000000e+00> : vector<64x4xf32>
    %19 = tpu.matmul %16, %18, %cst_22 {dimension_numbers = #tpu.dot_dimension_numbers<[1], [0], [0], [1], [0, 0, 1, 1], [], []>} : vector<64x36xbf16>, vector<36x4xbf16>, vector<64x4xf32> -> vector<64x4xf32>
    %20 = vector.extract_strided_slice %4 {offsets = [0, 0], sizes = [8, 4], strides = [1, 1]} : vector<64x4xf32> to vector<8x4xf32>
    %21 = vector.extract_strided_slice %9 {offsets = [0, 0], sizes = [8, 4], strides = [1, 1]} : vector<64x4xf32> to vector<8x4xf32>
    %22 = vector.extract_strided_slice %14 {offsets = [0, 0], sizes = [8, 4], strides = [1, 1]} : vector<64x4xf32> to vector<8x4xf32>
    %23 = vector.extract_strided_slice %19 {offsets = [0, 0], sizes = [8, 4], strides = [1, 1]} : vector<64x4xf32> to vector<8x4xf32>
    %24 = vector.extract_strided_slice %4 {offsets = [8, 0], sizes = [8, 4], strides = [1, 1]} : vector<64x4xf32> to vector<8x4xf32>
    %25 = vector.extract_strided_slice %9 {offsets = [8, 0], sizes = [8, 4], strides = [1, 1]} : vector<64x4xf32> to vector<8x4xf32>
    %26 = vector.extract_strided_slice %14 {offsets = [8, 0], sizes = [8, 4], strides = [1, 1]} : vector<64x4xf32> to vector<8x4xf32>
    %27 = vector.extract_strided_slice %19 {offsets = [8, 0], sizes = [8, 4], strides = [1, 1]} : vector<64x4xf32> to vector<8x4xf32>
    %28 = vector.extract_strided_slice %4 {offsets = [16, 0], sizes = [8, 4], strides = [1, 1]} : vector<64x4xf32> to vector<8x4xf32>
    %29 = vector.extract_strided_slice %9 {offsets = [16, 0], sizes = [8, 4], strides = [1, 1]} : vector<64x4xf32> to vector<8x4xf32>
    %30 = vector.extract_strided_slice %14 {offsets = [16, 0], sizes = [8, 4], strides = [1, 1]} : vector<64x4xf32> to vector<8x4xf32>
    %31 = vector.extract_strided_slice %19 {offsets = [16, 0], sizes = [8, 4], strides = [1, 1]} : vector<64x4xf32> to vector<8x4xf32>
    %32 = vector.extract_strided_slice %4 {offsets = [24, 0], sizes = [8, 4], strides = [1, 1]} : vector<64x4xf32> to vector<8x4xf32>
    %33 = vector.extract_strided_slice %9 {offsets = [24, 0], sizes = [8, 4], strides = [1, 1]} : vector<64x4xf32> to vector<8x4xf32>
    %34 = vector.extract_strided_slice %14 {offsets = [24, 0], sizes = [8, 4], strides = [1, 1]} : vector<64x4xf32> to vector<8x4xf32>
    %35 = vector.extract_strided_slice %19 {offsets = [24, 0], sizes = [8, 4], strides = [1, 1]} : vector<64x4xf32> to vector<8x4xf32>
    %36 = vector.extract_strided_slice %4 {offsets = [32, 0], sizes = [8, 4], strides = [1, 1]} : vector<64x4xf32> to vector<8x4xf32>
    %37 = vector.extract_strided_slice %9 {offsets = [32, 0], sizes = [8, 4], strides = [1, 1]} : vector<64x4xf32> to vector<8x4xf32>
    %38 = vector.extract_strided_slice %14 {offsets = [32, 0], sizes = [8, 4], strides = [1, 1]} : vector<64x4xf32> to vector<8x4xf32>
    %39 = vector.extract_strided_slice %19 {offsets = [32, 0], sizes = [8, 4], strides = [1, 1]} : vector<64x4xf32> to vector<8x4xf32>
    %40 = vector.extract_strided_slice %4 {offsets = [40, 0], sizes = [8, 4], strides = [1, 1]} : vector<64x4xf32> to vector<8x4xf32>
    %41 = vector.extract_strided_slice %9 {offsets = [40, 0], sizes = [8, 4], strides = [1, 1]} : vector<64x4xf32> to vector<8x4xf32>
    %42 = vector.extract_strided_slice %14 {offsets = [40, 0], sizes = [8, 4], strides = [1, 1]} : vector<64x4xf32> to vector<8x4xf32>
    %43 = vector.extract_strided_slice %19 {offsets = [40, 0], sizes = [8, 4], strides = [1, 1]} : vector<64x4xf32> to vector<8x4xf32>
    %44 = vector.extract_strided_slice %4 {offsets = [48, 0], sizes = [8, 4], strides = [1, 1]} : vector<64x4xf32> to vector<8x4xf32>
    %45 = vector.extract_strided_slice %9 {offsets = [48, 0], sizes = [8, 4], strides = [1, 1]} : vector<64x4xf32> to vector<8x4xf32>
    %46 = vector.extract_strided_slice %14 {offsets = [48, 0], sizes = [8, 4], strides = [1, 1]} : vector<64x4xf32> to vector<8x4xf32>
    %47 = vector.extract_strided_slice %19 {offsets = [48, 0], sizes = [8, 4], strides = [1, 1]} : vector<64x4xf32> to vector<8x4xf32>
    %48 = vector.extract_strided_slice %4 {offsets = [56, 0], sizes = [8, 4], strides = [1, 1]} : vector<64x4xf32> to vector<8x4xf32>
    %49 = vector.extract_strided_slice %9 {offsets = [56, 0], sizes = [8, 4], strides = [1, 1]} : vector<64x4xf32> to vector<8x4xf32>
    %50 = vector.extract_strided_slice %14 {offsets = [56, 0], sizes = [8, 4], strides = [1, 1]} : vector<64x4xf32> to vector<8x4xf32>
    %51 = vector.extract_strided_slice %19 {offsets = [56, 0], sizes = [8, 4], strides = [1, 1]} : vector<64x4xf32> to vector<8x4xf32>
    %52 = tpu.concatenate %20, %21, %22, %23, %24, %25, %26, %27, %28, %29, %30, %31, %32, %33, %34, %35 in 1 : vector<8x4xf32>, vector<8x4xf32>, vector<8x4xf32>, vector<8x4xf32>, vector<8x4xf32>, vector<8x4xf32>, vector<8x4xf32>, vector<8x4xf32>, vector<8x4xf32>, vector<8x4xf32>, vector<8x4xf32>, vector<8x4xf32>, vector<8x4xf32>, vector<8x4xf32>, vector<8x4xf32>, vector<8x4xf32> -> vector<8x64xf32>
    %53 = tpu.concatenate %36, %37, %38, %39, %40, %41, %42, %43, %44, %45, %46, %47, %48, %49, %50, %51 in 1 : vector<8x4xf32>, vector<8x4xf32>, vector<8x4xf32>, vector<8x4xf32>, vector<8x4xf32>, vector<8x4xf32>, vector<8x4xf32>, vector<8x4xf32>, vector<8x4xf32>, vector<8x4xf32>, vector<8x4xf32>, vector<8x4xf32>, vector<8x4xf32>, vector<8x4xf32>, vector<8x4xf32>, vector<8x4xf32> -> vector<8x64xf32>
    %54 = tpu.concatenate %52, %53 in 1 : vector<8x64xf32>, vector<8x64xf32> -> vector<8x128xf32>
    %c0_23 = arith.constant 0 : index
    %c0_24 = arith.constant 0 : index
    %55 = vector.load %arg3[%c0_23, %c0_24] : memref<1x128xf32, #tpu.memory_space<vmem>>, vector<1x128xf32>
    %56 = vector.broadcast %55 : vector<1x128xf32> to vector<8x128xf32>
    %57 = arith.addf %54, %56 : vector<8x128xf32>
    %58 = arith.negf %57 : vector<8x128xf32>
    %59 = math.exp %58 : vector<8x128xf32>
    %cst_25 = arith.constant 1.000000e+00 : f32
    %60 = vector.broadcast %cst_25 : f32 to vector<8x128xf32>
    %61 = arith.addf %60, %59 : vector<8x128xf32>
    %62 = arith.divf %60, %61 : vector<8x128xf32>
    %63 = arith.mulf %57, %62 : vector<8x128xf32>
    %c0_26 = arith.constant 0 : index
    %c0_27 = arith.constant 0 : index
    %64 = vector.load %arg4[%c0_26, %c0_27] : memref<8x128xf32, #tpu.memory_space<vmem>>, vector<8x128xf32>
    tpu.vector_store %arg4[%c0_26, %c0_27], %63 {strides = array<i32>} : memref<8x128xf32, #tpu.memory_space<vmem>>, vector<8x128xf32>,
    return
  }
  func.func @transform_0(%arg0: i32) -> (i32, i32, i32) {
    %c0_i32 = arith.constant 0 : i32
    %c0_i32_0 = arith.constant 0 : i32
    %c0_i32_1 = arith.constant 0 : i32
    return %c0_i32, %arg0, %c0_i32_0 : i32, i32, i32
  }
  func.func @transform_1(%arg0: i32) -> (i32, i32, i32) {
    %c0_i32 = arith.constant 0 : i32
    %c0_i32_0 = arith.constant 0 : i32
    %c0_i32_1 = arith.constant 0 : i32
    %c0_i32_2 = arith.constant 0 : i32
    return %c0_i32, %c0_i32_0, %c0_i32_1 : i32, i32, i32
  }
  func.func @transform_2(%arg0: i32) -> (i32, i32) {
    %c0_i32 = arith.constant 0 : i32
    %c0_i32_0 = arith.constant 0 : i32
    %c0_i32_1 = arith.constant 0 : i32
    return %c0_i32, %c0_i32_0 : i32, i32
  }
  func.func @transform_3(%arg0: i32) -> (i32, i32) {
    %c0_i32 = arith.constant 0 : i32
    %c0_i32_0 = arith.constant 0 : i32
    return %arg0, %c0_i32 : i32, i32
  }
}

module attributes {stable_mosaic.version = 11 : i64} {
  func.func @kernel(%arg0: i32, %arg1: memref<1x32x16xbf16, #tpu.memory_space<vmem>>, %arg2: memref<1x16x32xbf16, #tpu.memory_space<vmem>>, %arg3: memref<1x128xf32, #tpu.memory_space<vmem>>, %arg4: memref<8x128xf32, #tpu.memory_space<vmem>>) attributes {dimension_semantics = [#tpu.dimension_semantics<parallel>], iteration_bounds = array<i64: 1>, scalar_prefetch = 0 : i64, scratch_operands = 0 : i64, tpu.core_type = #tpu.core_type<tc>, window_params = [{transform_indices = @transform_0, window_bounds = array<i64: 1, 32, 16>}, {pipeline_mode = #tpu.pipeline_mode<synchronous>, transform_indices = @transform_1, window_bounds = array<i64: 1, 16, 32>}, {pipeline_mode = #tpu.pipeline_mode<synchronous>, transform_indices = @transform_2, window_bounds = array<i64: 1, 128>}, {transform_indices = @transform_3, window_bounds = array<i64: 8, 128>}]} {
    %c0 = arith.constant 0 : index
    %c0_0 = arith.constant 0 : index
    %c0_1 = arith.constant 0 : index
    %0 = vector.load %arg1[%c0, %c0_0, %c0_1] : memref<1x32x16xbf16, #tpu.memory_space<vmem>>, vector<1x32x16xbf16>
    %1 = vector.shape_cast %0 : vector<1x32x16xbf16> to vector<32x16xbf16>
    %c0_2 = arith.constant 0 : index
    %c0_3 = arith.constant 0 : index
    %c0_4 = arith.constant 0 : index
    %2 = vector.load %arg2[%c0_2, %c0_3, %c0_4] : memref<1x16x32xbf16, #tpu.memory_space<vmem>>, vector<1x16x32xbf16>
    %3 = vector.shape_cast %2 : vector<1x16x32xbf16> to vector<16x32xbf16>
    %cst = arith.constant dense<0.000000e+00> : vector<32x32xf32>
    %4 = tpu.matmul %1, %3, %cst {dimension_numbers = #tpu.dot_dimension_numbers<[1], [0], [0], [1], [0, 0, 1, 1], [], []>} : vector<32x16xbf16>, vector<16x32xbf16>, vector<32x32xf32> -> vector<32x32xf32>
    %5 = vector.extract_strided_slice %4 {offsets = [0, 0], sizes = [8, 32], strides = [1, 1]} : vector<32x32xf32> to vector<8x32xf32>
    %6 = vector.extract_strided_slice %4 {offsets = [8, 0], sizes = [8, 32], strides = [1, 1]} : vector<32x32xf32> to vector<8x32xf32>
    %7 = vector.extract_strided_slice %4 {offsets = [16, 0], sizes = [8, 32], strides = [1, 1]} : vector<32x32xf32> to vector<8x32xf32>
    %8 = vector.extract_strided_slice %4 {offsets = [24, 0], sizes = [8, 32], strides = [1, 1]} : vector<32x32xf32> to vector<8x32xf32>
    %9 = tpu.concatenate %5, %6, %7, %8 in 1 : vector<8x32xf32>, vector<8x32xf32>, vector<8x32xf32>, vector<8x32xf32> -> vector<8x128xf32>
    %c0_5 = arith.constant 0 : index
    %c0_6 = arith.constant 0 : index
    %10 = vector.load %arg3[%c0_5, %c0_6] : memref<1x128xf32, #tpu.memory_space<vmem>>, vector<1x128xf32>
    %11 = vector.broadcast %10 : vector<1x128xf32> to vector<8x128xf32>
    %12 = arith.addf %9, %11 : vector<8x128xf32>
    %c0_7 = arith.constant 0 : index
    %c0_8 = arith.constant 0 : index
    %13 = vector.load %arg4[%c0_7, %c0_8] : memref<8x128xf32, #tpu.memory_space<vmem>>, vector<8x128xf32>
    tpu.vector_store %arg4[%c0_7, %c0_8], %12 {strides = array<i32>} : memref<8x128xf32, #tpu.memory_space<vmem>>, vector<8x128xf32>,
    return
  }
  func.func @transform_0(%arg0: i32) -> (i32, i32, i32) {
    %c0_i32 = arith.constant 0 : i32
    %c0_i32_0 = arith.constant 0 : i32
    %c0_i32_1 = arith.constant 0 : i32
    return %c0_i32, %arg0, %c0_i32_0 : i32, i32, i32
  }
  func.func @transform_1(%arg0: i32) -> (i32, i32, i32) {
    %c0_i32 = arith.constant 0 : i32
    %c0_i32_0 = arith.constant 0 : i32
    %c0_i32_1 = arith.constant 0 : i32
    %c0_i32_2 = arith.constant 0 : i32
    return %c0_i32, %c0_i32_0, %c0_i32_1 : i32, i32, i32
  }
  func.func @transform_2(%arg0: i32) -> (i32, i32) {
    %c0_i32 = arith.constant 0 : i32
    %c0_i32_0 = arith.constant 0 : i32
    %c0_i32_1 = arith.constant 0 : i32
    return %c0_i32, %c0_i32_0 : i32, i32
  }
  func.func @transform_3(%arg0: i32) -> (i32, i32) {
    %c0_i32 = arith.constant 0 : i32
    %c0_i32_0 = arith.constant 0 : i32
    return %arg0, %c0_i32 : i32, i32
  }
}

module attributes {stable_mosaic.version = 11 : i64} {
  func.func @kernel(%arg0: i32, %arg1: memref<1x32x16xbf16, #tpu.memory_space<vmem>>, %arg2: memref<1x16x32xbf16, #tpu.memory_space<vmem>>, %arg3: memref<1x128xf32, #tpu.memory_space<vmem>>, %arg4: memref<8x128xf32, #tpu.memory_space<vmem>>, %arg5: memref<8x128xf32, #tpu.memory_space<vmem>>) attributes {dimension_semantics = [#tpu.dimension_semantics<parallel>], iteration_bounds = array<i64: 1>, scalar_prefetch = 0 : i64, scratch_operands = 0 : i64, tpu.core_type = #tpu.core_type<tc>, window_params = [{transform_indices = @transform_0, window_bounds = array<i64: 1, 32, 16>}, {pipeline_mode = #tpu.pipeline_mode<synchronous>, transform_indices = @transform_1, window_bounds = array<i64: 1, 16, 32>}, {pipeline_mode = #tpu.pipeline_mode<synchronous>, transform_indices = @transform_2, window_bounds = array<i64: 1, 128>}, {transform_indices = @transform_3, window_bounds = array<i64: 8, 128>}, {transform_indices = @transform_4, window_bounds = array<i64: 8, 128>}]} {
    %c0 = arith.constant 0 : index
    %c0_0 = arith.constant 0 : index
    %c0_1 = arith.constant 0 : index
    %0 = vector.load %arg1[%c0, %c0_0, %c0_1] : memref<1x32x16xbf16, #tpu.memory_space<vmem>>, vector<1x32x16xbf16>
    %1 = vector.shape_cast %0 : vector<1x32x16xbf16> to vector<32x16xbf16>
    %c0_2 = arith.constant 0 : index
    %c0_3 = arith.constant 0 : index
    %c0_4 = arith.constant 0 : index
    %2 = vector.load %arg2[%c0_2, %c0_3, %c0_4] : memref<1x16x32xbf16, #tpu.memory_space<vmem>>, vector<1x16x32xbf16>
    %3 = vector.shape_cast %2 : vector<1x16x32xbf16> to vector<16x32xbf16>
    %cst = arith.constant dense<0.000000e+00> : vector<32x32xf32>
    %4 = tpu.matmul %1, %3, %cst {dimension_numbers = #tpu.dot_dimension_numbers<[1], [0], [0], [1], [0, 0, 1, 1], [], []>} : vector<32x16xbf16>, vector<16x32xbf16>, vector<32x32xf32> -> vector<32x32xf32>
    %5 = vector.extract_strided_slice %4 {offsets = [0, 0], sizes = [8, 32], strides = [1, 1]} : vector<32x32xf32> to vector<8x32xf32>
    %6 = vector.extract_strided_slice %4 {offsets = [8, 0], sizes = [8, 32], strides = [1, 1]} : vector<32x32xf32> to vector<8x32xf32>
    %7 = vector.extract_strided_slice %4 {offsets = [16, 0], sizes = [8, 32], strides = [1, 1]} : vector<32x32xf32> to vector<8x32xf32>
    %8 = vector.extract_strided_slice %4 {offsets = [24, 0], sizes = [8, 32], strides = [1, 1]} : vector<32x32xf32> to vector<8x32xf32>
    %9 = tpu.concatenate %5, %6, %7, %8 in 1 : vector<8x32xf32>, vector<8x32xf32>, vector<8x32xf32>, vector<8x32xf32> -> vector<8x128xf32>
    %c0_5 = arith.constant 0 : index
    %c0_6 = arith.constant 0 : index
    %10 = vector.load %arg3[%c0_5, %c0_6] : memref<1x128xf32, #tpu.memory_space<vmem>>, vector<1x128xf32>
    %11 = vector.broadcast %10 : vector<1x128xf32> to vector<8x128xf32>
    %12 = arith.addf %9, %11 : vector<8x128xf32>
    %c0_7 = arith.constant 0 : index
    %c0_8 = arith.constant 0 : index
    %13 = vector.load %arg4[%c0_7, %c0_8] : memref<8x128xf32, #tpu.memory_space<vmem>>, vector<8x128xf32>
    %14 = arith.addf %12, %13 : vector<8x128xf32>
    %15 = arith.negf %14 : vector<8x128xf32>
    %16 = math.exp %15 : vector<8x128xf32>
    %cst_9 = arith.constant 1.000000e+00 : f32
    %17 = vector.broadcast %cst_9 : f32 to vector<8x128xf32>
    %18 = arith.addf %17, %16 : vector<8x128xf32>
    %19 = arith.divf %17, %18 : vector<8x128xf32>
    %20 = arith.mulf %14, %19 : vector<8x128xf32>
    %c0_10 = arith.constant 0 : index
    %c0_11 = arith.constant 0 : index
    %21 = vector.load %arg5[%c0_10, %c0_11] : memref<8x128xf32, #tpu.memory_space<vmem>>, vector<8x128xf32>
    tpu.vector_store %arg5[%c0_10, %c0_11], %20 {strides = array<i32>} : memref<8x128xf32, #tpu.memory_space<vmem>>, vector<8x128xf32>,
    return
  }
  func.func @transform_0(%arg0: i32) -> (i32, i32, i32) {
    %c0_i32 = arith.constant 0 : i32
    %c0_i32_0 = arith.constant 0 : i32
    %c0_i32_1 = arith.constant 0 : i32
    return %c0_i32, %arg0, %c0_i32_0 : i32, i32, i32
  }
  func.func @transform_1(%arg0: i32) -> (i32, i32, i32) {
    %c0_i32 = arith.constant 0 : i32
    %c0_i32_0 = arith.constant 0 : i32
    %c0_i32_1 = arith.constant 0 : i32
    %c0_i32_2 = arith.constant 0 : i32
    return %c0_i32, %c0_i32_0, %c0_i32_1 : i32, i32, i32
  }
  func.func @transform_2(%arg0: i32) -> (i32, i32) {
    %c0_i32 = arith.constant 0 : i32
    %c0_i32_0 = arith.constant 0 : i32
    %c0_i32_1 = arith.constant 0 : i32
    return %c0_i32, %c0_i32_0 : i32, i32
  }
  func.func @transform_3(%arg0: i32) -> (i32, i32) {
    %c0_i32 = arith.constant 0 : i32
    %c0_i32_0 = arith.constant 0 : i32
    return %arg0, %c0_i32 : i32, i32
  }
  func.func @transform_4(%arg0: i32) -> (i32, i32) {
    %c0_i32 = arith.constant 0 : i32
    %c0_i32_0 = arith.constant 0 : i32
    return %arg0, %c0_i32 : i32, i32
  }
}

module attributes {stable_mosaic.version = 11 : i64} {
  func.func @kernel(%arg0: i32, %arg1: memref<1x16x32xbf16, #tpu.memory_space<vmem>>, %arg2: memref<1x32x64xbf16, #tpu.memory_space<vmem>>, %arg3: memref<1x128xf32, #tpu.memory_space<vmem>>, %arg4: memref<8x128xf32, #tpu.memory_space<vmem>>) attributes {dimension_semantics = [#tpu.dimension_semantics<parallel>], iteration_bounds = array<i64: 1>, scalar_prefetch = 0 : i64, scratch_operands = 0 : i64, tpu.core_type = #tpu.core_type<tc>, window_params = [{transform_indices = @transform_0, window_bounds = array<i64: 1, 16, 32>}, {pipeline_mode = #tpu.pipeline_mode<synchronous>, transform_indices = @transform_1, window_bounds = array<i64: 1, 32, 64>}, {pipeline_mode = #tpu.pipeline_mode<synchronous>, transform_indices = @transform_2, window_bounds = array<i64: 1, 128>}, {transform_indices = @transform_3, window_bounds = array<i64: 8, 128>}]} {
    %c0 = arith.constant 0 : index
    %c0_0 = arith.constant 0 : index
    %c0_1 = arith.constant 0 : index
    %0 = vector.load %arg1[%c0, %c0_0, %c0_1] : memref<1x16x32xbf16, #tpu.memory_space<vmem>>, vector<1x16x32xbf16>
    %1 = vector.shape_cast %0 : vector<1x16x32xbf16> to vector<16x32xbf16>
    %c0_2 = arith.constant 0 : index
    %c0_3 = arith.constant 0 : index
    %c0_4 = arith.constant 0 : index
    %2 = vector.load %arg2[%c0_2, %c0_3, %c0_4] : memref<1x32x64xbf16, #tpu.memory_space<vmem>>, vector<1x32x64xbf16>
    %3 = vector.shape_cast %2 : vector<1x32x64xbf16> to vector<32x64xbf16>
    %cst = arith.constant dense<0.000000e+00> : vector<16x64xf32>
    %4 = tpu.matmul %1, %3, %cst {dimension_numbers = #tpu.dot_dimension_numbers<[1], [0], [0], [1], [0, 0, 1, 1], [], []>} : vector<16x32xbf16>, vector<32x64xbf16>, vector<16x64xf32> -> vector<16x64xf32>
    %5 = vector.extract_strided_slice %4 {offsets = [0, 0], sizes = [8, 64], strides = [1, 1]} : vector<16x64xf32> to vector<8x64xf32>
    %6 = vector.extract_strided_slice %4 {offsets = [8, 0], sizes = [8, 64], strides = [1, 1]} : vector<16x64xf32> to vector<8x64xf32>
    %7 = tpu.concatenate %5, %6 in 1 : vector<8x64xf32>, vector<8x64xf32> -> vector<8x128xf32>
    %c0_5 = arith.constant 0 : index
    %c0_6 = arith.constant 0 : index
    %8 = vector.load %arg3[%c0_5, %c0_6] : memref<1x128xf32, #tpu.memory_space<vmem>>, vector<1x128xf32>
    %9 = vector.broadcast %8 : vector<1x128xf32> to vector<8x128xf32>
    %10 = arith.addf %7, %9 : vector<8x128xf32>
    %c0_7 = arith.constant 0 : index
    %c0_8 = arith.constant 0 : index
    %11 = vector.load %arg4[%c0_7, %c0_8] : memref<8x128xf32, #tpu.memory_space<vmem>>, vector<8x128xf32>
    tpu.vector_store %arg4[%c0_7, %c0_8], %10 {strides = array<i32>} : memref<8x128xf32, #tpu.memory_space<vmem>>, vector<8x128xf32>,
    return
  }
  func.func @transform_0(%arg0: i32) -> (i32, i32, i32) {
    %c0_i32 = arith.constant 0 : i32
    %c0_i32_0 = arith.constant 0 : i32
    %c0_i32_1 = arith.constant 0 : i32
    return %c0_i32, %arg0, %c0_i32_0 : i32, i32, i32
  }
  func.func @transform_1(%arg0: i32) -> (i32, i32, i32) {
    %c0_i32 = arith.constant 0 : i32
    %c0_i32_0 = arith.constant 0 : i32
    %c0_i32_1 = arith.constant 0 : i32
    %c0_i32_2 = arith.constant 0 : i32
    return %c0_i32, %c0_i32_0, %c0_i32_1 : i32, i32, i32
  }
  func.func @transform_2(%arg0: i32) -> (i32, i32) {
    %c0_i32 = arith.constant 0 : i32
    %c0_i32_0 = arith.constant 0 : i32
    %c0_i32_1 = arith.constant 0 : i32
    return %c0_i32, %c0_i32_0 : i32, i32
  }
  func.func @transform_3(%arg0: i32) -> (i32, i32) {
    %c0_i32 = arith.constant 0 : i32
    %c0_i32_0 = arith.constant 0 : i32
    return %arg0, %c0_i32 : i32, i32
  }
}

module attributes {stable_mosaic.version = 11 : i64} {
  func.func @kernel(%arg0: i32, %arg1: memref<1x32x32xbf16, #tpu.memory_space<vmem>>, %arg2: memref<1x32x32xbf16, #tpu.memory_space<vmem>>, %arg3: memref<1x128xf32, #tpu.memory_space<vmem>>, %arg4: memref<8x128xf32, #tpu.memory_space<vmem>>) attributes {dimension_semantics = [#tpu.dimension_semantics<parallel>], iteration_bounds = array<i64: 1>, scalar_prefetch = 0 : i64, scratch_operands = 0 : i64, tpu.core_type = #tpu.core_type<tc>, window_params = [{transform_indices = @transform_0, window_bounds = array<i64: 1, 32, 32>}, {pipeline_mode = #tpu.pipeline_mode<synchronous>, transform_indices = @transform_1, window_bounds = array<i64: 1, 32, 32>}, {pipeline_mode = #tpu.pipeline_mode<synchronous>, transform_indices = @transform_2, window_bounds = array<i64: 1, 128>}, {transform_indices = @transform_3, window_bounds = array<i64: 8, 128>}]} {
    %c0 = arith.constant 0 : index
    %c0_0 = arith.constant 0 : index
    %c0_1 = arith.constant 0 : index
    %0 = vector.load %arg1[%c0, %c0_0, %c0_1] : memref<1x32x32xbf16, #tpu.memory_space<vmem>>, vector<1x32x32xbf16>
    %1 = vector.shape_cast %0 : vector<1x32x32xbf16> to vector<32x32xbf16>
    %c0_2 = arith.constant 0 : index
    %c0_3 = arith.constant 0 : index
    %c0_4 = arith.constant 0 : index
    %2 = vector.load %arg2[%c0_2, %c0_3, %c0_4] : memref<1x32x32xbf16, #tpu.memory_space<vmem>>, vector<1x32x32xbf16>
    %3 = vector.shape_cast %2 : vector<1x32x32xbf16> to vector<32x32xbf16>
    %cst = arith.constant dense<0.000000e+00> : vector<32x32xf32>
    %4 = tpu.matmul %1, %3, %cst {dimension_numbers = #tpu.dot_dimension_numbers<[1], [0], [0], [1], [0, 0, 1, 1], [], []>} : vector<32x32xbf16>, vector<32x32xbf16>, vector<32x32xf32> -> vector<32x32xf32>
    %5 = vector.extract_strided_slice %4 {offsets = [0, 0], sizes = [8, 32], strides = [1, 1]} : vector<32x32xf32> to vector<8x32xf32>
    %6 = vector.extract_strided_slice %4 {offsets = [8, 0], sizes = [8, 32], strides = [1, 1]} : vector<32x32xf32> to vector<8x32xf32>
    %7 = vector.extract_strided_slice %4 {offsets = [16, 0], sizes = [8, 32], strides = [1, 1]} : vector<32x32xf32> to vector<8x32xf32>
    %8 = vector.extract_strided_slice %4 {offsets = [24, 0], sizes = [8, 32], strides = [1, 1]} : vector<32x32xf32> to vector<8x32xf32>
    %9 = tpu.concatenate %5, %6, %7, %8 in 1 : vector<8x32xf32>, vector<8x32xf32>, vector<8x32xf32>, vector<8x32xf32> -> vector<8x128xf32>
    %c0_5 = arith.constant 0 : index
    %c0_6 = arith.constant 0 : index
    %10 = vector.load %arg3[%c0_5, %c0_6] : memref<1x128xf32, #tpu.memory_space<vmem>>, vector<1x128xf32>
    %11 = vector.broadcast %10 : vector<1x128xf32> to vector<8x128xf32>
    %12 = arith.addf %9, %11 : vector<8x128xf32>
    %13 = arith.negf %12 : vector<8x128xf32>
    %14 = math.exp %13 : vector<8x128xf32>
    %cst_7 = arith.constant 1.000000e+00 : f32
    %15 = vector.broadcast %cst_7 : f32 to vector<8x128xf32>
    %16 = arith.addf %15, %14 : vector<8x128xf32>
    %17 = arith.divf %15, %16 : vector<8x128xf32>
    %18 = arith.mulf %12, %17 : vector<8x128xf32>
    %c0_8 = arith.constant 0 : index
    %c0_9 = arith.constant 0 : index
    %19 = vector.load %arg4[%c0_8, %c0_9] : memref<8x128xf32, #tpu.memory_space<vmem>>, vector<8x128xf32>
    tpu.vector_store %arg4[%c0_8, %c0_9], %18 {strides = array<i32>} : memref<8x128xf32, #tpu.memory_space<vmem>>, vector<8x128xf32>,
    return
  }
  func.func @transform_0(%arg0: i32) -> (i32, i32, i32) {
    %c0_i32 = arith.constant 0 : i32
    %c0_i32_0 = arith.constant 0 : i32
    %c0_i32_1 = arith.constant 0 : i32
    return %c0_i32, %arg0, %c0_i32_0 : i32, i32, i32
  }
  func.func @transform_1(%arg0: i32) -> (i32, i32, i32) {
    %c0_i32 = arith.constant 0 : i32
    %c0_i32_0 = arith.constant 0 : i32
    %c0_i32_1 = arith.constant 0 : i32
    %c0_i32_2 = arith.constant 0 : i32
    return %c0_i32, %c0_i32_0, %c0_i32_1 : i32, i32, i32
  }
  func.func @transform_2(%arg0: i32) -> (i32, i32) {
    %c0_i32 = arith.constant 0 : i32
    %c0_i32_0 = arith.constant 0 : i32
    %c0_i32_1 = arith.constant 0 : i32
    return %c0_i32, %c0_i32_0 : i32, i32
  }
  func.func @transform_3(%arg0: i32) -> (i32, i32) {
    %c0_i32 = arith.constant 0 : i32
    %c0_i32_0 = arith.constant 0 : i32
    return %arg0, %c0_i32 : i32, i32
  }
}

module attributes {stable_mosaic.version = 11 : i64} {
  func.func @kernel(%arg0: i32, %arg1: memref<1x16x32xbf16, #tpu.memory_space<vmem>>, %arg2: memref<1x32x64xbf16, #tpu.memory_space<vmem>>, %arg3: memref<1x128xf32, #tpu.memory_space<vmem>>, %arg4: memref<8x128xf32, #tpu.memory_space<vmem>>, %arg5: memref<8x128xf32, #tpu.memory_space<vmem>>) attributes {dimension_semantics = [#tpu.dimension_semantics<parallel>], iteration_bounds = array<i64: 1>, scalar_prefetch = 0 : i64, scratch_operands = 0 : i64, tpu.core_type = #tpu.core_type<tc>, window_params = [{transform_indices = @transform_0, window_bounds = array<i64: 1, 16, 32>}, {pipeline_mode = #tpu.pipeline_mode<synchronous>, transform_indices = @transform_1, window_bounds = array<i64: 1, 32, 64>}, {pipeline_mode = #tpu.pipeline_mode<synchronous>, transform_indices = @transform_2, window_bounds = array<i64: 1, 128>}, {transform_indices = @transform_3, window_bounds = array<i64: 8, 128>}, {transform_indices = @transform_4, window_bounds = array<i64: 8, 128>}]} {
    %c0 = arith.constant 0 : index
    %c0_0 = arith.constant 0 : index
    %c0_1 = arith.constant 0 : index
    %0 = vector.load %arg1[%c0, %c0_0, %c0_1] : memref<1x16x32xbf16, #tpu.memory_space<vmem>>, vector<1x16x32xbf16>
    %1 = vector.shape_cast %0 : vector<1x16x32xbf16> to vector<16x32xbf16>
    %c0_2 = arith.constant 0 : index
    %c0_3 = arith.constant 0 : index
    %c0_4 = arith.constant 0 : index
    %2 = vector.load %arg2[%c0_2, %c0_3, %c0_4] : memref<1x32x64xbf16, #tpu.memory_space<vmem>>, vector<1x32x64xbf16>
    %3 = vector.shape_cast %2 : vector<1x32x64xbf16> to vector<32x64xbf16>
    %cst = arith.constant dense<0.000000e+00> : vector<16x64xf32>
    %4 = tpu.matmul %1, %3, %cst {dimension_numbers = #tpu.dot_dimension_numbers<[1], [0], [0], [1], [0, 0, 1, 1], [], []>} : vector<16x32xbf16>, vector<32x64xbf16>, vector<16x64xf32> -> vector<16x64xf32>
    %5 = vector.extract_strided_slice %4 {offsets = [0, 0], sizes = [8, 64], strides = [1, 1]} : vector<16x64xf32> to vector<8x64xf32>
    %6 = vector.extract_strided_slice %4 {offsets = [8, 0], sizes = [8, 64], strides = [1, 1]} : vector<16x64xf32> to vector<8x64xf32>
    %7 = tpu.concatenate %5, %6 in 1 : vector<8x64xf32>, vector<8x64xf32> -> vector<8x128xf32>
    %c0_5 = arith.constant 0 : index
    %c0_6 = arith.constant 0 : index
    %8 = vector.load %arg3[%c0_5, %c0_6] : memref<1x128xf32, #tpu.memory_space<vmem>>, vector<1x128xf32>
    %9 = vector.broadcast %8 : vector<1x128xf32> to vector<8x128xf32>
    %10 = arith.addf %7, %9 : vector<8x128xf32>
    %c0_7 = arith.constant 0 : index
    %c0_8 = arith.constant 0 : index
    %11 = vector.load %arg4[%c0_7, %c0_8] : memref<8x128xf32, #tpu.memory_space<vmem>>, vector<8x128xf32>
    %12 = arith.addf %10, %11 : vector<8x128xf32>
    %13 = arith.negf %12 : vector<8x128xf32>
    %14 = math.exp %13 : vector<8x128xf32>
    %cst_9 = arith.constant 1.000000e+00 : f32
    %15 = vector.broadcast %cst_9 : f32 to vector<8x128xf32>
    %16 = arith.addf %15, %14 : vector<8x128xf32>
    %17 = arith.divf %15, %16 : vector<8x128xf32>
    %18 = arith.mulf %12, %17 : vector<8x128xf32>
    %c0_10 = arith.constant 0 : index
    %c0_11 = arith.constant 0 : index
    %19 = vector.load %arg5[%c0_10, %c0_11] : memref<8x128xf32, #tpu.memory_space<vmem>>, vector<8x128xf32>
    tpu.vector_store %arg5[%c0_10, %c0_11], %18 {strides = array<i32>} : memref<8x128xf32, #tpu.memory_space<vmem>>, vector<8x128xf32>,
    return
  }
  func.func @transform_0(%arg0: i32) -> (i32, i32, i32) {
    %c0_i32 = arith.constant 0 : i32
    %c0_i32_0 = arith.constant 0 : i32
    %c0_i32_1 = arith.constant 0 : i32
    return %c0_i32, %arg0, %c0_i32_0 : i32, i32, i32
  }
  func.func @transform_1(%arg0: i32) -> (i32, i32, i32) {
    %c0_i32 = arith.constant 0 : i32
    %c0_i32_0 = arith.constant 0 : i32
    %c0_i32_1 = arith.constant 0 : i32
    %c0_i32_2 = arith.constant 0 : i32
    return %c0_i32, %c0_i32_0, %c0_i32_1 : i32, i32, i32
  }
  func.func @transform_2(%arg0: i32) -> (i32, i32) {
    %c0_i32 = arith.constant 0 : i32
    %c0_i32_0 = arith.constant 0 : i32
    %c0_i32_1 = arith.constant 0 : i32
    return %c0_i32, %c0_i32_0 : i32, i32
  }
  func.func @transform_3(%arg0: i32) -> (i32, i32) {
    %c0_i32 = arith.constant 0 : i32
    %c0_i32_0 = arith.constant 0 : i32
    return %arg0, %c0_i32 : i32, i32
  }
  func.func @transform_4(%arg0: i32) -> (i32, i32) {
    %c0_i32 = arith.constant 0 : i32
    %c0_i32_0 = arith.constant 0 : i32
    return %arg0, %c0_i32 : i32, i32
  }
}

module attributes {stable_mosaic.version = 11 : i64} {
  func.func @kernel(%arg0: i32, %arg1: memref<4x32x72xbf16, #tpu.memory_space<vmem>>, %arg2: memref<4x72x8xbf16, #tpu.memory_space<vmem>>, %arg3: memref<1x128xf32, #tpu.memory_space<vmem>>, %arg4: memref<8x128xf32, #tpu.memory_space<vmem>>) attributes {dimension_semantics = [#tpu.dimension_semantics<parallel>], iteration_bounds = array<i64: 1>, scalar_prefetch = 0 : i64, scratch_operands = 0 : i64, tpu.core_type = #tpu.core_type<tc>, window_params = [{transform_indices = @transform_0, window_bounds = array<i64: 4, 32, 72>}, {pipeline_mode = #tpu.pipeline_mode<synchronous>, transform_indices = @transform_1, window_bounds = array<i64: 4, 72, 8>}, {pipeline_mode = #tpu.pipeline_mode<synchronous>, transform_indices = @transform_2, window_bounds = array<i64: 1, 128>}, {transform_indices = @transform_3, window_bounds = array<i64: 8, 128>}]} {
    %c0 = arith.constant 0 : index
    %c0_0 = arith.constant 0 : index
    %c0_1 = arith.constant 0 : index
    %0 = vector.load %arg1[%c0, %c0_0, %c0_1] : memref<4x32x72xbf16, #tpu.memory_space<vmem>>, vector<1x32x72xbf16>
    %1 = vector.shape_cast %0 : vector<1x32x72xbf16> to vector<32x72xbf16>
    %c0_2 = arith.constant 0 : index
    %c0_3 = arith.constant 0 : index
    %c0_4 = arith.constant 0 : index
    %2 = vector.load %arg2[%c0_2, %c0_3, %c0_4] : memref<4x72x8xbf16, #tpu.memory_space<vmem>>, vector<1x72x8xbf16>
    %3 = vector.shape_cast %2 : vector<1x72x8xbf16> to vector<72x8xbf16>
    %cst = arith.constant dense<0.000000e+00> : vector<32x8xf32>
    %4 = tpu.matmul %1, %3, %cst {dimension_numbers = #tpu.dot_dimension_numbers<[1], [0], [0], [1], [0, 0, 1, 1], [], []>} : vector<32x72xbf16>, vector<72x8xbf16>, vector<32x8xf32> -> vector<32x8xf32>
    %c1 = arith.constant 1 : index
    %c0_5 = arith.constant 0 : index
    %c0_6 = arith.constant 0 : index
    %5 = vector.load %arg1[%c1, %c0_5, %c0_6] : memref<4x32x72xbf16, #tpu.memory_space<vmem>>, vector<1x32x72xbf16>
    %6 = vector.shape_cast %5 : vector<1x32x72xbf16> to vector<32x72xbf16>
    %c1_7 = arith.constant 1 : index
    %c0_8 = arith.constant 0 : index
    %c0_9 = arith.constant 0 : index
    %7 = vector.load %arg2[%c1_7, %c0_8, %c0_9] : memref<4x72x8xbf16, #tpu.memory_space<vmem>>, vector<1x72x8xbf16>
    %8 = vector.shape_cast %7 : vector<1x72x8xbf16> to vector<72x8xbf16>
    %cst_10 = arith.constant dense<0.000000e+00> : vector<32x8xf32>
    %9 = tpu.matmul %6, %8, %cst_10 {dimension_numbers = #tpu.dot_dimension_numbers<[1], [0], [0], [1], [0, 0, 1, 1], [], []>} : vector<32x72xbf16>, vector<72x8xbf16>, vector<32x8xf32> -> vector<32x8xf32>
    %c2 = arith.constant 2 : index
    %c0_11 = arith.constant 0 : index
    %c0_12 = arith.constant 0 : index
    %10 = vector.load %arg1[%c2, %c0_11, %c0_12] : memref<4x32x72xbf16, #tpu.memory_space<vmem>>, vector<1x32x72xbf16>
    %11 = vector.shape_cast %10 : vector<1x32x72xbf16> to vector<32x72xbf16>
    %c2_13 = arith.constant 2 : index
    %c0_14 = arith.constant 0 : index
    %c0_15 = arith.constant 0 : index
    %12 = vector.load %arg2[%c2_13, %c0_14, %c0_15] : memref<4x72x8xbf16, #tpu.memory_space<vmem>>, vector<1x72x8xbf16>
    %13 = vector.shape_cast %12 : vector<1x72x8xbf16> to vector<72x8xbf16>
    %cst_16 = arith.constant dense<0.000000e+00> : vector<32x8xf32>
    %14 = tpu.matmul %11, %13, %cst_16 {dimension_numbers = #tpu.dot_dimension_numbers<[1], [0], [0], [1], [0, 0, 1, 1], [], []>} : vector<32x72xbf16>, vector<72x8xbf16>, vector<32x8xf32> -> vector<32x8xf32>
    %c3 = arith.constant 3 : index
    %c0_17 = arith.constant 0 : index
    %c0_18 = arith.constant 0 : index
    %15 = vector.load %arg1[%c3, %c0_17, %c0_18] : memref<4x32x72xbf16, #tpu.memory_space<vmem>>, vector<1x32x72xbf16>
    %16 = vector.shape_cast %15 : vector<1x32x72xbf16> to vector<32x72xbf16>
    %c3_19 = arith.constant 3 : index
    %c0_20 = arith.constant 0 : index
    %c0_21 = arith.constant 0 : index
    %17 = vector.load %arg2[%c3_19, %c0_20, %c0_21] : memref<4x72x8xbf16, #tpu.memory_space<vmem>>, vector<1x72x8xbf16>
    %18 = vector.shape_cast %17 : vector<1x72x8xbf16> to vector<72x8xbf16>
    %cst_22 = arith.constant dense<0.000000e+00> : vector<32x8xf32>
    %19 = tpu.matmul %16, %18, %cst_22 {dimension_numbers = #tpu.dot_dimension_numbers<[1], [0], [0], [1], [0, 0, 1, 1], [], []>} : vector<32x72xbf16>, vector<72x8xbf16>, vector<32x8xf32> -> vector<32x8xf32>
    %20 = vector.extract_strided_slice %4 {offsets = [0, 0], sizes = [8, 8], strides = [1, 1]} : vector<32x8xf32> to vector<8x8xf32>
    %21 = vector.extract_strided_slice %9 {offsets = [0, 0], sizes = [8, 8], strides = [1, 1]} : vector<32x8xf32> to vector<8x8xf32>
    %22 = vector.extract_strided_slice %14 {offsets = [0, 0], sizes = [8, 8], strides = [1, 1]} : vector<32x8xf32> to vector<8x8xf32>
    %23 = vector.extract_strided_slice %19 {offsets = [0, 0], sizes = [8, 8], strides = [1, 1]} : vector<32x8xf32> to vector<8x8xf32>
    %24 = vector.extract_strided_slice %4 {offsets = [8, 0], sizes = [8, 8], strides = [1, 1]} : vector<32x8xf32> to vector<8x8xf32>
    %25 = vector.extract_strided_slice %9 {offsets = [8, 0], sizes = [8, 8], strides = [1, 1]} : vector<32x8xf32> to vector<8x8xf32>
    %26 = vector.extract_strided_slice %14 {offsets = [8, 0], sizes = [8, 8], strides = [1, 1]} : vector<32x8xf32> to vector<8x8xf32>
    %27 = vector.extract_strided_slice %19 {offsets = [8, 0], sizes = [8, 8], strides = [1, 1]} : vector<32x8xf32> to vector<8x8xf32>
    %28 = vector.extract_strided_slice %4 {offsets = [16, 0], sizes = [8, 8], strides = [1, 1]} : vector<32x8xf32> to vector<8x8xf32>
    %29 = vector.extract_strided_slice %9 {offsets = [16, 0], sizes = [8, 8], strides = [1, 1]} : vector<32x8xf32> to vector<8x8xf32>
    %30 = vector.extract_strided_slice %14 {offsets = [16, 0], sizes = [8, 8], strides = [1, 1]} : vector<32x8xf32> to vector<8x8xf32>
    %31 = vector.extract_strided_slice %19 {offsets = [16, 0], sizes = [8, 8], strides = [1, 1]} : vector<32x8xf32> to vector<8x8xf32>
    %32 = vector.extract_strided_slice %4 {offsets = [24, 0], sizes = [8, 8], strides = [1, 1]} : vector<32x8xf32> to vector<8x8xf32>
    %33 = vector.extract_strided_slice %9 {offsets = [24, 0], sizes = [8, 8], strides = [1, 1]} : vector<32x8xf32> to vector<8x8xf32>
    %34 = vector.extract_strided_slice %14 {offsets = [24, 0], sizes = [8, 8], strides = [1, 1]} : vector<32x8xf32> to vector<8x8xf32>
    %35 = vector.extract_strided_slice %19 {offsets = [24, 0], sizes = [8, 8], strides = [1, 1]} : vector<32x8xf32> to vector<8x8xf32>
    %36 = tpu.concatenate %20, %21, %22, %23, %24, %25, %26, %27, %28, %29, %30, %31, %32, %33, %34, %35 in 1 : vector<8x8xf32>, vector<8x8xf32>, vector<8x8xf32>, vector<8x8xf32>, vector<8x8xf32>, vector<8x8xf32>, vector<8x8xf32>, vector<8x8xf32>, vector<8x8xf32>, vector<8x8xf32>, vector<8x8xf32>, vector<8x8xf32>, vector<8x8xf32>, vector<8x8xf32>, vector<8x8xf32>, vector<8x8xf32> -> vector<8x128xf32>
    %c0_23 = arith.constant 0 : index
    %c0_24 = arith.constant 0 : index
    %37 = vector.load %arg3[%c0_23, %c0_24] : memref<1x128xf32, #tpu.memory_space<vmem>>, vector<1x128xf32>
    %38 = vector.broadcast %37 : vector<1x128xf32> to vector<8x128xf32>
    %39 = arith.addf %36, %38 : vector<8x128xf32>
    %40 = arith.negf %39 : vector<8x128xf32>
    %41 = math.exp %40 : vector<8x128xf32>
    %cst_25 = arith.constant 1.000000e+00 : f32
    %42 = vector.broadcast %cst_25 : f32 to vector<8x128xf32>
    %43 = arith.addf %42, %41 : vector<8x128xf32>
    %44 = arith.divf %42, %43 : vector<8x128xf32>
    %45 = arith.mulf %39, %44 : vector<8x128xf32>
    %c0_26 = arith.constant 0 : index
    %c0_27 = arith.constant 0 : index
    %46 = vector.load %arg4[%c0_26, %c0_27] : memref<8x128xf32, #tpu.memory_space<vmem>>, vector<8x128xf32>
    tpu.vector_store %arg4[%c0_26, %c0_27], %45 {strides = array<i32>} : memref<8x128xf32, #tpu.memory_space<vmem>>, vector<8x128xf32>,
    return
  }
  func.func @transform_0(%arg0: i32) -> (i32, i32, i32) {
    %c0_i32 = arith.constant 0 : i32
    %c0_i32_0 = arith.constant 0 : i32
    %c0_i32_1 = arith.constant 0 : i32
    return %c0_i32, %arg0, %c0_i32_0 : i32, i32, i32
  }
  func.func @transform_1(%arg0: i32) -> (i32, i32, i32) {
    %c0_i32 = arith.constant 0 : i32
    %c0_i32_0 = arith.constant 0 : i32
    %c0_i32_1 = arith.constant 0 : i32
    %c0_i32_2 = arith.constant 0 : i32
    return %c0_i32, %c0_i32_0, %c0_i32_1 : i32, i32, i32
  }
  func.func @transform_2(%arg0: i32) -> (i32, i32) {
    %c0_i32 = arith.constant 0 : i32
    %c0_i32_0 = arith.constant 0 : i32
    %c0_i32_1 = arith.constant 0 : i32
    return %c0_i32, %c0_i32_0 : i32, i32
  }
  func.func @transform_3(%arg0: i32) -> (i32, i32) {
    %c0_i32 = arith.constant 0 : i32
    %c0_i32_0 = arith.constant 0 : i32
    return %arg0, %c0_i32 : i32, i32
  }
}

module attributes {stable_mosaic.version = 11 : i64} {
  func.func @kernel(%arg0: i32, %arg1: memref<1x8x64xbf16, #tpu.memory_space<vmem>>, %arg2: memref<1x64x10xbf16, #tpu.memory_space<vmem>>, %arg3: memref<1x10xf32, #tpu.memory_space<vmem>>, %arg4: memref<8x10xf32, #tpu.memory_space<vmem>>) attributes {dimension_semantics = [#tpu.dimension_semantics<parallel>], iteration_bounds = array<i64: 1>, scalar_prefetch = 0 : i64, scratch_operands = 0 : i64, tpu.core_type = #tpu.core_type<tc>, window_params = [{transform_indices = @transform_0, window_bounds = array<i64: 1, 8, 64>}, {pipeline_mode = #tpu.pipeline_mode<synchronous>, transform_indices = @transform_1, window_bounds = array<i64: 1, 64, 10>}, {pipeline_mode = #tpu.pipeline_mode<synchronous>, transform_indices = @transform_2, window_bounds = array<i64: 1, 10>}, {transform_indices = @transform_3, window_bounds = array<i64: 8, 10>}]} {
    %c0 = arith.constant 0 : index
    %c0_0 = arith.constant 0 : index
    %c0_1 = arith.constant 0 : index
    %0 = vector.load %arg1[%c0, %c0_0, %c0_1] : memref<1x8x64xbf16, #tpu.memory_space<vmem>>, vector<1x8x64xbf16>
    %1 = vector.shape_cast %0 : vector<1x8x64xbf16> to vector<8x64xbf16>
    %c0_2 = arith.constant 0 : index
    %c0_3 = arith.constant 0 : index
    %c0_4 = arith.constant 0 : index
    %2 = vector.load %arg2[%c0_2, %c0_3, %c0_4] : memref<1x64x10xbf16, #tpu.memory_space<vmem>>, vector<1x64x10xbf16>
    %3 = vector.shape_cast %2 : vector<1x64x10xbf16> to vector<64x10xbf16>
    %cst = arith.constant dense<0.000000e+00> : vector<8x10xf32>
    %4 = tpu.matmul %1, %3, %cst {dimension_numbers = #tpu.dot_dimension_numbers<[1], [0], [0], [1], [0, 0, 1, 1], [], []>} : vector<8x64xbf16>, vector<64x10xbf16>, vector<8x10xf32> -> vector<8x10xf32>
    %c0_5 = arith.constant 0 : index
    %c0_6 = arith.constant 0 : index
    %5 = vector.load %arg3[%c0_5, %c0_6] : memref<1x10xf32, #tpu.memory_space<vmem>>, vector<1x10xf32>
    %6 = vector.broadcast %5 : vector<1x10xf32> to vector<8x10xf32>
    %7 = arith.addf %4, %6 : vector<8x10xf32>
    %c0_7 = arith.constant 0 : index
    %c0_8 = arith.constant 0 : index
    %8 = vector.load %arg4[%c0_7, %c0_8] : memref<8x10xf32, #tpu.memory_space<vmem>>, vector<8x10xf32>
    tpu.vector_store %arg4[%c0_7, %c0_8], %7 {strides = array<i32>} : memref<8x10xf32, #tpu.memory_space<vmem>>, vector<8x10xf32>,
    return
  }
  func.func @transform_0(%arg0: i32) -> (i32, i32, i32) {
    %c0_i32 = arith.constant 0 : i32
    %c0_i32_0 = arith.constant 0 : i32
    %c0_i32_1 = arith.constant 0 : i32
    return %c0_i32, %arg0, %c0_i32_0 : i32, i32, i32
  }
  func.func @transform_1(%arg0: i32) -> (i32, i32, i32) {
    %c0_i32 = arith.constant 0 : i32
    %c0_i32_0 = arith.constant 0 : i32
    %c0_i32_1 = arith.constant 0 : i32
    %c0_i32_2 = arith.constant 0 : i32
    return %c0_i32, %c0_i32_0, %c0_i32_1 : i32, i32, i32
  }
  func.func @transform_2(%arg0: i32) -> (i32, i32) {
    %c0_i32 = arith.constant 0 : i32
    %c0_i32_0 = arith.constant 0 : i32
    %c0_i32_1 = arith.constant 0 : i32
    return %c0_i32, %c0_i32_0 : i32, i32
  }
  func.func @transform_3(%arg0: i32) -> (i32, i32) {
    %c0_i32 = arith.constant 0 : i32
    %c0_i32_0 = arith.constant 0 : i32
    return %arg0, %c0_i32 : i32, i32
  }
}

</mosaic_0001>

<bundles_post_ra>
// kernel: _lambda_.24
= control target key start
LH: loop header
LB: loop body
LE: loop exit
PB: predicated region body
PF: predicated region fallthrough
CT: control target
= control target key end

     0   :  { %8 = vsyncpa [#allocation3], 0  ;;  %s1060_s12 = smov 0   ;;  %s1251_s0 = inlined_call_operand.vmem [shape: bf16[1,512,27], index: 0, kind: input, shape index: {}]   ;;  %s1252_s1 = inlined_call_operand.hbm [shape: bf16[1,27,32], index: 1, kind: input, shape index: {}]   ;;  %s1253_s2 = inlined_call_operand.vmem [shape: f32[1,128], index: 2, kind: input, shape index: {}]   ;;  %s1254_s3 = inlined_call_operand.vmem [shape: f32[128,128], index: 3, kind: output, shape index: {}]  }
   0x1 LB: > { %s1066_s13 = sadd.s32 4294967295, %s1031_s12   ;;  %p806_p0 = scmp.ge.s32.totalorder %s1031_s12, 1  ;;  %s1031_s12 = sphi %s1060_s12, %s14_s12  }
   0x2   : > { %p113_p1 = scmp.lt.s32.totalorder %s1031_s12, 3  ;;  %s1033_s14 = smov [#allocation2]  }
   0x3   : > { %s125_s15 = sshll.u32 %s1033_s14, 4  ;;  %p1255_p3 = scmp.eq.s32.totalorder %s1066_s13, 0  ;;  %s126_s15 = int_to_ptr.vmem [resolvable:$true] %s125_s15 }
   0x4   : > { %p1070_p2 = pnand %p806_p0, %p113_p1  ;;  %s993_s20 = scalar_lea.hbm %s1252_s1, 256 }
   0x5   : > { %p994_p6 = scmp.ne.s32.totalorder %s1252_s1, %s993_s20  ;;  %p1000_p10 = scmp.lt.u32.totalorder %s993_s20, %s1252_s1 }
   0x6   : > { %s1257_s16 = scalar_select %p1070_p2, 1, 0 }
   0x7   : > { %p922_p4 = pneg %p1070_p2 }
   0x9   : > { %p1079_p5 = pnand %p1255_p3, %p922_p4 }
   0xb   : > { %p995_p7 = pneg %p1079_p5 }
   0xd   : > { %p996_p8 = pnand %p995_p7, %p994_p6 }
   0xf   : > { %p997_p9 = pneg %p996_p8 }
  0x11   : > { %p1002_p11 = pnand %p1000_p10, %p997_p9 }
  0x13   : > { %1005 = shalt.err (!%p1002_p11)
}
  0x14   : > { %s1006_s25 = scalar_lea.vmem %s126_s15, 256  ;;  %p1014_p1 = scmp.lt.s32.totalorder %s126_s15, %s126_s15 }
  0x15   : > { %p1007_p12 = scmp.ne.s32.totalorder %s126_s15, %s1006_s25  ;;  %p1015_p4 = scmp.lt.s32.totalorder %s1006_s25, %s1006_s25 }
  0x17   : > { %p1009_p13 = pnand %p1007_p12, %p995_p7  ;;  %p1016_p3 = por %p1015_p4, %p1014_p1 }
  0x19   : > { %p1010_p0 = pneg %p1009_p13 }
  0x1b   : > { %p1017_p2 = pnand %p1016_p3, %p1010_p0 }
  0x1d   : > { %1020 = shalt.err (!%p1017_p2)
}
  0x1e   : > { %s1034_s26 = smov 64   ;;  %s1035_s27 = smov 4  }
  0x1f   : > { %925 = dma.hbm_to_vmem [thread:$0]  (!%p1079_p5), %s1252_s1, 256, %s126_s15, [#allocation3], %s1034_s26, %s1034_s26, %s1035_s27  }
  0x20   : > { %p1259_p6 = scmp.ne.s32.totalorder %s1257_s16, 0 }
  0x21   : > { %p1260_p8 = scmp.eq.s32.totalorder (!%p1259_p6), %s1066_s13, 0 }
  0x22   : > { %153 = sbr.rel (%p1259_p6) target bundleno = 456 (0x1c8), region = 32 }
  0x29   : > { %1026 = dma.done.wait (%p1260_p8), [#allocation3], 256   ;;  %p1261_p7 = pmov %p1260_p8 }
  0x2a   : > { %s811_s30 = sshll.u32 %s1066_s13, 5  ;;  %vm366_vm0 = vcmask 1044480   ;;  %vm367_vm1 = vcmask 1045504   ;;  %v1036_v0 = vmov 65535   ;;  %vm317_vm2 = vcmask 220160   ;;  %v943_v2 = vld [vmem:[#allocation2] sm:$0xff]  }
  0x2b   : > { %1028 = vsyncadd (%p1261_p7), [#allocation3], 4294967040  ;;  %p178_p2 = scmp.lt.s32.totalorder %s811_s30, 63  ;;  %v368_v1 = vsel %vm366_vm0, 4294967295, %v1036_v0  ;;  %v944_v4 = vld [vmem:[#allocation2 + $0x8] sm:$0x3f]   ;;  %878 = vmatprep.subr.bf16.mxu0 %v943_v2  ;;  %914 = vmatprep.subr.bf16.mxu1 %v943_v2 }
  0x2c   : > { %v369_v3 = vsel %vm367_vm1, %v368_v1, 0  ;;  %879 = vmatpush3.bf16.msra.mxu0 %v943_v2  ;;  %916 = vmatpush3.bf16.msra.mxu1 %v943_v2  ;;  %s1037_s8 = smov 64   ;;  %s1038_s9 = smov 96   ;;  %vm630_vm3 = vcmask 261120   ;;  %vm639_vm4 = vcmask 523264   ;;  %vm648_vm5 = vcmask 785408  }
  0x2d   : > { %s1263_s30 = smov (!%p178_p2, %s811_s30), 63  ;;  %v371_v6 = vand.u32 %v944_v4, %v369_v3  ;;  %s1039_s10 = smov 32   ;;  %v1174_v0 = vld [vmem:[%s1253_s2] ss:$0 sm:$0xff] }
  0x2e   : > { %s812_s4 = sshll.u32 %s1263_s30, 2  ;;  %s813_s15 = sshll.u32 %s1066_s13, 3 }
  0x2f   : > { %s1109_s7 = scalar_lea.vmem %s1251_s0, %s812_s4  ;;  %880 = vmatprep.subr.bf16.mxu0 %v371_v6  ;;  %915 = vmatprep.subr.bf16.mxu1 %v371_v6  ;;  %p184_p3 = scmp.lt.s32.totalorder %s813_s15, 15 }
  0x30   : > { %v945_v5 = vld [vmem:[%s1109_s7] sm:$0xff]   ;;  %v947_v8 = vld [vmem:[%s1109_s7 + $0x8] sm:$0xff]   ;;  %v949_v10 = vld [vmem:[%s1109_s7 + $0x10] sm:$0xff]   ;;  %881 = vmatpush3.bf16.msra.mxu0 %v371_v6  ;;  %917 = vmatpush3.bf16.msra.mxu1 %v371_v6 }
  0x31   : > { %v946_v7 = vld [vmem:[%s1109_s7 + $0x40] sm:$0xff]   ;;  %882 = vmatprep.mubr.msk.bf16.mxu0 %vm317_vm2, %v945_v5  ;;  %v948_v9 = vld [vmem:[%s1109_s7 + $0x48] sm:$0xff]   ;;  %v950_v11 = vld [vmem:[%s1109_s7 + $0x50] sm:$0xff]   ;;  %s1265_s15 = smov (!%p184_p3, %s813_s15), 15 }
  0x32   : > { %898 = vmatprep.mubr.msk.bf16.mxu1 %vm317_vm2, %v946_v7  ;;  %v951_v12 = vld [vmem:[%s1109_s7 + $0x18] sm:$0xff]   ;;  %v953_v14 = vld [vmem:[%s1109_s7 + $0x20] sm:$0xff]   ;;  %v955_v16 = vld [vmem:[%s1109_s7 + $0x28] sm:$0xff]   ;;  %s814_s13 = sshll.u32 %s1265_s15, 3 }
  0x33   : > { %883 = vmatmul.mubr.msk.bf16.vlgmr.msra.gmra.mrb[0].mxu0 %vm317_vm2, %v947_v8  ;;  %899 = vmatmul.mubr.msk.bf16.vlgmr.msra.gmra.mrb[0].mxu1 %vm317_vm2, %v948_v9  ;;  %v952_v13 = vld [vmem:[%s1109_s7 + $0x58] sm:$0xff]   ;;  %v954_v15 = vld [vmem:[%s1109_s7 + $0x60] sm:$0xff]   ;;  %v956_v17 = vld [vmem:[%s1109_s7 + $0x68] sm:$0xff]   ;;  %s1234_s18 = scalar_lea.vmem %s1254_s3, %s814_s13 }
  0x34   : > { %886 = vmatprep.mubr.msk.bf16.mxu0 %vm317_vm2, %v949_v10  ;;  %902 = vmatprep.mubr.msk.bf16.mxu1 %vm317_vm2, %v950_v11  ;;  %v957_v18 = vld [vmem:[%s1109_s7 + $0x30] sm:$0xff]   ;;  %v958_v20 = vld [vmem:[%s1109_s7 + $0x38] sm:$0xff]  }
  0x35   : > { %v959_v19 = vld [vmem:[%s1109_s7 + $0x70] sm:$0xff]   ;;  %v960_v21 = vld [vmem:[%s1109_s7 + $0x78] sm:$0xff]  }
  0x3b   : > { %887 = vmatmul.mubr.msk.bf16.gmra.mrb[4].mxu0 %vm317_vm2, %v951_v12  ;;  %903 = vmatmul.mubr.msk.bf16.gmra.mrb[4].mxu1 %vm317_vm2, %v952_v13 }
  0x3c   : > { %890 = vmatprep.mubr.msk.bf16.mxu0 %vm317_vm2, %v953_v14  ;;  %906 = vmatprep.mubr.msk.bf16.mxu1 %vm317_vm2, %v954_v15 }
  0x43   : > { %891 = vmatmul.mubr.msk.bf16.gmra.mrb[8].mxu0 %vm317_vm2, %v955_v16  ;;  %907 = vmatmul.mubr.msk.bf16.gmra.mrb[8].mxu1 %vm317_vm2, %v956_v17 }
  0x44   : > { %894 = vmatprep.mubr.msk.bf16.mxu0 %vm317_vm2, %v957_v18  ;;  %910 = vmatprep.mubr.msk.bf16.mxu1 %vm317_vm2, %v959_v19 }
  0x4b   : > { %895 = vmatmul.mubr.msk.bf16.gmra.mrb[12].mxu0 %vm317_vm2, %v958_v20  ;;  %911 = vmatmul.mubr.msk.bf16.gmra.mrb[12].mxu1 %vm317_vm2, %v960_v21 }
 0x106   : > { %v1143_v22 = vpop.f32.mrb[0].mxu0  ;;  %v900_v23 = vpop.f32.mrb[0].mxu1 }
 0x107   : > { %578 = vrot.lane.b32.xlu0 %v900_v23, %s1037_s8  ;;  %v1145_v24 = vpop.f32.mrb[1].mxu0  ;;  %v471_v25 = vpop.f32.mrb[1].mxu1 }
 0x108   : > { %v1147_v26 = vpop.f32.mrb[2].mxu0  ;;  %v901_v27 = vpop.f32.mrb[2].mxu1 }
 0x109   : > { %580 = vrot.lane.b32.xlu1 %v901_v27, %s1037_s8  ;;  %v1149_v28 = vpop.f32.mrb[3].mxu0  ;;  %v474_v29 = vpop.f32.mrb[3].mxu1 }
 0x10b   : > { %574 = vrot.lane.b32.xlu0 %v471_v25, %s1037_s8 }
 0x10d   : > { %576 = vrot.lane.b32.xlu1 %v474_v29, %s1037_s8 }
 0x10e   : > { %v1151_v30 = vpop.f32.mrb[4].mxu0  ;;  %v904_v31 = vpop.f32.mrb[4].mxu1 }
 0x10f   : > { %586 = vrot.lane.b32.xlu0 %v904_v31, %s1037_s8  ;;  %v1153_v32 = vpop.f32.mrb[5].mxu0  ;;  %v487_v33 = vpop.f32.mrb[5].mxu1 }
 0x110   : > { %v1155_v34 = vpop.f32.mrb[6].mxu0  ;;  %v905_v35 = vpop.f32.mrb[6].mxu1 }
 0x111   : > { %588 = vrot.lane.b32.xlu1 %v905_v35, %s1037_s8  ;;  %v1157_v36 = vpop.f32.mrb[7].mxu0  ;;  %v490_v37 = vpop.f32.mrb[7].mxu1 }
 0x113   : > { %582 = vrot.lane.b32.xlu0 %v487_v33, %s1037_s8 }
 0x115   : > { %584 = vrot.lane.b32.xlu1 %v490_v37, %s1037_s8 }
 0x116   : > { %v892_v38 = vpop.f32.mrb[8].mxu0  ;;  %v908_v39 = vpop.f32.mrb[8].mxu1 }
 0x117   : > { %610 = vrot.lane.b32.xlu0 %v908_v39, %s1038_s9  ;;  %v439_v40 = vpop.f32.mrb[9].mxu0  ;;  %v503_v41 = vpop.f32.mrb[9].mxu1 }
 0x118   : > { %v893_v42 = vpop.f32.mrb[10].mxu0  ;;  %v909_v43 = vpop.f32.mrb[10].mxu1 }
 0x119   : > { %v506_v44 = vpop.f32.mrb[11].mxu1  ;;  %546 = vrot.lane.b32.xlu1 %v892_v38, %s1039_s10  ;;  %v442_v45 = vpop.f32.mrb[11].mxu0 }
 0x11b   : > { %542 = vrot.lane.b32.xlu0 %v439_v40, %s1039_s10 }
 0x11d   : > { %548 = vrot.lane.b32.xlu1 %v893_v42, %s1039_s10 }
 0x11e   : > { %v896_v46 = vpop.f32.mrb[12].mxu0  ;;  %v912_v47 = vpop.f32.mrb[12].mxu1 }
 0x11f   : > { %606 = vrot.lane.b32.xlu0 %v503_v41, %s1038_s9  ;;  %v455_v48 = vpop.f32.mrb[13].mxu0  ;;  %v519_v49 = vpop.f32.mrb[13].mxu1 }
 0x120   : > { %v897_v50 = vpop.f32.mrb[14].mxu0  ;;  %v913_v51 = vpop.f32.mrb[14].mxu1 }
 0x121   : > { %612 = vrot.lane.b32.xlu1 %v909_v43, %s1038_s9  ;;  %v458_v52 = vpop.f32.mrb[15].mxu0  ;;  %v522_v53 = vpop.f32.mrb[15].mxu1 }
 0x123   : > { %544 = vrot.lane.b32.xlu0 %v442_v45, %s1039_s10 }
 0x125   : > { %608 = vrot.lane.b32.xlu1 %v506_v44, %s1038_s9 }
 0x127   : > { %554 = vrot.lane.b32.xlu0 %v896_v46, %s1039_s10 }
 0x129   : > { %556 = vrot.lane.b32.xlu1 %v897_v50, %s1039_s10 }
 0x12b   : > { %550 = vrot.lane.b32.xlu0 %v455_v48, %s1039_s10 }
 0x12d   : > { %552 = vrot.lane.b32.xlu1 %v458_v52, %s1039_s10 }
 0x12f   : > { %614 = vrot.lane.b32.xlu0 %v519_v49, %s1038_s9 }
 0x131   : > { %616 = vrot.lane.b32.xlu1 %v522_v53, %s1038_s9 }
 0x133   : > { %618 = vrot.lane.b32.xlu0 %v912_v47, %s1038_s9 }
 0x135   : > { %620 = vrot.lane.b32.xlu1 %v913_v51, %s1038_s9 }
 0x179   : > { %v579_v54 = vpop.permute.xlu0 %578 }
 0x17b   : > { %v581_v55 = vpop.permute.xlu1 %580 }
 0x17d   : > { %v575_v56 = vpop.permute.xlu0 %574 }
 0x17f   : > { %v577_v57 = vpop.permute.xlu1 %576 }
 0x181   : > { %v1167_v58 = vpop.permute.xlu0 %586 }
 0x183   : > { %v1169_v59 = vpop.permute.xlu1 %588 }
 0x185   : > { %v583_v60 = vpop.permute.xlu0 %582 }
 0x187   : > { %v585_v61 = vpop.permute.xlu1 %584 }
 0x189   : > { %v611_v62 = vpop.permute.xlu0 %610 }
 0x18b   : > { %v547_v63 = vpop.permute.xlu1 %546 }
 0x18c   : > { %v633_v1 = vsel %vm630_vm3, %v1143_v22, %v547_v63 }
 0x18d   : > { %v642_v2 = vsel %vm639_vm4, %v633_v1, %v579_v54  ;;  %v543_v3 = vpop.permute.xlu0 %542 }
 0x18e   : > { %v651_v4 = vsel %vm648_vm5, %v642_v2, %v611_v62  ;;  %v631_v5 = vsel %vm630_vm3, %v1145_v24, %v543_v3 }
 0x18f   : > { %v1183_v6 = vadd.f32 %v1174_v0, %v651_v4  ;;  %v549_v7 = vpop.permute.xlu1 %548  ;;  %v640_v10 = vsel %vm639_vm4, %v631_v5, %v575_v56 }
 0x190   : > { %v634_v8 = vsel %vm630_vm3, %v1147_v26, %v549_v7 }
 0x191   : > { %v852_v9 = vmul.f32 -1.442695, %v1183_v6  ;;  %v607_v11 = vpop.permute.xlu0 %606  ;;  %v643_v14 = vsel %vm639_vm4, %v634_v8, %v581_v55 }
 0x192   : > { %v649_v12 = vsel %vm648_vm5, %v640_v10, %v607_v11 }
 0x193   : > { %961 = vpow2.f32 %v852_v9  ;;  %v1191_v13 = vadd.f32 %v1174_v0, %v649_v12  ;;  %v613_v15 = vpop.permute.xlu1 %612 }
 0x194   : > { %v652_v16 = vsel %vm648_vm5, %v643_v14, %v613_v15 }
 0x195   : > { %v850_v17 = vmul.f32 -1.442695, %v1191_v13  ;;  %v1197_v18 = vadd.f32 %v1174_v0, %v652_v16  ;;  %v545_v19 = vpop.permute.xlu0 %544 }
 0x196   : > { %v632_v20 = vsel %vm630_vm3, %v1149_v28, %v545_v19 }
 0x197   : > { %963 = vpow2.f32 %v850_v17  ;;  %v853_v21 = vmul.f32 -1.442695, %v1197_v18  ;;  %v609_v22 = vpop.permute.xlu1 %608  ;;  %v641_v23 = vsel %vm639_vm4, %v632_v20, %v577_v57 }
 0x198   : > { %v650_v24 = vsel %vm648_vm5, %v641_v23, %v609_v22 }
 0x199   : > { %965 = vpow2.f32 %v853_v21  ;;  %v1205_v25 = vadd.f32 %v1174_v0, %v650_v24  ;;  %v555_v26 = vpop.permute.xlu0 %554 }
 0x19a   : > { %v637_v43 = vsel %vm630_vm3, %v1151_v30, %v555_v26 }
 0x19b   : > { %v851_v27 = vmul.f32 -1.442695, %v1205_v25  ;;  %v557_v29 = vpop.permute.xlu1 %556  ;;  %v646_v30 = vsel %vm639_vm4, %v637_v43, %v1167_v58 }
 0x19d   : > { %v962_v31 = vpop.eup %961  ;;  %967 = vpow2.f32 %v851_v27  ;;  %v551_v28 = vpop.permute.xlu0 %550 }
 0x19e   : > { %v698_v33 = vadd.f32 1.0, %v962_v31  ;;  %v635_v35 = vsel %vm630_vm3, %v1153_v32, %v551_v28 }
 0x19f   : > { %v553_v37 = vpop.permute.xlu1 %552  ;;  %v644_v40 = vsel %vm639_vm4, %v635_v35, %v583_v60 }
 0x1a0   : > { %969 = vrcp.f32 %v698_v33  ;;  %v636_v38 = vsel %vm630_vm3, %v1157_v36, %v553_v37  ;;  %v638_v36 = vsel %vm630_vm3, %v1155_v34, %v557_v29 }
 0x1a1   : > { %v964_v39 = vpop.eup %963  ;;  %v615_v41 = vpop.permute.xlu0 %614  ;;  %v645_v46 = vsel %vm639_vm4, %v636_v38, %v585_v61  ;;  %v647_v34 = vsel %vm639_vm4, %v638_v36, %v1169_v59 }
 0x1a2   : > { %v696_v42 = vadd.f32 1.0, %v964_v39  ;;  %v653_v44 = vsel %vm648_vm5, %v644_v40, %v615_v41 }
 0x1a3   : > { %v966_v45 = vpop.eup %965  ;;  %v668_v32 = vadd.f32 %v1174_v0, %v653_v44  ;;  %v617_v47 = vpop.permute.xlu1 %616 }
 0x1a4   : > { %971 = vrcp.f32 %v696_v42  ;;  %v699_v48 = vadd.f32 1.0, %v966_v45  ;;  %v654_v49 = vsel %vm648_vm5, %v645_v46, %v617_v47 }
 0x1a5   : > { %v854_v50 = vmul.f32 -1.442695, %v668_v32  ;;  %v669_v51 = vadd.f32 %v1174_v0, %v654_v49  ;;  %v619_v52 = vpop.permute.xlu0 %618 }
 0x1a6   : > { %973 = vrcp.f32 %v699_v48  ;;  %v655_v53 = vsel %vm648_vm5, %v646_v30, %v619_v52 }
 0x1a7   : > { %v968_v54 = vpop.eup %967  ;;  %975 = vpow2.f32 %v854_v50  ;;  %v855_v55 = vmul.f32 -1.442695, %v669_v51  ;;  %v670_v56 = vadd.f32 %v1174_v0, %v655_v53  ;;  %v621_v57 = vpop.permute.xlu1 %620 }
 0x1a8   : > { %v697_v60 = vadd.f32 1.0, %v968_v54  ;;  %v656_v61 = vsel %vm648_vm5, %v647_v34, %v621_v57 }
 0x1a9   : > { %977 = vpow2.f32 %v855_v55  ;;  %v856_v62 = vmul.f32 -1.442695, %v670_v56  ;;  %v671_v58 = vadd.f32 %v1174_v0, %v656_v61 }
 0x1aa   : > { %v970_v63 = vpop.eup %969  ;;  %979 = vrcp.f32 %v697_v60 }
 0x1ab   : > { %v722_v59 = vmul.f32 %v970_v63, %v1183_v6  ;;  %981 = vpow2.f32 %v856_v62  ;;  %v857_v1 = vmul.f32 -1.442695, %v671_v58 }
 0x1ad   : > { %730 = vst [vmem:[%s1234_s18 + $0x10] sm:$0xff] %v722_v59  ;;  %983 = vpow2.f32 %v857_v1 }
 0x1ae   : > { %v972_v2 = vpop.eup %971 }
 0x1af   : > { %v720_v3 = vmul.f32 %v972_v2, %v1191_v13 }
 0x1b0   : > { %v974_v0 = vpop.eup %973 }
 0x1b1   : > { %v976_v4 = vpop.eup %975  ;;  %728 = vst [vmem:[%s1234_s18] sm:$0xff] %v720_v3  ;;  %v723_v5 = vmul.f32 %v974_v0, %v1197_v18 }
 0x1b2   : > { %v700_v7 = vadd.f32 1.0, %v976_v4 }
 0x1b3   : > { %v978_v8 = vpop.eup %977  ;;  %731 = vst [vmem:[%s1234_s18 + $0x18] sm:$0xff] %v723_v5 }
 0x1b4   : > { %v980_v9 = vpop.eup %979  ;;  %985 = vrcp.f32 %v700_v7  ;;  %v701_v6 = vadd.f32 1.0, %v978_v8 }
 0x1b5   : > { %v982_v10 = vpop.eup %981  ;;  %v721_v11 = vmul.f32 %v980_v9, %v1205_v25 }
 0x1b6   : > { %987 = vrcp.f32 %v701_v6  ;;  %v702_v12 = vadd.f32 1.0, %v982_v10 }
 0x1b7   : > { %v984_v13 = vpop.eup %983  ;;  %729 = vst [vmem:[%s1234_s18 + $0x8] sm:$0xff] %v721_v11 }
 0x1b8   : > { %989 = vrcp.f32 %v702_v12  ;;  %v703_v14 = vadd.f32 1.0, %v984_v13 }
 0x1ba   : > { %991 = vrcp.f32 %v703_v14 }
 0x1be   : > { %v986_v15 = vpop.eup %985 }
 0x1bf   : > { %v724_v16 = vmul.f32 %v986_v15, %v668_v32 }
 0x1c0   : > { %v988_v17 = vpop.eup %987 }
 0x1c1   : > { %732 = vst [vmem:[%s1234_s18 + $0x20] sm:$0xff] %v724_v16  ;;  %v725_v18 = vmul.f32 %v988_v17, %v669_v51 }
 0x1c2   : > { %v990_v19 = vpop.eup %989 }
 0x1c3   : > { %733 = vst [vmem:[%s1234_s18 + $0x28] sm:$0xff] %v725_v18  ;;  %v726_v20 = vmul.f32 %v990_v19, %v670_v56 }
 0x1c4   : > { %v992_v21 = vpop.eup %991 }
 0x1c5   : > { %734 = vst [vmem:[%s1234_s18 + $0x30] sm:$0xff] %v726_v20  ;;  %v727_v22 = vmul.f32 %v992_v21, %v671_v58 }
 0x1c7   : > { %735 = vst [vmem:[%s1234_s18 + $0x38] sm:$0xff] %v727_v22 }
 0x1c8 PF: > { %s14_s12 = sadd.s32 1, %s1031_s12  }
 0x1c9   : > { %p11_p5 = scmp.ge.s32.totalorder %s14_s12, 4  }
 0x1cb   :  { %13 = sbr.rel (!%p11_p5) target bundleno = 1 (0x1), region = 67 }
 0x1d2   :  { %758 = vsyncpa [#allocation3], 1 }
 0x1d3   :  { %760 = vsyncpa [#allocation3 + $0x1], 1 }

// kernel: _lambda_.25
= control target key start
LH: loop header
LB: loop body
LE: loop exit
PB: predicated region body
PF: predicated region fallthrough
CT: control target
= control target key end

     0   :  { %s3691_s12 = smov 0   ;;  %s3693_s13 = smov 0   ;;  %s4784_s0 = inlined_call_operand.vmem [shape: bf16[4,512,72], index: 0, kind: input, shape index: {}]   ;;  %s4785_s1 = inlined_call_operand.vmem [shape: bf16[4,72,8], index: 1, kind: input, shape index: {}]   ;;  %s4786_s2 = inlined_call_operand.vmem [shape: f32[1,128], index: 2, kind: input, shape index: {}]   ;;  %s4787_s3 = inlined_call_operand.vmem [shape: f32[128,128], index: 3, kind: output, shape index: {}]  }
   0x1   :  { %s3695_s14 = smov 0  }
   0x2 LB: > { %s2927_s15 = sadd.s32 4294967295, %s3654_s14   ;;  %s3708_s16 = sadd.s32 1, %s3654_s14   ;;  %s3654_s14 = sphi %s3695_s14, %s4848_s14   ;;  %s3650_s13 = sphi %s3693_s13, %s4847_s13   ;;  %s3646_s12 = sphi %s3691_s12, %s4846_s12  }
   0x3   : > { %s17_s17 = ssub.s32 %s3654_s14, %s3708_s16  ;;  %s20_s18 = sadd.s32 1, %s3650_s13 }
   0x4   : > { %p18_p0 = scmp.eq.s32.totalorder %s17_s17, 0  ;;  %p27_p1 = scmp.ne.s32.totalorder %s3650_s13, %s3646_s12 }
   0x5   : > { %p28_p2 = scmp.eq.s32.totalorder %s3654_s14, 0  ;;  %p2930_p4 = scmp.ge.s32.totalorder %s3654_s14, 2 }
   0x6   : > { %s3717_s19 = scalar_select %p18_p0, %s3650_s13, %s20_s18  }
   0x7   : > { %p29_p3 = por %p28_p2, %p27_p1  ;;  %127 = sbr.rel (%p2930_p4) target bundleno = 50 (0x32), region = 24 }
   0xe   : > { %130 = sbr.rel (!%p29_p3) target bundleno = 50 (0x32), region = 28  ;;  %s132_s20 = sand.u32 (%p29_p3), 1, %s3650_s13  }
   0xf   : > { %s3220_s21 = sshll.u32 (%p29_p3), %s3654_s14, 7  ;;  %s2931_s22 = sshll.u32 (%p29_p3), %s132_s20, 9 }
  0x10   : > { %s3725_s25 = scalar_lea.vmem (%p29_p3), %s4784_s0, %s3220_s21  ;;  %s3730_s26 = scalar_lea.vmem (%p29_p3), [#allocation2], %s2931_s22 }
  0x11   : > { %v153_v0 = vld [vmem:[%s3725_s25] sm:$0xff] (%p29_p3)   ;;  %v157_v1 = vld [vmem:[%s3725_s25 + $0x8] sm:$0xff] (%p29_p3)   ;;  %v161_v2 = vld [vmem:[%s3725_s25 + $0x10] sm:$0xff] (%p29_p3)  }
  0x12   : > { %154 = vst [vmem:[%s3730_s26] sm:$0xff] (%p29_p3), %v153_v0   ;;  %158 = vst [vmem:[%s3730_s26 + $0x8] sm:$0xff] (%p29_p3), %v157_v1   ;;  %v165_v3 = vld [vmem:[%s3725_s25 + $0x18] sm:$0xff] (%p29_p3)   ;;  %v169_v4 = vld [vmem:[%s3725_s25 + $0x20] sm:$0xff] (%p29_p3)  }
  0x13   : > { %162 = vst [vmem:[%s3730_s26 + $0x10] sm:$0xff] (%p29_p3), %v161_v2   ;;  %v173_v5 = vld [vmem:[%s3725_s25 + $0x28] sm:$0xff] (%p29_p3)   ;;  %166 = vst [vmem:[%s3730_s26 + $0x18] sm:$0xff] (%p29_p3), %v165_v3   ;;  %v177_v6 = vld [vmem:[%s3725_s25 + $0x30] sm:$0xff] (%p29_p3)  }
  0x14   : > { %170 = vst [vmem:[%s3730_s26 + $0x20] sm:$0xff] (%p29_p3), %v169_v4   ;;  %174 = vst [vmem:[%s3730_s26 + $0x28] sm:$0xff] (%p29_p3), %v173_v5   ;;  %v181_v7 = vld [vmem:[%s3725_s25 + $0x38] sm:$0xff] (%p29_p3)   ;;  %v185_v8 = vld [vmem:[%s3725_s25 + $0x40] sm:$0xff] (%p29_p3)  }
  0x15   : > { %178 = vst [vmem:[%s3730_s26 + $0x30] sm:$0xff] %v177_v6   ;;  %182 = vst [vmem:[%s3730_s26 + $0x38] sm:$0xff] %v181_v7   ;;  %v189_v9 = vld [vmem:[%s3725_s25 + $0x48] sm:$0xff]   ;;  %v193_v10 = vld [vmem:[%s3725_s25 + $0x50] sm:$0xff]  }
  0x16   : > { %186 = vst [vmem:[%s3730_s26 + $0x40] sm:$0xff] %v185_v8   ;;  %v197_v11 = vld [vmem:[%s3725_s25 + $0x58] sm:$0xff]   ;;  %190 = vst [vmem:[%s3730_s26 + $0x48] sm:$0xff] %v189_v9   ;;  %v201_v12 = vld [vmem:[%s3725_s25 + $0x60] sm:$0xff]  }
  0x17   : > { %194 = vst [vmem:[%s3730_s26 + $0x50] sm:$0xff] %v193_v10   ;;  %198 = vst [vmem:[%s3730_s26 + $0x58] sm:$0xff] %v197_v11   ;;  %v205_v13 = vld [vmem:[%s3725_s25 + $0x68] sm:$0xff]   ;;  %v209_v14 = vld [vmem:[%s3725_s25 + $0x70] sm:$0xff]  }
  0x18   : > { %202 = vst [vmem:[%s3730_s26 + $0x60] sm:$0xff] %v201_v12   ;;  %206 = vst [vmem:[%s3730_s26 + $0x68] sm:$0xff] %v205_v13   ;;  %v213_v15 = vld [vmem:[%s3725_s25 + $0x78] sm:$0xff]   ;;  %v217_v16 = vld [vmem:[%s3725_s25 + $0x100] sm:$0xff]  }
  0x19   : > { %210 = vst [vmem:[%s3730_s26 + $0x70] sm:$0xff] %v209_v14   ;;  %v221_v17 = vld [vmem:[%s3725_s25 + $0x108] sm:$0xff]   ;;  %214 = vst [vmem:[%s3730_s26 + $0x78] sm:$0xff] %v213_v15   ;;  %v225_v18 = vld [vmem:[%s3725_s25 + $0x110] sm:$0xff]  }
  0x1a   : > { %218 = vst [vmem:[%s3730_s26 + $0x80] sm:$0xff] %v217_v16   ;;  %222 = vst [vmem:[%s3730_s26 + $0x88] sm:$0xff] %v221_v17   ;;  %v229_v19 = vld [vmem:[%s3725_s25 + $0x118] sm:$0xff]   ;;  %v233_v20 = vld [vmem:[%s3725_s25 + $0x120] sm:$0xff]  }
  0x1b   : > { %226 = vst [vmem:[%s3730_s26 + $0x90] sm:$0xff] %v225_v18   ;;  %230 = vst [vmem:[%s3730_s26 + $0x98] sm:$0xff] %v229_v19   ;;  %v237_v21 = vld [vmem:[%s3725_s25 + $0x128] sm:$0xff]   ;;  %v241_v22 = vld [vmem:[%s3725_s25 + $0x130] sm:$0xff]  }
  0x1c   : > { %234 = vst [vmem:[%s3730_s26 + $0xa0] sm:$0xff] %v233_v20   ;;  %v245_v23 = vld [vmem:[%s3725_s25 + $0x138] sm:$0xff]   ;;  %238 = vst [vmem:[%s3730_s26 + $0xa8] sm:$0xff] %v237_v21   ;;  %v249_v24 = vld [vmem:[%s3725_s25 + $0x140] sm:$0xff]  }
  0x1d   : > { %242 = vst [vmem:[%s3730_s26 + $0xb0] sm:$0xff] %v241_v22   ;;  %246 = vst [vmem:[%s3730_s26 + $0xb8] sm:$0xff] %v245_v23   ;;  %v253_v25 = vld [vmem:[%s3725_s25 + $0x148] sm:$0xff]   ;;  %v257_v26 = vld [vmem:[%s3725_s25 + $0x150] sm:$0xff]  }
  0x1e   : > { %250 = vst [vmem:[%s3730_s26 + $0xc0] sm:$0xff] %v249_v24   ;;  %254 = vst [vmem:[%s3730_s26 + $0xc8] sm:$0xff] %v253_v25   ;;  %v261_v27 = vld [vmem:[%s3725_s25 + $0x158] sm:$0xff]   ;;  %v265_v28 = vld [vmem:[%s3725_s25 + $0x160] sm:$0xff]  }
  0x1f   : > { %258 = vst [vmem:[%s3730_s26 + $0xd0] sm:$0xff] %v257_v26   ;;  %v269_v29 = vld [vmem:[%s3725_s25 + $0x168] sm:$0xff]   ;;  %262 = vst [vmem:[%s3730_s26 + $0xd8] sm:$0xff] %v261_v27   ;;  %v273_v30 = vld [vmem:[%s3725_s25 + $0x170] sm:$0xff]  }
  0x20   : > { %266 = vst [vmem:[%s3730_s26 + $0xe0] sm:$0xff] %v265_v28   ;;  %270 = vst [vmem:[%s3730_s26 + $0xe8] sm:$0xff] %v269_v29   ;;  %v277_v31 = vld [vmem:[%s3725_s25 + $0x178] sm:$0xff]   ;;  %v281_v32 = vld [vmem:[%s3725_s25 + $0x200] sm:$0xff]  }
  0x21   : > { %274 = vst [vmem:[%s3730_s26 + $0xf0] sm:$0xff] %v273_v30   ;;  %278 = vst [vmem:[%s3730_s26 + $0xf8] sm:$0xff] %v277_v31   ;;  %v285_v33 = vld [vmem:[%s3725_s25 + $0x208] sm:$0xff]   ;;  %v289_v34 = vld [vmem:[%s3725_s25 + $0x210] sm:$0xff]  }
  0x22   : > { %282 = vst [vmem:[%s3730_s26 + $0x100] sm:$0xff] %v281_v32   ;;  %v293_v35 = vld [vmem:[%s3725_s25 + $0x218] sm:$0xff]   ;;  %286 = vst [vmem:[%s3730_s26 + $0x108] sm:$0xff] %v285_v33   ;;  %v297_v36 = vld [vmem:[%s3725_s25 + $0x220] sm:$0xff]  }
  0x23   : > { %290 = vst [vmem:[%s3730_s26 + $0x110] sm:$0xff] %v289_v34   ;;  %294 = vst [vmem:[%s3730_s26 + $0x118] sm:$0xff] %v293_v35   ;;  %v301_v37 = vld [vmem:[%s3725_s25 + $0x228] sm:$0xff]   ;;  %v305_v38 = vld [vmem:[%s3725_s25 + $0x230] sm:$0xff]  }
  0x24   : > { %298 = vst [vmem:[%s3730_s26 + $0x120] sm:$0xff] %v297_v36   ;;  %302 = vst [vmem:[%s3730_s26 + $0x128] sm:$0xff] %v301_v37   ;;  %v309_v39 = vld [vmem:[%s3725_s25 + $0x238] sm:$0xff]   ;;  %v313_v40 = vld [vmem:[%s3725_s25 + $0x240] sm:$0xff]  }
  0x25   : > { %306 = vst [vmem:[%s3730_s26 + $0x130] sm:$0xff] %v305_v38   ;;  %v317_v41 = vld [vmem:[%s3725_s25 + $0x248] sm:$0xff]   ;;  %310 = vst [vmem:[%s3730_s26 + $0x138] sm:$0xff] %v309_v39   ;;  %v321_v42 = vld [vmem:[%s3725_s25 + $0x250] sm:$0xff]  }
  0x26   : > { %314 = vst [vmem:[%s3730_s26 + $0x140] sm:$0xff] %v313_v40   ;;  %318 = vst [vmem:[%s3730_s26 + $0x148] sm:$0xff] %v317_v41   ;;  %v325_v43 = vld [vmem:[%s3725_s25 + $0x258] sm:$0xff]   ;;  %v329_v44 = vld [vmem:[%s3725_s25 + $0x260] sm:$0xff]  }
  0x27   : > { %322 = vst [vmem:[%s3730_s26 + $0x150] sm:$0xff] %v321_v42   ;;  %326 = vst [vmem:[%s3730_s26 + $0x158] sm:$0xff] %v325_v43   ;;  %v333_v45 = vld [vmem:[%s3725_s25 + $0x268] sm:$0xff]   ;;  %v337_v46 = vld [vmem:[%s3725_s25 + $0x270] sm:$0xff]  }
  0x28   : > { %330 = vst [vmem:[%s3730_s26 + $0x160] sm:$0xff] %v329_v44   ;;  %v341_v47 = vld [vmem:[%s3725_s25 + $0x278] sm:$0xff]   ;;  %334 = vst [vmem:[%s3730_s26 + $0x168] sm:$0xff] %v333_v45   ;;  %v345_v48 = vld [vmem:[%s3725_s25 + $0x300] sm:$0xff]  }
  0x29   : > { %338 = vst [vmem:[%s3730_s26 + $0x170] sm:$0xff] %v337_v46   ;;  %342 = vst [vmem:[%s3730_s26 + $0x178] sm:$0xff] %v341_v47   ;;  %v349_v49 = vld [vmem:[%s3725_s25 + $0x308] sm:$0xff]   ;;  %v353_v50 = vld [vmem:[%s3725_s25 + $0x310] sm:$0xff]  }
  0x2a   : > { %346 = vst [vmem:[%s3730_s26 + $0x180] sm:$0xff] %v345_v48   ;;  %350 = vst [vmem:[%s3730_s26 + $0x188] sm:$0xff] %v349_v49   ;;  %v357_v51 = vld [vmem:[%s3725_s25 + $0x318] sm:$0xff]   ;;  %v361_v52 = vld [vmem:[%s3725_s25 + $0x320] sm:$0xff]  }
  0x2b   : > { %354 = vst [vmem:[%s3730_s26 + $0x190] sm:$0xff] %v353_v50   ;;  %v365_v53 = vld [vmem:[%s3725_s25 + $0x328] sm:$0xff]   ;;  %358 = vst [vmem:[%s3730_s26 + $0x198] sm:$0xff] %v357_v51   ;;  %v369_v54 = vld [vmem:[%s3725_s25 + $0x330] sm:$0xff]  }
  0x2c   : > { %362 = vst [vmem:[%s3730_s26 + $0x1a0] sm:$0xff] %v361_v52   ;;  %366 = vst [vmem:[%s3730_s26 + $0x1a8] sm:$0xff] %v365_v53   ;;  %v373_v55 = vld [vmem:[%s3725_s25 + $0x338] sm:$0xff]   ;;  %v377_v56 = vld [vmem:[%s3725_s25 + $0x340] sm:$0xff]  }
  0x2d   : > { %370 = vst [vmem:[%s3730_s26 + $0x1b0] sm:$0xff] %v369_v54   ;;  %374 = vst [vmem:[%s3730_s26 + $0x1b8] sm:$0xff] %v373_v55   ;;  %v381_v57 = vld [vmem:[%s3725_s25 + $0x348] sm:$0xff]   ;;  %v385_v58 = vld [vmem:[%s3725_s25 + $0x350] sm:$0xff]  }
  0x2e   : > { %378 = vst [vmem:[%s3730_s26 + $0x1c0] sm:$0xff] %v377_v56   ;;  %v389_v59 = vld [vmem:[%s3725_s25 + $0x358] sm:$0xff]   ;;  %382 = vst [vmem:[%s3730_s26 + $0x1c8] sm:$0xff] %v381_v57   ;;  %v393_v60 = vld [vmem:[%s3725_s25 + $0x360] sm:$0xff]  }
  0x2f   : > { %386 = vst [vmem:[%s3730_s26 + $0x1d0] sm:$0xff] %v385_v58   ;;  %390 = vst [vmem:[%s3730_s26 + $0x1d8] sm:$0xff] %v389_v59   ;;  %v397_v61 = vld [vmem:[%s3725_s25 + $0x368] sm:$0xff]   ;;  %v401_v62 = vld [vmem:[%s3725_s25 + $0x370] sm:$0xff]  }
  0x30   : > { %394 = vst [vmem:[%s3730_s26 + $0x1e0] sm:$0xff] %v393_v60   ;;  %398 = vst [vmem:[%s3730_s26 + $0x1e8] sm:$0xff] %v397_v61   ;;  %v405_v63 = vld [vmem:[%s3725_s25 + $0x378] sm:$0xff]  }
  0x31   : > { %402 = vst [vmem:[%s3730_s26 + $0x1f0] sm:$0xff] %v401_v62   ;;  %406 = vst [vmem:[%s3730_s26 + $0x1f8] sm:$0xff] %v405_v63  }
  0x32 PF: > { %p2934_p5 = scmp.ge.s32.totalorder %s3654_s14, 1  ;;  %p686_p6 = scmp.lt.s32.totalorder %s3654_s14, 3 }
  0x34   : > { %p687_p7 = pnand %p2934_p5, %p686_p6 }
  0x36   : > { %690 = sbr.rel (%p687_p7) target bundleno = 680 (0x2a8), region = 69 }
  0x3d   : > { %v3516_v0 = vld [vmem:[%s4785_s1] sm:$0xff]   ;;  %s693_s4 = sand.u32 1, %s3646_s12   ;;  %v3518_v2 = vld [vmem:[%s4785_s1 + $0x8] sm:$0xff]   ;;  %v3520_v4 = vld [vmem:[%s4785_s1 + $0x10] sm:$0xff]   ;;  %vm872_vm0 = vcmask 588800   ;;  %vm921_vm1 = vcmask 1043456  }
  0x3e   : > { %v3517_v1 = vld [vmem:[%s4785_s1 + $0x24] sm:$0xff]   ;;  %3305 = vmatprep.subr.bf16.mxu0 %v3516_v0  ;;  %v3519_v3 = vld [vmem:[%s4785_s1 + $0x2c] sm:$0xff]   ;;  %s2935_s11 = sshll.u32 %s693_s4, 9  ;;  %v3521_v5 = vld [vmem:[%s4785_s1 + $0x34] sm:$0xff]   ;;  %s3656_s27 = smov 8   ;;  %vm2652_vm2 = vcmask 64512  }
  0x3f   : > { %3347 = vmatprep.subr.bf16.mxu1 %v3517_v1  ;;  %3306 = vmatpush3.bf16.msra.mxu0 %v3516_v0  ;;  %v3522_v6 = vld [vmem:[%s4785_s1 + $0x18] sm:$0xff]   ;;  %s3884_s23 = scalar_lea.vmem [#allocation2], %s2935_s11  ;;  %v3524_v10 = vld [vmem:[%s4785_s1 + $0x20] ss:$0 sps:$4 sm:$0xff]   ;;  %v3525_v11 = vld [vmem:[%s4785_s1 + $0x44] ss:$0 sps:$4 sm:$0xff]  }
  0x40   : > { %3348 = vmatpush3.bf16.msra.mxu1 %v3517_v1  ;;  %3307 = vmatprep.subr.bf16.mxu0 %v3518_v2  ;;  %v3523_v7 = vld [vmem:[%s4785_s1 + $0x3c] sm:$0xff]   ;;  %v923_v12 = vsel %vm921_vm1, %v3524_v10, 0  ;;  %v1285_v13 = vsel %vm921_vm1, %v3525_v11, 0  ;;  %v3528_v14 = vld [vmem:[%s3884_s23 + $0x8] sm:$0xff]   ;;  %v3530_v16 = vld [vmem:[%s3884_s23 + $0x10] sm:$0xff]   ;;  %s3658_s28 = smov 40  }
  0x41   : > { %3349 = vmatprep.subr.bf16.mxu1 %v3519_v3  ;;  %v3526_v8 = vld [vmem:[%s3884_s23] sm:$0xff]   ;;  %v3529_v15 = vld [vmem:[%s3884_s23 + $0x88] sm:$0xff]   ;;  %v3531_v17 = vld [vmem:[%s3884_s23 + $0x90] sm:$0xff]   ;;  %s3659_s29 = smov 64   ;;  %s3660_s30 = smov 72   ;;  %vm2661_vm3 = vcmask 130048  }
  0x42   : > { %v3527_v9 = vld [vmem:[%s3884_s23 + $0x80] sm:$0xff]   ;;  %3315 = vmatprep.mubr.msk.bf16.mxu0 %vm872_vm0, %v3526_v8  ;;  %v3532_v18 = vld [vmem:[%s3884_s23 + $0x18] sm:$0xff]   ;;  %v3544_v22 = vld [vmem:[%s4785_s1 + $0x48] sm:$0xff]   ;;  %s3661_s4 = smov 96   ;;  %s3662_s5 = smov 104   ;;  %vm2670_vm4 = vcmask 195584  }
  0x43   : > { %3308 = vmatpush3.bf16.msra.mxu0 %v3518_v2  ;;  %3357 = vmatprep.mubr.msk.bf16.mxu1 %vm872_vm0, %v3527_v9  ;;  %v3533_v19 = vld [vmem:[%s3884_s23 + $0x98] sm:$0xff]   ;;  %v3534_v20 = vld [vmem:[%s3884_s23 + $0x20] sm:$0xff]   ;;  %v3547_v23 = vld [vmem:[%s4785_s1 + $0x6c] sm:$0xff]   ;;  %s3663_s6 = smov 16   ;;  %s3664_s7 = smov 24   ;;  %vm2679_vm5 = vcmask 261120  }
  0x44   : > { %3350 = vmatpush3.bf16.msra.mxu1 %v3519_v3  ;;  %3309 = vmatprep.subr.bf16.mxu0 %v3520_v4  ;;  %v3536_v21 = vld [vmem:[%s3884_s23 + $0xa0] sm:$0xff]   ;;  %v3535_v24 = vld [vmem:[%s3884_s23 + $0x28] sm:$0xff]   ;;  %v3549_v26 = vld [vmem:[%s4785_s1 + $0x50] sm:$0xff]   ;;  %s3665_s8 = smov 48   ;;  %s3666_s9 = smov 56   ;;  %vm2688_vm6 = vcmask 326656  }
  0x45   : > { %3351 = vmatprep.subr.bf16.mxu1 %v3521_v5  ;;  %v3537_v25 = vld [vmem:[%s3884_s23 + $0xa8] sm:$0xff]   ;;  %v3538_v27 = vld [vmem:[%s3884_s23 + $0x30] sm:$0xff]   ;;  %v3554_v30 = vld [vmem:[%s4785_s1 + $0x58] sm:$0xff]   ;;  %s3667_s10 = smov 80   ;;  %s3668_s11 = smov 88   ;;  %vm2697_vm7 = vcmask 392192  }
  0x46   : > { %v3540_v28 = vld [vmem:[%s3884_s23 + $0xb0] sm:$0xff]   ;;  %v3539_v31 = vld [vmem:[%s3884_s23 + $0x38] sm:$0xff]   ;;  %v3542_v34 = vld [vmem:[%s3884_s23 + $0x40] sm:$0xff]   ;;  %s3669_s12 = smov 112   ;;  %s3670_s17 = smov 120   ;;  %vm2706_vm8 = vcmask 457728  }
  0x47   : > { %3310 = vmatpush3.bf16.msra.mxu0 %v3520_v4  ;;  %v3552_v29 = vld [vmem:[%s4785_s1 + $0x74] sm:$0xff]   ;;  %v3557_v33 = vld [vmem:[%s4785_s1 + $0x7c] sm:$0xff]   ;;  %v3561_v37 = vld [vmem:[%s4785_s1 + $0x84] sm:$0xff]   ;;  %vm2715_vm9 = vcmask 523264   ;;  %vm2732_vm10 = vcmask 654336   ;;  %vm2741_vm11 = vcmask 719872  }
  0x48   : > { %3352 = vmatpush3.bf16.msra.mxu1 %v3521_v5  ;;  %3311 = vmatprep.subr.bf16.mxu0 %v3522_v6  ;;  %v3541_v32 = vld [vmem:[%s3884_s23 + $0xb8] sm:$0xff]   ;;  %v3545_v35 = vld [vmem:[%s3884_s23 + $0xc0] sm:$0xff]   ;;  %v3543_v38 = vld [vmem:[%s3884_s23 + $0x48] sm:$0xff]   ;;  %vm2750_vm12 = vcmask 785408   ;;  %vm2759_vm13 = vcmask 850944   ;;  %vm2768_vm14 = vcmask 916480  }
  0x49   : > { %3353 = vmatprep.subr.bf16.mxu1 %v3523_v7  ;;  %v3560_v36 = vld [vmem:[%s4785_s1 + $0x60] sm:$0xff]   ;;  %v3546_v39 = vld [vmem:[%s3884_s23 + $0xc8] sm:$0xff]   ;;  %v3548_v42 = vld [vmem:[%s3884_s23 + $0x50] sm:$0xff]   ;;  %vm2777_vm15 = vcmask 982016   ;;  %s2936_s21 = sshll.u32 %s2927_s15, 3 }
  0x4a   : > { %v3566_v40 = vld [vmem:[%s4785_s1 + $0x68] ss:$0 sps:$4 sm:$0xff]   ;;  %v3567_v41 = vld [vmem:[%s4785_s1 + $0x8c] ss:$0 sps:$4 sm:$0xff]   ;;  %v3551_v44 = vld [vmem:[%s3884_s23 + $0xd0] sm:$0xff]   ;;  %p718_p8 = scmp.lt.s32.totalorder %s2936_s21, 15 }
  0x4b   : > { %3312 = vmatpush3.bf16.msra.mxu0 %v3522_v6  ;;  %v1647_v43 = vsel %vm921_vm1, %v3566_v40, 0  ;;  %v2009_v45 = vsel %vm921_vm1, %v3567_v41, 0  ;;  %v3550_v46 = vld [vmem:[%s3884_s23 + $0x58] sm:$0xff]   ;;  %v3555_v48 = vld [vmem:[%s3884_s23 + $0x60] sm:$0xff]   ;;  %v3556_v50 = vld [vmem:[%s3884_s23 + $0x68] sm:$0xff]  }
  0x4c   : > { %3354 = vmatpush3.bf16.msra.mxu1 %v3523_v7  ;;  %3473 = vmatprep.subr.msk.bf16.mxu0 %vm921_vm1, %v3524_v10  ;;  %v3553_v47 = vld [vmem:[%s3884_s23 + $0xd8] sm:$0xff]   ;;  %v3558_v49 = vld [vmem:[%s3884_s23 + $0xe0] sm:$0xff]   ;;  %v3559_v51 = vld [vmem:[%s3884_s23 + $0xe8] sm:$0xff]   ;;  %s4850_s21 = smov (!%p718_p8, %s2936_s21), 15 }
  0x4d   : > { %3474 = vmatprep.subr.msk.bf16.mxu1 %vm921_vm1, %v3525_v11  ;;  %v3562_v52 = vld [vmem:[%s3884_s23 + $0x70] sm:$0xff]   ;;  %v3563_v54 = vld [vmem:[%s3884_s23 + $0x78] sm:$0xff]   ;;  %v3568_v56 = vld [vmem:[%s3884_s23 + $0x100] sm:$0xff]   ;;  %s2937_s14 = sshll.u32 %s4850_s21, 3 }
  0x4e   : > { %v3564_v53 = vld [vmem:[%s3884_s23 + $0xf0] sm:$0xff]   ;;  %v3565_v55 = vld [vmem:[%s3884_s23 + $0xf8] sm:$0xff]   ;;  %v3570_v57 = vld [vmem:[%s3884_s23 + $0x180] sm:$0xff]   ;;  %s4760_s24 = scalar_lea.vmem %s4787_s3, %s2937_s14 }
  0x4f   : > { %3314 = vmatpush3.bf16.msra.mxu0 %v923_v12  ;;  %v3569_v58 = vld [vmem:[%s3884_s23 + $0x108] sm:$0xff]   ;;  %v3572_v60 = vld [vmem:[%s3884_s23 + $0x110] sm:$0xff]   ;;  %v3573_v62 = vld [vmem:[%s3884_s23 + $0x118] sm:$0xff]  }
  0x50   : > { %3356 = vmatpush3.bf16.msra.mxu1 %v1285_v13  ;;  %3389 = vmatprep.subr.bf16.mxu0 %v3544_v22  ;;  %v3571_v59 = vld [vmem:[%s3884_s23 + $0x188] sm:$0xff]   ;;  %v3574_v61 = vld [vmem:[%s3884_s23 + $0x190] sm:$0xff]   ;;  %v3575_v63 = vld [vmem:[%s3884_s23 + $0x198] sm:$0xff]  }
  0x51   : > { %3431 = vmatprep.subr.bf16.mxu1 %v3547_v23  ;;  %v3576_v0 = vld [vmem:[%s3884_s23 + $0x120] sm:$0xff]   ;;  %v3577_v2 = vld [vmem:[%s3884_s23 + $0x128] sm:$0xff]   ;;  %v3580_v4 = vld [vmem:[%s3884_s23 + $0x130] sm:$0xff]  }
  0x52   : > { %3316 = vmatmul.mubr.msk.bf16.vlgmr.msra.gmra.mrb[0].mxu0 %vm872_vm0, %v3528_v14  ;;  %v3578_v1 = vld [vmem:[%s3884_s23 + $0x1a0] sm:$0xff]   ;;  %v3579_v3 = vld [vmem:[%s3884_s23 + $0x1a8] sm:$0xff]   ;;  %v3582_v5 = vld [vmem:[%s3884_s23 + $0x1b0] sm:$0xff]  }
  0x53   : > { %3358 = vmatmul.mubr.msk.bf16.vlgmr.msra.gmra.mrb[0].mxu1 %vm872_vm0, %v3529_v15  ;;  %3319 = vmatprep.mubr.msk.bf16.mxu0 %vm872_vm0, %v3530_v16  ;;  %v3581_v6 = vld [vmem:[%s3884_s23 + $0x138] sm:$0xff]   ;;  %v3584_v8 = vld [vmem:[%s3884_s23 + $0x140] sm:$0xff]   ;;  %v3585_v10 = vld [vmem:[%s3884_s23 + $0x148] sm:$0xff]  }
  0x54   : > { %3361 = vmatprep.mubr.msk.bf16.mxu1 %vm872_vm0, %v3531_v17  ;;  %3390 = vmatpush3.bf16.msra.mxu0 %v3544_v22  ;;  %v3583_v7 = vld [vmem:[%s3884_s23 + $0x1b8] sm:$0xff]   ;;  %v3586_v9 = vld [vmem:[%s3884_s23 + $0x1c0] sm:$0xff]   ;;  %v3587_v11 = vld [vmem:[%s3884_s23 + $0x1c8] sm:$0xff]  }
  0x55   : > { %3432 = vmatpush3.bf16.msra.mxu1 %v3547_v23  ;;  %3391 = vmatprep.subr.bf16.mxu0 %v3549_v26  ;;  %v3588_v12 = vld [vmem:[%s3884_s23 + $0x150] sm:$0xff]   ;;  %v3589_v14 = vld [vmem:[%s3884_s23 + $0x158] sm:$0xff]   ;;  %v3592_v16 = vld [vmem:[%s3884_s23 + $0x160] sm:$0xff]  }
  0x56   : > { %3433 = vmatprep.subr.bf16.mxu1 %v3552_v29  ;;  %v3590_v13 = vld [vmem:[%s3884_s23 + $0x1d0] sm:$0xff]   ;;  %v3591_v15 = vld [vmem:[%s3884_s23 + $0x1d8] sm:$0xff]   ;;  %v3594_v17 = vld [vmem:[%s3884_s23 + $0x1e0] sm:$0xff]  }
  0x57   : > { %v3597_v22 = vld [vmem:[%s3884_s23 + $0x178] sm:$0xff]  }
  0x58   : > { %3392 = vmatpush3.bf16.msra.mxu0 %v3549_v26  ;;  %v3599_v23 = vld [vmem:[%s3884_s23 + $0x1f8] sm:$0xff]  }
  0x59   : > { %3434 = vmatpush3.bf16.msra.mxu1 %v3552_v29  ;;  %3393 = vmatprep.subr.bf16.mxu0 %v3554_v30 }
  0x5a   : > { %3320 = vmatmul.mubr.msk.bf16.gmra.mrb[4].mxu0 %vm872_vm0, %v3532_v18  ;;  %3435 = vmatprep.subr.bf16.mxu1 %v3557_v33  ;;  %v3593_v18 = vld [vmem:[%s3884_s23 + $0x168] sm:$0xff]  }
  0x5b   : > { %3362 = vmatmul.mubr.msk.bf16.gmra.mrb[4].mxu1 %vm872_vm0, %v3533_v19  ;;  %3323 = vmatprep.mubr.msk.bf16.mxu0 %vm872_vm0, %v3534_v20  ;;  %v3595_v19 = vld [vmem:[%s3884_s23 + $0x1e8] sm:$0xff]   ;;  %v3596_v20 = vld [vmem:[%s3884_s23 + $0x170] sm:$0xff]  }
  0x5c   : > { %3365 = vmatprep.mubr.msk.bf16.mxu1 %vm872_vm0, %v3536_v21  ;;  %3394 = vmatpush3.bf16.msra.mxu0 %v3554_v30  ;;  %v3598_v21 = vld [vmem:[%s3884_s23 + $0x1f0] sm:$0xff]   ;;  %s3657_s23 = smov 32  }
  0x5d   : > { %3436 = vmatpush3.bf16.msra.mxu1 %v3557_v33  ;;  %3395 = vmatprep.subr.bf16.mxu0 %v3560_v36 }
  0x5e   : > { %3437 = vmatprep.subr.bf16.mxu1 %v3561_v37 }
  0x60   : > { %3396 = vmatpush3.bf16.msra.mxu0 %v3560_v36 }
  0x61   : > { %3438 = vmatpush3.bf16.msra.mxu1 %v3561_v37  ;;  %3475 = vmatprep.subr.msk.bf16.mxu0 %vm921_vm1, %v3566_v40 }
  0x62   : > { %3324 = vmatmul.mubr.msk.bf16.gmra.mrb[8].mxu0 %vm872_vm0, %v3535_v24  ;;  %3476 = vmatprep.subr.msk.bf16.mxu1 %vm921_vm1, %v3567_v41 }
  0x63   : > { %3366 = vmatmul.mubr.msk.bf16.gmra.mrb[8].mxu1 %vm872_vm0, %v3537_v25  ;;  %3327 = vmatprep.mubr.msk.bf16.mxu0 %vm872_vm0, %v3538_v27 }
  0x64   : > { %3369 = vmatprep.mubr.msk.bf16.mxu1 %vm872_vm0, %v3540_v28  ;;  %3398 = vmatpush3.bf16.msra.mxu0 %v1647_v43 }
  0x65   : > { %3440 = vmatpush3.bf16.msra.mxu1 %v2009_v45 }
  0x6a   : > { %3328 = vmatmul.mubr.msk.bf16.gmra.mrb[12].mxu0 %vm872_vm0, %v3539_v31 }
  0x6b   : > { %3370 = vmatmul.mubr.msk.bf16.gmra.mrb[12].mxu1 %vm872_vm0, %v3541_v32  ;;  %3331 = vmatprep.mubr.msk.bf16.mxu0 %vm872_vm0, %v3542_v34 }
  0x6c   : > { %3373 = vmatprep.mubr.msk.bf16.mxu1 %vm872_vm0, %v3545_v35 }
  0x72   : > { %3332 = vmatmul.mubr.msk.bf16.gmra.mrb[16].mxu0 %vm872_vm0, %v3543_v38 }
  0x73   : > { %3374 = vmatmul.mubr.msk.bf16.gmra.mrb[16].mxu1 %vm872_vm0, %v3546_v39  ;;  %3335 = vmatprep.mubr.msk.bf16.mxu0 %vm872_vm0, %v3548_v42 }
  0x74   : > { %3377 = vmatprep.mubr.msk.bf16.mxu1 %vm872_vm0, %v3551_v44 }
  0x7a   : > { %3336 = vmatmul.mubr.msk.bf16.gmra.mrb[20].mxu0 %vm872_vm0, %v3550_v46 }
  0x7b   : > { %3378 = vmatmul.mubr.msk.bf16.gmra.mrb[20].mxu1 %vm872_vm0, %v3553_v47  ;;  %3339 = vmatprep.mubr.msk.bf16.mxu0 %vm872_vm0, %v3555_v48 }
  0x7c   : > { %3381 = vmatprep.mubr.msk.bf16.mxu1 %vm872_vm0, %v3558_v49 }
  0x82   : > { %3340 = vmatmul.mubr.msk.bf16.gmra.mrb[24].mxu0 %vm872_vm0, %v3556_v50 }
  0x83   : > { %3382 = vmatmul.mubr.msk.bf16.gmra.mrb[24].mxu1 %vm872_vm0, %v3559_v51  ;;  %3343 = vmatprep.mubr.msk.bf16.mxu0 %vm872_vm0, %v3562_v52 }
  0x84   : > { %3385 = vmatprep.mubr.msk.bf16.mxu1 %vm872_vm0, %v3564_v53 }
  0x8a   : > { %3344 = vmatmul.mubr.msk.bf16.gmra.mrb[28].mxu0 %vm872_vm0, %v3563_v54 }
  0x8b   : > { %3386 = vmatmul.mubr.msk.bf16.gmra.mrb[28].mxu1 %vm872_vm0, %v3565_v55  ;;  %3399 = vmatprep.mubr.msk.bf16.mxu0 %vm872_vm0, %v3568_v56 }
  0x8c   : > { %3441 = vmatprep.mubr.msk.bf16.mxu1 %vm872_vm0, %v3570_v57 }
  0x92   : > { %3400 = vmatmul.mubr.msk.bf16.vlgmr.msra.gmra.mrb[32].mxu0 %vm872_vm0, %v3569_v58 }
  0x93   : > { %3442 = vmatmul.mubr.msk.bf16.vlgmr.msra.gmra.mrb[32].mxu1 %vm872_vm0, %v3571_v59  ;;  %3403 = vmatprep.mubr.msk.bf16.mxu0 %vm872_vm0, %v3572_v60 }
  0x94   : > { %3445 = vmatprep.mubr.msk.bf16.mxu1 %vm872_vm0, %v3574_v61 }
  0x9a   : > { %3404 = vmatmul.mubr.msk.bf16.gmra.mrb[36].mxu0 %vm872_vm0, %v3573_v62 }
  0x9b   : > { %3446 = vmatmul.mubr.msk.bf16.gmra.mrb[36].mxu1 %vm872_vm0, %v3575_v63  ;;  %3407 = vmatprep.mubr.msk.bf16.mxu0 %vm872_vm0, %v3576_v0 }
  0x9c   : > { %3449 = vmatprep.mubr.msk.bf16.mxu1 %vm872_vm0, %v3578_v1 }
  0xa2   : > { %3408 = vmatmul.mubr.msk.bf16.gmra.mrb[40].mxu0 %vm872_vm0, %v3577_v2 }
  0xa3   : > { %3450 = vmatmul.mubr.msk.bf16.gmra.mrb[40].mxu1 %vm872_vm0, %v3579_v3  ;;  %3411 = vmatprep.mubr.msk.bf16.mxu0 %vm872_vm0, %v3580_v4 }
  0xa4   : > { %3453 = vmatprep.mubr.msk.bf16.mxu1 %vm872_vm0, %v3582_v5 }
  0xaa   : > { %3412 = vmatmul.mubr.msk.bf16.gmra.mrb[44].mxu0 %vm872_vm0, %v3581_v6 }
  0xab   : > { %3454 = vmatmul.mubr.msk.bf16.gmra.mrb[44].mxu1 %vm872_vm0, %v3583_v7  ;;  %3415 = vmatprep.mubr.msk.bf16.mxu0 %vm872_vm0, %v3584_v8 }
  0xac   : > { %3457 = vmatprep.mubr.msk.bf16.mxu1 %vm872_vm0, %v3586_v9 }
  0xb2   : > { %3416 = vmatmul.mubr.msk.bf16.gmra.mrb[48].mxu0 %vm872_vm0, %v3585_v10 }
  0xb3   : > { %3458 = vmatmul.mubr.msk.bf16.gmra.mrb[48].mxu1 %vm872_vm0, %v3587_v11  ;;  %3419 = vmatprep.mubr.msk.bf16.mxu0 %vm872_vm0, %v3588_v12 }
  0xb4   : > { %3461 = vmatprep.mubr.msk.bf16.mxu1 %vm872_vm0, %v3590_v13 }
  0xba   : > { %3420 = vmatmul.mubr.msk.bf16.gmra.mrb[52].mxu0 %vm872_vm0, %v3589_v14 }
  0xbb   : > { %3462 = vmatmul.mubr.msk.bf16.gmra.mrb[52].mxu1 %vm872_vm0, %v3591_v15  ;;  %3423 = vmatprep.mubr.msk.bf16.mxu0 %vm872_vm0, %v3592_v16 }
  0xbc   : > { %3465 = vmatprep.mubr.msk.bf16.mxu1 %vm872_vm0, %v3594_v17 }
  0xc2   : > { %3424 = vmatmul.mubr.msk.bf16.gmra.mrb[56].mxu0 %vm872_vm0, %v3593_v18 }
  0xc3   : > { %3466 = vmatmul.mubr.msk.bf16.gmra.mrb[56].mxu1 %vm872_vm0, %v3595_v19  ;;  %3427 = vmatprep.mubr.msk.bf16.mxu0 %vm872_vm0, %v3596_v20 }
  0xc4   : > { %3469 = vmatprep.mubr.msk.bf16.mxu1 %vm872_vm0, %v3598_v21 }
  0xca   : > { %3428 = vmatmul.mubr.msk.bf16.gmra.mrb[60].mxu0 %vm872_vm0, %v3597_v22 }
  0xcb   : > { %3470 = vmatmul.mubr.msk.bf16.gmra.mrb[60].mxu1 %vm872_vm0, %v3599_v23 }
 0x125   : > { %v4058_v24 = vpop.f32.mrb[0].mxu0 }
 0x126   : > { %v3359_v25 = vpop.f32.mrb[0].mxu1  ;;  %v4060_v26 = vpop.f32.mrb[1].mxu0 }
 0x127   : > { %4788 = vst [vmem:[#allocation3_spill] sm:$0xff] %v4060_v26  ;;  %2184 = vrot.lane.b32.xlu1 %v3359_v25, %s3656_s27  ;;  %v1321_v27 = vpop.f32.mrb[1].mxu1  ;;  %v4062_v28 = vpop.f32.mrb[2].mxu0 }
 0x128   : > { %4789 = vst [vmem:[#allocation4_spill] sm:$0xff] %v4062_v28  ;;  %2180 = vrot.lane.b32.xlu0 %v1321_v27, %s3656_s27  ;;  %v3360_v29 = vpop.f32.mrb[2].mxu1  ;;  %v4064_v30 = vpop.f32.mrb[3].mxu0 }
 0x129   : > { %4790 = vst [vmem:[#allocation5_spill] sm:$0xff] %v4064_v30  ;;  %v1324_v31 = vpop.f32.mrb[3].mxu1 }
 0x12b   : > { %2186 = vrot.lane.b32.xlu1 %v3360_v29, %s3656_s27 }
 0x12c   : > { %2182 = vrot.lane.b32.xlu0 %v1324_v31, %s3656_s27 }
 0x12d   : > { %v4066_v32 = vpop.f32.mrb[4].mxu0 }
 0x12e   : > { %4791 = vst [vmem:[#allocation6_spill] sm:$0xff] %v4066_v32  ;;  %v3363_v33 = vpop.f32.mrb[4].mxu1  ;;  %v4068_v34 = vpop.f32.mrb[5].mxu0 }
 0x12f   : > { %4792 = vst [vmem:[#allocation7_spill] sm:$0xff] %v4068_v34  ;;  %v1337_v35 = vpop.f32.mrb[5].mxu1  ;;  %v4070_v36 = vpop.f32.mrb[6].mxu0 }
 0x130   : > { %4793 = vst [vmem:[#allocation8_spill] sm:$0xff] %v4070_v36  ;;  %2192 = vrot.lane.b32.xlu0 %v3363_v33, %s3656_s27  ;;  %v3364_v37 = vpop.f32.mrb[6].mxu1  ;;  %v4072_v38 = vpop.f32.mrb[7].mxu0 }
 0x131   : > { %4794 = vst [vmem:[#allocation9_spill] sm:$0xff] %v4072_v38  ;;  %2194 = vrot.lane.b32.xlu1 %v3364_v37, %s3656_s27  ;;  %v1340_v39 = vpop.f32.mrb[7].mxu1 }
 0x134   : > { %2188 = vrot.lane.b32.xlu0 %v1337_v35, %s3656_s27 }
 0x135   : > { %2190 = vrot.lane.b32.xlu1 %v1340_v39, %s3656_s27  ;;  %v3325_v40 = vpop.f32.mrb[8].mxu0 }
 0x136   : > { %v991_v41 = vpop.f32.mrb[9].mxu0  ;;  %v3367_v42 = vpop.f32.mrb[8].mxu1 }
 0x137   : > { %v1353_v43 = vpop.f32.mrb[9].mxu1  ;;  %v3326_v44 = vpop.f32.mrb[10].mxu0 }
 0x138   : > { %2280 = vrot.lane.b32.xlu0 %v3325_v40, %s3657_s23  ;;  %v3368_v45 = vpop.f32.mrb[10].mxu1  ;;  %v994_v46 = vpop.f32.mrb[11].mxu0 }
 0x139   : > { %2282 = vrot.lane.b32.xlu1 %v3326_v44, %s3657_s23  ;;  %v1356_v47 = vpop.f32.mrb[11].mxu1 }
 0x13c   : > { %2312 = vrot.lane.b32.xlu0 %v3367_v42, %s3658_s28 }
 0x13d   : > { %2314 = vrot.lane.b32.xlu1 %v3368_v45, %s3658_s28  ;;  %v3329_v48 = vpop.f32.mrb[12].mxu0 }
 0x13e   : > { %v1007_v49 = vpop.f32.mrb[13].mxu0  ;;  %v3371_v50 = vpop.f32.mrb[12].mxu1 }
 0x13f   : > { %v3330_v51 = vpop.f32.mrb[14].mxu0  ;;  %v1369_v52 = vpop.f32.mrb[13].mxu1 }
 0x140   : > { %2276 = vrot.lane.b32.xlu0 %v991_v41, %s3657_s23  ;;  %v1010_v53 = vpop.f32.mrb[15].mxu0  ;;  %v3372_v54 = vpop.f32.mrb[14].mxu1 }
 0x141   : > { %2278 = vrot.lane.b32.xlu1 %v994_v46, %s3657_s23  ;;  %v1372_v55 = vpop.f32.mrb[15].mxu1 }
 0x144   : > { %2308 = vrot.lane.b32.xlu0 %v1353_v43, %s3658_s28 }
 0x145   : > { %2310 = vrot.lane.b32.xlu1 %v1356_v47, %s3658_s28  ;;  %v3333_v56 = vpop.f32.mrb[16].mxu0 }
 0x146   : > { %v1023_v57 = vpop.f32.mrb[17].mxu0  ;;  %v3375_v58 = vpop.f32.mrb[16].mxu1 }
 0x147   : > { %v3334_v59 = vpop.f32.mrb[18].mxu0  ;;  %v1385_v60 = vpop.f32.mrb[17].mxu1 }
 0x148   : > { %2288 = vrot.lane.b32.xlu0 %v3329_v48, %s3657_s23  ;;  %v1026_v61 = vpop.f32.mrb[19].mxu0  ;;  %v3376_v62 = vpop.f32.mrb[18].mxu1 }
 0x149   : > { %2290 = vrot.lane.b32.xlu1 %v3330_v51, %s3657_s23  ;;  %v1388_v63 = vpop.f32.mrb[19].mxu1 }
 0x14c   : > { %2320 = vrot.lane.b32.xlu0 %v3371_v50, %s3658_s28 }
 0x14d   : > { %2322 = vrot.lane.b32.xlu1 %v3372_v54, %s3658_s28  ;;  %v3337_v0 = vpop.f32.mrb[20].mxu0 }
 0x14e   : > { %v1039_v1 = vpop.f32.mrb[21].mxu0  ;;  %v3379_v2 = vpop.f32.mrb[20].mxu1 }
 0x14f   : > { %v3338_v3 = vpop.f32.mrb[22].mxu0  ;;  %v1401_v4 = vpop.f32.mrb[21].mxu1 }
 0x150   : > { %2284 = vrot.lane.b32.xlu0 %v1007_v49, %s3657_s23  ;;  %v1042_v5 = vpop.f32.mrb[23].mxu0  ;;  %v3380_v6 = vpop.f32.mrb[22].mxu1 }
 0x151   : > { %2286 = vrot.lane.b32.xlu1 %v1010_v53, %s3657_s23  ;;  %v1404_v7 = vpop.f32.mrb[23].mxu1 }
 0x154   : > { %2316 = vrot.lane.b32.xlu0 %v1369_v52, %s3658_s28 }
 0x155   : > { %2318 = vrot.lane.b32.xlu1 %v1372_v55, %s3658_s28  ;;  %v3341_v8 = vpop.f32.mrb[24].mxu0 }
 0x156   : > { %v4090_v9 = vpop.f32.mrb[25].mxu0  ;;  %v3383_v10 = vpop.f32.mrb[24].mxu1 }
 0x157   : > { %v3342_v11 = vpop.f32.mrb[26].mxu0  ;;  %v4092_v12 = vpop.f32.mrb[25].mxu1 }
 0x158   : > { %2408 = vrot.lane.b32.xlu0 %v3333_v56, %s3659_s29  ;;  %v4095_v13 = vpop.f32.mrb[27].mxu0  ;;  %v3384_v14 = vpop.f32.mrb[26].mxu1 }
 0x159   : > { %2410 = vrot.lane.b32.xlu1 %v3334_v59, %s3659_s29  ;;  %v4098_v15 = vpop.f32.mrb[27].mxu1 }
 0x15c   : > { %2440 = vrot.lane.b32.xlu0 %v3375_v58, %s3660_s30 }
 0x15d   : > { %2442 = vrot.lane.b32.xlu1 %v3376_v62, %s3660_s30  ;;  %v4102_v16 = vpop.f32.mrb[28].mxu0 }
 0x15e   : > { %v4104_v17 = vpop.f32.mrb[29].mxu0  ;;  %v4106_v18 = vpop.f32.mrb[28].mxu1 }
 0x15f   : > { %v4108_v19 = vpop.f32.mrb[30].mxu0  ;;  %v4110_v20 = vpop.f32.mrb[29].mxu1 }
 0x160   : > { %2404 = vrot.lane.b32.xlu0 %v1023_v57, %s3659_s29  ;;  %v4113_v21 = vpop.f32.mrb[31].mxu0  ;;  %v4115_v22 = vpop.f32.mrb[30].mxu1 }
 0x161   : > { %2406 = vrot.lane.b32.xlu1 %v1026_v61, %s3659_s29  ;;  %v4118_v23 = vpop.f32.mrb[31].mxu1 }
 0x164   : > { %2436 = vrot.lane.b32.xlu0 %v1385_v60, %s3660_s30 }
 0x165   : > { %2438 = vrot.lane.b32.xlu1 %v1388_v63, %s3660_s30  ;;  %v4122_v25 = vpop.f32.mrb[32].mxu0 }
 0x166   : > { %v4124_v27 = vpop.f32.mrb[33].mxu0  ;;  %v4126_v29 = vpop.f32.mrb[32].mxu1 }
 0x167   : > { %v4128_v31 = vpop.f32.mrb[34].mxu0  ;;  %v4130_v33 = vpop.f32.mrb[33].mxu1 }
 0x168   : > { %2416 = vrot.lane.b32.xlu0 %v3337_v0, %s3659_s29  ;;  %v4133_v35 = vpop.f32.mrb[35].mxu0  ;;  %v4135_v37 = vpop.f32.mrb[34].mxu1 }
 0x169   : > { %2418 = vrot.lane.b32.xlu1 %v3338_v3, %s3659_s29  ;;  %v4138_v39 = vpop.f32.mrb[35].mxu1 }
 0x16c   : > { %2448 = vrot.lane.b32.xlu0 %v3379_v2, %s3660_s30 }
 0x16d   : > { %2450 = vrot.lane.b32.xlu1 %v3380_v6, %s3660_s30  ;;  %v4142_v40 = vpop.f32.mrb[36].mxu0 }
 0x16e   : > { %v4144_v41 = vpop.f32.mrb[37].mxu0  ;;  %v4146_v42 = vpop.f32.mrb[36].mxu1 }
 0x16f   : > { %v4148_v43 = vpop.f32.mrb[38].mxu0  ;;  %v4150_v44 = vpop.f32.mrb[37].mxu1 }
 0x170   : > { %2412 = vrot.lane.b32.xlu0 %v1039_v1, %s3659_s29  ;;  %v4153_v45 = vpop.f32.mrb[39].mxu0  ;;  %v4155_v46 = vpop.f32.mrb[38].mxu1 }
 0x171   : > { %2414 = vrot.lane.b32.xlu1 %v1042_v5, %s3659_s29  ;;  %v4158_v47 = vpop.f32.mrb[39].mxu1 }
 0x174   : > { %2444 = vrot.lane.b32.xlu0 %v1401_v4, %s3660_s30 }
 0x175   : > { %2446 = vrot.lane.b32.xlu1 %v1404_v7, %s3660_s30  ;;  %v4162_v48 = vpop.f32.mrb[40].mxu0 }
 0x176   : > { %v4164_v49 = vpop.f32.mrb[41].mxu0  ;;  %v4166_v50 = vpop.f32.mrb[40].mxu1 }
 0x177   : > { %v4168_v51 = vpop.f32.mrb[42].mxu0  ;;  %v4170_v52 = vpop.f32.mrb[41].mxu1 }
 0x178   : > { %2536 = vrot.lane.b32.xlu0 %v3341_v8, %s3661_s4  ;;  %v4173_v53 = vpop.f32.mrb[43].mxu0  ;;  %v4175_v54 = vpop.f32.mrb[42].mxu1 }
 0x179   : > { %2538 = vrot.lane.b32.xlu1 %v3342_v11, %s3661_s4  ;;  %v4178_v55 = vpop.f32.mrb[43].mxu1 }
 0x17c   : > { %2568 = vrot.lane.b32.xlu0 %v3383_v10, %s3662_s5 }
 0x17d   : > { %2570 = vrot.lane.b32.xlu1 %v3384_v14, %s3662_s5  ;;  %v4182_v56 = vpop.f32.mrb[44].mxu0 }
 0x17e   : > { %v4184_v57 = vpop.f32.mrb[45].mxu0  ;;  %v4186_v58 = vpop.f32.mrb[44].mxu1 }
 0x17f   : > { %v4188_v59 = vpop.f32.mrb[46].mxu0  ;;  %v4190_v60 = vpop.f32.mrb[45].mxu1 }
 0x180   : > { %2532 = vrot.lane.b32.xlu0 %v4090_v9, %s3661_s4  ;;  %v4194_v61 = vpop.f32.mrb[47].mxu0  ;;  %v4196_v62 = vpop.f32.mrb[46].mxu1 }
 0x181   : > { %2534 = vrot.lane.b32.xlu1 %v4095_v13, %s3661_s4  ;;  %v4200_v63 = vpop.f32.mrb[47].mxu1 }
 0x184   : > { %2564 = vrot.lane.b32.xlu0 %v4092_v12, %s3662_s5 }
 0x185   : > { %2566 = vrot.lane.b32.xlu1 %v4098_v15, %s3662_s5  ;;  %v4206_v0 = vpop.f32.mrb[48].mxu0 }
 0x186   : > { %v4208_v1 = vpop.f32.mrb[49].mxu0  ;;  %v4210_v2 = vpop.f32.mrb[48].mxu1 }
 0x187   : > { %v4212_v3 = vpop.f32.mrb[50].mxu0  ;;  %v4214_v4 = vpop.f32.mrb[49].mxu1 }
 0x188   : > { %2544 = vrot.lane.b32.xlu0 %v4102_v16, %s3661_s4  ;;  %v4218_v5 = vpop.f32.mrb[51].mxu0  ;;  %v4220_v6 = vpop.f32.mrb[50].mxu1 }
 0x189   : > { %2546 = vrot.lane.b32.xlu1 %v4108_v19, %s3661_s4  ;;  %v4224_v7 = vpop.f32.mrb[51].mxu1 }
 0x18c   : > { %2576 = vrot.lane.b32.xlu0 %v4106_v18, %s3662_s5 }
 0x18d   : > { %2578 = vrot.lane.b32.xlu1 %v4115_v22, %s3662_s5  ;;  %v4230_v8 = vpop.f32.mrb[52].mxu0 }
 0x18e   : > { %v4232_v9 = vpop.f32.mrb[53].mxu0  ;;  %v4234_v10 = vpop.f32.mrb[52].mxu1 }
 0x18f   : > { %v4236_v11 = vpop.f32.mrb[54].mxu0  ;;  %v4238_v12 = vpop.f32.mrb[53].mxu1 }
 0x190   : > { %2540 = vrot.lane.b32.xlu0 %v4104_v17, %s3661_s4  ;;  %v4242_v13 = vpop.f32.mrb[55].mxu0  ;;  %v4244_v14 = vpop.f32.mrb[54].mxu1 }
 0x191   : > { %2542 = vrot.lane.b32.xlu1 %v4113_v21, %s3661_s4  ;;  %v4248_v15 = vpop.f32.mrb[55].mxu1 }
 0x194   : > { %2572 = vrot.lane.b32.xlu0 %v4110_v20, %s3662_s5 }
 0x195   : > { %2574 = vrot.lane.b32.xlu1 %v4118_v23, %s3662_s5  ;;  %v4254_v16 = vpop.f32.mrb[56].mxu0 }
 0x196   : > { %v4256_v18 = vpop.f32.mrb[57].mxu0  ;;  %v4258_v17 = vpop.f32.mrb[56].mxu1 }
 0x197   : > { %v4260_v19 = vpop.f32.mrb[58].mxu0  ;;  %v4262_v22 = vpop.f32.mrb[57].mxu1 }
 0x198   : > { %2216 = vrot.lane.b32.xlu0 %v4122_v25, %s3663_s6  ;;  %v4266_v21 = vpop.f32.mrb[59].mxu0  ;;  %v4268_v20 = vpop.f32.mrb[58].mxu1 }
 0x199   : > { %v4270_v38 = vpop.permute.xlu1 %2184  ;;  %2218 = vrot.lane.b32.xlu1 %v4128_v31, %s3663_s6  ;;  %v4274_v23 = vpop.f32.mrb[59].mxu1 }
 0x19a   : > { %v4276_v34 = vpop.permute.xlu0 %2180 }
 0x19b   : > { %4795 = vst [vmem:[#allocation10_spill] sm:$0xff] %v4276_v34 }
 0x19c   : > { %2248 = vrot.lane.b32.xlu0 %v4126_v29, %s3664_s7 }
 0x19d   : > { %v4280_v36 = vpop.permute.xlu1 %2186  ;;  %2250 = vrot.lane.b32.xlu1 %v4135_v37, %s3664_s7  ;;  %v4284_v25 = vpop.f32.mrb[60].mxu0 }
 0x19e   : > { %v4286_v32 = vpop.permute.xlu0 %2182  ;;  %v4288_v30 = vpop.f32.mrb[61].mxu0 }
 0x19f   : > { %4796 = vst [vmem:[#allocation11_spill] sm:$0xff] %v4286_v32  ;;  %4797 = vst [vmem:[#allocation12_spill] sm:$0xff] %v4288_v30  ;;  %v4290_v31 = vpop.f32.mrb[62].mxu0  ;;  %v4292_v26 = vpop.f32.mrb[60].mxu1 }
 0x1a0   : > { %4798 = vst [vmem:[#allocation13_spill] sm:$0xff] %v4292_v26  ;;  %2212 = vrot.lane.b32.xlu0 %v4124_v27, %s3663_s6  ;;  %v4296_v34 = vpop.f32.mrb[63].mxu0  ;;  %v4298_v29 = vpop.f32.mrb[61].mxu1 }
 0x1a1   : > { %2214 = vrot.lane.b32.xlu1 %v4133_v35, %s3663_s6  ;;  %v4302_v37 = vpop.f32.mrb[62].mxu1 }
 0x1a2   : > { %v4304_v28 = vpop.permute.xlu0 %2192  ;;  %v4306_v32 = vpop.f32.mrb[63].mxu1 }
 0x1a3   : > { %4799 = vst [vmem:[#allocation14_spill] sm:$0xff] %v4304_v28  ;;  %v4308_v30 = vpop.permute.xlu1 %2194 }
 0x1a4   : > { %2244 = vrot.lane.b32.xlu0 %v4130_v33, %s3664_s7 }
 0x1a5   : > { %2246 = vrot.lane.b32.xlu1 %v4138_v39, %s3664_s7 }
 0x1a6   : > { %v4314_v27 = vpop.permute.xlu0 %2188 }
 0x1a7   : > { %v4316_v26 = vpop.permute.xlu1 %2190 }
 0x1a8   : > { %2224 = vrot.lane.b32.xlu0 %v4142_v40, %s3663_s6 }
 0x1a9   : > { %2226 = vrot.lane.b32.xlu1 %v4148_v43, %s3663_s6 }
 0x1aa   : > { %v4322_v35 = vpop.permute.xlu0 %2280 }
 0x1ab   : > { %v4324_v28 = vpop.permute.xlu1 %2282 }
 0x1ac   : > { %2256 = vrot.lane.b32.xlu0 %v4146_v42, %s3664_s7 }
 0x1ad   : > { %2258 = vrot.lane.b32.xlu1 %v4155_v46, %s3664_s7 }
 0x1ae   : > { %v4330_v33 = vpop.permute.xlu0 %2312 }
 0x1af   : > { %v4332_v39 = vpop.permute.xlu1 %2314 }
 0x1b0   : > { %2220 = vrot.lane.b32.xlu0 %v4144_v41, %s3663_s6 }
 0x1b1   : > { %2222 = vrot.lane.b32.xlu1 %v4153_v45, %s3663_s6 }
 0x1b2   : > { %v4338_v40 = vpop.permute.xlu0 %2276 }
 0x1b3   : > { %v4340_v43 = vpop.permute.xlu1 %2278 }
 0x1b4   : > { %2252 = vrot.lane.b32.xlu0 %v4150_v44, %s3664_s7 }
 0x1b5   : > { %2254 = vrot.lane.b32.xlu1 %v4158_v47, %s3664_s7 }
 0x1b6   : > { %v4346_v42 = vpop.permute.xlu0 %2308 }
 0x1b7   : > { %v4348_v46 = vpop.permute.xlu1 %2310 }
 0x1b8   : > { %4800 = vst [vmem:[#allocation15_spill] sm:$0xff] %v4348_v46  ;;  %2344 = vrot.lane.b32.xlu0 %v4162_v48, %s3665_s8 }
 0x1b9   : > { %2346 = vrot.lane.b32.xlu1 %v4168_v51, %s3665_s8 }
 0x1ba   : > { %v4352_v41 = vpop.permute.xlu0 %2288 }
 0x1bb   : > { %v4354_v45 = vpop.permute.xlu1 %2290 }
 0x1bc   : > { %2376 = vrot.lane.b32.xlu0 %v4166_v50, %s3666_s9 }
 0x1bd   : > { %2378 = vrot.lane.b32.xlu1 %v4175_v54, %s3666_s9 }
 0x1be   : > { %v4358_v44 = vpop.permute.xlu0 %2320 }
 0x1bf   : > { %v4360_v47 = vpop.permute.xlu1 %2322 }
 0x1c0   : > { %2340 = vrot.lane.b32.xlu0 %v4164_v49, %s3665_s8 }
 0x1c1   : > { %2342 = vrot.lane.b32.xlu1 %v4173_v53, %s3665_s8 }
 0x1c2   : > { %v4364_v48 = vpop.permute.xlu0 %2284 }
 0x1c3   : > { %v4366_v51 = vpop.permute.xlu1 %2286 }
 0x1c4   : > { %2372 = vrot.lane.b32.xlu0 %v4170_v52, %s3666_s9 }
 0x1c5   : > { %2374 = vrot.lane.b32.xlu1 %v4178_v55, %s3666_s9 }
 0x1c6   : > { %v4370_v46 = vpop.permute.xlu0 %2316 }
 0x1c7   : > { %v4372_v50 = vpop.permute.xlu1 %2318 }
 0x1c8   : > { %2352 = vrot.lane.b32.xlu0 %v4182_v56, %s3665_s8 }
 0x1c9   : > { %2354 = vrot.lane.b32.xlu1 %v4188_v59, %s3665_s8 }
 0x1ca   : > { %v4376_v54 = vpop.permute.xlu0 %2408 }
 0x1cb   : > { %v4378_v49 = vpop.permute.xlu1 %2410 }
 0x1cc   : > { %2384 = vrot.lane.b32.xlu0 %v4186_v58, %s3666_s9 }
 0x1cd   : > { %2386 = vrot.lane.b32.xlu1 %v4196_v62, %s3666_s9 }
 0x1ce   : > { %v4382_v53 = vpop.permute.xlu0 %2440 }
 0x1cf   : > { %v4384_v52 = vpop.permute.xlu1 %2442 }
 0x1d0   : > { %2348 = vrot.lane.b32.xlu0 %v4184_v57, %s3665_s8 }
 0x1d1   : > { %2350 = vrot.lane.b32.xlu1 %v4194_v61, %s3665_s8 }
 0x1d2   : > { %v4388_v55 = vpop.permute.xlu0 %2404 }
 0x1d3   : > { %v4390_v56 = vpop.permute.xlu1 %2406 }
 0x1d4   : > { %2380 = vrot.lane.b32.xlu0 %v4190_v60, %s3666_s9 }
 0x1d5   : > { %2382 = vrot.lane.b32.xlu1 %v4200_v63, %s3666_s9 }
 0x1d6   : > { %v4394_v59 = vpop.permute.xlu0 %2436 }
 0x1d7   : > { %v4396_v58 = vpop.permute.xlu1 %2438 }
 0x1d8   : > { %2472 = vrot.lane.b32.xlu0 %v4206_v0, %s3667_s10 }
 0x1d9   : > { %2474 = vrot.lane.b32.xlu1 %v4212_v3, %s3667_s10 }
 0x1da   : > { %v4400_v57 = vpop.permute.xlu0 %2416 }
 0x1db   : > { %4801 = vst [vmem:[#allocation16_spill] sm:$0xff] %v4400_v57  ;;  %v4402_v61 = vpop.permute.xlu1 %2418 }
 0x1dc   : > { %4802 = vst [vmem:[#allocation17_spill] sm:$0xff] %v4402_v61  ;;  %2504 = vrot.lane.b32.xlu0 %v4210_v2, %s3668_s11 }
 0x1dd   : > { %2506 = vrot.lane.b32.xlu1 %v4220_v6, %s3668_s11 }
 0x1de   : > { %v4406_v60 = vpop.permute.xlu0 %2448 }
 0x1df   : > { %4803 = vst [vmem:[#allocation18_spill] sm:$0xff] %v4406_v60  ;;  %v4408_v62 = vpop.permute.xlu1 %2450 }
 0x1e0   : > { %4804 = vst [vmem:[#allocation19_spill] sm:$0xff] %v4408_v62  ;;  %2468 = vrot.lane.b32.xlu0 %v4208_v1, %s3667_s10 }
 0x1e1   : > { %2470 = vrot.lane.b32.xlu1 %v4218_v5, %s3667_s10 }
 0x1e2   : > { %v4412_v63 = vpop.permute.xlu0 %2412 }
 0x1e3   : > { %v4414_v0 = vpop.permute.xlu1 %2414 }
 0x1e4   : > { %2500 = vrot.lane.b32.xlu0 %v4214_v4, %s3668_s11 }
 0x1e5   : > { %2502 = vrot.lane.b32.xlu1 %v4224_v7, %s3668_s11 }
 0x1e6   : > { %v4418_v3 = vpop.permute.xlu0 %2444 }
 0x1e7   : > { %v4420_v2 = vpop.permute.xlu1 %2446 }
 0x1e8   : > { %4805 = vst [vmem:[#allocation20_spill] sm:$0xff] %v4420_v2  ;;  %2480 = vrot.lane.b32.xlu0 %v4230_v8, %s3667_s10 }
 0x1e9   : > { %2482 = vrot.lane.b32.xlu1 %v4236_v11, %s3667_s10 }
 0x1ea   : > { %v4424_v6 = vpop.permute.xlu0 %2536 }
 0x1eb   : > { %v4426_v1 = vpop.permute.xlu1 %2538 }
 0x1ec   : > { %2512 = vrot.lane.b32.xlu0 %v4234_v10, %s3668_s11 }
 0x1ed   : > { %2514 = vrot.lane.b32.xlu1 %v4244_v14, %s3668_s11 }
 0x1ee   : > { %v4430_v5 = vpop.permute.xlu0 %2568 }
 0x1ef   : > { %v4432_v4 = vpop.permute.xlu1 %2570 }
 0x1f0   : > { %2476 = vrot.lane.b32.xlu0 %v4232_v9, %s3667_s10 }
 0x1f1   : > { %2478 = vrot.lane.b32.xlu1 %v4242_v13, %s3667_s10 }
 0x1f2   : > { %v4436_v7 = vpop.permute.xlu0 %2532 }
 0x1f3   : > { %v4438_v8 = vpop.permute.xlu1 %2534 }
 0x1f4   : > { %2508 = vrot.lane.b32.xlu0 %v4238_v12, %s3668_s11 }
 0x1f5   : > { %2510 = vrot.lane.b32.xlu1 %v4248_v15, %s3668_s11 }
 0x1f6   : > { %v4442_v11 = vpop.permute.xlu0 %2564 }
 0x1f7   : > { %v4444_v10 = vpop.permute.xlu1 %2566 }
 0x1f8   : > { %2600 = vrot.lane.b32.xlu0 %v4254_v16, %s3669_s12 }
 0x1f9   : > { %2602 = vrot.lane.b32.xlu1 %v4260_v19, %s3669_s12 }
 0x1fa   : > { %v4448_v9 = vpop.permute.xlu0 %2544 }
 0x1fb   : > { %4806 = vst [vmem:[#allocation21_spill] sm:$0xff] %v4448_v9  ;;  %v4450_v13 = vpop.permute.xlu1 %2546  ;;  %v4825_v9 = vld [vmem:[#allocation9_spill] sm:$0xff] }
 0x1fc   : > { %4807 = vst [vmem:[#allocation22_spill] sm:$0xff] %v4450_v13  ;;  %2632 = vrot.lane.b32.xlu0 %v4258_v17, %s3670_s17  ;;  %v4815_v13 = vld [vmem:[#allocation12_spill] sm:$0xff] }
 0x1fd   : > { %2634 = vrot.lane.b32.xlu1 %v4268_v20, %s3670_s17 }
 0x1fe   : > { %v4456_v12 = vpop.permute.xlu0 %2576 }
 0x1ff   : > { %4808 = vst [vmem:[#allocation23_spill] sm:$0xff] %v4456_v12  ;;  %v4458_v14 = vpop.permute.xlu1 %2578 }
 0x200   : > { %4809 = vst [vmem:[#allocation24_spill] sm:$0xff] %v4458_v14  ;;  %2596 = vrot.lane.b32.xlu0 %v4256_v18, %s3669_s12  ;;  %v2655_v18 = vsel %vm2652_vm2, %v4058_v24, %v4270_v38 }
 0x201   : > { %2598 = vrot.lane.b32.xlu1 %v4266_v21, %s3669_s12 }
 0x202   : > { %v4462_v15 = vpop.permute.xlu0 %2540 }
 0x203   : > { %4810 = vst [vmem:[#allocation25_spill] sm:$0xff] %v4462_v15  ;;  %v4464_v16 = vpop.permute.xlu1 %2542 }
 0x204   : > { %4811 = vst [vmem:[#allocation26_spill] sm:$0xff] %v4464_v16  ;;  %2628 = vrot.lane.b32.xlu0 %v4262_v22, %s3670_s17  ;;  %v4814_v22 = vld [vmem:[#allocation4_spill] sm:$0xff] }
 0x205   : > { %2630 = vrot.lane.b32.xlu1 %v4274_v23, %s3670_s17  ;;  %v2656_v20 = vsel %vm2652_vm2, %v4814_v22, %v4280_v36  ;;  %v4816_v36 = vld [vmem:[#allocation10_spill] sm:$0xff] }
 0x206   : > { %v4470_v17 = vpop.permute.xlu0 %2572 }
 0x207   : > { %4812 = vst [vmem:[#allocation27_spill] sm:$0xff] %v4470_v17  ;;  %v4472_v19 = vpop.permute.xlu1 %2574 }
 0x208   : > { %4813 = vst [vmem:[#allocation28_spill] sm:$0xff] %v4472_v19  ;;  %2608 = vrot.lane.b32.xlu0 %v4284_v25, %s3669_s12 }
 0x209   : > { %2610 = vrot.lane.b32.xlu1 %v4290_v31, %s3669_s12 }
 0x20a   : > { %v2217_v21 = vpop.permute.xlu0 %2216 }
 0x20b   : > { %v2664_v23 = vsel %vm2661_vm3, %v2655_v18, %v2217_v21  ;;  %v2219_v14 = vpop.permute.xlu1 %2218  ;;  %v4819_v21 = vld [vmem:[#allocation5_spill] sm:$0xff] }
 0x20c   : > { %v2665_v12 = vsel %vm2661_vm3, %v2656_v20, %v2219_v14  ;;  %2604 = vrot.lane.b32.xlu0 %v4815_v13, %s3669_s12  ;;  %v4817_v14 = vld [vmem:[#allocation3_spill] sm:$0xff] }
 0x20d   : > { %2606 = vrot.lane.b32.xlu1 %v4296_v34, %s3669_s12  ;;  %v2653_v13 = vsel %vm2652_vm2, %v4817_v14, %v4816_v36  ;;  %v4818_v34 = vld [vmem:[#allocation11_spill] sm:$0xff]  ;;  %v4821_v14 = vld [vmem:[#allocation14_spill] sm:$0xff] }
 0x20e   : > { %v2249_v25 = vpop.permute.xlu0 %2248  ;;  %v2654_v22 = vsel %vm2652_vm2, %v4819_v21, %v4818_v34  ;;  %v4822_v34 = vld [vmem:[#allocation6_spill] sm:$0xff]  ;;  %v4823_v21 = vld [vmem:[#allocation8_spill] sm:$0xff] }
 0x20f   : > { %v4487_v31 = vsel %vm2670_vm4, %v2664_v23, %v2249_v25  ;;  %v2251_v24 = vpop.permute.xlu1 %2250  ;;  %v4820_v25 = vld [vmem:[#allocation13_spill] sm:$0xff] }
 0x210   : > { %v4490_v38 = vsel %vm2670_vm4, %v2665_v12, %v2251_v24  ;;  %2636 = vrot.lane.b32.xlu0 %v4298_v29, %s3670_s17 }
 0x211   : > { %2638 = vrot.lane.b32.xlu1 %v4306_v32, %s3670_s17  ;;  %v2683_v60 = vsel %vm2679_vm5, %v4490_v38, %v4324_v28 }
 0x212   : > { %v2213_v18 = vpop.permute.xlu0 %2212 }
 0x213   : > { %v2662_v20 = vsel %vm2661_vm3, %v2653_v13, %v2213_v18  ;;  %v2215_v23 = vpop.permute.xlu1 %2214  ;;  %v2659_v13 = vsel %vm2652_vm2, %v4822_v34, %v4821_v14 }
 0x214   : > { %v2663_v12 = vsel %vm2661_vm3, %v2654_v22, %v2215_v23  ;;  %2640 = vrot.lane.b32.xlu0 %v4820_v25, %s3670_s17  ;;  %v2660_v22 = vsel %vm2652_vm2, %v4823_v21, %v4308_v30  ;;  %v2658_v30 = vsel %vm2652_vm2, %v4825_v9, %v4316_v26 }
 0x215   : > { %2642 = vrot.lane.b32.xlu1 %v4302_v37, %s3670_s17 }
 0x216   : > { %v2245_v32 = vpop.permute.xlu0 %2244 }
 0x217   : > { %v4509_v29 = vsel %vm2670_vm4, %v2662_v20, %v2245_v32  ;;  %v2247_v24 = vpop.permute.xlu1 %2246 }
 0x218   : > { %v4512_v36 = vsel %vm2670_vm4, %v2663_v12, %v2247_v24  ;;  %v4824_v24 = vld [vmem:[#allocation7_spill] sm:$0xff] }
 0x219   : > { %v2657_v14 = vsel %vm2652_vm2, %v4824_v24, %v4314_v27 }
 0x21a   : > { %v2225_v18 = vpop.permute.xlu0 %2224 }
 0x21b   : > { %v2668_v23 = vsel %vm2661_vm3, %v2659_v13, %v2225_v18  ;;  %v2227_v37 = vpop.permute.xlu1 %2226 }
 0x21c   : > { %v2669_v25 = vsel %vm2661_vm3, %v2660_v22, %v2227_v37 }
 0x21e   : > { %v2257_v20 = vpop.permute.xlu0 %2256 }
 0x21f   : > { %v2677_v32 = vsel %vm2670_vm4, %v2668_v23, %v2257_v20  ;;  %v2259_v19 = vpop.permute.xlu1 %2258 }
 0x220   : > { %v2678_v12 = vsel %vm2670_vm4, %v2669_v25, %v2259_v19  ;;  %v2686_v9 = vsel %vm2679_vm5, %v2677_v32, %v4352_v41 }
 0x222   : > { %v2221_v34 = vpop.permute.xlu0 %2220 }
 0x223   : > { %v2666_v13 = vsel %vm2661_vm3, %v2657_v14, %v2221_v34  ;;  %v2223_v18 = vpop.permute.xlu1 %2222  ;;  %v2687_v34 = vsel %vm2679_vm5, %v2678_v12, %v4354_v45 }
 0x224   : > { %v2667_v21 = vsel %vm2661_vm3, %v2658_v30, %v2223_v18  ;;  %v2695_v30 = vsel %vm2688_vm6, %v2686_v9, %v4358_v44 }
 0x226   : > { %v2253_v22 = vpop.permute.xlu0 %2252 }
 0x227   : > { %v4533_v23 = vsel %vm2670_vm4, %v2666_v13, %v2253_v22  ;;  %v2255_v37 = vpop.permute.xlu1 %2254 }
 0x228   : > { %v4536_v19 = vsel %vm2670_vm4, %v2667_v21, %v2255_v37  ;;  %v2696_v21 = vsel %vm2688_vm6, %v2687_v34, %v4360_v47 }
 0x22a   : > { %v2345_v25 = vpop.permute.xlu0 %2344 }
 0x22b   : > { %v2347_v27 = vpop.permute.xlu1 %2346 }
 0x22e   : > { %v2377_v20 = vpop.permute.xlu0 %2376 }
 0x22f   : > { %v2379_v24 = vpop.permute.xlu1 %2378 }
 0x232   : > { %v2341_v17 = vpop.permute.xlu0 %2340 }
 0x233   : > { %v2343_v16 = vpop.permute.xlu1 %2342 }
 0x236   : > { %v2373_v26 = vpop.permute.xlu0 %2372 }
 0x237   : > { %v2375_v14 = vpop.permute.xlu1 %2374 }
 0x23a   : > { %v2353_v13 = vpop.permute.xlu0 %2352 }
 0x23b   : > { %v2704_v18 = vsel %vm2697_vm7, %v2695_v30, %v2353_v13  ;;  %v2355_v22 = vpop.permute.xlu1 %2354 }
 0x23c   : > { %v2705_v37 = vsel %vm2697_vm7, %v2696_v21, %v2355_v22 }
 0x23e   : > { %v2385_v41 = vpop.permute.xlu0 %2384 }
 0x23f   : > { %v4549_v32 = vsel %vm2706_vm8, %v2704_v18, %v2385_v41  ;;  %v2387_v45 = vpop.permute.xlu1 %2386 }
 0x240   : > { %4826 = vst [vmem:[#allocation4_spill] sm:$0xff] %v4549_v32  ;;  %v4552_v12 = vsel %vm2706_vm8, %v2705_v37, %v2387_v45  ;;  %v2682_v37 = vsel %vm2679_vm5, %v4487_v31, %v4322_v35  ;;  %v2692_v32 = vsel %vm2688_vm6, %v2683_v60, %v4332_v39  ;;  %v2681_v39 = vsel %vm2679_vm5, %v4512_v36, %v4340_v43 }
 0x241   : > { %4827 = vst [vmem:[#allocation12_spill] sm:$0xff] %v4552_v12  ;;  %v2691_v61 = vsel %vm2688_vm6, %v2682_v37, %v4330_v33  ;;  %v2701_v35 = vsel %vm2697_vm7, %v2692_v32, %v2347_v27  ;;  %v2680_v33 = vsel %vm2679_vm5, %v4509_v29, %v4338_v40  ;;  %v4829_v29 = vld [vmem:[#allocation15_spill] sm:$0xff] }
 0x242   : > { %v4554_v15 = vpop.permute.xlu0 %2348  ;;  %v2700_v2 = vsel %vm2697_vm7, %v2691_v61, %v2345_v25  ;;  %v2710_v28 = vsel %vm2706_vm8, %v2701_v35, %v2379_v24  ;;  %v2689_v25 = vsel %vm2688_vm6, %v2680_v33, %v4346_v42  ;;  %v2690_v27 = vsel %vm2688_vm6, %v2681_v39, %v4829_v29 }
 0x243   : > { %v4556_v44 = vpop.permute.xlu1 %2350  ;;  %v2709_v31 = vsel %vm2706_vm8, %v2700_v2, %v2377_v20  ;;  %v2719_v60 = vsel %vm2715_vm9, %v2710_v28, %v4378_v49  ;;  %v2699_v20 = vsel %vm2697_vm7, %v2690_v27, %v2343_v16 }
 0x244   : > { %v2718_v61 = vsel %vm2715_vm9, %v2709_v31, %v4376_v54  ;;  %v2698_v54 = vsel %vm2697_vm7, %v2689_v25, %v2341_v17  ;;  %v2727_v49 = vsel %vm872_vm0, %v2719_v60, %v4384_v52  ;;  %v2708_v17 = vsel %vm2706_vm8, %v2699_v20, %v2375_v14 }
 0x245   : > { %v2726_v40 = vsel %vm872_vm0, %v2718_v61, %v4382_v53  ;;  %v2707_v42 = vsel %vm2706_vm8, %v2698_v54, %v2373_v26  ;;  %v2717_v26 = vsel %vm2715_vm9, %v2708_v17, %v4390_v56  ;;  %v2684_v14 = vsel %vm2679_vm5, %v4533_v23, %v4364_v48  ;;  %v4832_v17 = vld [vmem:[#allocation20_spill] sm:$0xff] }
 0x246   : > { %v4558_v9 = vpop.permute.xlu0 %2380  ;;  %v2725_v48 = vsel %vm872_vm0, %v2717_v26, %v4396_v58 }
 0x247   : > { %v4560_v30 = vpop.permute.xlu1 %2382 }
 0x248   : > { %v4834_v26 = vld [vmem:[#allocation12_spill] sm:$0xff] }
 0x24a   : > { %v2473_v47 = vpop.permute.xlu0 %2472 }
 0x24b   : > { %v2475_v34 = vpop.permute.xlu1 %2474  ;;  %v2735_v43 = vsel %vm2732_vm10, %v2726_v40, %v2473_v47  ;;  %v2716_v47 = vsel %vm2715_vm9, %v2707_v42, %v4388_v55  ;;  %v2685_v55 = vsel %vm2679_vm5, %v4536_v19, %v4366_v51  ;;  %v4830_v42 = vld [vmem:[#allocation16_spill] sm:$0xff] }
 0x24c   : > { %v2736_v24 = vsel %vm2732_vm10, %v2727_v49, %v2475_v34 }
 0x24e   : > { %v2505_v13 = vpop.permute.xlu0 %2504 }
 0x24f   : > { %v2507_v21 = vpop.permute.xlu1 %2506  ;;  %v2744_v53 = vsel %vm2741_vm11, %v2735_v43, %v2505_v13 }
 0x250   : > { %v2745_v37 = vsel %vm2741_vm11, %v2736_v24, %v2507_v21  ;;  %v2753_v52 = vsel %vm2750_vm12, %v2744_v53, %v4424_v6  ;;  %v2724_v6 = vsel %vm872_vm0, %v2716_v47, %v4394_v59  ;;  %v4831_v24 = vld [vmem:[#allocation4_spill] sm:$0xff] }
 0x251   : > { %v2754_v34 = vsel %vm2750_vm12, %v2745_v37, %v4426_v1  ;;  %v2762_v56 = vsel %vm2759_vm13, %v2753_v52, %v4430_v5  ;;  %v4639_v1 = vld [vmem:[%s4786_s2] ss:$0 sm:$0xff] }
 0x252   : > { %v2469_v22 = vpop.permute.xlu0 %2468  ;;  %v2763_v51 = vsel %vm2759_vm13, %v2754_v34, %v4432_v4  ;;  %v2693_v4 = vsel %vm2688_vm6, %v2684_v14, %v4370_v46 }
 0x253   : > { %v2471_v62 = vpop.permute.xlu1 %2470  ;;  %v2733_v21 = vsel %vm2732_vm10, %v2724_v6, %v2469_v22  ;;  %v4835_v6 = vld [vmem:[#allocation18_spill] sm:$0xff] }
 0x254   : > { %v2734_v59 = vsel %vm2732_vm10, %v2725_v48, %v2471_v62  ;;  %v2702_v62 = vsel %vm2697_vm7, %v2693_v4, %v4554_v15 }
 0x255   : > { %v2711_v46 = vsel %vm2706_vm8, %v2702_v62, %v4558_v9 }
 0x256   : > { %v2501_v18 = vpop.permute.xlu0 %2500 }
 0x257   : > { %v2503_v41 = vpop.permute.xlu1 %2502  ;;  %v2742_v5 = vsel %vm2741_vm11, %v2733_v21, %v2501_v18  ;;  %v2694_v18 = vsel %vm2688_vm6, %v2685_v55, %v4372_v50 }
 0x258   : > { %v2743_v22 = vsel %vm2741_vm11, %v2734_v59, %v2503_v41  ;;  %v2751_v41 = vsel %vm2750_vm12, %v2742_v5, %v4436_v7  ;;  %v2703_v25 = vsel %vm2697_vm7, %v2694_v18, %v4556_v44  ;;  %v2720_v44 = vsel %vm2715_vm9, %v2711_v46, %v4412_v63  ;;  %v4840_v18 = vld [vmem:[#allocation27_spill] sm:$0xff] }
 0x259   : > { %v2752_v40 = vsel %vm2750_vm12, %v2743_v22, %v4438_v8  ;;  %v2712_v50 = vsel %vm2706_vm8, %v2703_v25, %v4560_v30  ;;  %v2760_v7 = vsel %vm2759_vm13, %v2751_v41, %v4442_v11  ;;  %v2728_v63 = vsel %vm872_vm0, %v2720_v44, %v4418_v3 }
 0x25a   : > { %v4565_v45 = vpop.permute.xlu0 %2480  ;;  %v2761_v9 = vsel %vm2759_vm13, %v2752_v40, %v4444_v10  ;;  %v2721_v27 = vsel %vm2715_vm9, %v2712_v50, %v4414_v0  ;;  %v2722_v0 = vsel %vm2715_vm9, %v4831_v24, %v4830_v42  ;;  %v4843_v40 = vld [vmem:[#allocation22_spill] sm:$0xff] }
 0x25b   : > { %4828 = vst [vmem:[#allocation10_spill] sm:$0xff] %v4565_v45  ;;  %v4570_v12 = vpop.permute.xlu1 %2482  ;;  %v2729_v37 = vsel %vm872_vm0, %v2721_v27, %v4832_v17 }
 0x25e   : > { %v4577_v57 = vpop.permute.xlu0 %2512 }
 0x25f   : > { %v4581_v45 = vpop.permute.xlu1 %2514 }
 0x262   : > { %v4589_v38 = vpop.permute.xlu0 %2476  ;;  %v4836_v48 = vld [vmem:[#allocation10_spill] sm:$0xff] }
 0x263   : > { %v4596_v2 = vpop.permute.xlu1 %2478  ;;  %v2737_v53 = vsel %vm2732_vm10, %v2728_v63, %v4589_v38 }
 0x264   : > { %v2738_v34 = vsel %vm2732_vm10, %v2729_v37, %v4596_v2 }
 0x266   : > { %v4608_v36 = vpop.permute.xlu0 %2508 }
 0x267   : > { %v4614_v32 = vpop.permute.xlu1 %2510 }
 0x268   : > { %v2747_v38 = vsel %vm2741_vm11, %v2738_v34, %v4614_v32 }
 0x26a   : > { %v2601_v16 = vpop.permute.xlu0 %2600 }
 0x26b   : > { %v2603_v13 = vpop.permute.xlu1 %2602  ;;  %v2771_v23 = vsel %vm2768_vm14, %v2762_v56, %v2601_v16  ;;  %v4833_v16 = vld [vmem:[#allocation17_spill] sm:$0xff]  ;;  %v2730_v56 = vsel %vm872_vm0, %v2722_v0, %v4835_v6 }
 0x26c   : > { %v2772_v35 = vsel %vm2768_vm14, %v2763_v51, %v2603_v13  ;;  %v2723_v3 = vsel %vm2715_vm9, %v4834_v26, %v4833_v16  ;;  %v2746_v13 = vsel %vm2741_vm11, %v2737_v53, %v4608_v36  ;;  %v2739_v2 = vsel %vm2732_vm10, %v2730_v56, %v4836_v48  ;;  %v4838_v51 = vld [vmem:[#allocation25_spill] sm:$0xff] }
 0x26e   : > { %v2633_v19 = vpop.permute.xlu0 %2632 }
 0x26f   : > { %v2780_v31 = vsel %vm2777_vm15, %v2771_v23, %v2633_v19  ;;  %v2635_v28 = vpop.permute.xlu1 %2634  ;;  %v4837_v23 = vld [vmem:[#allocation19_spill] sm:$0xff]  ;;  %v2755_v19 = vsel %vm2750_vm12, %v2746_v13, %v4838_v51 }
 0x270   : > { %v4653_v33 = vadd.f32 %v4639_v1, %v2780_v31  ;;  %v2781_v58 = vsel %vm2777_vm15, %v2772_v35, %v2635_v28  ;;  %v2731_v36 = vsel %vm872_vm0, %v2723_v3, %v4837_v23  ;;  %v2748_v35 = vsel %vm2741_vm11, %v2739_v2, %v4577_v57  ;;  %v4839_v31 = vld [vmem:[#allocation26_spill] sm:$0xff] }
 0x271   : > { %v4659_v61 = vadd.f32 %v4639_v1, %v2781_v58  ;;  %v2740_v32 = vsel %vm2732_vm10, %v2731_v36, %v4570_v12  ;;  %v2756_v28 = vsel %vm2750_vm12, %v2747_v38, %v4839_v31  ;;  %v2764_v41 = vsel %vm2759_vm13, %v2755_v19, %v4840_v18 }
 0x272   : > { %v3212_v39 = vmul.f32 -1.442695, %v4653_v33  ;;  %v2597_v60 = vpop.permute.xlu0 %2596  ;;  %v2749_v4 = vsel %vm2741_vm11, %v2740_v32, %v4581_v45 }
 0x273   : > { %v3213_v15 = vmul.f32 -1.442695, %v4659_v61  ;;  %v2599_v54 = vpop.permute.xlu1 %2598  ;;  %v2769_v29 = vsel %vm2768_vm14, %v2760_v7, %v2597_v60  ;;  %v4842_v60 = vld [vmem:[#allocation28_spill] sm:$0xff] }
 0x274   : > { %3600 = vpow2.f32 %v3212_v39  ;;  %v2770_v43 = vsel %vm2768_vm14, %v2761_v9, %v2599_v54  ;;  %v4841_v39 = vld [vmem:[#allocation21_spill] sm:$0xff]  ;;  %v2765_v25 = vsel %vm2759_vm13, %v2756_v28, %v4842_v60 }
 0x275   : > { %3602 = vpow2.f32 %v3213_v15  ;;  %v2757_v12 = vsel %vm2750_vm12, %v2748_v35, %v4841_v39  ;;  %v2758_v15 = vsel %vm2750_vm12, %v2749_v4, %v4843_v40 }
 0x276   : > { %v2629_v8 = vpop.permute.xlu0 %2628 }
 0x277   : > { %v2778_v30 = vsel %vm2777_vm15, %v2769_v29, %v2629_v8  ;;  %v2631_v49 = vpop.permute.xlu1 %2630  ;;  %v4844_v29 = vld [vmem:[#allocation23_spill] sm:$0xff] }
 0x278   : > { %v4689_v20 = vadd.f32 %v4639_v1, %v2778_v30  ;;  %v2779_v11 = vsel %vm2777_vm15, %v2770_v43, %v2631_v49  ;;  %v2766_v9 = vsel %vm2759_vm13, %v2757_v12, %v4844_v29  ;;  %v4845_v30 = vld [vmem:[#allocation24_spill] sm:$0xff] }
 0x279   : > { %v4695_v10 = vadd.f32 %v4639_v1, %v2779_v11  ;;  %v2767_v49 = vsel %vm2759_vm13, %v2758_v15, %v4845_v30 }
 0x27a   : > { %v3210_v47 = vmul.f32 -1.442695, %v4689_v20  ;;  %v2609_v52 = vpop.permute.xlu0 %2608 }
 0x27b   : > { %v3211_v14 = vmul.f32 -1.442695, %v4695_v10  ;;  %v2611_v55 = vpop.permute.xlu1 %2610  ;;  %v2775_v43 = vsel %vm2768_vm14, %v2766_v9, %v2609_v52 }
 0x27c   : > { %3604 = vpow2.f32 %v3210_v47  ;;  %v2776_v0 = vsel %vm2768_vm14, %v2767_v49, %v2611_v55 }
 0x27d   : > { %3606 = vpow2.f32 %v3211_v14 }
 0x27e   : > { %v3601_v21 = vpop.eup %3600  ;;  %v2605_v59 = vpop.permute.xlu0 %2604 }
 0x27f   : > { %v3603_v5 = vpop.eup %3602  ;;  %v2827_v22 = vadd.f32 1.0, %v3601_v21  ;;  %v2607_v58 = vpop.permute.xlu1 %2606  ;;  %v2773_v57 = vsel %vm2768_vm14, %v2764_v41, %v2605_v59 }
 0x280   : > { %v2828_v62 = vadd.f32 1.0, %v3603_v5  ;;  %v2774_v45 = vsel %vm2768_vm14, %v2765_v25, %v2607_v58 }
 0x281   : > { %3608 = vrcp.f32 %v2827_v22 }
 0x282   : > { %3610 = vrcp.f32 %v2828_v62  ;;  %v2637_v46 = vpop.permute.xlu0 %2636 }
 0x283   : > { %v2782_v54 = vsel %vm2777_vm15, %v2773_v57, %v2637_v46  ;;  %v2639_v50 = vpop.permute.xlu1 %2638 }
 0x284   : > { %v2797_v7 = vadd.f32 %v4639_v1, %v2782_v54  ;;  %v2783_v44 = vsel %vm2777_vm15, %v2774_v45, %v2639_v50 }
 0x285   : > { %v2798_v8 = vadd.f32 %v4639_v1, %v2783_v44 }
 0x286   : > { %v3605_v27 = vpop.eup %3604  ;;  %v3214_v11 = vmul.f32 -1.442695, %v2797_v7  ;;  %v2641_v63 = vpop.permute.xlu0 %2640 }
 0x287   : > { %v3607_v42 = vpop.eup %3606  ;;  %v2825_v24 = vadd.f32 1.0, %v3605_v27  ;;  %v3215_v53 = vmul.f32 -1.442695, %v2798_v8  ;;  %v2784_v17 = vsel %vm2777_vm15, %v2775_v43, %v2641_v63  ;;  %v2643_v37 = vpop.permute.xlu1 %2642 }
 0x288   : > { %v2826_v47 = vadd.f32 1.0, %v3607_v42  ;;  %3612 = vpow2.f32 %v3214_v11  ;;  %v2799_v16 = vadd.f32 %v4639_v1, %v2784_v17  ;;  %v2785_v52 = vsel %vm2777_vm15, %v2776_v0, %v2643_v37 }
 0x289   : > { %3614 = vrcp.f32 %v2825_v24  ;;  %v2800_v26 = vadd.f32 %v4639_v1, %v2785_v52 }
 0x28a   : > { %3616 = vrcp.f32 %v2826_v47  ;;  %v3216_v3 = vmul.f32 -1.442695, %v2799_v16 }
 0x28b   : > { %v3609_v34 = vpop.eup %3608  ;;  %3618 = vpow2.f32 %v3215_v53  ;;  %v3217_v13 = vmul.f32 -1.442695, %v2800_v26 }
 0x28c   : > { %v3611_v14 = vpop.eup %3610  ;;  %v2851_v55 = vmul.f32 %v3609_v34, %v4653_v33  ;;  %3620 = vpow2.f32 %v3216_v3 }
 0x28d   : > { %v2852_v38 = vmul.f32 %v3611_v14, %v4659_v61  ;;  %3622 = vpow2.f32 %v3217_v13 }
 0x28e   : > { %2859 = vst [vmem:[%s4760_s24 + $0x10] sm:$0xff] %v2851_v55 }
 0x28f   : > { %2860 = vst [vmem:[%s4760_s24 + $0x18] sm:$0xff] %v2852_v38 }
 0x292   : > { %v3613_v1 = vpop.eup %3612 }
 0x293   : > { %v3615_v6 = vpop.eup %3614  ;;  %v2829_v56 = vadd.f32 1.0, %v3613_v1 }
 0x294   : > { %v3617_v21 = vpop.eup %3616  ;;  %v2849_v48 = vmul.f32 %v3615_v6, %v4689_v20 }
 0x295   : > { %v3619_v2 = vpop.eup %3618  ;;  %v2850_v23 = vmul.f32 %v3617_v21, %v4695_v10  ;;  %3624 = vrcp.f32 %v2829_v56 }
 0x296   : > { %v3621_v36 = vpop.eup %3620  ;;  %2857 = vst [vmem:[%s4760_s24] sm:$0xff] %v2849_v48  ;;  %v2830_v33 = vadd.f32 1.0, %v3619_v2 }
 0x297   : > { %v3623_v61 = vpop.eup %3622  ;;  %2858 = vst [vmem:[%s4760_s24 + $0x8] sm:$0xff] %v2850_v23  ;;  %v2831_v51 = vadd.f32 1.0, %v3621_v36 }
 0x298   : > { %3626 = vrcp.f32 %v2830_v33  ;;  %v2832_v19 = vadd.f32 1.0, %v3623_v61 }
 0x299   : > { %3628 = vrcp.f32 %v2831_v51 }
 0x29a   : > { %3630 = vrcp.f32 %v2832_v19 }
 0x29f   : > { %v3625_v59 = vpop.eup %3624 }
 0x2a0   : > { %v2853_v20 = vmul.f32 %v3625_v59, %v2797_v7 }
 0x2a2   : > { %v3627_v5 = vpop.eup %3626  ;;  %2861 = vst [vmem:[%s4760_s24 + $0x20] sm:$0xff] %v2853_v20 }
 0x2a3   : > { %v3629_v32 = vpop.eup %3628  ;;  %v2854_v10 = vmul.f32 %v3627_v5, %v2798_v8 }
 0x2a4   : > { %v3631_v35 = vpop.eup %3630  ;;  %v2855_v31 = vmul.f32 %v3629_v32, %v2799_v16 }
 0x2a5   : > { %2862 = vst [vmem:[%s4760_s24 + $0x28] sm:$0xff] %v2854_v10  ;;  %v2856_v28 = vmul.f32 %v3631_v35, %v2800_v26 }
 0x2a6   : > { %2863 = vst [vmem:[%s4760_s24 + $0x30] sm:$0xff] %v2855_v31 }
 0x2a7   : > { %2864 = vst [vmem:[%s4760_s24 + $0x38] sm:$0xff] %v2856_v28 }
 0x2a8 PF: > { %p10_p9 = scmp.ge.s32.totalorder %s3708_s16, 4   ;;  %s4846_s12 = smov %s3650_s13 }
 0x2a9   : > { %s4847_s13 = smov %s3717_s19  ;;  %s4848_s14 = smov %s3708_s16 }
 0x2aa   :  { %12 = sbr.rel (!%p10_p9) target bundleno = 2 (0x2), region = 114 }

// kernel: _lambda_.26
= control target key start
LH: loop header
LB: loop body
LE: loop exit
PB: predicated region body
PF: predicated region fallthrough
CT: control target
= control target key end

     0   :  { %s258_s0 = inlined_call_operand.vmem [shape: f32[9,32,128], index: 0, kind: input, shape index: {}]   ;;  %s259_s1 = inlined_call_operand.vmem [shape: f32[32,128], index: 1, kind: output, shape index: {}]  }
   0x1   :  { %v8_v0 = vld [vmem:[%s258_s0] sm:$0xff]  ;;  %v9_v6 = vld [vmem:[%s258_s0 + $0x8] sm:$0xff]  ;;  %v10_v15 = vld [vmem:[%s258_s0 + $0x10] sm:$0xff] }
   0x2   :  { %v96_v1 = vld [vmem:[%s258_s0 + $0x20] sm:$0xff]  ;;  %v97_v7 = vld [vmem:[%s258_s0 + $0x28] sm:$0xff]  ;;  %v98_v16 = vld [vmem:[%s258_s0 + $0x30] sm:$0xff] }
   0x3   :  { %v100_v2 = vld [vmem:[%s258_s0 + $0x40] sm:$0xff]  ;;  %v17_v3 = vadd.f32 %v96_v1, %v8_v0  ;;  %v101_v8 = vld [vmem:[%s258_s0 + $0x48] sm:$0xff]  ;;  %v18_v10 = vadd.f32 %v97_v7, %v9_v6  ;;  %v102_v17 = vld [vmem:[%s258_s0 + $0x50] sm:$0xff]  ;;  %v19_v20 = vadd.f32 %v98_v16, %v10_v15 }
   0x4   :  { %v104_v4 = vld [vmem:[%s258_s0 + $0x60] sm:$0xff]  ;;  %v105_v13 = vld [vmem:[%s258_s0 + $0x68] sm:$0xff]  ;;  %v106_v24 = vld [vmem:[%s258_s0 + $0x70] sm:$0xff] }
   0x5   :  { %v26_v5 = vadd.f32 %v100_v2, %v17_v3  ;;  %v108_v9 = vld [vmem:[%s258_s0 + $0x80] sm:$0xff]  ;;  %v27_v14 = vadd.f32 %v101_v8, %v18_v10  ;;  %v109_v19 = vld [vmem:[%s258_s0 + $0x88] sm:$0xff]  ;;  %v28_v26 = vadd.f32 %v102_v17, %v19_v20  ;;  %v11_v27 = vld [vmem:[%s258_s0 + $0x18] sm:$0xff] }
   0x6   :  { %v112_v12 = vld [vmem:[%s258_s0 + $0xa0] sm:$0xff]  ;;  %v113_v23 = vld [vmem:[%s258_s0 + $0xa8] sm:$0xff]  ;;  %v99_v28 = vld [vmem:[%s258_s0 + $0x38] sm:$0xff] }
   0x7   :  { %v35_v11 = vadd.f32 %v104_v4, %v26_v5  ;;  %v116_v21 = vld [vmem:[%s258_s0 + $0xc0] sm:$0xff]  ;;  %v36_v22 = vadd.f32 %v105_v13, %v27_v14  ;;  %v103_v29 = vld [vmem:[%s258_s0 + $0x58] sm:$0xff]  ;;  %v110_v32 = vld [vmem:[%s258_s0 + $0x90] sm:$0xff]  ;;  %v20_v33 = vadd.f32 %v99_v28, %v11_v27  ;;  %v37_v36 = vadd.f32 %v106_v24, %v28_v26 }
   0x8   :  { %v120_v30 = vld [vmem:[%s258_s0 + $0xe0] sm:$0xff]  ;;  %v117_v35 = vld [vmem:[%s258_s0 + $0xc8] sm:$0xff]  ;;  %v107_v37 = vld [vmem:[%s258_s0 + $0x78] sm:$0xff] }
   0x9   :  { %v44_v18 = vadd.f32 %v108_v9, %v35_v11  ;;  %v45_v31 = vadd.f32 %v109_v19, %v36_v22  ;;  %v124_v38 = vld [vmem:[%s258_s0 + $0x100] sm:$0xff]  ;;  %v114_v40 = vld [vmem:[%s258_s0 + $0xb0] sm:$0xff]  ;;  %v29_v41 = vadd.f32 %v103_v29, %v20_v33  ;;  %v121_v43 = vld [vmem:[%s258_s0 + $0xe8] sm:$0xff]  ;;  %v46_v44 = vadd.f32 %v110_v32, %v37_v36 }
   0xa   :  { %v111_v45 = vld [vmem:[%s258_s0 + $0x98] sm:$0xff]  ;;  %v118_v47 = vld [vmem:[%s258_s0 + $0xd0] sm:$0xff]  ;;  %v125_v50 = vld [vmem:[%s258_s0 + $0x108] sm:$0xff] }
   0xb   :  { %v53_v25 = vadd.f32 %v112_v12, %v44_v18  ;;  %v54_v39 = vadd.f32 %v113_v23, %v45_v31  ;;  %v38_v48 = vadd.f32 %v107_v37, %v29_v41  ;;  %v55_v51 = vadd.f32 %v114_v40, %v46_v44  ;;  %v115_v52 = vld [vmem:[%s258_s0 + $0xb8] sm:$0xff]  ;;  %v122_v54 = vld [vmem:[%s258_s0 + $0xf0] sm:$0xff] }
   0xc   :  { %v119_v58 = vld [vmem:[%s258_s0 + $0xd8] sm:$0xff]  ;;  %v126_v60 = vld [vmem:[%s258_s0 + $0x110] sm:$0xff] }
   0xd   :  { %v62_v34 = vadd.f32 %v116_v21, %v53_v25  ;;  %v63_v46 = vadd.f32 %v117_v35, %v54_v39  ;;  %v47_v55 = vadd.f32 %v111_v45, %v38_v48  ;;  %v64_v57 = vadd.f32 %v118_v47, %v55_v51  ;;  %v123_v63 = vld [vmem:[%s258_s0 + $0xf8] sm:$0xff] }
   0xe   :  { %v127_v3 = vld [vmem:[%s258_s0 + $0x118] sm:$0xff] }
   0xf   :  { %v71_v42 = vadd.f32 %v120_v30, %v62_v34  ;;  %v72_v53 = vadd.f32 %v121_v43, %v63_v46  ;;  %v56_v61 = vadd.f32 %v115_v52, %v47_v55  ;;  %v73_v62 = vadd.f32 %v122_v54, %v64_v57 }
  0x11   :  { %v80_v49 = vadd.f32 %v124_v38, %v71_v42  ;;  %v81_v59 = vadd.f32 %v125_v50, %v72_v53  ;;  %v65_v1 = vadd.f32 %v119_v58, %v56_v61  ;;  %v82_v2 = vadd.f32 %v126_v60, %v73_v62 }
  0x13   :  { %v84_v56 = vmul.f32 0.11111111, %v80_v49  ;;  %v85_v0 = vmul.f32 0.11111111, %v81_v59  ;;  %v74_v4 = vadd.f32 %v123_v63, %v65_v1  ;;  %v86_v5 = vmul.f32 0.11111111, %v82_v2 }
  0x15   :  { %88 = vst [vmem:[%s259_s1] sm:$0xff] %v84_v56  ;;  %89 = vst [vmem:[%s259_s1 + $0x8] sm:$0xff] %v85_v0  ;;  %v83_v6 = vadd.f32 %v127_v3, %v74_v4 }
  0x16   :  { %90 = vst [vmem:[%s259_s1 + $0x10] sm:$0xff] %v86_v5 }
  0x17   :  { %v87_v7 = vmul.f32 0.11111111, %v83_v6 }
  0x19   :  { %91 = vst [vmem:[%s259_s1 + $0x18] sm:$0xff] %v87_v7 }

// kernel: _lambda_.27
= control target key start
LH: loop header
LB: loop body
LE: loop exit
PB: predicated region body
PF: predicated region fallthrough
CT: control target
= control target key end

     0   :  { %vm107_vm0 = vcmask 588800   ;;  %vm132_vm1 = vcmask 1043456   ;;  %s1636_s6 = smov 18   ;;  %s1637_s7 = smov 2   ;;  %vm947_vm2 = vcmask 15360   ;;  %vm949_vm3 = vcmask 31744   ;;  %s2074_s1 = inlined_call_operand.vmem [shape: bf16[4,72,2], index: 1, kind: input, shape index: {}]   ;;  %s2075_s0 = inlined_call_operand.vmem [shape: bf16[4,128,72], index: 0, kind: input, shape index: {}]   ;;  %s2076_s2 = inlined_call_operand.vmem [shape: f32[1,128], index: 2, kind: input, shape index: {}]   ;;  %s2077_s3 = inlined_call_operand.vmem [shape: f32[8,128], index: 3, kind: output, shape index: {}]  }
   0x1   :  { %v1579_v0 = vld [vmem:[%s2074_s1] sm:$0xff]   ;;  %v1581_v2 = vld [vmem:[%s2074_s1 + $0x8] sm:$0xff]   ;;  %v1583_v4 = vld [vmem:[%s2074_s1 + $0x10] sm:$0xff]   ;;  %s1638_s8 = smov 26   ;;  %s1639_s9 = smov 24   ;;  %vm951_vm4 = vcmask 48128  }
   0x2   :  { %v1580_v1 = vld [vmem:[%s2074_s1 + $0x24] sm:$0xff]   ;;  %1453 = vmatprep.subr.bf16.mxu0 %v1579_v0  ;;  %v1582_v3 = vld [vmem:[%s2074_s1 + $0x2c] sm:$0xff]   ;;  %v1584_v5 = vld [vmem:[%s2074_s1 + $0x34] sm:$0xff]   ;;  %s1640_s10 = smov 10   ;;  %s1641_s11 = smov 8   ;;  %vm953_vm5 = vcmask 64512  }
   0x3   :  { %1479 = vmatprep.subr.bf16.mxu1 %v1580_v1  ;;  %1454 = vmatpush3.bf16.msra.mxu0 %v1579_v0  ;;  %v1585_v6 = vld [vmem:[%s2074_s1 + $0x18] sm:$0xff]   ;;  %v1589_v8 = vld [vmem:[%s2075_s0] sm:$0xff]   ;;  %v1591_v13 = vld [vmem:[%s2075_s0 + $0x8] sm:$0xff]   ;;  %s1642_s12 = smov 20   ;;  %s1643_s13 = smov 22   ;;  %vm955_vm6 = vcmask 80896  }
   0x4   :  { %1480 = vmatpush3.bf16.msra.mxu1 %v1580_v1  ;;  %1455 = vmatprep.subr.bf16.mxu0 %v1581_v2  ;;  %v1586_v7 = vld [vmem:[%s2074_s1 + $0x3c] sm:$0xff]   ;;  %v1588_v11 = vld [vmem:[%s2074_s1 + $0x44] ss:$0 sps:$4 sm:$0xff]   ;;  %v1595_v14 = vld [vmem:[%s2074_s1 + $0x48] sm:$0xff]   ;;  %s1644_s14 = smov 4   ;;  %s1645_s15 = smov 6  }
   0x5   :  { %1481 = vmatprep.subr.bf16.mxu1 %v1582_v3  ;;  %v1590_v9 = vld [vmem:[%s2075_s0 + $0x40] sm:$0xff]   ;;  %1463 = vmatprep.mubr.msk.bf16.mxu0 %vm107_vm0, %v1589_v8  ;;  %v352_v15 = vsel %vm132_vm1, %v1588_v11, 0  ;;  %v1592_v16 = vld [vmem:[%s2075_s0 + $0x48] sm:$0xff]   ;;  %v1593_v17 = vld [vmem:[%s2075_s0 + $0x10] sm:$0xff]   ;;  %s1646_s16 = smov 28   ;;  %s1647_s17 = smov 30  }
   0x6   :  { %v1587_v10 = vld [vmem:[%s2074_s1 + $0x20] ss:$0 sps:$4 sm:$0xff]   ;;  %1489 = vmatprep.mubr.msk.bf16.mxu1 %vm107_vm0, %v1590_v9  ;;  %v1598_v18 = vld [vmem:[%s2074_s1 + $0x6c] sm:$0xff]   ;;  %v1600_v21 = vld [vmem:[%s2074_s1 + $0x74] sm:$0xff]   ;;  %s1648_s18 = smov 12   ;;  %s1649_s19 = smov 14  }
   0x7   :  { %1456 = vmatpush3.bf16.msra.mxu0 %v1581_v2  ;;  %v134_v12 = vsel %vm132_vm1, %v1587_v10, 0  ;;  %v1594_v19 = vld [vmem:[%s2075_s0 + $0x50] sm:$0xff]   ;;  %v1596_v22 = vld [vmem:[%s2075_s0 + $0x18] sm:$0xff]   ;;  %v1602_v25 = vld [vmem:[%s2075_s0 + $0x20] sm:$0xff]   ;;  %vm957_vm7 = vcmask 97280   ;;  %vm959_vm8 = vcmask 113664  }
   0x8   :  { %1482 = vmatpush3.bf16.msra.mxu1 %v1582_v3  ;;  %1457 = vmatprep.subr.bf16.mxu0 %v1583_v4  ;;  %v1599_v20 = vld [vmem:[%s2074_s1 + $0x50] sm:$0xff]   ;;  %v1597_v23 = vld [vmem:[%s2075_s0 + $0x58] sm:$0xff]   ;;  %v1601_v27 = vld [vmem:[%s2075_s0 + $0x60] sm:$0xff]   ;;  %vm961_vm9 = vcmask 130048   ;;  %vm963_vm10 = vcmask 146432   ;;  %vm965_vm11 = vcmask 162816  }
   0x9   :  { %1483 = vmatprep.subr.bf16.mxu1 %v1584_v5  ;;  %v1604_v24 = vld [vmem:[%s2074_s1 + $0x58] sm:$0xff]   ;;  %v1607_v28 = vld [vmem:[%s2074_s1 + $0x60] sm:$0xff]   ;;  %v1603_v30 = vld [vmem:[%s2075_s0 + $0x68] sm:$0xff]   ;;  %vm967_vm12 = vcmask 179200   ;;  %vm969_vm13 = vcmask 195584   ;;  %vm971_vm14 = vcmask 211968  }
   0xa   :  { %v1606_v26 = vld [vmem:[%s2074_s1 + $0x7c] sm:$0xff]   ;;  %v1610_v29 = vld [vmem:[%s2074_s1 + $0x84] sm:$0xff]   ;;  %v1608_v33 = vld [vmem:[%s2075_s0 + $0x30] sm:$0xff]   ;;  %vm973_vm15 = vcmask 228352   ;;  %s1650_s20 = smov 32   ;;  %s1651_s21 = smov 64  }
   0xb   :  { %1458 = vmatpush3.bf16.msra.mxu0 %v1583_v4  ;;  %v1605_v31 = vld [vmem:[%s2075_s0 + $0x28] sm:$0xff]   ;;  %v1611_v34 = vld [vmem:[%s2075_s0 + $0x70] sm:$0xff]   ;;  %v1609_v38 = vld [vmem:[%s2075_s0 + $0x38] sm:$0xff]   ;;  %s1652_s22 = smov 96  }
   0xc   :  { %1484 = vmatpush3.bf16.msra.mxu1 %v1584_v5  ;;  %1459 = vmatprep.subr.bf16.mxu0 %v1585_v6  ;;  %v1613_v32 = vld [vmem:[%s2074_s1 + $0x68] ss:$0 sps:$4 sm:$0xff]   ;;  %v1615_v35 = vld [vmem:[%s2074_s1 + $0x8c] ss:$0 sps:$4 sm:$0xff]   ;;  %v1612_v39 = vld [vmem:[%s2075_s0 + $0x78] sm:$0xff]  }
   0xd   :  { %1485 = vmatprep.subr.bf16.mxu1 %v1586_v7  ;;  %v570_v36 = vsel %vm132_vm1, %v1613_v32, 0  ;;  %v788_v37 = vsel %vm132_vm1, %v1615_v35, 0  ;;  %v1614_v40 = vld [vmem:[%s2075_s0 + $0x80] sm:$0xff]   ;;  %v1616_v42 = vld [vmem:[%s2075_s0 + $0x88] sm:$0xff]   ;;  %v1619_v44 = vld [vmem:[%s2075_s0 + $0x90] sm:$0xff]  }
   0xe   :  { %v1617_v41 = vld [vmem:[%s2075_s0 + $0xc0] sm:$0xff]   ;;  %v1618_v43 = vld [vmem:[%s2075_s0 + $0xc8] sm:$0xff]   ;;  %v1621_v45 = vld [vmem:[%s2075_s0 + $0xd0] sm:$0xff]  }
   0xf   :  { %1460 = vmatpush3.bf16.msra.mxu0 %v1585_v6  ;;  %v1620_v46 = vld [vmem:[%s2075_s0 + $0x98] sm:$0xff]   ;;  %v1623_v48 = vld [vmem:[%s2075_s0 + $0xa0] sm:$0xff]   ;;  %v1624_v50 = vld [vmem:[%s2075_s0 + $0xa8] sm:$0xff]  }
  0x10   :  { %1486 = vmatpush3.bf16.msra.mxu1 %v1586_v7  ;;  %1557 = vmatprep.subr.msk.bf16.mxu0 %vm132_vm1, %v1587_v10  ;;  %v1622_v47 = vld [vmem:[%s2075_s0 + $0xd8] sm:$0xff]   ;;  %v1625_v49 = vld [vmem:[%s2075_s0 + $0xe0] sm:$0xff]   ;;  %v1626_v51 = vld [vmem:[%s2075_s0 + $0xe8] sm:$0xff]  }
  0x11   :  { %1558 = vmatprep.subr.msk.bf16.mxu1 %vm132_vm1, %v1588_v11  ;;  %v1627_v52 = vld [vmem:[%s2075_s0 + $0xb0] sm:$0xff]   ;;  %v1628_v54 = vld [vmem:[%s2075_s0 + $0xb8] sm:$0xff]  }
  0x12   :  { %v1629_v53 = vld [vmem:[%s2075_s0 + $0xf0] sm:$0xff]   ;;  %v1630_v55 = vld [vmem:[%s2075_s0 + $0xf8] sm:$0xff]   ;;  %s1635_s0 = smov 16  }
  0x13   :  { %1462 = vmatpush3.bf16.msra.mxu0 %v134_v12 }
  0x14   :  { %1488 = vmatpush3.bf16.msra.mxu1 %v352_v15  ;;  %1505 = vmatprep.subr.bf16.mxu0 %v1595_v14 }
  0x15   :  { %1531 = vmatprep.subr.bf16.mxu1 %v1598_v18 }
  0x16   :  { %1464 = vmatmul.mubr.msk.bf16.vlgmr.msra.gmra.mrb[0].mxu0 %vm107_vm0, %v1591_v13 }
  0x17   :  { %1490 = vmatmul.mubr.msk.bf16.vlgmr.msra.gmra.mrb[0].mxu1 %vm107_vm0, %v1592_v16  ;;  %1467 = vmatprep.mubr.msk.bf16.mxu0 %vm107_vm0, %v1593_v17 }
  0x18   :  { %1493 = vmatprep.mubr.msk.bf16.mxu1 %vm107_vm0, %v1594_v19  ;;  %1506 = vmatpush3.bf16.msra.mxu0 %v1595_v14 }
  0x19   :  { %1532 = vmatpush3.bf16.msra.mxu1 %v1598_v18  ;;  %1507 = vmatprep.subr.bf16.mxu0 %v1599_v20 }
  0x1a   :  { %1533 = vmatprep.subr.bf16.mxu1 %v1600_v21 }
  0x1c   :  { %1508 = vmatpush3.bf16.msra.mxu0 %v1599_v20 }
  0x1d   :  { %1534 = vmatpush3.bf16.msra.mxu1 %v1600_v21  ;;  %1509 = vmatprep.subr.bf16.mxu0 %v1604_v24 }
  0x1e   :  { %1468 = vmatmul.mubr.msk.bf16.gmra.mrb[4].mxu0 %vm107_vm0, %v1596_v22  ;;  %1535 = vmatprep.subr.bf16.mxu1 %v1606_v26 }
  0x1f   :  { %1494 = vmatmul.mubr.msk.bf16.gmra.mrb[4].mxu1 %vm107_vm0, %v1597_v23  ;;  %1471 = vmatprep.mubr.msk.bf16.mxu0 %vm107_vm0, %v1602_v25 }
  0x20   :  { %1497 = vmatprep.mubr.msk.bf16.mxu1 %vm107_vm0, %v1601_v27  ;;  %1510 = vmatpush3.bf16.msra.mxu0 %v1604_v24 }
  0x21   :  { %1536 = vmatpush3.bf16.msra.mxu1 %v1606_v26  ;;  %1511 = vmatprep.subr.bf16.mxu0 %v1607_v28 }
  0x22   :  { %1537 = vmatprep.subr.bf16.mxu1 %v1610_v29 }
  0x24   :  { %1512 = vmatpush3.bf16.msra.mxu0 %v1607_v28 }
  0x25   :  { %1538 = vmatpush3.bf16.msra.mxu1 %v1610_v29  ;;  %1559 = vmatprep.subr.msk.bf16.mxu0 %vm132_vm1, %v1613_v32 }
  0x26   :  { %1472 = vmatmul.mubr.msk.bf16.gmra.mrb[8].mxu0 %vm107_vm0, %v1605_v31  ;;  %1560 = vmatprep.subr.msk.bf16.mxu1 %vm132_vm1, %v1615_v35  ;;  %vm1214_vm1 = vcmask 261120  }
  0x27   :  { %1498 = vmatmul.mubr.msk.bf16.gmra.mrb[8].mxu1 %vm107_vm0, %v1603_v30  ;;  %1475 = vmatprep.mubr.msk.bf16.mxu0 %vm107_vm0, %v1608_v33 }
  0x28   :  { %1501 = vmatprep.mubr.msk.bf16.mxu1 %vm107_vm0, %v1611_v34  ;;  %1514 = vmatpush3.bf16.msra.mxu0 %v570_v36 }
  0x29   :  { %1540 = vmatpush3.bf16.msra.mxu1 %v788_v37 }
  0x2e   :  { %1476 = vmatmul.mubr.msk.bf16.gmra.mrb[12].mxu0 %vm107_vm0, %v1609_v38 }
  0x2f   :  { %1502 = vmatmul.mubr.msk.bf16.gmra.mrb[12].mxu1 %vm107_vm0, %v1612_v39  ;;  %1515 = vmatprep.mubr.msk.bf16.mxu0 %vm107_vm0, %v1614_v40 }
  0x30   :  { %1541 = vmatprep.mubr.msk.bf16.mxu1 %vm107_vm0, %v1617_v41 }
  0x36   :  { %1516 = vmatmul.mubr.msk.bf16.vlgmr.msra.gmra.mrb[16].mxu0 %vm107_vm0, %v1616_v42 }
  0x37   :  { %1542 = vmatmul.mubr.msk.bf16.vlgmr.msra.gmra.mrb[16].mxu1 %vm107_vm0, %v1618_v43  ;;  %1519 = vmatprep.mubr.msk.bf16.mxu0 %vm107_vm0, %v1619_v44 }
  0x38   :  { %1545 = vmatprep.mubr.msk.bf16.mxu1 %vm107_vm0, %v1621_v45 }
  0x3e   :  { %1520 = vmatmul.mubr.msk.bf16.gmra.mrb[20].mxu0 %vm107_vm0, %v1620_v46 }
  0x3f   :  { %1546 = vmatmul.mubr.msk.bf16.gmra.mrb[20].mxu1 %vm107_vm0, %v1622_v47  ;;  %1523 = vmatprep.mubr.msk.bf16.mxu0 %vm107_vm0, %v1623_v48 }
  0x40   :  { %1549 = vmatprep.mubr.msk.bf16.mxu1 %vm107_vm0, %v1625_v49 }
  0x46   :  { %1524 = vmatmul.mubr.msk.bf16.gmra.mrb[24].mxu0 %vm107_vm0, %v1624_v50 }
  0x47   :  { %1550 = vmatmul.mubr.msk.bf16.gmra.mrb[24].mxu1 %vm107_vm0, %v1626_v51  ;;  %1527 = vmatprep.mubr.msk.bf16.mxu0 %vm107_vm0, %v1627_v52 }
  0x48   :  { %1553 = vmatprep.mubr.msk.bf16.mxu1 %vm107_vm0, %v1629_v53 }
  0x4e   :  { %1528 = vmatmul.mubr.msk.bf16.gmra.mrb[28].mxu0 %vm107_vm0, %v1628_v54 }
  0x4f   :  { %1554 = vmatmul.mubr.msk.bf16.gmra.mrb[28].mxu1 %vm107_vm0, %v1630_v55  ;;  %vm975_vm0 = vcmask 244736  }
  0xe9   :  { %v1869_v56 = vpop.f32.mrb[0].mxu0 }
  0xea   :  { %v1871_v57 = vpop.f32.mrb[0].mxu1  ;;  %v1873_v58 = vpop.f32.mrb[1].mxu0 }
  0xeb   :  { %v1875_v59 = vpop.f32.mrb[1].mxu1  ;;  %v1877_v60 = vpop.f32.mrb[2].mxu0 }
  0xec   :  { %v1879_v61 = vpop.f32.mrb[2].mxu1  ;;  %v1881_v62 = vpop.f32.mrb[3].mxu0 }
  0xed   :  { %v1883_v63 = vpop.f32.mrb[3].mxu1 }
  0xf1   :  { %v1469_v0 = vpop.f32.mrb[4].mxu0 }
  0xf2   :  { %v1495_v1 = vpop.f32.mrb[4].mxu1  ;;  %1006 = vrot.lane.b32.xlu0 %v1469_v0, %s1635_s0  ;;  %v1886_v2 = vpop.f32.mrb[5].mxu0 }
  0xf3   :  { %1010 = vrot.lane.b32.xlu1 %v1495_v1, %s1636_s6  ;;  %v404_v3 = vpop.f32.mrb[5].mxu1  ;;  %v1470_v4 = vpop.f32.mrb[6].mxu0 }
  0xf4   :  { %v1496_v5 = vpop.f32.mrb[6].mxu1  ;;  %v189_v6 = vpop.f32.mrb[7].mxu0 }
  0xf5   :  { %v407_v7 = vpop.f32.mrb[7].mxu1 }
  0xf6   :  { %978 = vrot.lane.b32.xlu0 %v404_v3, %s1637_s7 }
  0xf7   :  { %1026 = vrot.lane.b32.xlu1 %v1496_v5, %s1638_s8 }
  0xf9   :  { %v1473_v8 = vpop.f32.mrb[8].mxu0 }
  0xfa   :  { %1022 = vrot.lane.b32.xlu0 %v1470_v4, %s1639_s9  ;;  %v1499_v9 = vpop.f32.mrb[8].mxu1  ;;  %v1892_v10 = vpop.f32.mrb[9].mxu0 }
  0xfb   :  { %994 = vrot.lane.b32.xlu1 %v407_v7, %s1640_s10  ;;  %v420_v11 = vpop.f32.mrb[9].mxu1  ;;  %v1474_v12 = vpop.f32.mrb[10].mxu0 }
  0xfc   :  { %v1500_v13 = vpop.f32.mrb[10].mxu1  ;;  %v205_v14 = vpop.f32.mrb[11].mxu0 }
  0xfd   :  { %v423_v15 = vpop.f32.mrb[11].mxu1 }
  0xfe   :  { %990 = vrot.lane.b32.xlu0 %v189_v6, %s1641_s11 }
  0xff   :  { %1085 = vrot.lane.b32.xlu1 %v1499_v9, %s1636_s6 }
 0x101   :  { %v1477_v16 = vpop.f32.mrb[12].mxu0 }
 0x102   :  { %1081 = vrot.lane.b32.xlu0 %v1473_v8, %s1635_s0  ;;  %v1898_v17 = vpop.f32.mrb[13].mxu0  ;;  %v1503_v18 = vpop.f32.mrb[12].mxu1 }
 0x103   :  { %1053 = vrot.lane.b32.xlu1 %v420_v11, %s1637_s7  ;;  %v1478_v19 = vpop.f32.mrb[14].mxu0  ;;  %v436_v20 = vpop.f32.mrb[13].mxu1 }
 0x104   :  { %v221_v21 = vpop.f32.mrb[15].mxu0  ;;  %v1901_v22 = vpop.f32.mrb[14].mxu1 }
 0x105   :  { %v439_v23 = vpop.f32.mrb[15].mxu1 }
 0x106   :  { %1097 = vrot.lane.b32.xlu0 %v1474_v12, %s1639_s9 }
 0x107   :  { %1101 = vrot.lane.b32.xlu1 %v1500_v13, %s1638_s8 }
 0x109   :  { %v1905_v24 = vpop.f32.mrb[16].mxu0 }
 0x10a   :  { %1065 = vrot.lane.b32.xlu0 %v205_v14, %s1641_s11  ;;  %v1908_v25 = vpop.f32.mrb[17].mxu0  ;;  %v1910_v26 = vpop.f32.mrb[16].mxu1 }
 0x10b   :  { %1069 = vrot.lane.b32.xlu1 %v423_v15, %s1640_s10  ;;  %v1913_v27 = vpop.f32.mrb[18].mxu0  ;;  %v1915_v28 = vpop.f32.mrb[17].mxu1 }
 0x10c   :  { %v1917_v29 = vpop.f32.mrb[19].mxu0  ;;  %v1919_v30 = vpop.f32.mrb[18].mxu1 }
 0x10d   :  { %v1921_v31 = vpop.f32.mrb[19].mxu1 }
 0x10e   :  { %1156 = vrot.lane.b32.xlu0 %v1477_v16, %s1635_s0 }
 0x10f   :  { %1160 = vrot.lane.b32.xlu1 %v1503_v18, %s1636_s6 }
 0x111   :  { %v1521_v32 = vpop.f32.mrb[20].mxu0 }
 0x112   :  { %1172 = vrot.lane.b32.xlu0 %v1478_v19, %s1639_s9  ;;  %v622_v33 = vpop.f32.mrb[21].mxu0  ;;  %v1547_v34 = vpop.f32.mrb[20].mxu1 }
 0x113   :  { %1128 = vrot.lane.b32.xlu1 %v436_v20, %s1637_s7  ;;  %v1522_v35 = vpop.f32.mrb[22].mxu0  ;;  %v840_v36 = vpop.f32.mrb[21].mxu1 }
 0x114   :  { %v625_v37 = vpop.f32.mrb[23].mxu0  ;;  %v1548_v38 = vpop.f32.mrb[22].mxu1 }
 0x115   :  { %v843_v39 = vpop.f32.mrb[23].mxu1 }
 0x116   :  { %1140 = vrot.lane.b32.xlu0 %v221_v21, %s1641_s11 }
 0x117   :  { %1144 = vrot.lane.b32.xlu1 %v439_v23, %s1640_s10 }
 0x119   :  { %v1525_v40 = vpop.f32.mrb[24].mxu0 }
 0x11a   :  { %1014 = vrot.lane.b32.xlu0 %v1521_v32, %s1642_s12  ;;  %v638_v41 = vpop.f32.mrb[25].mxu0  ;;  %v1551_v42 = vpop.f32.mrb[24].mxu1 }
 0x11b   :  { %1018 = vrot.lane.b32.xlu1 %v1547_v34, %s1643_s13  ;;  %v1526_v43 = vpop.f32.mrb[26].mxu0  ;;  %v856_v44 = vpop.f32.mrb[25].mxu1 }
 0x11c   :  { %v641_v45 = vpop.f32.mrb[27].mxu0  ;;  %v1552_v46 = vpop.f32.mrb[26].mxu1 }
 0x11d   :  { %v859_v47 = vpop.f32.mrb[27].mxu1 }
 0x11e   :  { %982 = vrot.lane.b32.xlu0 %v622_v33, %s1644_s14 }
 0x11f   :  { %986 = vrot.lane.b32.xlu1 %v840_v36, %s1645_s15 }
 0x121   :  { %v1529_v48 = vpop.f32.mrb[28].mxu0 }
 0x122   :  { %1030 = vrot.lane.b32.xlu0 %v1522_v35, %s1646_s16  ;;  %v654_v49 = vpop.f32.mrb[29].mxu0  ;;  %v1555_v50 = vpop.f32.mrb[28].mxu1 }
 0x123   :  { %1034 = vrot.lane.b32.xlu1 %v1548_v38, %s1647_s17  ;;  %v1530_v51 = vpop.f32.mrb[30].mxu0  ;;  %v872_v52 = vpop.f32.mrb[29].mxu1 }
 0x124   :  { %v657_v53 = vpop.f32.mrb[31].mxu0  ;;  %v1556_v54 = vpop.f32.mrb[30].mxu1 }
 0x125   :  { %v875_v55 = vpop.f32.mrb[31].mxu1 }
 0x126   :  { %998 = vrot.lane.b32.xlu0 %v625_v37, %s1648_s18 }
 0x127   :  { %1002 = vrot.lane.b32.xlu1 %v843_v39, %s1649_s19 }
 0x12a   :  { %1089 = vrot.lane.b32.xlu0 %v1525_v40, %s1642_s12 }
 0x12b   :  { %1093 = vrot.lane.b32.xlu1 %v1551_v42, %s1643_s13 }
 0x12e   :  { %1057 = vrot.lane.b32.xlu0 %v638_v41, %s1644_s14 }
 0x12f   :  { %1061 = vrot.lane.b32.xlu1 %v856_v44, %s1645_s15 }
 0x132   :  { %1073 = vrot.lane.b32.xlu0 %v641_v45, %s1648_s18 }
 0x133   :  { %1077 = vrot.lane.b32.xlu1 %v859_v47, %s1649_s19 }
 0x136   :  { %1164 = vrot.lane.b32.xlu0 %v1529_v48, %s1642_s12 }
 0x137   :  { %1168 = vrot.lane.b32.xlu1 %v1555_v50, %s1643_s13 }
 0x13a   :  { %1132 = vrot.lane.b32.xlu0 %v654_v49, %s1644_s14 }
 0x13b   :  { %1136 = vrot.lane.b32.xlu1 %v872_v52, %s1645_s15 }
 0x13e   :  { %1148 = vrot.lane.b32.xlu0 %v657_v53, %s1648_s18 }
 0x13f   :  { %1152 = vrot.lane.b32.xlu1 %v875_v55, %s1649_s19 }
 0x142   :  { %1105 = vrot.lane.b32.xlu0 %v1526_v43, %s1646_s16 }
 0x143   :  { %1176 = vrot.lane.b32.xlu1 %v1901_v22, %s1638_s8 }
 0x146   :  { %1109 = vrot.lane.b32.xlu0 %v1552_v46, %s1647_s17 }
 0x147   :  { %1180 = vrot.lane.b32.xlu1 %v1530_v51, %s1646_s16 }
 0x14a   :  { %1184 = vrot.lane.b32.xlu0 %v1556_v54, %s1647_s17 }
 0x14b   :  { %888 = vrot.lane.b32.xlu1 %v1875_v59, %s1637_s7 }
 0x14e   :  { %892 = vrot.lane.b32.xlu0 %v1908_v25, %s1644_s14 }
 0x14f   :  { %896 = vrot.lane.b32.xlu1 %v1915_v28, %s1645_s15 }
 0x152   :  { %900 = vrot.lane.b32.xlu0 %v1881_v62, %s1641_s11 }
 0x153   :  { %904 = vrot.lane.b32.xlu1 %v1883_v63, %s1640_s10 }
 0x156   :  { %908 = vrot.lane.b32.xlu0 %v1917_v29, %s1648_s18 }
 0x157   :  { %912 = vrot.lane.b32.xlu1 %v1921_v31, %s1649_s19 }
 0x15a   :  { %916 = vrot.lane.b32.xlu0 %v1869_v56, %s1635_s0 }
 0x15b   :  { %920 = vrot.lane.b32.xlu1 %v1871_v57, %s1636_s6 }
 0x15e   :  { %924 = vrot.lane.b32.xlu0 %v1905_v24, %s1642_s12 }
 0x15f   :  { %928 = vrot.lane.b32.xlu1 %v1910_v26, %s1643_s13 }
 0x162   :  { %932 = vrot.lane.b32.xlu0 %v1877_v60, %s1639_s9 }
 0x163   :  { %936 = vrot.lane.b32.xlu1 %v1879_v61, %s1638_s8 }
 0x164   :  { %v1007_v59 = vpop.permute.xlu0 %1006 }
 0x165   :  { %v1011_v62 = vpop.permute.xlu1 %1010 }
 0x166   :  { %940 = vrot.lane.b32.xlu0 %v1913_v27, %s1646_s16 }
 0x167   :  { %944 = vrot.lane.b32.xlu1 %v1919_v30, %s1647_s17 }
 0x168   :  { %v979_v56 = vpop.permute.xlu0 %978 }
 0x169   :  { %v1027_v57 = vpop.permute.xlu1 %1026  ;;  %v1037_v18 = vsel %vm947_vm2, %v1886_v2, %v979_v56 }
 0x16c   :  { %v1023_v63 = vpop.permute.xlu0 %1022 }
 0x16d   :  { %v995_v0 = vpop.permute.xlu1 %994 }
 0x170   :  { %v991_v1 = vpop.permute.xlu0 %990 }
 0x171   :  { %v1977_v3 = vpop.permute.xlu1 %1085 }
 0x174   :  { %v1979_v4 = vpop.permute.xlu0 %1081 }
 0x175   :  { %v1054_v60 = vpop.permute.xlu1 %1053 }
 0x176   :  { %v1112_v37 = vsel %vm947_vm2, %v1892_v10, %v1054_v60 }
 0x178   :  { %v1981_v5 = vpop.permute.xlu0 %1097 }
 0x179   :  { %v1983_v61 = vpop.permute.xlu1 %1101 }
 0x17c   :  { %v1066_v6 = vpop.permute.xlu0 %1065 }
 0x17d   :  { %v1070_v7 = vpop.permute.xlu1 %1069 }
 0x180   :  { %v1985_v8 = vpop.permute.xlu0 %1156 }
 0x181   :  { %v1987_v9 = vpop.permute.xlu1 %1160 }
 0x184   :  { %v1989_v11 = vpop.permute.xlu0 %1172 }
 0x185   :  { %v1129_v12 = vpop.permute.xlu1 %1128 }
 0x186   :  { %v1187_v54 = vsel %vm947_vm2, %v1898_v17, %v1129_v12 }
 0x188   :  { %v1991_v13 = vpop.permute.xlu0 %1140 }
 0x189   :  { %v1993_v14 = vpop.permute.xlu1 %1144 }
 0x18c   :  { %v1015_v15 = vpop.permute.xlu0 %1014 }
 0x18d   :  { %v1019_v16 = vpop.permute.xlu1 %1018 }
 0x190   :  { %v983_v19 = vpop.permute.xlu0 %982 }
 0x191   :  { %v987_v20 = vpop.permute.xlu1 %986  ;;  %v1038_v21 = vsel %vm949_vm3, %v1037_v18, %v983_v19 }
 0x192   :  { %v1039_v22 = vsel %vm951_vm4, %v1038_v21, %v987_v20 }
 0x193   :  { %v1040_v25 = vsel %vm953_vm5, %v1039_v22, %v991_v1 }
 0x194   :  { %v1031_v23 = vpop.permute.xlu0 %1030  ;;  %v1041_v26 = vsel %vm955_vm6, %v1040_v25, %v995_v0 }
 0x195   :  { %v1035_v24 = vpop.permute.xlu1 %1034 }
 0x198   :  { %v999_v27 = vpop.permute.xlu0 %998 }
 0x199   :  { %v1003_v28 = vpop.permute.xlu1 %1002  ;;  %v1042_v2 = vsel %vm957_vm7, %v1041_v26, %v999_v27 }
 0x19a   :  { %v1043_v29 = vsel %vm959_vm8, %v1042_v2, %v1003_v28 }
 0x19b   :  { %v1044_v30 = vsel %vm961_vm9, %v1043_v29, %v1007_v59 }
 0x19c   :  { %v1045_v31 = vsel %vm963_vm10, %v1044_v30, %v1011_v62  ;;  %v1090_v32 = vpop.permute.xlu0 %1089 }
 0x19d   :  { %v1046_v33 = vsel %vm965_vm11, %v1045_v31, %v1015_v15  ;;  %v1094_v34 = vpop.permute.xlu1 %1093 }
 0x19e   :  { %v1047_v35 = vsel %vm967_vm12, %v1046_v33, %v1019_v16 }
 0x19f   :  { %v1048_v36 = vsel %vm969_vm13, %v1047_v35, %v1023_v63 }
 0x1a0   :  { %v1058_v38 = vpop.permute.xlu0 %1057  ;;  %v1049_v39 = vsel %vm971_vm14, %v1048_v36, %v1027_v57 }
 0x1a1   :  { %v1062_v40 = vpop.permute.xlu1 %1061  ;;  %v1113_v41 = vsel %vm949_vm3, %v1112_v37, %v1058_v38  ;;  %v1050_v42 = vsel %vm973_vm15, %v1049_v39, %v1031_v23 }
 0x1a2   :  { %v1114_v43 = vsel %vm951_vm4, %v1113_v41, %v1062_v40  ;;  %v1051_v44 = vsel %vm975_vm0, %v1050_v42, %v1035_v24 }
 0x1a3   :  { %1203 = vrot.lane.b32.xlu0 %v1051_v44, %s1650_s20  ;;  %v1115_v45 = vsel %vm953_vm5, %v1114_v43, %v1066_v6 }
 0x1a4   :  { %v1116_v46 = vsel %vm955_vm6, %v1115_v45, %v1070_v7  ;;  %v1074_v47 = vpop.permute.xlu0 %1073 }
 0x1a5   :  { %v1078_v10 = vpop.permute.xlu1 %1077  ;;  %v1117_v48 = vsel %vm957_vm7, %v1116_v46, %v1074_v47 }
 0x1a6   :  { %v1118_v49 = vsel %vm959_vm8, %v1117_v48, %v1078_v10 }
 0x1a7   :  { %v1119_v50 = vsel %vm961_vm9, %v1118_v49, %v1979_v4 }
 0x1a8   :  { %v1120_v51 = vsel %vm963_vm10, %v1119_v50, %v1977_v3  ;;  %v1165_v52 = vpop.permute.xlu0 %1164 }
 0x1a9   :  { %v1169_v53 = vpop.permute.xlu1 %1168  ;;  %v1121_v57 = vsel %vm965_vm11, %v1120_v51, %v1090_v32 }
 0x1aa   :  { %v1122_v17 = vsel %vm967_vm12, %v1121_v57, %v1094_v34 }
 0x1ab   :  { %v1123_v12 = vsel %vm969_vm13, %v1122_v17, %v1981_v5 }
 0x1ac   :  { %v1133_v55 = vpop.permute.xlu0 %1132  ;;  %v1124_v19 = vsel %vm971_vm14, %v1123_v12, %v1983_v61 }
 0x1ad   :  { %v1137_v59 = vpop.permute.xlu1 %1136  ;;  %v1188_v62 = vsel %vm949_vm3, %v1187_v54, %v1133_v55 }
 0x1ae   :  { %v1189_v56 = vsel %vm951_vm4, %v1188_v62, %v1137_v59 }
 0x1af   :  { %v1190_v63 = vsel %vm953_vm5, %v1189_v56, %v1991_v13 }
 0x1b0   :  { %v1191_v0 = vsel %vm955_vm6, %v1190_v63, %v1993_v14  ;;  %v1149_v1 = vpop.permute.xlu0 %1148 }
 0x1b1   :  { %v1153_v3 = vpop.permute.xlu1 %1152  ;;  %v1192_v4 = vsel %vm957_vm7, %v1191_v0, %v1149_v1 }
 0x1b2   :  { %v1193_v60 = vsel %vm959_vm8, %v1192_v4, %v1153_v3 }
 0x1b3   :  { %v1194_v6 = vsel %vm961_vm9, %v1193_v60, %v1985_v8 }
 0x1b4   :  { %v1195_v7 = vsel %vm963_vm10, %v1194_v6, %v1987_v9  ;;  %v1106_v13 = vpop.permute.xlu0 %1105 }
 0x1b5   :  { %v1177_v15 = vpop.permute.xlu1 %1176  ;;  %v1196_v14 = vsel %vm965_vm11, %v1195_v7, %v1165_v52  ;;  %v1125_v8 = vsel %vm973_vm15, %v1124_v19, %v1106_v13 }
 0x1b6   :  { %v1197_v16 = vsel %vm967_vm12, %v1196_v14, %v1169_v53  ;;  %v1399_v53 = vld [vmem:[%s2076_s2] ss:$0 sm:$0xff] }
 0x1b7   :  { %v1198_v18 = vsel %vm969_vm13, %v1197_v16, %v1989_v11 }
 0x1b8   :  { %v1110_v20 = vpop.permute.xlu0 %1109  ;;  %v1199_v9 = vsel %vm971_vm14, %v1198_v18, %v1177_v15 }
 0x1b9   :  { %v1181_v21 = vpop.permute.xlu1 %1180  ;;  %v1126_v5 = vsel %vm975_vm0, %v1125_v8, %v1110_v20 }
 0x1ba   :  { %1207 = vrot.lane.b32.xlu1 %v1126_v5, %s1651_s21  ;;  %v1200_v22 = vsel %vm973_vm15, %v1199_v9, %v1181_v21 }
 0x1bc   :  { %v1185_v23 = vpop.permute.xlu0 %1184 }
 0x1bd   :  { %v889_v24 = vpop.permute.xlu1 %888  ;;  %v1201_v25 = vsel %vm975_vm0, %v1200_v22, %v1185_v23 }
 0x1be   :  { %1211 = vrot.lane.b32.xlu0 %v1201_v25, %s1652_s22  ;;  %v948_v61 = vsel %vm947_vm2, %v1873_v58, %v889_v24  ;;  %vm1216_vm2 = vcmask 523264  }
 0x1c0   :  { %v893_v11 = vpop.permute.xlu0 %892 }
 0x1c1   :  { %v897_v26 = vpop.permute.xlu1 %896  ;;  %v950_v27 = vsel %vm949_vm3, %v948_v61, %v893_v11  ;;  %vm1218_vm3 = vcmask 785408  }
 0x1c2   :  { %v952_v28 = vsel %vm951_vm4, %v950_v27, %v897_v26 }
 0x1c4   :  { %v901_v2 = vpop.permute.xlu0 %900 }
 0x1c5   :  { %v905_v29 = vpop.permute.xlu1 %904  ;;  %v954_v30 = vsel %vm953_vm5, %v952_v28, %v901_v2 }
 0x1c6   :  { %v956_v31 = vsel %vm955_vm6, %v954_v30, %v905_v29 }
 0x1c8   :  { %v909_v32 = vpop.permute.xlu0 %908 }
 0x1c9   :  { %v913_v33 = vpop.permute.xlu1 %912  ;;  %v958_v34 = vsel %vm957_vm7, %v956_v31, %v909_v32 }
 0x1ca   :  { %v960_v35 = vsel %vm959_vm8, %v958_v34, %v913_v33 }
 0x1cc   :  { %v917_v36 = vpop.permute.xlu0 %916 }
 0x1cd   :  { %v921_v58 = vpop.permute.xlu1 %920  ;;  %v962_v37 = vsel %vm961_vm9, %v960_v35, %v917_v36 }
 0x1ce   :  { %v964_v38 = vsel %vm963_vm10, %v962_v37, %v921_v58 }
 0x1d0   :  { %v925_v39 = vpop.permute.xlu0 %924 }
 0x1d1   :  { %v929_v40 = vpop.permute.xlu1 %928  ;;  %v966_v41 = vsel %vm965_vm11, %v964_v38, %v925_v39 }
 0x1d2   :  { %v968_v42 = vsel %vm967_vm12, %v966_v41, %v929_v40 }
 0x1d4   :  { %v933_v43 = vpop.permute.xlu0 %932 }
 0x1d5   :  { %v937_v44 = vpop.permute.xlu1 %936  ;;  %v970_v45 = vsel %vm969_vm13, %v968_v42, %v933_v43 }
 0x1d6   :  { %v972_v46 = vsel %vm971_vm14, %v970_v45, %v937_v44 }
 0x1d8   :  { %v941_v47 = vpop.permute.xlu0 %940 }
 0x1d9   :  { %v945_v10 = vpop.permute.xlu1 %944  ;;  %v974_v48 = vsel %vm973_vm15, %v972_v46, %v941_v47 }
 0x1da   :  { %v976_v49 = vsel %vm975_vm0, %v974_v48, %v945_v10 }
 0x215   :  { %v1204_v50 = vpop.permute.xlu0 %1203 }
 0x216   :  { %v1215_v52 = vsel %vm1214_vm1, %v976_v49, %v1204_v50 }
 0x22c   :  { %v1208_v51 = vpop.permute.xlu1 %1207 }
 0x22d   :  { %v1217_v54 = vsel %vm1216_vm2, %v1215_v52, %v1208_v51 }
 0x230   :  { %v1212_v55 = vpop.permute.xlu0 %1211 }
 0x231   :  { %v1219_v59 = vsel %vm1218_vm3, %v1217_v54, %v1212_v55 }
 0x232   :  { %v1227_v62 = vadd.f32 %v1399_v53, %v1219_v59 }
 0x234   :  { %v1400_v56 = vmul.f32 -1.442695, %v1227_v62 }
 0x236   :  { %1631 = vpow2.f32 %v1400_v56 }
 0x240   :  { %v1632_v57 = vpop.eup %1631 }
 0x241   :  { %v1231_v63 = vadd.f32 1.0, %v1632_v57 }
 0x243   :  { %1633 = vrcp.f32 %v1231_v63 }
 0x24d   :  { %v1634_v0 = vpop.eup %1633 }
 0x24e   :  { %v1234_v1 = vmul.f32 %v1634_v0, %v1227_v62 }
 0x250   :  { %1235 = vst [vmem:[%s2077_s3] sm:$0xff] %v1234_v1 }

// kernel: _lambda_.28
= control target key start
LH: loop header
LB: loop body
LE: loop exit
PB: predicated region body
PF: predicated region fallthrough
CT: control target
= control target key end

     0   :  { %vm87_vm0 = vcmask 261120   ;;  %s389_s4 = smov 16   ;;  %s390_s5 = smov 64   ;;  %vm269_vm1 = vcmask 64512   ;;  %vm271_vm2 = vcmask 130048   ;;  %vm273_vm3 = vcmask 195584   ;;  %s469_s1 = inlined_call_operand.vmem [shape: bf16[1,32,8], index: 1, kind: input, shape index: {}]   ;;  %s470_s0 = inlined_call_operand.vmem [shape: bf16[1,128,32], index: 0, kind: input, shape index: {}]   ;;  %s471_s2 = inlined_call_operand.vmem [shape: f32[1,128], index: 2, kind: input, shape index: {}]   ;;  %s472_s3 = inlined_call_operand.vmem [shape: f32[8,128], index: 3, kind: output, shape index: {}]  }
   0x1   :  { %v379_v0 = vld [vmem:[%s469_s1] sm:$0xff]   ;;  %v380_v1 = vld [vmem:[%s469_s1 + $0x8] sm:$0xff]   ;;  %v385_v6 = vld [vmem:[%s470_s0 + $0x10] sm:$0xff]   ;;  %s391_s6 = smov 8   ;;  %s392_s7 = smov 24   ;;  %vm276_vm4 = vcmask 326656  }
   0x2   :  { %340 = vmatprep.subr.bf16.mxu0 %v379_v0  ;;  %360 = vmatprep.subr.bf16.mxu1 %v379_v0  ;;  %v381_v2 = vld [vmem:[%s470_s0] sm:$0xff]   ;;  %v383_v4 = vld [vmem:[%s470_s0 + $0x8] sm:$0xff]   ;;  %v387_v7 = vld [vmem:[%s470_s0 + $0x30] sm:$0xff]   ;;  %s394_s8 = smov 48   ;;  %s395_s9 = smov 56   ;;  %vm278_vm5 = vcmask 392192  }
   0x3   :  { %341 = vmatpush3.bf16.msra.mxu0 %v379_v0  ;;  %362 = vmatpush3.bf16.msra.mxu1 %v379_v0  ;;  %v382_v3 = vld [vmem:[%s470_s0 + $0x20] sm:$0xff]   ;;  %v384_v5 = vld [vmem:[%s470_s0 + $0x28] sm:$0xff]   ;;  %v386_v8 = vld [vmem:[%s470_s0 + $0x18] sm:$0xff]   ;;  %s396_s10 = smov 32   ;;  %s397_s11 = smov 40   ;;  %vm280_vm6 = vcmask 457728  }
   0x4   :  { %342 = vmatprep.subr.bf16.mxu0 %v380_v1  ;;  %361 = vmatprep.subr.bf16.mxu1 %v380_v1  ;;  %v388_v9 = vld [vmem:[%s470_s0 + $0x38] sm:$0xff]   ;;  %s393_s0 = smov 72   ;;  %s398_s12 = smov 80   ;;  %vm282_vm7 = vcmask 523264   ;;  %vm284_vm8 = vcmask 588800   ;;  %vm286_vm9 = vcmask 654336  }
   0x5   :  { %344 = vmatprep.mubr.msk.bf16.mxu0 %vm87_vm0, %v381_v2  ;;  %352 = vmatprep.mubr.msk.bf16.mxu1 %vm87_vm0, %v382_v3  ;;  %s399_s13 = smov 88   ;;  %s400_s14 = smov 96   ;;  %vm288_vm10 = vcmask 719872   ;;  %vm290_vm11 = vcmask 785408   ;;  %vm292_vm12 = vcmask 850944   ;;  %vm294_vm13 = vcmask 916480  }
   0x6   :  { %s401_s15 = smov 104   ;;  %s402_s16 = smov 112   ;;  %vm296_vm14 = vcmask 982016   ;;  %v329_v53 = vld [vmem:[%s471_s2] ss:$0 sm:$0xff] }
   0x7   :  { %343 = vmatpush3.bf16.msra.mxu0 %v380_v1  ;;  %363 = vmatpush3.bf16.msra.mxu1 %v380_v1  ;;  %s403_s17 = smov 120  }
   0xa   :  { %345 = vmatmul.mubr.msk.bf16.vlgmr.msra.gmra.mrb[0].mxu0 %vm87_vm0, %v383_v4  ;;  %353 = vmatmul.mubr.msk.bf16.vlgmr.msra.gmra.mrb[0].mxu1 %vm87_vm0, %v384_v5 }
   0xb   :  { %348 = vmatprep.mubr.msk.bf16.mxu0 %vm87_vm0, %v385_v6  ;;  %356 = vmatprep.mubr.msk.bf16.mxu1 %vm87_vm0, %v387_v7 }
  0x12   :  { %349 = vmatmul.mubr.msk.bf16.gmra.mrb[4].mxu0 %vm87_vm0, %v386_v8  ;;  %357 = vmatmul.mubr.msk.bf16.gmra.mrb[4].mxu1 %vm87_vm0, %v388_v9 }
  0xdd   :  { %v346_v10 = vpop.f32.mrb[0].mxu0  ;;  %v354_v11 = vpop.f32.mrb[0].mxu1 }
  0xde   :  { %v178_v12 = vpop.f32.mrb[1].mxu1  ;;  %214 = vrot.lane.b32.xlu0 %v346_v10, %s389_s4  ;;  %v146_v13 = vpop.f32.mrb[1].mxu0 }
  0xdf   :  { %238 = vrot.lane.b32.xlu1 %v178_v12, %s390_s5  ;;  %v347_v14 = vpop.f32.mrb[2].mxu0  ;;  %v355_v15 = vpop.f32.mrb[2].mxu1 }
  0xe0   :  { %v149_v16 = vpop.f32.mrb[3].mxu0  ;;  %v181_v17 = vpop.f32.mrb[3].mxu1 }
  0xe2   :  { %210 = vrot.lane.b32.xlu0 %v149_v16, %s391_s6 }
  0xe3   :  { %218 = vrot.lane.b32.xlu1 %v347_v14, %s392_s7 }
  0xe5   :  { %v350_v18 = vpop.f32.mrb[4].mxu0  ;;  %v358_v19 = vpop.f32.mrb[4].mxu1 }
  0xe6   :  { %242 = vrot.lane.b32.xlu0 %v181_v17, %s393_s0  ;;  %v162_v20 = vpop.f32.mrb[5].mxu0  ;;  %v194_v21 = vpop.f32.mrb[5].mxu1 }
  0xe7   :  { %230 = vrot.lane.b32.xlu1 %v350_v18, %s394_s8  ;;  %v351_v22 = vpop.f32.mrb[6].mxu0  ;;  %v359_v23 = vpop.f32.mrb[6].mxu1 }
  0xe8   :  { %v165_v24 = vpop.f32.mrb[7].mxu0  ;;  %v197_v25 = vpop.f32.mrb[7].mxu1 }
  0xea   :  { %234 = vrot.lane.b32.xlu0 %v351_v22, %s395_s9 }
  0xeb   :  { %222 = vrot.lane.b32.xlu1 %v162_v20, %s396_s10 }
  0xee   :  { %226 = vrot.lane.b32.xlu0 %v165_v24, %s397_s11 }
  0xef   :  { %246 = vrot.lane.b32.xlu1 %v354_v11, %s398_s12 }
  0xf2   :  { %250 = vrot.lane.b32.xlu0 %v355_v15, %s399_s13 }
  0xf3   :  { %254 = vrot.lane.b32.xlu1 %v194_v21, %s400_s14 }
  0xf6   :  { %258 = vrot.lane.b32.xlu0 %v197_v25, %s401_s15 }
  0xf7   :  { %262 = vrot.lane.b32.xlu1 %v358_v19, %s402_s16 }
  0xfa   :  { %266 = vrot.lane.b32.xlu0 %v359_v23, %s403_s17 }
 0x150   :  { %v215_v26 = vpop.permute.xlu0 %214 }
 0x151   :  { %v239_v27 = vpop.permute.xlu1 %238 }
 0x154   :  { %v211_v28 = vpop.permute.xlu0 %210 }
 0x155   :  { %v219_v29 = vpop.permute.xlu1 %218  ;;  %v270_v31 = vsel %vm269_vm1, %v146_v13, %v211_v28 }
 0x156   :  { %v272_v33 = vsel %vm271_vm2, %v270_v31, %v215_v26 }
 0x157   :  { %v274_v36 = vsel %vm273_vm3, %v272_v33, %v219_v29 }
 0x158   :  { %v243_v30 = vpop.permute.xlu0 %242 }
 0x159   :  { %v231_v32 = vpop.permute.xlu1 %230 }
 0x15c   :  { %v235_v34 = vpop.permute.xlu0 %234 }
 0x15d   :  { %v223_v35 = vpop.permute.xlu1 %222 }
 0x15e   :  { %v275_v37 = vsel %vm87_vm0, %v274_v36, %v223_v35 }
 0x160   :  { %v227_v38 = vpop.permute.xlu0 %226 }
 0x161   :  { %v277_v39 = vsel %vm276_vm4, %v275_v37, %v227_v38  ;;  %v247_v40 = vpop.permute.xlu1 %246 }
 0x162   :  { %v279_v41 = vsel %vm278_vm5, %v277_v39, %v231_v32 }
 0x163   :  { %v281_v42 = vsel %vm280_vm6, %v279_v41, %v235_v34 }
 0x164   :  { %v283_v43 = vsel %vm282_vm7, %v281_v42, %v239_v27  ;;  %v251_v44 = vpop.permute.xlu0 %250 }
 0x165   :  { %v285_v45 = vsel %vm284_vm8, %v283_v43, %v243_v30  ;;  %v255_v46 = vpop.permute.xlu1 %254 }
 0x166   :  { %v287_v47 = vsel %vm286_vm9, %v285_v45, %v247_v40 }
 0x167   :  { %v289_v48 = vsel %vm288_vm10, %v287_v47, %v251_v44 }
 0x168   :  { %v291_v49 = vsel %vm290_vm11, %v289_v48, %v255_v46  ;;  %v259_v50 = vpop.permute.xlu0 %258 }
 0x169   :  { %v293_v51 = vsel %vm292_vm12, %v291_v49, %v259_v50  ;;  %v263_v52 = vpop.permute.xlu1 %262 }
 0x16a   :  { %v295_v54 = vsel %vm294_vm13, %v293_v51, %v263_v52 }
 0x16c   :  { %v267_v55 = vpop.permute.xlu0 %266 }
 0x16d   :  { %v297_v56 = vsel %vm296_vm14, %v295_v54, %v267_v55 }
 0x16e   :  { %v305_v57 = vadd.f32 %v329_v53, %v297_v56 }
 0x170   :  { %306 = vst [vmem:[%s472_s3] sm:$0xff] %v305_v57 }

// kernel: _lambda_.29
= control target key start
LH: loop header
LB: loop body
LE: loop exit
PB: predicated region body
PF: predicated region fallthrough
CT: control target
= control target key end

     0   :  { %vm111_vm0 = vcmask 1040384   ;;  %vm86_vm1 = vcmask 146432   ;;  %s1466_s15 = smov 18   ;;  %s1467_s16 = smov 2   ;;  %vm854_vm2 = vcmask 15360   ;;  %vm856_vm3 = vcmask 31744   ;;  %s1876_s1 = inlined_call_operand.vmem [shape: bf16[4,18,2], index: 1, kind: input, shape index: {}]   ;;  %s1877_s0 = inlined_call_operand.vmem [shape: bf16[4,128,18], index: 0, kind: input, shape index: {}]   ;;  %s1878_s2 = inlined_call_operand.vmem [shape: f32[1,128], index: 2, kind: input, shape index: {}]   ;;  %s1879_s3 = inlined_call_operand.vmem [shape: f32[8,128], index: 3, kind: input, shape index: {}]   ;;  %s1880_s4 = inlined_call_operand.vmem [shape: f32[8,128], index: 4, kind: output, shape index: {}]  }
   0x1   :  { %v1421_v0 = vld [vmem:[%s1876_s1] sm:$0xff]   ;;  %v1422_v1 = vld [vmem:[%s1876_s1 + $0xc] sm:$0xff]   ;;  %v1423_v2 = vld [vmem:[%s1876_s1 + $0x8] ss:$0 sps:$4 sm:$0x11]   ;;  %s1468_s17 = smov 26  }
   0x2   :  { %1319 = vmatprep.subr.bf16.mxu0 %v1421_v0  ;;  %v1425_v3 = vld [vmem:[%s1877_s0] sm:$0xff]   ;;  %1339 = vmatprep.subr.bf16.mxu1 %v1422_v1  ;;  %v1424_v4 = vld [vmem:[%s1876_s1 + $0x14] ss:$0 sps:$4 sm:$0x11]   ;;  %v113_v6 = vsel %vm111_vm0, %v1423_v2, 0  ;;  %v1427_v7 = vld [vmem:[%s1877_s0 + $0x8] sm:$0xff]  }
   0x3   :  { %1320 = vmatpush3.bf16.msra.mxu0 %v1421_v0  ;;  %v1426_v5 = vld [vmem:[%s1877_s0 + $0x40] sm:$0xff]   ;;  %1340 = vmatpush3.bf16.msra.mxu1 %v1422_v1  ;;  %v307_v8 = vsel %vm111_vm0, %v1424_v4, 0  ;;  %v1428_v9 = vld [vmem:[%s1877_s0 + $0x48] sm:$0xff]   ;;  %v1429_v10 = vld [vmem:[%s1877_s0 + $0x10] sm:$0xff]   ;;  %s1469_s18 = smov 24   ;;  %s1470_s19 = smov 10  }
   0x4   :  { %1399 = vmatprep.subr.msk.bf16.mxu0 %vm111_vm0, %v1423_v2  ;;  %1400 = vmatprep.subr.msk.bf16.mxu1 %vm111_vm0, %v1424_v4  ;;  %v1430_v11 = vld [vmem:[%s1877_s0 + $0x50] sm:$0xff]   ;;  %v1431_v12 = vld [vmem:[%s1876_s1 + $0x18] sm:$0xff]   ;;  %v1434_v14 = vld [vmem:[%s1876_s1 + $0x24] sm:$0xff]   ;;  %s1471_s20 = smov 8   ;;  %s1472_s21 = smov 20   ;;  %vm858_vm4 = vcmask 48128  }
   0x5   :  { %1323 = vmatprep.mubr.msk.bf16.mxu0 %vm86_vm1, %v1425_v3  ;;  %1343 = vmatprep.mubr.msk.bf16.mxu1 %vm86_vm1, %v1426_v5  ;;  %v1432_v13 = vld [vmem:[%s1877_s0 + $0x18] sm:$0xff]   ;;  %v1436_v16 = vld [vmem:[%s1877_s0 + $0x20] sm:$0xff]   ;;  %v1440_v19 = vld [vmem:[%s1876_s1 + $0x2c] ss:$0 sps:$4 sm:$0x11]   ;;  %s1473_s22 = smov 22  }
   0x6   :  { %v1433_v15 = vld [vmem:[%s1877_s0 + $0x58] sm:$0xff]   ;;  %v1435_v17 = vld [vmem:[%s1877_s0 + $0x60] sm:$0xff]   ;;  %v695_v21 = vsel %vm111_vm0, %v1440_v19, 0  ;;  %v1437_v22 = vld [vmem:[%s1877_s0 + $0x68] sm:$0xff]   ;;  %s1474_s23 = smov 4   ;;  %s1475_s24 = smov 6  }
   0x7   :  { %1322 = vmatpush3.bf16.msra.mxu0 %v113_v6  ;;  %1342 = vmatpush3.bf16.msra.mxu1 %v307_v8  ;;  %v1439_v18 = vld [vmem:[%s1876_s1 + $0x20] ss:$0 sps:$4 sm:$0x11]   ;;  %v1438_v23 = vld [vmem:[%s1877_s0 + $0x28] sm:$0xff]   ;;  %v1441_v24 = vld [vmem:[%s1877_s0 + $0x30] sm:$0xff]   ;;  %s1476_s25 = smov 28  }
   0x8   :  { %1359 = vmatprep.subr.bf16.mxu0 %v1431_v12  ;;  %1379 = vmatprep.subr.bf16.mxu1 %v1434_v14  ;;  %v501_v20 = vsel %vm111_vm0, %v1439_v18, 0  ;;  %v1443_v25 = vld [vmem:[%s1877_s0 + $0x70] sm:$0xff]   ;;  %v1442_v26 = vld [vmem:[%s1877_s0 + $0x38] sm:$0xff]   ;;  %v1445_v28 = vld [vmem:[%s1877_s0 + $0x80] sm:$0xff]   ;;  %s1477_s26 = smov 30   ;;  %s1478_s1 = smov 12  }
   0x9   :  { %v1444_v27 = vld [vmem:[%s1877_s0 + $0x78] sm:$0xff]   ;;  %v1447_v29 = vld [vmem:[%s1877_s0 + $0xc0] sm:$0xff]   ;;  %v1446_v30 = vld [vmem:[%s1877_s0 + $0x88] sm:$0xff]   ;;  %s1479_s27 = smov 14   ;;  %vm860_vm5 = vcmask 64512   ;;  %vm862_vm6 = vcmask 80896  }
   0xa   :  { %1324 = vmatmul.mubr.msk.bf16.vlgmr.msra.gmra.mrb[0].mxu0 %vm86_vm1, %v1427_v7  ;;  %1344 = vmatmul.mubr.msk.bf16.vlgmr.msra.gmra.mrb[0].mxu1 %vm86_vm1, %v1428_v9  ;;  %v1448_v31 = vld [vmem:[%s1877_s0 + $0xc8] sm:$0xff]   ;;  %v1449_v32 = vld [vmem:[%s1877_s0 + $0x90] sm:$0xff]   ;;  %v1450_v34 = vld [vmem:[%s1877_s0 + $0x98] sm:$0xff]   ;;  %vm864_vm7 = vcmask 97280   ;;  %vm866_vm8 = vcmask 113664   ;;  %vm868_vm9 = vcmask 130048  }
   0xb   :  { %1327 = vmatprep.mubr.msk.bf16.mxu0 %vm86_vm1, %v1429_v10  ;;  %1347 = vmatprep.mubr.msk.bf16.mxu1 %vm86_vm1, %v1430_v11  ;;  %v1451_v33 = vld [vmem:[%s1877_s0 + $0xd0] sm:$0xff]   ;;  %v1452_v35 = vld [vmem:[%s1877_s0 + $0xd8] sm:$0xff]   ;;  %v1453_v36 = vld [vmem:[%s1877_s0 + $0xa0] sm:$0xff]   ;;  %vm871_vm10 = vcmask 162816   ;;  %vm873_vm11 = vcmask 179200   ;;  %vm875_vm12 = vcmask 195584  }
   0xc   :  { %1360 = vmatpush3.bf16.msra.mxu0 %v1431_v12  ;;  %1380 = vmatpush3.bf16.msra.mxu1 %v1434_v14  ;;  %v1455_v37 = vld [vmem:[%s1877_s0 + $0xe0] sm:$0xff]   ;;  %v1454_v38 = vld [vmem:[%s1877_s0 + $0xa8] sm:$0xff]   ;;  %v1457_v40 = vld [vmem:[%s1877_s0 + $0xb0] sm:$0xff]   ;;  %vm877_vm13 = vcmask 211968   ;;  %vm879_vm14 = vcmask 228352   ;;  %vm881_vm15 = vcmask 244736  }
   0xd   :  { %1401 = vmatprep.subr.msk.bf16.mxu0 %vm111_vm0, %v1439_v18  ;;  %1402 = vmatprep.subr.msk.bf16.mxu1 %vm111_vm0, %v1440_v19  ;;  %v1456_v39 = vld [vmem:[%s1877_s0 + $0xe8] sm:$0xff]   ;;  %v1459_v41 = vld [vmem:[%s1877_s0 + $0xf0] sm:$0xff]   ;;  %v1458_v42 = vld [vmem:[%s1877_s0 + $0xb8] sm:$0xff]   ;;  %s1480_s28 = smov 32   ;;  %s1481_s29 = smov 64   ;;  %vm1120_vm0 = vcmask 261120  }
   0xe   :  { %v1460_v43 = vld [vmem:[%s1877_s0 + $0xf8] sm:$0xff]   ;;  %s1465_s0 = smov 16   ;;  %s1482_s30 = smov 96  }
  0x10   :  { %1362 = vmatpush3.bf16.msra.mxu0 %v501_v20  ;;  %1382 = vmatpush3.bf16.msra.mxu1 %v695_v21 }
  0x12   :  { %1328 = vmatmul.mubr.msk.bf16.gmra.mrb[4].mxu0 %vm86_vm1, %v1432_v13  ;;  %1348 = vmatmul.mubr.msk.bf16.gmra.mrb[4].mxu1 %vm86_vm1, %v1433_v15 }
  0x13   :  { %1331 = vmatprep.mubr.msk.bf16.mxu0 %vm86_vm1, %v1436_v16  ;;  %1351 = vmatprep.mubr.msk.bf16.mxu1 %vm86_vm1, %v1435_v17 }
  0x1a   :  { %1332 = vmatmul.mubr.msk.bf16.gmra.mrb[8].mxu0 %vm86_vm1, %v1438_v23  ;;  %1352 = vmatmul.mubr.msk.bf16.gmra.mrb[8].mxu1 %vm86_vm1, %v1437_v22 }
  0x1b   :  { %1335 = vmatprep.mubr.msk.bf16.mxu0 %vm86_vm1, %v1441_v24  ;;  %1355 = vmatprep.mubr.msk.bf16.mxu1 %vm86_vm1, %v1443_v25 }
  0x22   :  { %1336 = vmatmul.mubr.msk.bf16.gmra.mrb[12].mxu0 %vm86_vm1, %v1442_v26  ;;  %1356 = vmatmul.mubr.msk.bf16.gmra.mrb[12].mxu1 %vm86_vm1, %v1444_v27 }
  0x23   :  { %1363 = vmatprep.mubr.msk.bf16.mxu0 %vm86_vm1, %v1445_v28  ;;  %1383 = vmatprep.mubr.msk.bf16.mxu1 %vm86_vm1, %v1447_v29 }
  0x2a   :  { %1364 = vmatmul.mubr.msk.bf16.vlgmr.msra.gmra.mrb[16].mxu0 %vm86_vm1, %v1446_v30  ;;  %1384 = vmatmul.mubr.msk.bf16.vlgmr.msra.gmra.mrb[16].mxu1 %vm86_vm1, %v1448_v31 }
  0x2b   :  { %1367 = vmatprep.mubr.msk.bf16.mxu0 %vm86_vm1, %v1449_v32  ;;  %1387 = vmatprep.mubr.msk.bf16.mxu1 %vm86_vm1, %v1451_v33 }
  0x32   :  { %1368 = vmatmul.mubr.msk.bf16.gmra.mrb[20].mxu0 %vm86_vm1, %v1450_v34  ;;  %1388 = vmatmul.mubr.msk.bf16.gmra.mrb[20].mxu1 %vm86_vm1, %v1452_v35 }
  0x33   :  { %1371 = vmatprep.mubr.msk.bf16.mxu0 %vm86_vm1, %v1453_v36  ;;  %1391 = vmatprep.mubr.msk.bf16.mxu1 %vm86_vm1, %v1455_v37 }
  0x3a   :  { %1372 = vmatmul.mubr.msk.bf16.gmra.mrb[24].mxu0 %vm86_vm1, %v1454_v38  ;;  %1392 = vmatmul.mubr.msk.bf16.gmra.mrb[24].mxu1 %vm86_vm1, %v1456_v39 }
  0x3b   :  { %1375 = vmatprep.mubr.msk.bf16.mxu0 %vm86_vm1, %v1457_v40  ;;  %1395 = vmatprep.mubr.msk.bf16.mxu1 %vm86_vm1, %v1459_v41 }
  0x42   :  { %1376 = vmatmul.mubr.msk.bf16.gmra.mrb[28].mxu0 %vm86_vm1, %v1458_v42  ;;  %1396 = vmatmul.mubr.msk.bf16.gmra.mrb[28].mxu1 %vm86_vm1, %v1460_v43 }
  0xdd   :  { %v1668_v44 = vpop.f32.mrb[0].mxu0  ;;  %v1670_v45 = vpop.f32.mrb[0].mxu1 }
  0xde   :  { %v1672_v46 = vpop.f32.mrb[1].mxu0  ;;  %v1674_v47 = vpop.f32.mrb[1].mxu1 }
  0xdf   :  { %v1676_v48 = vpop.f32.mrb[2].mxu0  ;;  %v1678_v49 = vpop.f32.mrb[2].mxu1 }
  0xe0   :  { %v1680_v50 = vpop.f32.mrb[3].mxu0  ;;  %v1682_v51 = vpop.f32.mrb[3].mxu1 }
  0xe5   :  { %v1329_v52 = vpop.f32.mrb[4].mxu0  ;;  %v1349_v53 = vpop.f32.mrb[4].mxu1 }
  0xe6   :  { %912 = vrot.lane.b32.xlu0 %v1329_v52, %s1465_s0  ;;  %v1685_v54 = vpop.f32.mrb[5].mxu0  ;;  %916 = vrot.lane.b32.xlu1 %v1349_v53, %s1466_s15  ;;  %v359_v55 = vpop.f32.mrb[5].mxu1 }
  0xe7   :  { %v1330_v56 = vpop.f32.mrb[6].mxu0  ;;  %v1350_v57 = vpop.f32.mrb[6].mxu1 }
  0xe8   :  { %v168_v58 = vpop.f32.mrb[7].mxu0  ;;  %v362_v59 = vpop.f32.mrb[7].mxu1 }
  0xea   :  { %884 = vrot.lane.b32.xlu0 %v359_v55, %s1467_s16  ;;  %932 = vrot.lane.b32.xlu1 %v1350_v57, %s1468_s17 }
  0xed   :  { %v1333_v60 = vpop.f32.mrb[8].mxu0  ;;  %v1353_v61 = vpop.f32.mrb[8].mxu1 }
  0xee   :  { %928 = vrot.lane.b32.xlu0 %v1330_v56, %s1469_s18  ;;  %v1691_v62 = vpop.f32.mrb[9].mxu0  ;;  %900 = vrot.lane.b32.xlu1 %v362_v59, %s1470_s19  ;;  %v375_v63 = vpop.f32.mrb[9].mxu1 }
  0xef   :  { %v1334_v0 = vpop.f32.mrb[10].mxu0  ;;  %v1354_v1 = vpop.f32.mrb[10].mxu1 }
  0xf0   :  { %v184_v2 = vpop.f32.mrb[11].mxu0  ;;  %v378_v3 = vpop.f32.mrb[11].mxu1 }
  0xf2   :  { %896 = vrot.lane.b32.xlu0 %v168_v58, %s1471_s20  ;;  %991 = vrot.lane.b32.xlu1 %v1353_v61, %s1466_s15 }
  0xf5   :  { %v1337_v4 = vpop.f32.mrb[12].mxu0  ;;  %v1357_v6 = vpop.f32.mrb[12].mxu1 }
  0xf6   :  { %987 = vrot.lane.b32.xlu0 %v1333_v60, %s1465_s0  ;;  %v1697_v5 = vpop.f32.mrb[13].mxu0  ;;  %959 = vrot.lane.b32.xlu1 %v375_v63, %s1467_s16  ;;  %v391_v8 = vpop.f32.mrb[13].mxu1 }
  0xf7   :  { %v1338_v7 = vpop.f32.mrb[14].mxu0  ;;  %v1700_v10 = vpop.f32.mrb[14].mxu1 }
  0xf8   :  { %v200_v9 = vpop.f32.mrb[15].mxu0  ;;  %v394_v11 = vpop.f32.mrb[15].mxu1 }
  0xfa   :  { %1003 = vrot.lane.b32.xlu0 %v1334_v0, %s1469_s18  ;;  %1007 = vrot.lane.b32.xlu1 %v1354_v1, %s1468_s17 }
  0xfd   :  { %v1704_v12 = vpop.f32.mrb[16].mxu0  ;;  %v1709_v14 = vpop.f32.mrb[16].mxu1 }
  0xfe   :  { %971 = vrot.lane.b32.xlu0 %v184_v2, %s1471_s20  ;;  %v1707_v13 = vpop.f32.mrb[17].mxu0  ;;  %975 = vrot.lane.b32.xlu1 %v378_v3, %s1470_s19  ;;  %v1714_v16 = vpop.f32.mrb[17].mxu1 }
  0xff   :  { %v1712_v15 = vpop.f32.mrb[18].mxu0  ;;  %v1718_v18 = vpop.f32.mrb[18].mxu1 }
 0x100   :  { %v1716_v17 = vpop.f32.mrb[19].mxu0  ;;  %v1720_v19 = vpop.f32.mrb[19].mxu1 }
 0x102   :  { %1062 = vrot.lane.b32.xlu0 %v1337_v4, %s1465_s0  ;;  %1066 = vrot.lane.b32.xlu1 %v1357_v6, %s1466_s15 }
 0x105   :  { %v1369_v20 = vpop.f32.mrb[20].mxu0  ;;  %v1389_v22 = vpop.f32.mrb[20].mxu1 }
 0x106   :  { %1078 = vrot.lane.b32.xlu0 %v1338_v7, %s1469_s18  ;;  %v553_v21 = vpop.f32.mrb[21].mxu0  ;;  %1034 = vrot.lane.b32.xlu1 %v391_v8, %s1467_s16  ;;  %v747_v24 = vpop.f32.mrb[21].mxu1 }
 0x107   :  { %v1370_v23 = vpop.f32.mrb[22].mxu0  ;;  %v1390_v26 = vpop.f32.mrb[22].mxu1 }
 0x108   :  { %v556_v25 = vpop.f32.mrb[23].mxu0  ;;  %v750_v27 = vpop.f32.mrb[23].mxu1 }
 0x10a   :  { %1046 = vrot.lane.b32.xlu0 %v200_v9, %s1471_s20  ;;  %1050 = vrot.lane.b32.xlu1 %v394_v11, %s1470_s19 }
 0x10d   :  { %v1373_v28 = vpop.f32.mrb[24].mxu0  ;;  %v1393_v30 = vpop.f32.mrb[24].mxu1 }
 0x10e   :  { %920 = vrot.lane.b32.xlu0 %v1369_v20, %s1472_s21  ;;  %v569_v29 = vpop.f32.mrb[25].mxu0  ;;  %924 = vrot.lane.b32.xlu1 %v1389_v22, %s1473_s22  ;;  %v763_v32 = vpop.f32.mrb[25].mxu1 }
 0x10f   :  { %v1374_v31 = vpop.f32.mrb[26].mxu0  ;;  %v1394_v34 = vpop.f32.mrb[26].mxu1 }
 0x110   :  { %v572_v33 = vpop.f32.mrb[27].mxu0  ;;  %v766_v35 = vpop.f32.mrb[27].mxu1 }
 0x112   :  { %888 = vrot.lane.b32.xlu0 %v553_v21, %s1474_s23  ;;  %892 = vrot.lane.b32.xlu1 %v747_v24, %s1475_s24 }
 0x115   :  { %v1377_v36 = vpop.f32.mrb[28].mxu0  ;;  %v1397_v38 = vpop.f32.mrb[28].mxu1 }
 0x116   :  { %936 = vrot.lane.b32.xlu0 %v1370_v23, %s1476_s25  ;;  %v585_v37 = vpop.f32.mrb[29].mxu0  ;;  %940 = vrot.lane.b32.xlu1 %v1390_v26, %s1477_s26  ;;  %v779_v40 = vpop.f32.mrb[29].mxu1 }
 0x117   :  { %v1378_v39 = vpop.f32.mrb[30].mxu0  ;;  %v1398_v42 = vpop.f32.mrb[30].mxu1 }
 0x118   :  { %v588_v41 = vpop.f32.mrb[31].mxu0  ;;  %v782_v43 = vpop.f32.mrb[31].mxu1 }
 0x11a   :  { %904 = vrot.lane.b32.xlu0 %v556_v25, %s1478_s1  ;;  %908 = vrot.lane.b32.xlu1 %v750_v27, %s1479_s27 }
 0x11e   :  { %995 = vrot.lane.b32.xlu0 %v1373_v28, %s1472_s21  ;;  %999 = vrot.lane.b32.xlu1 %v1393_v30, %s1473_s22 }
 0x122   :  { %963 = vrot.lane.b32.xlu0 %v569_v29, %s1474_s23  ;;  %967 = vrot.lane.b32.xlu1 %v763_v32, %s1475_s24 }
 0x126   :  { %979 = vrot.lane.b32.xlu0 %v572_v33, %s1478_s1  ;;  %983 = vrot.lane.b32.xlu1 %v766_v35, %s1479_s27 }
 0x12a   :  { %1070 = vrot.lane.b32.xlu0 %v1377_v36, %s1472_s21  ;;  %1074 = vrot.lane.b32.xlu1 %v1397_v38, %s1473_s22 }
 0x12e   :  { %1038 = vrot.lane.b32.xlu0 %v585_v37, %s1474_s23  ;;  %1042 = vrot.lane.b32.xlu1 %v779_v40, %s1475_s24 }
 0x132   :  { %1054 = vrot.lane.b32.xlu0 %v588_v41, %s1478_s1  ;;  %1058 = vrot.lane.b32.xlu1 %v782_v43, %s1479_s27 }
 0x136   :  { %1011 = vrot.lane.b32.xlu0 %v1374_v31, %s1476_s25  ;;  %1082 = vrot.lane.b32.xlu1 %v1700_v10, %s1468_s17 }
 0x13a   :  { %1015 = vrot.lane.b32.xlu0 %v1394_v34, %s1477_s26  ;;  %1086 = vrot.lane.b32.xlu1 %v1378_v39, %s1476_s25 }
 0x13e   :  { %1090 = vrot.lane.b32.xlu0 %v1398_v42, %s1477_s26  ;;  %795 = vrot.lane.b32.xlu1 %v1674_v47, %s1467_s16 }
 0x142   :  { %799 = vrot.lane.b32.xlu0 %v1707_v13, %s1474_s23  ;;  %803 = vrot.lane.b32.xlu1 %v1714_v16, %s1475_s24 }
 0x146   :  { %807 = vrot.lane.b32.xlu0 %v1680_v50, %s1471_s20  ;;  %811 = vrot.lane.b32.xlu1 %v1682_v51, %s1470_s19 }
 0x14a   :  { %815 = vrot.lane.b32.xlu0 %v1716_v17, %s1478_s1  ;;  %819 = vrot.lane.b32.xlu1 %v1720_v19, %s1479_s27 }
 0x14e   :  { %823 = vrot.lane.b32.xlu0 %v1668_v44, %s1465_s0  ;;  %827 = vrot.lane.b32.xlu1 %v1670_v45, %s1466_s15 }
 0x152   :  { %831 = vrot.lane.b32.xlu0 %v1704_v12, %s1472_s21  ;;  %835 = vrot.lane.b32.xlu1 %v1709_v14, %s1473_s22 }
 0x156   :  { %839 = vrot.lane.b32.xlu0 %v1676_v48, %s1469_s18  ;;  %843 = vrot.lane.b32.xlu1 %v1678_v49, %s1468_s17 }
 0x158   :  { %v913_v47 = vpop.permute.xlu0 %912  ;;  %v917_v50 = vpop.permute.xlu1 %916 }
 0x15a   :  { %847 = vrot.lane.b32.xlu0 %v1712_v15, %s1476_s25  ;;  %851 = vrot.lane.b32.xlu1 %v1718_v18, %s1477_s26 }
 0x15c   :  { %v885_v44 = vpop.permute.xlu0 %884  ;;  %v933_v45 = vpop.permute.xlu1 %932 }
 0x15d   :  { %v943_v6 = vsel %vm854_vm2, %v1685_v54, %v885_v44 }
 0x160   :  { %v929_v51 = vpop.permute.xlu0 %928  ;;  %v901_v52 = vpop.permute.xlu1 %900 }
 0x164   :  { %v897_v53 = vpop.permute.xlu0 %896  ;;  %v1776_v55 = vpop.permute.xlu1 %991 }
 0x168   :  { %v1778_v56 = vpop.permute.xlu0 %987  ;;  %v960_v48 = vpop.permute.xlu1 %959 }
 0x169   :  { %v1018_v25 = vsel %vm854_vm2, %v1691_v62, %v960_v48 }
 0x16c   :  { %v1780_v57 = vpop.permute.xlu0 %1003  ;;  %v1782_v49 = vpop.permute.xlu1 %1007 }
 0x170   :  { %v972_v58 = vpop.permute.xlu0 %971  ;;  %v976_v59 = vpop.permute.xlu1 %975 }
 0x174   :  { %v1784_v60 = vpop.permute.xlu0 %1062  ;;  %v1786_v61 = vpop.permute.xlu1 %1066 }
 0x178   :  { %v1788_v63 = vpop.permute.xlu0 %1078  ;;  %v1035_v0 = vpop.permute.xlu1 %1034 }
 0x179   :  { %v1093_v42 = vsel %vm854_vm2, %v1697_v5, %v1035_v0 }
 0x17c   :  { %v1790_v1 = vpop.permute.xlu0 %1046  ;;  %v1792_v2 = vpop.permute.xlu1 %1050 }
 0x180   :  { %v921_v3 = vpop.permute.xlu0 %920  ;;  %v925_v4 = vpop.permute.xlu1 %924 }
 0x184   :  { %v889_v7 = vpop.permute.xlu0 %888  ;;  %v893_v8 = vpop.permute.xlu1 %892 }
 0x185   :  { %v944_v9 = vsel %vm856_vm3, %v943_v6, %v889_v7 }
 0x186   :  { %v945_v10 = vsel %vm858_vm4, %v944_v9, %v893_v8 }
 0x187   :  { %v946_v13 = vsel %vm860_vm5, %v945_v10, %v897_v53 }
 0x188   :  { %v937_v11 = vpop.permute.xlu0 %936  ;;  %v941_v12 = vpop.permute.xlu1 %940  ;;  %v947_v14 = vsel %vm862_vm6, %v946_v13, %v901_v52 }
 0x18c   :  { %v905_v15 = vpop.permute.xlu0 %904  ;;  %v909_v16 = vpop.permute.xlu1 %908 }
 0x18d   :  { %v948_v54 = vsel %vm864_vm7, %v947_v14, %v905_v15 }
 0x18e   :  { %v949_v17 = vsel %vm866_vm8, %v948_v54, %v909_v16 }
 0x18f   :  { %v950_v18 = vsel %vm868_vm9, %v949_v17, %v913_v47 }
 0x190   :  { %v951_v19 = vsel %vm86_vm1, %v950_v18, %v917_v50  ;;  %v996_v20 = vpop.permute.xlu0 %995  ;;  %v1000_v22 = vpop.permute.xlu1 %999 }
 0x191   :  { %v952_v21 = vsel %vm871_vm10, %v951_v19, %v921_v3 }
 0x192   :  { %v953_v23 = vsel %vm873_vm11, %v952_v21, %v925_v4 }
 0x193   :  { %v954_v24 = vsel %vm875_vm12, %v953_v23, %v929_v51 }
 0x194   :  { %v964_v26 = vpop.permute.xlu0 %963  ;;  %v955_v27 = vsel %vm877_vm13, %v954_v24, %v933_v45  ;;  %v968_v28 = vpop.permute.xlu1 %967 }
 0x195   :  { %v1019_v29 = vsel %vm856_vm3, %v1018_v25, %v964_v26  ;;  %v956_v30 = vsel %vm879_vm14, %v955_v27, %v937_v11 }
 0x196   :  { %v1020_v31 = vsel %vm858_vm4, %v1019_v29, %v968_v28  ;;  %v957_v32 = vsel %vm881_vm15, %v956_v30, %v941_v12 }
 0x197   :  { %1109 = vrot.lane.b32.xlu0 %v957_v32, %s1480_s28  ;;  %v1021_v33 = vsel %vm860_vm5, %v1020_v31, %v972_v58 }
 0x198   :  { %v1022_v34 = vsel %vm862_vm6, %v1021_v33, %v976_v59  ;;  %v980_v35 = vpop.permute.xlu0 %979  ;;  %v984_v62 = vpop.permute.xlu1 %983 }
 0x199   :  { %v1023_v36 = vsel %vm864_vm7, %v1022_v34, %v980_v35 }
 0x19a   :  { %v1024_v37 = vsel %vm866_vm8, %v1023_v36, %v984_v62 }
 0x19b   :  { %v1025_v38 = vsel %vm868_vm9, %v1024_v37, %v1778_v56 }
 0x19c   :  { %v1026_v39 = vsel %vm86_vm1, %v1025_v38, %v1776_v55  ;;  %v1071_v40 = vpop.permute.xlu0 %1070  ;;  %v1075_v41 = vpop.permute.xlu1 %1074 }
 0x19d   :  { %v1027_v45 = vsel %vm871_vm10, %v1026_v39, %v996_v20 }
 0x19e   :  { %v1028_v5 = vsel %vm873_vm11, %v1027_v45, %v1000_v22 }
 0x19f   :  { %v1029_v0 = vsel %vm875_vm12, %v1028_v5, %v1780_v57 }
 0x1a0   :  { %v1039_v43 = vpop.permute.xlu0 %1038  ;;  %v1043_v47 = vpop.permute.xlu1 %1042  ;;  %v1030_v7 = vsel %vm877_vm13, %v1029_v0, %v1782_v49 }
 0x1a1   :  { %v1094_v50 = vsel %vm856_vm3, %v1093_v42, %v1039_v43 }
 0x1a2   :  { %v1095_v44 = vsel %vm858_vm4, %v1094_v50, %v1043_v47  ;;  %v1134_v47 = vld [vmem:[%s1879_s3] sm:$0xff] }
 0x1a3   :  { %v1096_v51 = vsel %vm860_vm5, %v1095_v44, %v1790_v1 }
 0x1a4   :  { %v1097_v52 = vsel %vm862_vm6, %v1096_v51, %v1792_v2  ;;  %v1055_v53 = vpop.permute.xlu0 %1054  ;;  %v1059_v55 = vpop.permute.xlu1 %1058 }
 0x1a5   :  { %v1098_v56 = vsel %vm864_vm7, %v1097_v52, %v1055_v53 }
 0x1a6   :  { %v1099_v48 = vsel %vm866_vm8, %v1098_v56, %v1059_v55 }
 0x1a7   :  { %v1100_v58 = vsel %vm868_vm9, %v1099_v48, %v1784_v60 }
 0x1a8   :  { %v1101_v59 = vsel %vm86_vm1, %v1100_v58, %v1786_v61  ;;  %v1012_v1 = vpop.permute.xlu0 %1011  ;;  %v1083_v3 = vpop.permute.xlu1 %1082 }
 0x1a9   :  { %v1102_v2 = vsel %vm871_vm10, %v1101_v59, %v1071_v40  ;;  %v1031_v60 = vsel %vm879_vm14, %v1030_v7, %v1012_v1 }
 0x1aa   :  { %v1103_v4 = vsel %vm873_vm11, %v1102_v2, %v1075_v41  ;;  %v1277_v41 = vld [vmem:[%s1878_s2] ss:$0 sm:$0xff] }
 0x1ab   :  { %v1104_v6 = vsel %vm875_vm12, %v1103_v4, %v1788_v63 }
 0x1ac   :  { %v1016_v8 = vpop.permute.xlu0 %1015  ;;  %v1105_v61 = vsel %vm877_vm13, %v1104_v6, %v1083_v3  ;;  %v1087_v9 = vpop.permute.xlu1 %1086 }
 0x1ad   :  { %v1032_v57 = vsel %vm881_vm15, %v1031_v60, %v1016_v8  ;;  %v1106_v10 = vsel %vm879_vm14, %v1105_v61, %v1087_v9 }
 0x1ae   :  { %1113 = vrot.lane.b32.xlu1 %v1032_v57, %s1481_s29 }
 0x1b0   :  { %v1091_v11 = vpop.permute.xlu0 %1090  ;;  %v796_v12 = vpop.permute.xlu1 %795 }
 0x1b1   :  { %v1107_v13 = vsel %vm881_vm15, %v1106_v10, %v1091_v11  ;;  %v855_v49 = vsel %vm854_vm2, %v1672_v46, %v796_v12  ;;  %vm1124_vm2 = vcmask 785408  }
 0x1b2   :  { %1117 = vrot.lane.b32.xlu0 %v1107_v13, %s1482_s30 }
 0x1b4   :  { %v800_v63 = vpop.permute.xlu0 %799  ;;  %v804_v14 = vpop.permute.xlu1 %803 }
 0x1b5   :  { %v857_v15 = vsel %vm856_vm3, %v855_v49, %v800_v63 }
 0x1b6   :  { %v859_v16 = vsel %vm858_vm4, %v857_v15, %v804_v14 }
 0x1b8   :  { %v808_v54 = vpop.permute.xlu0 %807  ;;  %v812_v17 = vpop.permute.xlu1 %811 }
 0x1b9   :  { %v861_v18 = vsel %vm860_vm5, %v859_v16, %v808_v54 }
 0x1ba   :  { %v863_v19 = vsel %vm862_vm6, %v861_v18, %v812_v17 }
 0x1bc   :  { %v816_v20 = vpop.permute.xlu0 %815  ;;  %v820_v21 = vpop.permute.xlu1 %819 }
 0x1bd   :  { %v865_v22 = vsel %vm864_vm7, %v863_v19, %v816_v20 }
 0x1be   :  { %v867_v23 = vsel %vm866_vm8, %v865_v22, %v820_v21 }
 0x1c0   :  { %v824_v24 = vpop.permute.xlu0 %823  ;;  %v828_v46 = vpop.permute.xlu1 %827 }
 0x1c1   :  { %v869_v25 = vsel %vm868_vm9, %v867_v23, %v824_v24 }
 0x1c2   :  { %v870_v26 = vsel %vm86_vm1, %v869_v25, %v828_v46  ;;  %vm1122_vm1 = vcmask 523264  }
 0x1c4   :  { %v832_v27 = vpop.permute.xlu0 %831  ;;  %v836_v28 = vpop.permute.xlu1 %835 }
 0x1c5   :  { %v872_v29 = vsel %vm871_vm10, %v870_v26, %v832_v27 }
 0x1c6   :  { %v874_v30 = vsel %vm873_vm11, %v872_v29, %v836_v28 }
 0x1c8   :  { %v840_v31 = vpop.permute.xlu0 %839  ;;  %v844_v32 = vpop.permute.xlu1 %843 }
 0x1c9   :  { %v876_v33 = vsel %vm875_vm12, %v874_v30, %v840_v31 }
 0x1ca   :  { %v878_v34 = vsel %vm877_vm13, %v876_v33, %v844_v32 }
 0x1cc   :  { %v848_v35 = vpop.permute.xlu0 %847  ;;  %v852_v62 = vpop.permute.xlu1 %851 }
 0x1cd   :  { %v880_v36 = vsel %vm879_vm14, %v878_v34, %v848_v35 }
 0x1ce   :  { %v882_v37 = vsel %vm881_vm15, %v880_v36, %v852_v62 }
 0x209   :  { %v1110_v38 = vpop.permute.xlu0 %1109 }
 0x20a   :  { %v1121_v40 = vsel %vm1120_vm0, %v882_v37, %v1110_v38 }
 0x220   :  { %v1114_v39 = vpop.permute.xlu1 %1113 }
 0x221   :  { %v1123_v42 = vsel %vm1122_vm1, %v1121_v40, %v1114_v39 }
 0x224   :  { %v1118_v43 = vpop.permute.xlu0 %1117 }
 0x225   :  { %v1125_v50 = vsel %vm1124_vm2, %v1123_v42, %v1118_v43 }
 0x226   :  { %v1133_v44 = vadd.f32 %v1277_v41, %v1125_v50 }
 0x228   :  { %v1135_v45 = vadd.f32 %v1134_v47, %v1133_v44 }
 0x22a   :  { %v1278_v51 = vmul.f32 -1.442695, %v1135_v45 }
 0x22c   :  { %1461 = vpow2.f32 %v1278_v51 }
 0x236   :  { %v1462_v52 = vpop.eup %1461 }
 0x237   :  { %v1139_v53 = vadd.f32 1.0, %v1462_v52 }
 0x239   :  { %1463 = vrcp.f32 %v1139_v53 }
 0x243   :  { %v1464_v55 = vpop.eup %1463 }
 0x244   :  { %v1142_v56 = vmul.f32 %v1464_v55, %v1135_v45 }
 0x246   :  { %1143 = vst [vmem:[%s1880_s4] sm:$0xff] %v1142_v56 }

// kernel: _lambda_.30
= control target key start
LH: loop header
LB: loop body
LE: loop exit
PB: predicated region body
PF: predicated region fallthrough
CT: control target
= control target key end

     0   :  { %s52_s0 = inlined_call_operand.vmem [shape: f32[4,8,128], index: 0, kind: input, shape index: {}]   ;;  %s53_s1 = inlined_call_operand.vmem [shape: f32[8,128], index: 1, kind: output, shape index: {}]  }
   0x1   :  { %v8_v0 = vld [vmem:[%s52_s0] sm:$0xff]  ;;  %v24_v1 = vld [vmem:[%s52_s0 + $0x8] sm:$0xff]  ;;  %v25_v2 = vld [vmem:[%s52_s0 + $0x10] sm:$0xff] }
   0x2   :  { %v11_v3 = vadd.f32 %v24_v1, %v8_v0  ;;  %v26_v4 = vld [vmem:[%s52_s0 + $0x18] sm:$0xff] }
   0x4   :  { %v14_v5 = vadd.f32 %v25_v2, %v11_v3 }
   0x6   :  { %v17_v6 = vadd.f32 %v26_v4, %v14_v5 }
   0x8   :  { %v18_v7 = vmul.f32 0.25, %v17_v6 }
   0xa   :  { %19 = vst [vmem:[%s53_s1] sm:$0xff] %v18_v7 }

// kernel: _lambda_.31
= control target key start
LH: loop header
LB: loop body
LE: loop exit
PB: predicated region body
PF: predicated region fallthrough
CT: control target
= control target key end

     0   :  { %vm68_vm0 = vcmask 1040384   ;;  %vm55_vm1 = vcmask 146432   ;;  %s890_s5 = smov 36   ;;  %s891_s6 = smov 16   ;;  %vm563_vm2 = vcmask 31744   ;;  %vm565_vm3 = vcmask 64512   ;;  %s1087_s1 = inlined_call_operand.vmem [shape: bf16[4,18,4], index: 1, kind: input, shape index: {}]   ;;  %s1088_s0 = inlined_call_operand.vmem [shape: bf16[4,64,18], index: 0, kind: input, shape index: {}]   ;;  %s1089_s2 = inlined_call_operand.vmem [shape: f32[1,128], index: 2, kind: input, shape index: {}]   ;;  %s1090_s3 = inlined_call_operand.vmem [shape: f32[8,128], index: 3, kind: output, shape index: {}]  }
   0x1   :  { %v861_v0 = vld [vmem:[%s1087_s1] sm:$0xff]   ;;  %v862_v1 = vld [vmem:[%s1087_s1 + $0xc] sm:$0xff]   ;;  %v863_v2 = vld [vmem:[%s1087_s1 + $0x8] ss:$0 sps:$4 sm:$0x11]   ;;  %s892_s7 = smov 4  }
   0x2   :  { %793 = vmatprep.subr.bf16.mxu0 %v861_v0  ;;  %v865_v3 = vld [vmem:[%s1088_s0] sm:$0xff]   ;;  %805 = vmatprep.subr.bf16.mxu1 %v862_v1  ;;  %v864_v4 = vld [vmem:[%s1087_s1 + $0x14] ss:$0 sps:$4 sm:$0x11]   ;;  %v70_v6 = vsel %vm68_vm0, %v863_v2, 0  ;;  %v867_v7 = vld [vmem:[%s1088_s0 + $0x8] sm:$0xff]  }
   0x3   :  { %794 = vmatpush3.bf16.msra.mxu0 %v861_v0  ;;  %v866_v5 = vld [vmem:[%s1088_s0 + $0x20] sm:$0xff]   ;;  %806 = vmatpush3.bf16.msra.mxu1 %v862_v1  ;;  %v192_v8 = vsel %vm68_vm0, %v864_v4, 0  ;;  %v868_v9 = vld [vmem:[%s1088_s0 + $0x28] sm:$0xff]   ;;  %v869_v10 = vld [vmem:[%s1087_s1 + $0x18] sm:$0xff]   ;;  %s893_s8 = smov 20   ;;  %s894_s9 = smov 40  }
   0x4   :  { %841 = vmatprep.subr.msk.bf16.mxu0 %vm68_vm0, %v863_v2  ;;  %842 = vmatprep.subr.msk.bf16.mxu1 %vm68_vm0, %v864_v4  ;;  %v870_v11 = vld [vmem:[%s1087_s1 + $0x24] sm:$0xff]   ;;  %v871_v12 = vld [vmem:[%s1088_s0 + $0x10] sm:$0xff]   ;;  %v873_v14 = vld [vmem:[%s1088_s0 + $0x18] sm:$0xff]   ;;  %s895_s10 = smov 8   ;;  %s896_s11 = smov 12   ;;  %vm567_vm4 = vcmask 97280  }
   0x5   :  { %797 = vmatprep.mubr.msk.bf16.mxu0 %vm55_vm1, %v865_v3  ;;  %809 = vmatprep.mubr.msk.bf16.mxu1 %vm55_vm1, %v866_v5  ;;  %v872_v13 = vld [vmem:[%s1088_s0 + $0x30] sm:$0xff]   ;;  %v875_v15 = vld [vmem:[%s1087_s1 + $0x20] ss:$0 sps:$4 sm:$0x11]   ;;  %v874_v16 = vld [vmem:[%s1088_s0 + $0x38] sm:$0xff]   ;;  %s897_s12 = smov 44  }
   0x6   :  { %v876_v17 = vld [vmem:[%s1087_s1 + $0x2c] ss:$0 sps:$4 sm:$0x11]   ;;  %v314_v18 = vsel %vm68_vm0, %v875_v15, 0  ;;  %v877_v19 = vld [vmem:[%s1088_s0 + $0x40] sm:$0xff]   ;;  %v881_v24 = vld [vmem:[%s1088_s0 + $0x50] sm:$0xff]  }
   0x7   :  { %796 = vmatpush3.bf16.msra.mxu0 %v70_v6  ;;  %808 = vmatpush3.bf16.msra.mxu1 %v192_v8  ;;  %v436_v20 = vsel %vm68_vm0, %v876_v17, 0  ;;  %v879_v21 = vld [vmem:[%s1088_s0 + $0x60] sm:$0xff]   ;;  %v878_v22 = vld [vmem:[%s1088_s0 + $0x48] sm:$0xff]   ;;  %v883_v25 = vld [vmem:[%s1088_s0 + $0x70] sm:$0xff]   ;;  %s898_s13 = smov 24   ;;  %s899_s14 = smov 28  }
   0x8   :  { %817 = vmatprep.subr.bf16.mxu0 %v869_v10  ;;  %829 = vmatprep.subr.bf16.mxu1 %v870_v11  ;;  %v880_v23 = vld [vmem:[%s1088_s0 + $0x68] sm:$0xff]   ;;  %v882_v26 = vld [vmem:[%s1088_s0 + $0x58] sm:$0xff]   ;;  %s900_s15 = smov 48   ;;  %s901_s16 = smov 52   ;;  %vm569_vm5 = vcmask 130048   ;;  %vm571_vm6 = vcmask 162816  }
   0x9   :  { %v884_v27 = vld [vmem:[%s1088_s0 + $0x78] sm:$0xff]   ;;  %s889_s0 = smov 32   ;;  %s902_s17 = smov 56   ;;  %vm573_vm7 = vcmask 195584   ;;  %vm575_vm8 = vcmask 228352   ;;  %vm577_vm9 = vcmask 261120  }
   0xa   :  { %798 = vmatmul.mubr.msk.bf16.vlgmr.msra.gmra.mrb[0].mxu0 %vm55_vm1, %v867_v7  ;;  %810 = vmatmul.mubr.msk.bf16.vlgmr.msra.gmra.mrb[0].mxu1 %vm55_vm1, %v868_v9  ;;  %s903_s18 = smov 60   ;;  %vm579_vm10 = vcmask 293888   ;;  %vm581_vm11 = vcmask 326656   ;;  %vm583_vm12 = vcmask 359424   ;;  %vm585_vm13 = vcmask 392192   ;;  %s904_s19 = smov 64  }
   0xb   :  { %818 = vmatpush3.bf16.msra.mxu0 %v869_v10  ;;  %801 = vmatprep.mubr.msk.bf16.mxu0 %vm55_vm1, %v871_v12  ;;  %vm587_vm14 = vcmask 424960   ;;  %vm589_vm15 = vcmask 457728  }
   0xc   :  { %830 = vmatpush3.bf16.msra.mxu1 %v870_v11  ;;  %813 = vmatprep.mubr.msk.bf16.mxu1 %vm55_vm1, %v872_v13 }
   0xd   :  { %843 = vmatprep.subr.msk.bf16.mxu0 %vm68_vm0, %v875_v15  ;;  %844 = vmatprep.subr.msk.bf16.mxu1 %vm68_vm0, %v876_v17  ;;  %vm591_vm0 = vcmask 490496  }
   0xf   :  { %820 = vmatpush3.bf16.msra.mxu0 %v314_v18 }
  0x10   :  { %832 = vmatpush3.bf16.msra.mxu1 %v436_v20 }
  0x12   :  { %802 = vmatmul.mubr.msk.bf16.gmra.mrb[4].mxu0 %vm55_vm1, %v873_v14  ;;  %814 = vmatmul.mubr.msk.bf16.gmra.mrb[4].mxu1 %vm55_vm1, %v874_v16 }
  0x13   :  { %821 = vmatprep.mubr.msk.bf16.mxu0 %vm55_vm1, %v877_v19  ;;  %833 = vmatprep.mubr.msk.bf16.mxu1 %vm55_vm1, %v879_v21 }
  0x1a   :  { %822 = vmatmul.mubr.msk.bf16.vlgmr.msra.gmra.mrb[8].mxu0 %vm55_vm1, %v878_v22  ;;  %834 = vmatmul.mubr.msk.bf16.vlgmr.msra.gmra.mrb[8].mxu1 %vm55_vm1, %v880_v23 }
  0x1b   :  { %825 = vmatprep.mubr.msk.bf16.mxu0 %vm55_vm1, %v881_v24  ;;  %837 = vmatprep.mubr.msk.bf16.mxu1 %vm55_vm1, %v883_v25 }
  0x22   :  { %826 = vmatmul.mubr.msk.bf16.gmra.mrb[12].mxu0 %vm55_vm1, %v882_v26  ;;  %838 = vmatmul.mubr.msk.bf16.gmra.mrb[12].mxu1 %vm55_vm1, %v884_v27  ;;  %vm672_vm1 = vcmask 523264  }
  0xdd   :  { %v1021_v28 = vpop.f32.mrb[0].mxu0  ;;  %v1025_v30 = vpop.f32.mrb[0].mxu1 }
  0xde   :  { %v1023_v29 = vpop.f32.mrb[1].mxu0  ;;  %v228_v32 = vpop.f32.mrb[1].mxu1 }
  0xdf   :  { %v1027_v31 = vpop.f32.mrb[2].mxu0  ;;  %v1029_v34 = vpop.f32.mrb[2].mxu1 }
  0xe0   :  { %v109_v33 = vpop.f32.mrb[3].mxu0  ;;  %v231_v35 = vpop.f32.mrb[3].mxu1 }
  0xe5   :  { %v803_v36 = vpop.f32.mrb[4].mxu0  ;;  %v815_v37 = vpop.f32.mrb[4].mxu1 }
  0xe6   :  { %622 = vrot.lane.b32.xlu1 %v803_v36, %s889_s0  ;;  %v1032_v38 = vpop.f32.mrb[5].mxu0  ;;  %626 = vrot.lane.b32.xlu0 %v815_v37, %s890_s5  ;;  %v244_v40 = vpop.f32.mrb[5].mxu1 }
  0xe7   :  { %v804_v39 = vpop.f32.mrb[6].mxu0  ;;  %v816_v42 = vpop.f32.mrb[6].mxu1 }
  0xe8   :  { %v125_v41 = vpop.f32.mrb[7].mxu0  ;;  %v247_v43 = vpop.f32.mrb[7].mxu1 }
  0xea   :  { %606 = vrot.lane.b32.xlu1 %v125_v41, %s891_s6  ;;  %594 = vrot.lane.b32.xlu0 %v244_v40, %s892_s7 }
  0xed   :  { %v823_v44 = vpop.f32.mrb[8].mxu0  ;;  %v835_v46 = vpop.f32.mrb[8].mxu1 }
  0xee   :  { %v350_v45 = vpop.f32.mrb[9].mxu0  ;;  %610 = vrot.lane.b32.xlu0 %v247_v43, %s893_s8  ;;  %v472_v48 = vpop.f32.mrb[9].mxu1 }
  0xef   :  { %v824_v47 = vpop.f32.mrb[10].mxu0  ;;  %v836_v50 = vpop.f32.mrb[10].mxu1 }
  0xf0   :  { %v353_v49 = vpop.f32.mrb[11].mxu0  ;;  %v475_v51 = vpop.f32.mrb[11].mxu1 }
  0xf5   :  { %v827_v52 = vpop.f32.mrb[12].mxu0  ;;  %v839_v53 = vpop.f32.mrb[12].mxu1 }
  0xf6   :  { %630 = vrot.lane.b32.xlu1 %v827_v52, %s894_s9  ;;  %v366_v54 = vpop.f32.mrb[13].mxu0  ;;  %v488_v55 = vpop.f32.mrb[13].mxu1 }
  0xf7   :  { %598 = vrot.lane.b32.xlu0 %v366_v54, %s895_s10  ;;  %v828_v56 = vpop.f32.mrb[14].mxu0  ;;  %v840_v58 = vpop.f32.mrb[14].mxu1 }
  0xf8   :  { %v369_v57 = vpop.f32.mrb[15].mxu0  ;;  %v491_v59 = vpop.f32.mrb[15].mxu1 }
  0xfa   :  { %602 = vrot.lane.b32.xlu1 %v488_v55, %s896_s11 }
  0xfb   :  { %634 = vrot.lane.b32.xlu0 %v839_v53, %s897_s12 }
  0xfe   :  { %614 = vrot.lane.b32.xlu1 %v369_v57, %s898_s13 }
  0xff   :  { %618 = vrot.lane.b32.xlu0 %v491_v59, %s899_s14 }
 0x102   :  { %638 = vrot.lane.b32.xlu1 %v804_v39, %s900_s15 }
 0x103   :  { %642 = vrot.lane.b32.xlu0 %v816_v42, %s901_s16 }
 0x106   :  { %646 = vrot.lane.b32.xlu1 %v828_v56, %s902_s17  ;;  %v767_v56 = vld [vmem:[%s1089_s2] ss:$0 sm:$0xff] }
 0x107   :  { %650 = vrot.lane.b32.xlu0 %v840_v58, %s903_s18 }
 0x10a   :  { %504 = vrot.lane.b32.xlu1 %v228_v32, %s892_s7 }
 0x10b   :  { %508 = vrot.lane.b32.xlu0 %v350_v45, %s895_s10 }
 0x10e   :  { %512 = vrot.lane.b32.xlu1 %v472_v48, %s896_s11 }
 0x10f   :  { %516 = vrot.lane.b32.xlu0 %v109_v33, %s891_s6 }
 0x112   :  { %520 = vrot.lane.b32.xlu1 %v231_v35, %s893_s8 }
 0x113   :  { %524 = vrot.lane.b32.xlu0 %v353_v49, %s898_s13 }
 0x116   :  { %528 = vrot.lane.b32.xlu1 %v475_v51, %s899_s14 }
 0x117   :  { %532 = vrot.lane.b32.xlu0 %v1021_v28, %s889_s0 }
 0x11a   :  { %536 = vrot.lane.b32.xlu1 %v1025_v30, %s890_s5 }
 0x11b   :  { %540 = vrot.lane.b32.xlu0 %v823_v44, %s894_s9 }
 0x11e   :  { %544 = vrot.lane.b32.xlu1 %v835_v46, %s897_s12 }
 0x11f   :  { %548 = vrot.lane.b32.xlu0 %v1027_v31, %s900_s15 }
 0x122   :  { %552 = vrot.lane.b32.xlu1 %v1029_v34, %s901_s16 }
 0x123   :  { %556 = vrot.lane.b32.xlu0 %v824_v47, %s902_s17 }
 0x126   :  { %560 = vrot.lane.b32.xlu1 %v836_v50, %s903_s18 }
 0x158   :  { %v627_v60 = vpop.permute.xlu0 %626  ;;  %v623_v61 = vpop.permute.xlu1 %622 }
 0x15c   :  { %v595_v62 = vpop.permute.xlu0 %594  ;;  %v607_v63 = vpop.permute.xlu1 %606 }
 0x15d   :  { %v653_v3 = vsel %vm563_vm2, %v1032_v38, %v595_v62 }
 0x160   :  { %v611_v0 = vpop.permute.xlu0 %610 }
 0x168   :  { %v631_v1 = vpop.permute.xlu1 %630 }
 0x169   :  { %v599_v2 = vpop.permute.xlu0 %598 }
 0x16a   :  { %v654_v4 = vsel %vm565_vm3, %v653_v3, %v599_v2 }
 0x16c   :  { %v603_v5 = vpop.permute.xlu1 %602 }
 0x16d   :  { %v655_v6 = vsel %vm567_vm4, %v654_v4, %v603_v5  ;;  %v635_v7 = vpop.permute.xlu0 %634 }
 0x16e   :  { %v656_v8 = vsel %vm569_vm5, %v655_v6, %v607_v63 }
 0x16f   :  { %v657_v9 = vsel %vm571_vm6, %v656_v8, %v611_v0 }
 0x170   :  { %v615_v10 = vpop.permute.xlu1 %614 }
 0x171   :  { %v658_v11 = vsel %vm573_vm7, %v657_v9, %v615_v10  ;;  %v619_v12 = vpop.permute.xlu0 %618 }
 0x172   :  { %v659_v13 = vsel %vm575_vm8, %v658_v11, %v619_v12 }
 0x173   :  { %v660_v14 = vsel %vm577_vm9, %v659_v13, %v623_v61 }
 0x174   :  { %v661_v15 = vsel %vm579_vm10, %v660_v14, %v627_v60  ;;  %v639_v16 = vpop.permute.xlu1 %638 }
 0x175   :  { %v662_v17 = vsel %vm581_vm11, %v661_v15, %v631_v1  ;;  %v643_v18 = vpop.permute.xlu0 %642 }
 0x176   :  { %v663_v19 = vsel %vm583_vm12, %v662_v17, %v635_v7 }
 0x177   :  { %v664_v20 = vsel %vm585_vm13, %v663_v19, %v639_v16 }
 0x178   :  { %v665_v21 = vsel %vm587_vm14, %v664_v20, %v643_v18  ;;  %v647_v22 = vpop.permute.xlu1 %646 }
 0x179   :  { %v666_v23 = vsel %vm589_vm15, %v665_v21, %v647_v22  ;;  %v651_v24 = vpop.permute.xlu0 %650 }
 0x17a   :  { %v667_v25 = vsel %vm591_vm0, %v666_v23, %v651_v24 }
 0x17b   :  { %669 = vrot.lane.b32.xlu0 %v667_v25, %s904_s19 }
 0x17c   :  { %v505_v26 = vpop.permute.xlu1 %504 }
 0x17d   :  { %v564_v27 = vsel %vm563_vm2, %v1023_v29, %v505_v26  ;;  %v509_v28 = vpop.permute.xlu0 %508 }
 0x17e   :  { %v566_v30 = vsel %vm565_vm3, %v564_v27, %v509_v28 }
 0x180   :  { %v513_v31 = vpop.permute.xlu1 %512 }
 0x181   :  { %v568_v32 = vsel %vm567_vm4, %v566_v30, %v513_v31  ;;  %v517_v33 = vpop.permute.xlu0 %516 }
 0x182   :  { %v570_v34 = vsel %vm569_vm5, %v568_v32, %v517_v33 }
 0x184   :  { %v521_v35 = vpop.permute.xlu1 %520 }
 0x185   :  { %v572_v36 = vsel %vm571_vm6, %v570_v34, %v521_v35  ;;  %v525_v37 = vpop.permute.xlu0 %524 }
 0x186   :  { %v574_v38 = vsel %vm573_vm7, %v572_v36, %v525_v37 }
 0x188   :  { %v529_v39 = vpop.permute.xlu1 %528 }
 0x189   :  { %v576_v40 = vsel %vm575_vm8, %v574_v38, %v529_v39  ;;  %v533_v41 = vpop.permute.xlu0 %532 }
 0x18a   :  { %v578_v29 = vsel %vm577_vm9, %v576_v40, %v533_v41 }
 0x18c   :  { %v537_v42 = vpop.permute.xlu1 %536 }
 0x18d   :  { %v580_v43 = vsel %vm579_vm10, %v578_v29, %v537_v42  ;;  %v541_v44 = vpop.permute.xlu0 %540 }
 0x18e   :  { %v582_v45 = vsel %vm581_vm11, %v580_v43, %v541_v44 }
 0x190   :  { %v545_v46 = vpop.permute.xlu1 %544 }
 0x191   :  { %v584_v47 = vsel %vm583_vm12, %v582_v45, %v545_v46  ;;  %v549_v48 = vpop.permute.xlu0 %548 }
 0x192   :  { %v586_v49 = vsel %vm585_vm13, %v584_v47, %v549_v48 }
 0x194   :  { %v553_v50 = vpop.permute.xlu1 %552 }
 0x195   :  { %v588_v51 = vsel %vm587_vm14, %v586_v49, %v553_v50  ;;  %v557_v52 = vpop.permute.xlu0 %556 }
 0x196   :  { %v590_v53 = vsel %vm589_vm15, %v588_v51, %v557_v52 }
 0x198   :  { %v561_v54 = vpop.permute.xlu1 %560 }
 0x199   :  { %v592_v55 = vsel %vm591_vm0, %v590_v53, %v561_v54 }
 0x1ed   :  { %v670_v57 = vpop.permute.xlu0 %669 }
 0x1ee   :  { %v673_v58 = vsel %vm672_vm1, %v592_v55, %v670_v57 }
 0x1ef   :  { %v681_v59 = vadd.f32 %v767_v56, %v673_v58 }
 0x1f1   :  { %v768_v60 = vmul.f32 -1.442695, %v681_v59 }
 0x1f3   :  { %885 = vpow2.f32 %v768_v60 }
 0x1fd   :  { %v886_v61 = vpop.eup %885 }
 0x1fe   :  { %v685_v62 = vadd.f32 1.0, %v886_v61 }
 0x200   :  { %887 = vrcp.f32 %v685_v62 }
 0x20a   :  { %v888_v63 = vpop.eup %887 }
 0x20b   :  { %v688_v0 = vmul.f32 %v888_v63, %v681_v59 }
 0x20d   :  { %689 = vst [vmem:[%s1090_s3] sm:$0xff] %v688_v0 }

// kernel: _lambda_.32
= control target key start
LH: loop header
LB: loop body
LE: loop exit
PB: predicated region body
PF: predicated region fallthrough
CT: control target
= control target key end

     0   :  { %vm57_vm0 = vcmask 1043456   ;;  %vm44_vm1 = vcmask 64512   ;;  %s220_s21 = smov 32   ;;  %s221_s22 = smov 64   ;;  %vm154_vm2 = vcmask 130048   ;;  %vm156_vm3 = vcmask 261120   ;;  %s268_s1 = inlined_call_operand.vmem [shape: bf16[1,8,16], index: 1, kind: input, shape index: {}]   ;;  %s269_s0 = inlined_call_operand.vmem [shape: bf16[1,64,8], index: 0, kind: input, shape index: {}]   ;;  %s270_s2 = inlined_call_operand.vmem [shape: f32[1,128], index: 2, kind: input, shape index: {}]   ;;  %s271_s3 = inlined_call_operand.vmem [shape: f32[8,128], index: 3, kind: output, shape index: {}]  }
   0x1   :  { %v23_v0 = vld [vmem:[%s268_s1] sm:$0xf]  ;;  %v217_v3 = vld [vmem:[%s269_s0 + $0x10] sm:$0xff]   ;;  %v218_v4 = vld [vmem:[%s269_s0 + $0x8] sm:$0xff]   ;;  %s222_s23 = smov 16   ;;  %s223_s24 = smov 48  }
   0x2   :  { %207 = vmatprep.subr.msk.bf16.mxu0 %vm57_vm0, %v23_v0  ;;  %208 = vmatprep.subr.msk.bf16.mxu1 %vm57_vm0, %v23_v0  ;;  %v59_v1 = vsel %vm57_vm0, %v23_v0, 0  ;;  %v216_v2 = vld [vmem:[%s269_s0] sm:$0xff]   ;;  %v219_v5 = vld [vmem:[%s269_s0 + $0x18] sm:$0xff]   ;;  %s224_s25 = smov 80   ;;  %s225_s0 = smov 96   ;;  %vm158_vm4 = vcmask 392192  }
   0x3   :  { %196 = vmatpush3.bf16.msra.mxu0 %v59_v1  ;;  %206 = vmatpush3.bf16.msra.mxu1 %v59_v1  ;;  %s226_s26 = smov 112   ;;  %vm160_vm5 = vcmask 523264   ;;  %vm162_vm6 = vcmask 654336   ;;  %vm164_vm7 = vcmask 785408   ;;  %vm166_vm8 = vcmask 916480  }
   0x4   :  { %197 = vmatprep.mubr.msk.bf16.mxu0 %vm44_vm1, %v216_v2  ;;  %201 = vmatprep.mubr.msk.bf16.mxu1 %vm44_vm1, %v217_v3  ;;  %v189_v25 = vld [vmem:[%s270_s2] ss:$0 sm:$0xff] }
   0x6   :  { %198 = vmatmul.mubr.msk.bf16.vlgmr.msra.gmra.mrb[0].mxu0 %vm44_vm1, %v218_v4  ;;  %202 = vmatmul.mubr.msk.bf16.vlgmr.msra.gmra.mrb[0].mxu1 %vm44_vm1, %v219_v5 }
  0xd9   :  { %v199_v6 = vpop.f32.mrb[0].mxu0  ;;  %v203_v7 = vpop.f32.mrb[0].mxu1 }
  0xda   :  { %131 = vrot.lane.b32.xlu0 %v199_v6, %s220_s21  ;;  %v95_v8 = vpop.f32.mrb[1].mxu0  ;;  %v111_v9 = vpop.f32.mrb[1].mxu1 }
  0xdb   :  { %v200_v10 = vpop.f32.mrb[2].mxu0  ;;  %139 = vrot.lane.b32.xlu1 %v111_v9, %s221_s22  ;;  %v204_v11 = vpop.f32.mrb[2].mxu1 }
  0xdc   :  { %v98_v12 = vpop.f32.mrb[3].mxu0  ;;  %v114_v13 = vpop.f32.mrb[3].mxu1 }
  0xde   :  { %127 = vrot.lane.b32.xlu0 %v98_v12, %s222_s23 }
  0xdf   :  { %135 = vrot.lane.b32.xlu1 %v200_v10, %s223_s24 }
  0xe2   :  { %143 = vrot.lane.b32.xlu0 %v114_v13, %s224_s25 }
  0xe3   :  { %147 = vrot.lane.b32.xlu1 %v203_v7, %s225_s0 }
  0xe6   :  { %151 = vrot.lane.b32.xlu0 %v204_v11, %s226_s26 }
 0x14c   :  { %v132_v14 = vpop.permute.xlu0 %131 }
 0x14d   :  { %v140_v15 = vpop.permute.xlu1 %139 }
 0x150   :  { %v128_v16 = vpop.permute.xlu0 %127 }
 0x151   :  { %v155_v17 = vsel %vm154_vm2, %v95_v8, %v128_v16  ;;  %v136_v18 = vpop.permute.xlu1 %135 }
 0x152   :  { %v157_v19 = vsel %vm156_vm3, %v155_v17, %v132_v14 }
 0x153   :  { %v159_v20 = vsel %vm158_vm4, %v157_v19, %v136_v18 }
 0x154   :  { %v161_v21 = vsel %vm160_vm5, %v159_v20, %v140_v15  ;;  %v144_v22 = vpop.permute.xlu0 %143 }
 0x155   :  { %v163_v23 = vsel %vm162_vm6, %v161_v21, %v144_v22  ;;  %v148_v24 = vpop.permute.xlu1 %147 }
 0x156   :  { %v165_v26 = vsel %vm164_vm7, %v163_v23, %v148_v24 }
 0x158   :  { %v152_v27 = vpop.permute.xlu0 %151 }
 0x159   :  { %v167_v28 = vsel %vm166_vm8, %v165_v26, %v152_v27 }
 0x15a   :  { %v175_v29 = vadd.f32 %v189_v25, %v167_v28 }
 0x15c   :  { %176 = vst [vmem:[%s271_s3] sm:$0xff] %v175_v29 }

// kernel: _lambda_.33
= control target key start
LH: loop header
LB: loop body
LE: loop exit
PB: predicated region body
PF: predicated region fallthrough
CT: control target
= control target key end

     0   :  { %vm79_vm0 = vcmask 1041408   ;;  %vm66_vm1 = vcmask 293888   ;;  %s952_s18 = smov 36   ;;  %s953_s19 = smov 16   ;;  %vm598_vm2 = vcmask 31744   ;;  %vm600_vm3 = vcmask 64512   ;;  %s1169_s1 = inlined_call_operand.vmem [shape: bf16[4,36,4], index: 1, kind: input, shape index: {}]   ;;  %s1170_s0 = inlined_call_operand.vmem [shape: bf16[4,64,36], index: 0, kind: input, shape index: {}]   ;;  %s1171_s2 = inlined_call_operand.vmem [shape: f32[1,128], index: 2, kind: input, shape index: {}]   ;;  %s1172_s3 = inlined_call_operand.vmem [shape: f32[8,128], index: 3, kind: input, shape index: {}]   ;;  %s1173_s4 = inlined_call_operand.vmem [shape: f32[8,128], index: 4, kind: output, shape index: {}]  }
   0x1   :  { %v919_v0 = vld [vmem:[%s1169_s1] sm:$0xff]   ;;  %v920_v1 = vld [vmem:[%s1169_s1 + $0x14] sm:$0xff]   ;;  %v921_v2 = vld [vmem:[%s1169_s1 + $0x8] sm:$0xff]   ;;  %s954_s20 = smov 4   ;;  %s955_s21 = smov 20   ;;  %vm602_vm4 = vcmask 97280  }
   0x2   :  { %843 = vmatprep.subr.bf16.mxu0 %v919_v0  ;;  %857 = vmatprep.subr.bf16.mxu1 %v920_v1  ;;  %v922_v3 = vld [vmem:[%s1169_s1 + $0x1c] sm:$0xff]   ;;  %v923_v4 = vld [vmem:[%s1169_s1 + $0x10] ss:$0 sps:$4 sm:$0x33]   ;;  %v927_v10 = vld [vmem:[%s1170_s0 + $0x8] sm:$0xff]   ;;  %s956_s22 = smov 40  }
   0x3   :  { %844 = vmatpush3.bf16.msra.mxu0 %v919_v0  ;;  %858 = vmatpush3.bf16.msra.mxu1 %v920_v1  ;;  %v925_v5 = vld [vmem:[%s1170_s0] sm:$0xff]   ;;  %v81_v8 = vsel %vm79_vm0, %v923_v4, 0  ;;  %v928_v11 = vld [vmem:[%s1170_s0 + $0x28] sm:$0xff]   ;;  %v931_v14 = vld [vmem:[%s1169_s1 + $0x30] sm:$0xff]   ;;  %s957_s23 = smov 8   ;;  %s958_s24 = smov 12  }
   0x4   :  { %845 = vmatprep.subr.bf16.mxu0 %v921_v2  ;;  %859 = vmatprep.subr.bf16.mxu1 %v922_v3  ;;  %v924_v6 = vld [vmem:[%s1169_s1 + $0x24] ss:$0 sps:$4 sm:$0x33]   ;;  %v929_v12 = vld [vmem:[%s1169_s1 + $0x28] sm:$0xff]   ;;  %v930_v13 = vld [vmem:[%s1169_s1 + $0x3c] sm:$0xff]   ;;  %s959_s25 = smov 44  }
   0x5   :  { %v926_v7 = vld [vmem:[%s1170_s0 + $0x20] sm:$0xff]   ;;  %849 = vmatprep.mubr.msk.bf16.mxu0 %vm66_vm1, %v925_v5  ;;  %v211_v9 = vsel %vm79_vm0, %v924_v6, 0  ;;  %v932_v15 = vld [vmem:[%s1170_s0 + $0x10] sm:$0xff]   ;;  %v934_v17 = vld [vmem:[%s1170_s0 + $0x18] sm:$0xff]   ;;  %s960_s26 = smov 24   ;;  %s961_s27 = smov 28  }
   0x6   :  { %863 = vmatprep.mubr.msk.bf16.mxu1 %vm66_vm1, %v926_v7  ;;  %v933_v16 = vld [vmem:[%s1170_s0 + $0x30] sm:$0xff]   ;;  %v936_v18 = vld [vmem:[%s1169_s1 + $0x44] sm:$0xff]   ;;  %v937_v19 = vld [vmem:[%s1169_s1 + $0x38] ss:$0 sps:$4 sm:$0x33]   ;;  %s962_s28 = smov 48  }
   0x7   :  { %846 = vmatpush3.bf16.msra.mxu0 %v921_v2  ;;  %860 = vmatpush3.bf16.msra.mxu1 %v922_v3  ;;  %v935_v20 = vld [vmem:[%s1170_s0 + $0x38] sm:$0xff]   ;;  %v938_v21 = vld [vmem:[%s1169_s1 + $0x4c] ss:$0 sps:$4 sm:$0x33]   ;;  %v341_v22 = vsel %vm79_vm0, %v937_v19, 0  ;;  %v939_v23 = vld [vmem:[%s1170_s0 + $0x40] sm:$0xff]  }
   0x8   :  { %899 = vmatprep.subr.msk.bf16.mxu0 %vm79_vm0, %v923_v4  ;;  %900 = vmatprep.subr.msk.bf16.mxu1 %vm79_vm0, %v924_v6  ;;  %v471_v24 = vsel %vm79_vm0, %v938_v21, 0  ;;  %v941_v25 = vld [vmem:[%s1170_s0 + $0x60] sm:$0xff]   ;;  %v940_v26 = vld [vmem:[%s1170_s0 + $0x48] sm:$0xff]   ;;  %v943_v28 = vld [vmem:[%s1170_s0 + $0x50] sm:$0xff]   ;;  %s963_s29 = smov 52   ;;  %s964_s30 = smov 56  }
   0x9   :  { %v942_v27 = vld [vmem:[%s1170_s0 + $0x68] sm:$0xff]   ;;  %v945_v29 = vld [vmem:[%s1170_s0 + $0x70] sm:$0xff]   ;;  %v944_v30 = vld [vmem:[%s1170_s0 + $0x58] sm:$0xff]   ;;  %s965_s5 = smov 60   ;;  %vm604_vm5 = vcmask 130048   ;;  %vm606_vm6 = vcmask 162816  }
   0xa   :  { %v946_v31 = vld [vmem:[%s1170_s0 + $0x78] sm:$0xff]   ;;  %s951_s0 = smov 32   ;;  %vm608_vm7 = vcmask 195584   ;;  %vm610_vm8 = vcmask 228352   ;;  %vm612_vm9 = vcmask 261120   ;;  %vm615_vm10 = vcmask 326656  }
   0xb   :  { %848 = vmatpush3.bf16.msra.mxu0 %v81_v8  ;;  %862 = vmatpush3.bf16.msra.mxu1 %v211_v9  ;;  %vm617_vm11 = vcmask 359424   ;;  %vm619_vm12 = vcmask 392192   ;;  %vm621_vm13 = vcmask 424960   ;;  %vm623_vm14 = vcmask 457728   ;;  %s966_s6 = smov 64  }
   0xc   :  { %871 = vmatprep.subr.bf16.mxu0 %v929_v12  ;;  %885 = vmatprep.subr.bf16.mxu1 %v930_v13  ;;  %vm625_vm15 = vcmask 490496  }
   0xe   :  { %850 = vmatmul.mubr.msk.bf16.vlgmr.msra.gmra.mrb[0].mxu0 %vm66_vm1, %v927_v10  ;;  %864 = vmatmul.mubr.msk.bf16.vlgmr.msra.gmra.mrb[0].mxu1 %vm66_vm1, %v928_v11 }
   0xf   :  { %872 = vmatpush3.bf16.msra.mxu0 %v929_v12  ;;  %886 = vmatpush3.bf16.msra.mxu1 %v930_v13 }
  0x10   :  { %873 = vmatprep.subr.bf16.mxu0 %v931_v14  ;;  %853 = vmatprep.mubr.msk.bf16.mxu0 %vm66_vm1, %v932_v15 }
  0x11   :  { %867 = vmatprep.mubr.msk.bf16.mxu1 %vm66_vm1, %v933_v16  ;;  %887 = vmatprep.subr.bf16.mxu1 %v936_v18 }
  0x13   :  { %874 = vmatpush3.bf16.msra.mxu0 %v931_v14  ;;  %888 = vmatpush3.bf16.msra.mxu1 %v936_v18 }
  0x14   :  { %901 = vmatprep.subr.msk.bf16.mxu0 %vm79_vm0, %v937_v19  ;;  %902 = vmatprep.subr.msk.bf16.mxu1 %vm79_vm0, %v938_v21  ;;  %vm706_vm0 = vcmask 523264  }
  0x16   :  { %854 = vmatmul.mubr.msk.bf16.gmra.mrb[4].mxu0 %vm66_vm1, %v934_v17  ;;  %868 = vmatmul.mubr.msk.bf16.gmra.mrb[4].mxu1 %vm66_vm1, %v935_v20 }
  0x17   :  { %876 = vmatpush3.bf16.msra.mxu0 %v341_v22  ;;  %890 = vmatpush3.bf16.msra.mxu1 %v471_v24 }
  0x18   :  { %877 = vmatprep.mubr.msk.bf16.mxu0 %vm66_vm1, %v939_v23  ;;  %891 = vmatprep.mubr.msk.bf16.mxu1 %vm66_vm1, %v941_v25 }
  0x1e   :  { %878 = vmatmul.mubr.msk.bf16.vlgmr.msra.gmra.mrb[8].mxu0 %vm66_vm1, %v940_v26  ;;  %892 = vmatmul.mubr.msk.bf16.vlgmr.msra.gmra.mrb[8].mxu1 %vm66_vm1, %v942_v27 }
  0x1f   :  { %881 = vmatprep.mubr.msk.bf16.mxu0 %vm66_vm1, %v943_v28  ;;  %895 = vmatprep.mubr.msk.bf16.mxu1 %vm66_vm1, %v945_v29 }
  0x26   :  { %882 = vmatmul.mubr.msk.bf16.gmra.mrb[12].mxu0 %vm66_vm1, %v944_v30  ;;  %896 = vmatmul.mubr.msk.bf16.gmra.mrb[12].mxu1 %vm66_vm1, %v946_v31 }
  0xe1   :  { %v1100_v32 = vpop.f32.mrb[0].mxu0  ;;  %v1104_v34 = vpop.f32.mrb[0].mxu1 }
  0xe2   :  { %v1102_v33 = vpop.f32.mrb[1].mxu0  ;;  %v247_v36 = vpop.f32.mrb[1].mxu1 }
  0xe3   :  { %v1106_v35 = vpop.f32.mrb[2].mxu0  ;;  %v1108_v38 = vpop.f32.mrb[2].mxu1 }
  0xe4   :  { %v120_v37 = vpop.f32.mrb[3].mxu0  ;;  %v250_v39 = vpop.f32.mrb[3].mxu1 }
  0xe9   :  { %v855_v40 = vpop.f32.mrb[4].mxu0  ;;  %v869_v41 = vpop.f32.mrb[4].mxu1 }
  0xea   :  { %656 = vrot.lane.b32.xlu1 %v855_v40, %s951_s0  ;;  %v1111_v42 = vpop.f32.mrb[5].mxu0  ;;  %660 = vrot.lane.b32.xlu0 %v869_v41, %s952_s18  ;;  %v263_v44 = vpop.f32.mrb[5].mxu1 }
  0xeb   :  { %v856_v43 = vpop.f32.mrb[6].mxu0  ;;  %v870_v46 = vpop.f32.mrb[6].mxu1 }
  0xec   :  { %v136_v45 = vpop.f32.mrb[7].mxu0  ;;  %v266_v47 = vpop.f32.mrb[7].mxu1 }
  0xee   :  { %640 = vrot.lane.b32.xlu1 %v136_v45, %s953_s19  ;;  %628 = vrot.lane.b32.xlu0 %v263_v44, %s954_s20 }
  0xf1   :  { %v879_v48 = vpop.f32.mrb[8].mxu0  ;;  %v893_v50 = vpop.f32.mrb[8].mxu1 }
  0xf2   :  { %v377_v49 = vpop.f32.mrb[9].mxu0  ;;  %644 = vrot.lane.b32.xlu0 %v266_v47, %s955_s21  ;;  %v507_v52 = vpop.f32.mrb[9].mxu1 }
  0xf3   :  { %v880_v51 = vpop.f32.mrb[10].mxu0  ;;  %v894_v54 = vpop.f32.mrb[10].mxu1 }
  0xf4   :  { %v380_v53 = vpop.f32.mrb[11].mxu0  ;;  %v510_v55 = vpop.f32.mrb[11].mxu1 }
  0xf9   :  { %v883_v56 = vpop.f32.mrb[12].mxu0  ;;  %v897_v57 = vpop.f32.mrb[12].mxu1 }
  0xfa   :  { %664 = vrot.lane.b32.xlu1 %v883_v56, %s956_s22  ;;  %v393_v58 = vpop.f32.mrb[13].mxu0  ;;  %v523_v59 = vpop.f32.mrb[13].mxu1 }
  0xfb   :  { %632 = vrot.lane.b32.xlu0 %v393_v58, %s957_s23  ;;  %v884_v60 = vpop.f32.mrb[14].mxu0  ;;  %v898_v62 = vpop.f32.mrb[14].mxu1 }
  0xfc   :  { %v396_v61 = vpop.f32.mrb[15].mxu0  ;;  %v526_v63 = vpop.f32.mrb[15].mxu1 }
  0xfe   :  { %636 = vrot.lane.b32.xlu1 %v523_v59, %s958_s24 }
  0xff   :  { %668 = vrot.lane.b32.xlu0 %v897_v57, %s959_s25 }
 0x102   :  { %648 = vrot.lane.b32.xlu1 %v396_v61, %s960_s26 }
 0x103   :  { %652 = vrot.lane.b32.xlu0 %v526_v63, %s961_s27 }
 0x106   :  { %672 = vrot.lane.b32.xlu1 %v856_v43, %s962_s28 }
 0x107   :  { %676 = vrot.lane.b32.xlu0 %v870_v46, %s963_s29 }
 0x10a   :  { %680 = vrot.lane.b32.xlu1 %v884_v60, %s964_s30  ;;  %v813_v60 = vld [vmem:[%s1171_s2] ss:$0 sm:$0xff] }
 0x10b   :  { %684 = vrot.lane.b32.xlu0 %v898_v62, %s965_s5  ;;  %v716_v62 = vld [vmem:[%s1172_s3] sm:$0xff] }
 0x10e   :  { %539 = vrot.lane.b32.xlu1 %v247_v36, %s954_s20 }
 0x10f   :  { %543 = vrot.lane.b32.xlu0 %v377_v49, %s957_s23 }
 0x112   :  { %547 = vrot.lane.b32.xlu1 %v507_v52, %s958_s24 }
 0x113   :  { %551 = vrot.lane.b32.xlu0 %v120_v37, %s953_s19 }
 0x116   :  { %555 = vrot.lane.b32.xlu1 %v250_v39, %s955_s21 }
 0x117   :  { %559 = vrot.lane.b32.xlu0 %v380_v53, %s960_s26 }
 0x11a   :  { %563 = vrot.lane.b32.xlu1 %v510_v55, %s961_s27 }
 0x11b   :  { %567 = vrot.lane.b32.xlu0 %v1100_v32, %s951_s0 }
 0x11e   :  { %571 = vrot.lane.b32.xlu1 %v1104_v34, %s952_s18 }
 0x11f   :  { %575 = vrot.lane.b32.xlu0 %v879_v48, %s956_s22 }
 0x122   :  { %579 = vrot.lane.b32.xlu1 %v893_v50, %s959_s25 }
 0x123   :  { %583 = vrot.lane.b32.xlu0 %v1106_v35, %s962_s28 }
 0x126   :  { %587 = vrot.lane.b32.xlu1 %v1108_v38, %s963_s29 }
 0x127   :  { %591 = vrot.lane.b32.xlu0 %v880_v51, %s964_s30 }
 0x12a   :  { %595 = vrot.lane.b32.xlu1 %v894_v54, %s965_s5 }
 0x15c   :  { %v661_v0 = vpop.permute.xlu0 %660  ;;  %v657_v1 = vpop.permute.xlu1 %656 }
 0x160   :  { %v629_v2 = vpop.permute.xlu0 %628  ;;  %v641_v3 = vpop.permute.xlu1 %640 }
 0x161   :  { %v687_v7 = vsel %vm598_vm2, %v1111_v42, %v629_v2 }
 0x164   :  { %v645_v4 = vpop.permute.xlu0 %644 }
 0x16c   :  { %v665_v5 = vpop.permute.xlu1 %664 }
 0x16d   :  { %v633_v6 = vpop.permute.xlu0 %632 }
 0x16e   :  { %v688_v8 = vsel %vm600_vm3, %v687_v7, %v633_v6 }
 0x170   :  { %v637_v9 = vpop.permute.xlu1 %636 }
 0x171   :  { %v689_v10 = vsel %vm602_vm4, %v688_v8, %v637_v9  ;;  %v669_v11 = vpop.permute.xlu0 %668 }
 0x172   :  { %v690_v12 = vsel %vm604_vm5, %v689_v10, %v641_v3 }
 0x173   :  { %v691_v13 = vsel %vm606_vm6, %v690_v12, %v645_v4 }
 0x174   :  { %v649_v14 = vpop.permute.xlu1 %648 }
 0x175   :  { %v692_v15 = vsel %vm608_vm7, %v691_v13, %v649_v14  ;;  %v653_v16 = vpop.permute.xlu0 %652 }
 0x176   :  { %v693_v17 = vsel %vm610_vm8, %v692_v15, %v653_v16 }
 0x177   :  { %v694_v18 = vsel %vm612_vm9, %v693_v17, %v657_v1 }
 0x178   :  { %v695_v19 = vsel %vm66_vm1, %v694_v18, %v661_v0  ;;  %v673_v20 = vpop.permute.xlu1 %672 }
 0x179   :  { %v696_v21 = vsel %vm615_vm10, %v695_v19, %v665_v5  ;;  %v677_v22 = vpop.permute.xlu0 %676 }
 0x17a   :  { %v697_v23 = vsel %vm617_vm11, %v696_v21, %v669_v11 }
 0x17b   :  { %v698_v24 = vsel %vm619_vm12, %v697_v23, %v673_v20 }
 0x17c   :  { %v699_v25 = vsel %vm621_vm13, %v698_v24, %v677_v22  ;;  %v681_v26 = vpop.permute.xlu1 %680 }
 0x17d   :  { %v700_v27 = vsel %vm623_vm14, %v699_v25, %v681_v26  ;;  %v685_v28 = vpop.permute.xlu0 %684 }
 0x17e   :  { %v701_v29 = vsel %vm625_vm15, %v700_v27, %v685_v28 }
 0x17f   :  { %703 = vrot.lane.b32.xlu0 %v701_v29, %s966_s6 }
 0x180   :  { %v540_v30 = vpop.permute.xlu1 %539 }
 0x181   :  { %v599_v31 = vsel %vm598_vm2, %v1102_v33, %v540_v30  ;;  %v544_v32 = vpop.permute.xlu0 %543 }
 0x182   :  { %v601_v34 = vsel %vm600_vm3, %v599_v31, %v544_v32 }
 0x184   :  { %v548_v35 = vpop.permute.xlu1 %547 }
 0x185   :  { %v603_v36 = vsel %vm602_vm4, %v601_v34, %v548_v35  ;;  %v552_v37 = vpop.permute.xlu0 %551 }
 0x186   :  { %v605_v38 = vsel %vm604_vm5, %v603_v36, %v552_v37 }
 0x188   :  { %v556_v39 = vpop.permute.xlu1 %555 }
 0x189   :  { %v607_v40 = vsel %vm606_vm6, %v605_v38, %v556_v39  ;;  %v560_v41 = vpop.permute.xlu0 %559 }
 0x18a   :  { %v609_v42 = vsel %vm608_vm7, %v607_v40, %v560_v41 }
 0x18c   :  { %v564_v43 = vpop.permute.xlu1 %563 }
 0x18d   :  { %v611_v44 = vsel %vm610_vm8, %v609_v42, %v564_v43  ;;  %v568_v45 = vpop.permute.xlu0 %567 }
 0x18e   :  { %v613_v33 = vsel %vm612_vm9, %v611_v44, %v568_v45 }
 0x190   :  { %v572_v46 = vpop.permute.xlu1 %571 }
 0x191   :  { %v614_v47 = vsel %vm66_vm1, %v613_v33, %v572_v46  ;;  %v576_v48 = vpop.permute.xlu0 %575 }
 0x192   :  { %v616_v49 = vsel %vm615_vm10, %v614_v47, %v576_v48 }
 0x194   :  { %v580_v50 = vpop.permute.xlu1 %579 }
 0x195   :  { %v618_v51 = vsel %vm617_vm11, %v616_v49, %v580_v50  ;;  %v584_v52 = vpop.permute.xlu0 %583 }
 0x196   :  { %v620_v53 = vsel %vm619_vm12, %v618_v51, %v584_v52 }
 0x198   :  { %v588_v54 = vpop.permute.xlu1 %587 }
 0x199   :  { %v622_v55 = vsel %vm621_vm13, %v620_v53, %v588_v54  ;;  %v592_v56 = vpop.permute.xlu0 %591 }
 0x19a   :  { %v624_v57 = vsel %vm623_vm14, %v622_v55, %v592_v56 }
 0x19c   :  { %v596_v58 = vpop.permute.xlu1 %595 }
 0x19d   :  { %v626_v59 = vsel %vm625_vm15, %v624_v57, %v596_v58 }
 0x1f1   :  { %v704_v61 = vpop.permute.xlu0 %703 }
 0x1f2   :  { %v707_v63 = vsel %vm706_vm0, %v626_v59, %v704_v61 }
 0x1f3   :  { %v715_v0 = vadd.f32 %v813_v60, %v707_v63 }
 0x1f5   :  { %v717_v1 = vadd.f32 %v716_v62, %v715_v0 }
 0x1f7   :  { %v814_v2 = vmul.f32 -1.442695, %v717_v1 }
 0x1f9   :  { %947 = vpow2.f32 %v814_v2 }
 0x203   :  { %v948_v3 = vpop.eup %947 }
 0x204   :  { %v721_v4 = vadd.f32 1.0, %v948_v3 }
 0x206   :  { %949 = vrcp.f32 %v721_v4 }
 0x210   :  { %v950_v5 = vpop.eup %949 }
 0x211   :  { %v724_v6 = vmul.f32 %v950_v5, %v717_v1 }
 0x213   :  { %725 = vst [vmem:[%s1173_s4] sm:$0xff] %v724_v6 }

// kernel: _lambda_.34
= control target key start
LH: loop header
LB: loop body
LE: loop exit
PB: predicated region body
PF: predicated region fallthrough
CT: control target
= control target key end

     0   :  { %vm51_vm0 = vcmask 130048   ;;  %s234_s21 = smov 32   ;;  %s235_s22 = smov 64   ;;  %vm158_vm1 = vcmask 261120   ;;  %vm160_vm2 = vcmask 392192   ;;  %vm162_vm3 = vcmask 523264   ;;  %s287_s1 = inlined_call_operand.vmem [shape: bf16[1,16,16], index: 1, kind: input, shape index: {}]   ;;  %s288_s0 = inlined_call_operand.vmem [shape: bf16[1,64,16], index: 0, kind: input, shape index: {}]   ;;  %s289_s2 = inlined_call_operand.vmem [shape: f32[1,128], index: 2, kind: input, shape index: {}]   ;;  %s290_s3 = inlined_call_operand.vmem [shape: f32[8,128], index: 3, kind: output, shape index: {}]  }
   0x1   :  { %v225_v0 = vld [vmem:[%s287_s1] sm:$0xff]   ;;  %v227_v2 = vld [vmem:[%s288_s0 + $0x10] sm:$0xff]   ;;  %v228_v3 = vld [vmem:[%s288_s0 + $0x8] sm:$0xff]   ;;  %s236_s23 = smov 16   ;;  %s237_s24 = smov 48   ;;  %vm164_vm4 = vcmask 654336  }
   0x2   :  { %v226_v1 = vld [vmem:[%s288_s0] sm:$0xff]   ;;  %206 = vmatprep.subr.bf16.mxu0 %v225_v0  ;;  %216 = vmatprep.subr.bf16.mxu1 %v225_v0  ;;  %v229_v4 = vld [vmem:[%s288_s0 + $0x18] sm:$0xff]   ;;  %s238_s0 = smov 80   ;;  %s239_s25 = smov 96   ;;  %vm166_vm5 = vcmask 785408   ;;  %vm168_vm6 = vcmask 916480  }
   0x3   :  { %207 = vmatpush3.bf16.msra.mxu0 %v225_v0  ;;  %217 = vmatpush3.bf16.msra.mxu1 %v225_v0  ;;  %s240_s26 = smov 112   ;;  %v199_v24 = vld [vmem:[%s289_s2] ss:$0 sm:$0xff] }
   0x4   :  { %208 = vmatprep.mubr.msk.bf16.mxu0 %vm51_vm0, %v226_v1  ;;  %212 = vmatprep.mubr.msk.bf16.mxu1 %vm51_vm0, %v227_v2 }
   0x6   :  { %209 = vmatmul.mubr.msk.bf16.vlgmr.msra.gmra.mrb[0].mxu0 %vm51_vm0, %v228_v3  ;;  %213 = vmatmul.mubr.msk.bf16.vlgmr.msra.gmra.mrb[0].mxu1 %vm51_vm0, %v229_v4 }
  0xd9   :  { %v210_v5 = vpop.f32.mrb[0].mxu0  ;;  %v214_v6 = vpop.f32.mrb[0].mxu1 }
  0xda   :  { %v114_v7 = vpop.f32.mrb[1].mxu1  ;;  %134 = vrot.lane.b32.xlu0 %v210_v5, %s234_s21  ;;  %v98_v8 = vpop.f32.mrb[1].mxu0 }
  0xdb   :  { %142 = vrot.lane.b32.xlu1 %v114_v7, %s235_s22  ;;  %v211_v9 = vpop.f32.mrb[2].mxu0  ;;  %v215_v10 = vpop.f32.mrb[2].mxu1 }
  0xdc   :  { %v101_v11 = vpop.f32.mrb[3].mxu0  ;;  %v117_v12 = vpop.f32.mrb[3].mxu1 }
  0xde   :  { %130 = vrot.lane.b32.xlu0 %v101_v11, %s236_s23 }
  0xdf   :  { %138 = vrot.lane.b32.xlu1 %v211_v9, %s237_s24 }
  0xe2   :  { %146 = vrot.lane.b32.xlu0 %v117_v12, %s238_s0 }
  0xe3   :  { %150 = vrot.lane.b32.xlu1 %v214_v6, %s239_s25 }
  0xe6   :  { %154 = vrot.lane.b32.xlu0 %v215_v10, %s240_s26 }
 0x14c   :  { %v135_v13 = vpop.permute.xlu0 %134 }
 0x14d   :  { %v143_v14 = vpop.permute.xlu1 %142 }
 0x150   :  { %v131_v15 = vpop.permute.xlu0 %130 }
 0x151   :  { %v157_v16 = vsel %vm51_vm0, %v98_v8, %v131_v15  ;;  %v139_v17 = vpop.permute.xlu1 %138 }
 0x152   :  { %v159_v18 = vsel %vm158_vm1, %v157_v16, %v135_v13 }
 0x153   :  { %v161_v19 = vsel %vm160_vm2, %v159_v18, %v139_v17 }
 0x154   :  { %v163_v20 = vsel %vm162_vm3, %v161_v19, %v143_v14  ;;  %v147_v21 = vpop.permute.xlu0 %146 }
 0x155   :  { %v165_v22 = vsel %vm164_vm4, %v163_v20, %v147_v21  ;;  %v151_v23 = vpop.permute.xlu1 %150 }
 0x156   :  { %v167_v25 = vsel %vm166_vm5, %v165_v22, %v151_v23 }
 0x158   :  { %v155_v26 = vpop.permute.xlu0 %154 }
 0x159   :  { %v169_v27 = vsel %vm168_vm6, %v167_v25, %v155_v26 }
 0x15a   :  { %v177_v28 = vadd.f32 %v199_v24, %v169_v27 }
 0x15c   :  { %v200_v29 = vmul.f32 -1.442695, %v177_v28 }
 0x15e   :  { %230 = vpow2.f32 %v200_v29 }
 0x168   :  { %v231_v30 = vpop.eup %230 }
 0x169   :  { %v181_v31 = vadd.f32 1.0, %v231_v30 }
 0x16b   :  { %232 = vrcp.f32 %v181_v31 }
 0x175   :  { %v233_v32 = vpop.eup %232 }
 0x176   :  { %v184_v33 = vmul.f32 %v233_v32, %v177_v28 }
 0x178   :  { %185 = vst [vmem:[%s290_s3] sm:$0xff] %v184_v33 }

// kernel: _lambda_.38
= control target key start
LH: loop header
LB: loop body
LE: loop exit
PB: predicated region body
PF: predicated region fallthrough
CT: control target
= control target key end

     0   :  { %vm37_vm0 = vcmask 130048   ;;  %s145_s18 = smov 96   ;;  %s147_s19 = smov 64   ;;  %vm105_vm1 = vcmask 261120   ;;  %vm107_vm2 = vcmask 523264   ;;  %vm109_vm3 = vcmask 785408   ;;  %s183_s1 = inlined_call_operand.vmem [shape: bf16[1,16,32], index: 1, kind: input, shape index: {}]   ;;  %s184_s0 = inlined_call_operand.vmem [shape: bf16[1,32,16], index: 0, kind: input, shape index: {}]   ;;  %s185_s2 = inlined_call_operand.vmem [shape: f32[1,128], index: 2, kind: input, shape index: {}]   ;;  %s186_s3 = inlined_call_operand.vmem [shape: f32[8,128], index: 3, kind: output, shape index: {}]  }
   0x1   :  { %v142_v0 = vld [vmem:[%s183_s1] sm:$0xff]   ;;  %v144_v2 = vld [vmem:[%s184_s0 + $0x8] sm:$0xff]   ;;  %s146_s1 = smov 32  }
   0x2   :  { %v143_v1 = vld [vmem:[%s184_s0] sm:$0xff]   ;;  %133 = vmatprep.subr.bf16.mxu0 %v142_v0 }
   0x3   :  { %134 = vmatpush3.bf16.msra.mxu0 %v142_v0  ;;  %135 = vmatprep.mubr.msk.bf16.mxu0 %vm37_vm0, %v143_v1  ;;  %v129_v9 = vld [vmem:[%s185_s2] ss:$0 sm:$0xff] }
   0x6   :  { %136 = vmatmul.mubr.msk.bf16.vlgmr.msra.gmra.mrb[0].mxu0 %vm37_vm0, %v144_v2 }
  0xd9   :  { %v137_v3 = vpop.f32.mrb[0].mxu0 }
  0xda   :  { %v78_v4 = vpop.f32.mrb[1].mxu0 }
  0xdb   :  { %v138_v5 = vpop.f32.mrb[2].mxu0 }
  0xdc   :  { %102 = vrot.lane.b32.xlu1 %v138_v5, %s145_s18  ;;  %v81_v6 = vpop.f32.mrb[3].mxu0 }
  0xdd   :  { %94 = vrot.lane.b32.xlu0 %v81_v6, %s146_s1 }
  0xe1   :  { %98 = vrot.lane.b32.xlu0 %v137_v3, %s147_s19 }
 0x14e   :  { %v103_v11 = vpop.permute.xlu1 %102 }
 0x14f   :  { %v95_v7 = vpop.permute.xlu0 %94 }
 0x150   :  { %v106_v8 = vsel %vm105_vm1, %v78_v4, %v95_v7 }
 0x153   :  { %v99_v10 = vpop.permute.xlu0 %98 }
 0x154   :  { %v108_v12 = vsel %vm107_vm2, %v106_v8, %v99_v10 }
 0x155   :  { %v110_v13 = vsel %vm109_vm3, %v108_v12, %v103_v11 }
 0x156   :  { %v118_v14 = vadd.f32 %v129_v9, %v110_v13 }
 0x158   :  { %119 = vst [vmem:[%s186_s3] sm:$0xff] %v118_v14 }

// kernel: _lambda_.36
= control target key start
LH: loop header
LB: loop body
LE: loop exit
PB: predicated region body
PF: predicated region fallthrough
CT: control target
= control target key end

     0   :  { %vm76_vm0 = vcmask 1041408   ;;  %vm63_vm1 = vcmask 293888   ;;  %s947_s13 = smov 36   ;;  %s948_s14 = smov 16   ;;  %vm595_vm2 = vcmask 31744   ;;  %vm597_vm3 = vcmask 64512   ;;  %s1156_s1 = inlined_call_operand.vmem [shape: bf16[4,36,4], index: 1, kind: input, shape index: {}]   ;;  %s1157_s0 = inlined_call_operand.vmem [shape: bf16[4,64,36], index: 0, kind: input, shape index: {}]   ;;  %s1158_s2 = inlined_call_operand.vmem [shape: f32[1,128], index: 2, kind: input, shape index: {}]   ;;  %s1159_s3 = inlined_call_operand.vmem [shape: f32[8,128], index: 3, kind: output, shape index: {}]  }
   0x1   :  { %v914_v0 = vld [vmem:[%s1156_s1] sm:$0xff]   ;;  %v915_v1 = vld [vmem:[%s1156_s1 + $0x14] sm:$0xff]   ;;  %v916_v2 = vld [vmem:[%s1156_s1 + $0x8] sm:$0xff]   ;;  %s949_s15 = smov 4   ;;  %s950_s16 = smov 20   ;;  %vm599_vm4 = vcmask 97280  }
   0x2   :  { %838 = vmatprep.subr.bf16.mxu0 %v914_v0  ;;  %852 = vmatprep.subr.bf16.mxu1 %v915_v1  ;;  %v917_v3 = vld [vmem:[%s1156_s1 + $0x1c] sm:$0xff]   ;;  %v918_v4 = vld [vmem:[%s1156_s1 + $0x10] ss:$0 sps:$4 sm:$0x33]   ;;  %v922_v10 = vld [vmem:[%s1157_s0 + $0x8] sm:$0xff]   ;;  %s951_s17 = smov 40  }
   0x3   :  { %839 = vmatpush3.bf16.msra.mxu0 %v914_v0  ;;  %853 = vmatpush3.bf16.msra.mxu1 %v915_v1  ;;  %v920_v5 = vld [vmem:[%s1157_s0] sm:$0xff]   ;;  %v78_v8 = vsel %vm76_vm0, %v918_v4, 0  ;;  %v923_v11 = vld [vmem:[%s1157_s0 + $0x28] sm:$0xff]   ;;  %v926_v14 = vld [vmem:[%s1156_s1 + $0x30] sm:$0xff]   ;;  %s952_s18 = smov 8   ;;  %s953_s19 = smov 12  }
   0x4   :  { %840 = vmatprep.subr.bf16.mxu0 %v916_v2  ;;  %854 = vmatprep.subr.bf16.mxu1 %v917_v3  ;;  %v919_v6 = vld [vmem:[%s1156_s1 + $0x24] ss:$0 sps:$4 sm:$0x33]   ;;  %v924_v12 = vld [vmem:[%s1156_s1 + $0x28] sm:$0xff]   ;;  %v925_v13 = vld [vmem:[%s1156_s1 + $0x3c] sm:$0xff]   ;;  %s954_s20 = smov 44  }
   0x5   :  { %v921_v7 = vld [vmem:[%s1157_s0 + $0x20] sm:$0xff]   ;;  %844 = vmatprep.mubr.msk.bf16.mxu0 %vm63_vm1, %v920_v5  ;;  %v208_v9 = vsel %vm76_vm0, %v919_v6, 0  ;;  %v927_v15 = vld [vmem:[%s1157_s0 + $0x10] sm:$0xff]   ;;  %v929_v17 = vld [vmem:[%s1157_s0 + $0x18] sm:$0xff]   ;;  %s955_s21 = smov 24   ;;  %s956_s22 = smov 28  }
   0x6   :  { %858 = vmatprep.mubr.msk.bf16.mxu1 %vm63_vm1, %v921_v7  ;;  %v928_v16 = vld [vmem:[%s1157_s0 + $0x30] sm:$0xff]   ;;  %v931_v18 = vld [vmem:[%s1156_s1 + $0x44] sm:$0xff]   ;;  %v932_v19 = vld [vmem:[%s1156_s1 + $0x38] ss:$0 sps:$4 sm:$0x33]   ;;  %s957_s23 = smov 48  }
   0x7   :  { %841 = vmatpush3.bf16.msra.mxu0 %v916_v2  ;;  %855 = vmatpush3.bf16.msra.mxu1 %v917_v3  ;;  %v930_v20 = vld [vmem:[%s1157_s0 + $0x38] sm:$0xff]   ;;  %v933_v21 = vld [vmem:[%s1156_s1 + $0x4c] ss:$0 sps:$4 sm:$0x33]   ;;  %v338_v22 = vsel %vm76_vm0, %v932_v19, 0  ;;  %v934_v23 = vld [vmem:[%s1157_s0 + $0x40] sm:$0xff]  }
   0x8   :  { %894 = vmatprep.subr.msk.bf16.mxu0 %vm76_vm0, %v918_v4  ;;  %895 = vmatprep.subr.msk.bf16.mxu1 %vm76_vm0, %v919_v6  ;;  %v468_v24 = vsel %vm76_vm0, %v933_v21, 0  ;;  %v936_v25 = vld [vmem:[%s1157_s0 + $0x60] sm:$0xff]   ;;  %v935_v26 = vld [vmem:[%s1157_s0 + $0x48] sm:$0xff]   ;;  %v938_v28 = vld [vmem:[%s1157_s0 + $0x50] sm:$0xff]   ;;  %s958_s24 = smov 52   ;;  %s959_s25 = smov 56  }
   0x9   :  { %v937_v27 = vld [vmem:[%s1157_s0 + $0x68] sm:$0xff]   ;;  %v940_v29 = vld [vmem:[%s1157_s0 + $0x70] sm:$0xff]   ;;  %v939_v30 = vld [vmem:[%s1157_s0 + $0x58] sm:$0xff]   ;;  %s960_s26 = smov 60   ;;  %vm601_vm5 = vcmask 130048   ;;  %vm603_vm6 = vcmask 162816  }
   0xa   :  { %v941_v31 = vld [vmem:[%s1157_s0 + $0x78] sm:$0xff]   ;;  %s946_s0 = smov 32   ;;  %vm605_vm7 = vcmask 195584   ;;  %vm607_vm8 = vcmask 228352   ;;  %vm609_vm9 = vcmask 261120   ;;  %vm612_vm10 = vcmask 326656  }
   0xb   :  { %843 = vmatpush3.bf16.msra.mxu0 %v78_v8  ;;  %857 = vmatpush3.bf16.msra.mxu1 %v208_v9  ;;  %vm614_vm11 = vcmask 359424   ;;  %vm616_vm12 = vcmask 392192   ;;  %vm618_vm13 = vcmask 424960   ;;  %vm620_vm14 = vcmask 457728   ;;  %s961_s27 = smov 64  }
   0xc   :  { %866 = vmatprep.subr.bf16.mxu0 %v924_v12  ;;  %880 = vmatprep.subr.bf16.mxu1 %v925_v13  ;;  %vm622_vm15 = vcmask 490496  }
   0xe   :  { %845 = vmatmul.mubr.msk.bf16.vlgmr.msra.gmra.mrb[0].mxu0 %vm63_vm1, %v922_v10  ;;  %859 = vmatmul.mubr.msk.bf16.vlgmr.msra.gmra.mrb[0].mxu1 %vm63_vm1, %v923_v11 }
   0xf   :  { %867 = vmatpush3.bf16.msra.mxu0 %v924_v12  ;;  %881 = vmatpush3.bf16.msra.mxu1 %v925_v13 }
  0x10   :  { %868 = vmatprep.subr.bf16.mxu0 %v926_v14  ;;  %848 = vmatprep.mubr.msk.bf16.mxu0 %vm63_vm1, %v927_v15 }
  0x11   :  { %862 = vmatprep.mubr.msk.bf16.mxu1 %vm63_vm1, %v928_v16  ;;  %882 = vmatprep.subr.bf16.mxu1 %v931_v18 }
  0x13   :  { %869 = vmatpush3.bf16.msra.mxu0 %v926_v14  ;;  %883 = vmatpush3.bf16.msra.mxu1 %v931_v18 }
  0x14   :  { %896 = vmatprep.subr.msk.bf16.mxu0 %vm76_vm0, %v932_v19  ;;  %897 = vmatprep.subr.msk.bf16.mxu1 %vm76_vm0, %v933_v21  ;;  %vm703_vm0 = vcmask 523264  }
  0x16   :  { %849 = vmatmul.mubr.msk.bf16.gmra.mrb[4].mxu0 %vm63_vm1, %v929_v17  ;;  %863 = vmatmul.mubr.msk.bf16.gmra.mrb[4].mxu1 %vm63_vm1, %v930_v20 }
  0x17   :  { %871 = vmatpush3.bf16.msra.mxu0 %v338_v22  ;;  %885 = vmatpush3.bf16.msra.mxu1 %v468_v24 }
  0x18   :  { %872 = vmatprep.mubr.msk.bf16.mxu0 %vm63_vm1, %v934_v23  ;;  %886 = vmatprep.mubr.msk.bf16.mxu1 %vm63_vm1, %v936_v25 }
  0x1e   :  { %873 = vmatmul.mubr.msk.bf16.vlgmr.msra.gmra.mrb[8].mxu0 %vm63_vm1, %v935_v26  ;;  %887 = vmatmul.mubr.msk.bf16.vlgmr.msra.gmra.mrb[8].mxu1 %vm63_vm1, %v937_v27 }
  0x1f   :  { %876 = vmatprep.mubr.msk.bf16.mxu0 %vm63_vm1, %v938_v28  ;;  %890 = vmatprep.mubr.msk.bf16.mxu1 %vm63_vm1, %v940_v29 }
  0x26   :  { %877 = vmatmul.mubr.msk.bf16.gmra.mrb[12].mxu0 %vm63_vm1, %v939_v30  ;;  %891 = vmatmul.mubr.msk.bf16.gmra.mrb[12].mxu1 %vm63_vm1, %v941_v31 }
  0xe1   :  { %v1090_v32 = vpop.f32.mrb[0].mxu0  ;;  %v1094_v34 = vpop.f32.mrb[0].mxu1 }
  0xe2   :  { %v1092_v33 = vpop.f32.mrb[1].mxu0  ;;  %v244_v36 = vpop.f32.mrb[1].mxu1 }
  0xe3   :  { %v1096_v35 = vpop.f32.mrb[2].mxu0  ;;  %v1098_v38 = vpop.f32.mrb[2].mxu1 }
  0xe4   :  { %v117_v37 = vpop.f32.mrb[3].mxu0  ;;  %v247_v39 = vpop.f32.mrb[3].mxu1 }
  0xe9   :  { %v850_v40 = vpop.f32.mrb[4].mxu0  ;;  %v864_v41 = vpop.f32.mrb[4].mxu1 }
  0xea   :  { %653 = vrot.lane.b32.xlu1 %v850_v40, %s946_s0  ;;  %v1101_v42 = vpop.f32.mrb[5].mxu0  ;;  %657 = vrot.lane.b32.xlu0 %v864_v41, %s947_s13  ;;  %v260_v44 = vpop.f32.mrb[5].mxu1 }
  0xeb   :  { %v851_v43 = vpop.f32.mrb[6].mxu0  ;;  %v865_v46 = vpop.f32.mrb[6].mxu1 }
  0xec   :  { %v133_v45 = vpop.f32.mrb[7].mxu0  ;;  %v263_v47 = vpop.f32.mrb[7].mxu1 }
  0xee   :  { %637 = vrot.lane.b32.xlu1 %v133_v45, %s948_s14  ;;  %625 = vrot.lane.b32.xlu0 %v260_v44, %s949_s15 }
  0xf1   :  { %v874_v48 = vpop.f32.mrb[8].mxu0  ;;  %v888_v50 = vpop.f32.mrb[8].mxu1 }
  0xf2   :  { %v374_v49 = vpop.f32.mrb[9].mxu0  ;;  %641 = vrot.lane.b32.xlu0 %v263_v47, %s950_s16  ;;  %v504_v52 = vpop.f32.mrb[9].mxu1 }
  0xf3   :  { %v875_v51 = vpop.f32.mrb[10].mxu0  ;;  %v889_v54 = vpop.f32.mrb[10].mxu1 }
  0xf4   :  { %v377_v53 = vpop.f32.mrb[11].mxu0  ;;  %v507_v55 = vpop.f32.mrb[11].mxu1 }
  0xf9   :  { %v878_v56 = vpop.f32.mrb[12].mxu0  ;;  %v892_v57 = vpop.f32.mrb[12].mxu1 }
  0xfa   :  { %661 = vrot.lane.b32.xlu1 %v878_v56, %s951_s17  ;;  %v390_v58 = vpop.f32.mrb[13].mxu0  ;;  %v520_v59 = vpop.f32.mrb[13].mxu1 }
  0xfb   :  { %629 = vrot.lane.b32.xlu0 %v390_v58, %s952_s18  ;;  %v879_v60 = vpop.f32.mrb[14].mxu0  ;;  %v893_v62 = vpop.f32.mrb[14].mxu1 }
  0xfc   :  { %v393_v61 = vpop.f32.mrb[15].mxu0  ;;  %v523_v63 = vpop.f32.mrb[15].mxu1 }
  0xfe   :  { %633 = vrot.lane.b32.xlu1 %v520_v59, %s953_s19 }
  0xff   :  { %665 = vrot.lane.b32.xlu0 %v892_v57, %s954_s20 }
 0x102   :  { %645 = vrot.lane.b32.xlu1 %v393_v61, %s955_s21 }
 0x103   :  { %649 = vrot.lane.b32.xlu0 %v523_v63, %s956_s22 }
 0x106   :  { %669 = vrot.lane.b32.xlu1 %v851_v43, %s957_s23 }
 0x107   :  { %673 = vrot.lane.b32.xlu0 %v865_v46, %s958_s24 }
 0x10a   :  { %677 = vrot.lane.b32.xlu1 %v879_v60, %s959_s25  ;;  %v808_v60 = vld [vmem:[%s1158_s2] ss:$0 sm:$0xff] }
 0x10b   :  { %681 = vrot.lane.b32.xlu0 %v893_v62, %s960_s26 }
 0x10e   :  { %536 = vrot.lane.b32.xlu1 %v244_v36, %s949_s15 }
 0x10f   :  { %540 = vrot.lane.b32.xlu0 %v374_v49, %s952_s18 }
 0x112   :  { %544 = vrot.lane.b32.xlu1 %v504_v52, %s953_s19 }
 0x113   :  { %548 = vrot.lane.b32.xlu0 %v117_v37, %s948_s14 }
 0x116   :  { %552 = vrot.lane.b32.xlu1 %v247_v39, %s950_s16 }
 0x117   :  { %556 = vrot.lane.b32.xlu0 %v377_v53, %s955_s21 }
 0x11a   :  { %560 = vrot.lane.b32.xlu1 %v507_v55, %s956_s22 }
 0x11b   :  { %564 = vrot.lane.b32.xlu0 %v1090_v32, %s946_s0 }
 0x11e   :  { %568 = vrot.lane.b32.xlu1 %v1094_v34, %s947_s13 }
 0x11f   :  { %572 = vrot.lane.b32.xlu0 %v874_v48, %s951_s17 }
 0x122   :  { %576 = vrot.lane.b32.xlu1 %v888_v50, %s954_s20 }
 0x123   :  { %580 = vrot.lane.b32.xlu0 %v1096_v35, %s957_s23 }
 0x126   :  { %584 = vrot.lane.b32.xlu1 %v1098_v38, %s958_s24 }
 0x127   :  { %588 = vrot.lane.b32.xlu0 %v875_v51, %s959_s25 }
 0x12a   :  { %592 = vrot.lane.b32.xlu1 %v889_v54, %s960_s26 }
 0x15c   :  { %v658_v0 = vpop.permute.xlu0 %657  ;;  %v654_v1 = vpop.permute.xlu1 %653 }
 0x160   :  { %v626_v2 = vpop.permute.xlu0 %625  ;;  %v638_v3 = vpop.permute.xlu1 %637 }
 0x161   :  { %v684_v7 = vsel %vm595_vm2, %v1101_v42, %v626_v2 }
 0x164   :  { %v642_v4 = vpop.permute.xlu0 %641 }
 0x16c   :  { %v662_v5 = vpop.permute.xlu1 %661 }
 0x16d   :  { %v630_v6 = vpop.permute.xlu0 %629 }
 0x16e   :  { %v685_v8 = vsel %vm597_vm3, %v684_v7, %v630_v6 }
 0x170   :  { %v634_v9 = vpop.permute.xlu1 %633 }
 0x171   :  { %v686_v10 = vsel %vm599_vm4, %v685_v8, %v634_v9  ;;  %v666_v11 = vpop.permute.xlu0 %665 }
 0x172   :  { %v687_v12 = vsel %vm601_vm5, %v686_v10, %v638_v3 }
 0x173   :  { %v688_v13 = vsel %vm603_vm6, %v687_v12, %v642_v4 }
 0x174   :  { %v646_v14 = vpop.permute.xlu1 %645 }
 0x175   :  { %v689_v15 = vsel %vm605_vm7, %v688_v13, %v646_v14  ;;  %v650_v16 = vpop.permute.xlu0 %649 }
 0x176   :  { %v690_v17 = vsel %vm607_vm8, %v689_v15, %v650_v16 }
 0x177   :  { %v691_v18 = vsel %vm609_vm9, %v690_v17, %v654_v1 }
 0x178   :  { %v692_v19 = vsel %vm63_vm1, %v691_v18, %v658_v0  ;;  %v670_v20 = vpop.permute.xlu1 %669 }
 0x179   :  { %v693_v21 = vsel %vm612_vm10, %v692_v19, %v662_v5  ;;  %v674_v22 = vpop.permute.xlu0 %673 }
 0x17a   :  { %v694_v23 = vsel %vm614_vm11, %v693_v21, %v666_v11 }
 0x17b   :  { %v695_v24 = vsel %vm616_vm12, %v694_v23, %v670_v20 }
 0x17c   :  { %v696_v25 = vsel %vm618_vm13, %v695_v24, %v674_v22  ;;  %v678_v26 = vpop.permute.xlu1 %677 }
 0x17d   :  { %v697_v27 = vsel %vm620_vm14, %v696_v25, %v678_v26  ;;  %v682_v28 = vpop.permute.xlu0 %681 }
 0x17e   :  { %v698_v29 = vsel %vm622_vm15, %v697_v27, %v682_v28 }
 0x17f   :  { %700 = vrot.lane.b32.xlu0 %v698_v29, %s961_s27 }
 0x180   :  { %v537_v30 = vpop.permute.xlu1 %536 }
 0x181   :  { %v596_v31 = vsel %vm595_vm2, %v1092_v33, %v537_v30  ;;  %v541_v32 = vpop.permute.xlu0 %540 }
 0x182   :  { %v598_v34 = vsel %vm597_vm3, %v596_v31, %v541_v32 }
 0x184   :  { %v545_v35 = vpop.permute.xlu1 %544 }
 0x185   :  { %v600_v36 = vsel %vm599_vm4, %v598_v34, %v545_v35  ;;  %v549_v37 = vpop.permute.xlu0 %548 }
 0x186   :  { %v602_v38 = vsel %vm601_vm5, %v600_v36, %v549_v37 }
 0x188   :  { %v553_v39 = vpop.permute.xlu1 %552 }
 0x189   :  { %v604_v40 = vsel %vm603_vm6, %v602_v38, %v553_v39  ;;  %v557_v41 = vpop.permute.xlu0 %556 }
 0x18a   :  { %v606_v42 = vsel %vm605_vm7, %v604_v40, %v557_v41 }
 0x18c   :  { %v561_v43 = vpop.permute.xlu1 %560 }
 0x18d   :  { %v608_v44 = vsel %vm607_vm8, %v606_v42, %v561_v43  ;;  %v565_v45 = vpop.permute.xlu0 %564 }
 0x18e   :  { %v610_v33 = vsel %vm609_vm9, %v608_v44, %v565_v45 }
 0x190   :  { %v569_v46 = vpop.permute.xlu1 %568 }
 0x191   :  { %v611_v47 = vsel %vm63_vm1, %v610_v33, %v569_v46  ;;  %v573_v48 = vpop.permute.xlu0 %572 }
 0x192   :  { %v613_v49 = vsel %vm612_vm10, %v611_v47, %v573_v48 }
 0x194   :  { %v577_v50 = vpop.permute.xlu1 %576 }
 0x195   :  { %v615_v51 = vsel %vm614_vm11, %v613_v49, %v577_v50  ;;  %v581_v52 = vpop.permute.xlu0 %580 }
 0x196   :  { %v617_v53 = vsel %vm616_vm12, %v615_v51, %v581_v52 }
 0x198   :  { %v585_v54 = vpop.permute.xlu1 %584 }
 0x199   :  { %v619_v55 = vsel %vm618_vm13, %v617_v53, %v585_v54  ;;  %v589_v56 = vpop.permute.xlu0 %588 }
 0x19a   :  { %v621_v57 = vsel %vm620_vm14, %v619_v55, %v589_v56 }
 0x19c   :  { %v593_v58 = vpop.permute.xlu1 %592 }
 0x19d   :  { %v623_v59 = vsel %vm622_vm15, %v621_v57, %v593_v58 }
 0x1f1   :  { %v701_v61 = vpop.permute.xlu0 %700 }
 0x1f2   :  { %v704_v62 = vsel %vm703_vm0, %v623_v59, %v701_v61 }
 0x1f3   :  { %v712_v63 = vadd.f32 %v808_v60, %v704_v62 }
 0x1f5   :  { %v809_v0 = vmul.f32 -1.442695, %v712_v63 }
 0x1f7   :  { %942 = vpow2.f32 %v809_v0 }
 0x201   :  { %v943_v1 = vpop.eup %942 }
 0x202   :  { %v716_v2 = vadd.f32 1.0, %v943_v1 }
 0x204   :  { %944 = vrcp.f32 %v716_v2 }
 0x20e   :  { %v945_v3 = vpop.eup %944 }
 0x20f   :  { %v719_v4 = vmul.f32 %v945_v3, %v712_v63 }
 0x211   :  { %720 = vst [vmem:[%s1159_s3] sm:$0xff] %v719_v4 }

// kernel: _lambda_.39
= control target key start
LH: loop header
LB: loop body
LE: loop exit
PB: predicated region body
PF: predicated region fallthrough
CT: control target
= control target key end

     0   :  { %vm40_vm0 = vcmask 130048   ;;  %s162_s21 = smov 96   ;;  %s164_s22 = smov 64   ;;  %vm108_vm1 = vcmask 261120   ;;  %vm110_vm2 = vcmask 523264   ;;  %vm112_vm3 = vcmask 785408   ;;  %s208_s1 = inlined_call_operand.vmem [shape: bf16[1,16,32], index: 1, kind: input, shape index: {}]   ;;  %s209_s0 = inlined_call_operand.vmem [shape: bf16[1,32,16], index: 0, kind: input, shape index: {}]   ;;  %s210_s2 = inlined_call_operand.vmem [shape: f32[1,128], index: 2, kind: input, shape index: {}]   ;;  %s211_s3 = inlined_call_operand.vmem [shape: f32[8,128], index: 3, kind: input, shape index: {}]   ;;  %s212_s4 = inlined_call_operand.vmem [shape: f32[8,128], index: 4, kind: output, shape index: {}]  }
   0x1   :  { %v155_v0 = vld [vmem:[%s208_s1] sm:$0xff]   ;;  %v157_v2 = vld [vmem:[%s209_s0 + $0x8] sm:$0xff]   ;;  %s163_s1 = smov 32  }
   0x2   :  { %v156_v1 = vld [vmem:[%s209_s0] sm:$0xff]   ;;  %146 = vmatprep.subr.bf16.mxu0 %v155_v0 }
   0x3   :  { %147 = vmatpush3.bf16.msra.mxu0 %v155_v0  ;;  %148 = vmatprep.mubr.msk.bf16.mxu0 %vm40_vm0, %v156_v1  ;;  %v141_v9 = vld [vmem:[%s210_s2] ss:$0 sm:$0xff] }
   0x4   :  { %v122_v13 = vld [vmem:[%s211_s3] sm:$0xff] }
   0x6   :  { %149 = vmatmul.mubr.msk.bf16.vlgmr.msra.gmra.mrb[0].mxu0 %vm40_vm0, %v157_v2 }
  0xd9   :  { %v150_v3 = vpop.f32.mrb[0].mxu0 }
  0xda   :  { %v81_v4 = vpop.f32.mrb[1].mxu0 }
  0xdb   :  { %v151_v5 = vpop.f32.mrb[2].mxu0 }
  0xdc   :  { %105 = vrot.lane.b32.xlu1 %v151_v5, %s162_s21  ;;  %v84_v6 = vpop.f32.mrb[3].mxu0 }
  0xdd   :  { %97 = vrot.lane.b32.xlu0 %v84_v6, %s163_s1 }
  0xe1   :  { %101 = vrot.lane.b32.xlu0 %v150_v3, %s164_s22 }
 0x14e   :  { %v106_v11 = vpop.permute.xlu1 %105 }
 0x14f   :  { %v98_v7 = vpop.permute.xlu0 %97 }
 0x150   :  { %v109_v8 = vsel %vm108_vm1, %v81_v4, %v98_v7 }
 0x153   :  { %v102_v10 = vpop.permute.xlu0 %101 }
 0x154   :  { %v111_v12 = vsel %vm110_vm2, %v109_v8, %v102_v10 }
 0x155   :  { %v113_v14 = vsel %vm112_vm3, %v111_v12, %v106_v11 }
 0x156   :  { %v121_v15 = vadd.f32 %v141_v9, %v113_v14 }
 0x158   :  { %v123_v16 = vadd.f32 %v122_v13, %v121_v15 }
 0x15a   :  { %v142_v17 = vmul.f32 -1.442695, %v123_v16 }
 0x15c   :  { %158 = vpow2.f32 %v142_v17 }
 0x166   :  { %v159_v18 = vpop.eup %158 }
 0x167   :  { %v127_v19 = vadd.f32 1.0, %v159_v18 }
 0x169   :  { %160 = vrcp.f32 %v127_v19 }
 0x173   :  { %v161_v20 = vpop.eup %160 }
 0x174   :  { %v130_v21 = vmul.f32 %v161_v20, %v123_v16 }
 0x176   :  { %131 = vst [vmem:[%s212_s4] sm:$0xff] %v130_v21 }

// kernel: _lambda_.44
= control target key start
LH: loop header
LB: loop body
LE: loop exit
PB: predicated region body
PF: predicated region fallthrough
CT: control target
= control target key end

     0   :  { %v124_v0 = vmov 0.0   ;;  %vm125_vm0 = vmmov 0   ;;  %vm38_vm1 = vcmask 261120   ;;  %s126_s18 = smov 64   ;;  %vm87_vm2 = vcmask 523264   ;;  %s162_s1 = inlined_call_operand.vmem [shape: bf16[1,32,64], index: 1, kind: input, shape index: {}]   ;;  %s163_s0 = inlined_call_operand.vmem [shape: bf16[1,16,32], index: 0, kind: input, shape index: {}]   ;;  %s164_s2 = inlined_call_operand.vmem [shape: f32[1,128], index: 2, kind: input, shape index: {}]   ;;  %s165_s3 = inlined_call_operand.vmem [shape: f32[8,128], index: 3, kind: output, shape index: {}]  }
   0x1   :  { %110 = vmatprep.subr.bf16.mxu0 %v124_v0  ;;  %v121_v1 = vld [vmem:[%s162_s1] sm:$0xff]   ;;  %114 = vmatprep.mubr.msk.bf16.mxu0 %vm125_vm0, %v124_v0  ;;  %v122_v2 = vld [vmem:[%s162_s1 + $0x8] sm:$0xff]  }
   0x2   :  { %111 = vmatpush3.bf16.msra.mxu0 %v121_v1  ;;  %v123_v3 = vld [vmem:[%s163_s0] sm:$0xff]  }
   0x3   :  { %112 = vmatprep.subr.bf16.mxu0 %v124_v0  ;;  %v106_v8 = vld [vmem:[%s164_s2] ss:$0 sm:$0xff] }
   0x6   :  { %113 = vmatpush3.bf16.msra.mxu0 %v122_v2 }
   0x9   :  { %115 = vmatmul.mubr.msk.bf16.vlgmr.msra.gmra.mrb[0].mxu0 %vm38_vm1, %v123_v3 }
  0xdc   :  { %v76_v4 = vpop.f32.mrb[0].mxu0 }
  0xdd   :  { %v116_v5 = vpop.f32.mrb[1].mxu0 }
  0xde   :  { %v79_v6 = vpop.f32.mrb[2].mxu0 }
  0xdf   :  { %v117_v7 = vpop.f32.mrb[3].mxu0  ;;  %84 = vrot.lane.b32.xlu0 %v79_v6, %s126_s18 }
 0x151   :  { %v85_v9 = vpop.permute.xlu0 %84 }
 0x152   :  { %v88_v10 = vsel %vm87_vm2, %v76_v4, %v85_v9 }
 0x153   :  { %v96_v11 = vadd.f32 %v106_v8, %v88_v10 }
 0x155   :  { %97 = vst [vmem:[%s165_s3] sm:$0xff] %v96_v11 }

// kernel: _lambda_.40
= control target key start
LH: loop header
LB: loop body
LE: loop exit
PB: predicated region body
PF: predicated region fallthrough
CT: control target
= control target key end

     0   :  { %vm45_vm0 = vcmask 261120   ;;  %s170_s20 = smov 32   ;;  %s171_s21 = smov 64   ;;  %vm114_vm1 = vcmask 523264   ;;  %vm116_vm2 = vcmask 785408   ;;  %s213_s1 = inlined_call_operand.vmem [shape: bf16[1,32,32], index: 1, kind: input, shape index: {}]   ;;  %s214_s0 = inlined_call_operand.vmem [shape: bf16[1,32,32], index: 0, kind: input, shape index: {}]   ;;  %s215_s2 = inlined_call_operand.vmem [shape: f32[1,128], index: 2, kind: input, shape index: {}]   ;;  %s216_s3 = inlined_call_operand.vmem [shape: f32[8,128], index: 3, kind: output, shape index: {}]  }
   0x1   :  { %v161_v0 = vld [vmem:[%s213_s1] sm:$0xff]   ;;  %v162_v1 = vld [vmem:[%s213_s1 + $0x8] sm:$0xff]   ;;  %s169_s1 = smov 96  }
   0x2   :  { %150 = vmatprep.subr.bf16.mxu0 %v161_v0  ;;  %v163_v2 = vld [vmem:[%s214_s0] sm:$0xff]   ;;  %v164_v3 = vld [vmem:[%s214_s0 + $0x8] sm:$0xff]  }
   0x3   :  { %151 = vmatpush3.bf16.msra.mxu0 %v161_v0  ;;  %154 = vmatprep.mubr.msk.bf16.mxu0 %vm45_vm0, %v163_v2  ;;  %v144_v10 = vld [vmem:[%s215_s2] ss:$0 sm:$0xff] }
   0x4   :  { %152 = vmatprep.subr.bf16.mxu0 %v162_v1 }
   0x7   :  { %153 = vmatpush3.bf16.msra.mxu0 %v162_v1 }
   0xa   :  { %155 = vmatmul.mubr.msk.bf16.vlgmr.msra.gmra.mrb[0].mxu0 %vm45_vm0, %v164_v3 }
  0xdd   :  { %v156_v4 = vpop.f32.mrb[0].mxu0 }
  0xde   :  { %v86_v5 = vpop.f32.mrb[1].mxu0 }
  0xdf   :  { %v157_v6 = vpop.f32.mrb[2].mxu0 }
  0xe0   :  { %110 = vrot.lane.b32.xlu1 %v157_v6, %s169_s1  ;;  %v89_v7 = vpop.f32.mrb[3].mxu0 }
  0xe1   :  { %102 = vrot.lane.b32.xlu0 %v89_v7, %s170_s20 }
  0xe5   :  { %106 = vrot.lane.b32.xlu0 %v156_v4, %s171_s21 }
 0x152   :  { %v111_v12 = vpop.permute.xlu1 %110 }
 0x153   :  { %v103_v8 = vpop.permute.xlu0 %102 }
 0x154   :  { %v113_v9 = vsel %vm45_vm0, %v86_v5, %v103_v8 }
 0x157   :  { %v107_v11 = vpop.permute.xlu0 %106 }
 0x158   :  { %v115_v13 = vsel %vm114_vm1, %v113_v9, %v107_v11 }
 0x159   :  { %v117_v14 = vsel %vm116_vm2, %v115_v13, %v111_v12 }
 0x15a   :  { %v125_v15 = vadd.f32 %v144_v10, %v117_v14 }
 0x15c   :  { %v145_v16 = vmul.f32 -1.442695, %v125_v15 }
 0x15e   :  { %165 = vpow2.f32 %v145_v16 }
 0x168   :  { %v166_v17 = vpop.eup %165 }
 0x169   :  { %v129_v18 = vadd.f32 1.0, %v166_v17 }
 0x16b   :  { %167 = vrcp.f32 %v129_v18 }
 0x175   :  { %v168_v19 = vpop.eup %167 }
 0x176   :  { %v132_v20 = vmul.f32 %v168_v19, %v125_v15 }
 0x178   :  { %133 = vst [vmem:[%s216_s3] sm:$0xff] %v132_v20 }

// kernel: _lambda_.45
= control target key start
LH: loop header
LB: loop body
LE: loop exit
PB: predicated region body
PF: predicated region fallthrough
CT: control target
= control target key end

     0   :  { %v141_v0 = vmov 0.0   ;;  %vm142_vm0 = vmmov 0   ;;  %vm41_vm1 = vcmask 261120   ;;  %s143_s21 = smov 64   ;;  %vm90_vm2 = vcmask 523264   ;;  %s187_s1 = inlined_call_operand.vmem [shape: bf16[1,32,64], index: 1, kind: input, shape index: {}]   ;;  %s188_s0 = inlined_call_operand.vmem [shape: bf16[1,16,32], index: 0, kind: input, shape index: {}]   ;;  %s189_s2 = inlined_call_operand.vmem [shape: f32[1,128], index: 2, kind: input, shape index: {}]   ;;  %s190_s3 = inlined_call_operand.vmem [shape: f32[8,128], index: 3, kind: input, shape index: {}]   ;;  %s191_s4 = inlined_call_operand.vmem [shape: f32[8,128], index: 4, kind: output, shape index: {}]  }
   0x1   :  { %123 = vmatprep.subr.bf16.mxu0 %v141_v0  ;;  %v134_v1 = vld [vmem:[%s187_s1] sm:$0xff]   ;;  %127 = vmatprep.mubr.msk.bf16.mxu0 %vm142_vm0, %v141_v0  ;;  %v135_v2 = vld [vmem:[%s187_s1 + $0x8] sm:$0xff]  }
   0x2   :  { %124 = vmatpush3.bf16.msra.mxu0 %v134_v1  ;;  %v136_v3 = vld [vmem:[%s188_s0] sm:$0xff]  }
   0x3   :  { %125 = vmatprep.subr.bf16.mxu0 %v141_v0  ;;  %v118_v8 = vld [vmem:[%s189_s2] ss:$0 sm:$0xff] }
   0x4   :  { %v100_v11 = vld [vmem:[%s190_s3] sm:$0xff] }
   0x6   :  { %126 = vmatpush3.bf16.msra.mxu0 %v135_v2 }
   0x9   :  { %128 = vmatmul.mubr.msk.bf16.vlgmr.msra.gmra.mrb[0].mxu0 %vm41_vm1, %v136_v3 }
  0xdc   :  { %v79_v4 = vpop.f32.mrb[0].mxu0 }
  0xdd   :  { %v129_v5 = vpop.f32.mrb[1].mxu0 }
  0xde   :  { %v82_v6 = vpop.f32.mrb[2].mxu0 }
  0xdf   :  { %v130_v7 = vpop.f32.mrb[3].mxu0  ;;  %87 = vrot.lane.b32.xlu0 %v82_v6, %s143_s21 }
 0x151   :  { %v88_v9 = vpop.permute.xlu0 %87 }
 0x152   :  { %v91_v10 = vsel %vm90_vm2, %v79_v4, %v88_v9 }
 0x153   :  { %v99_v12 = vadd.f32 %v118_v8, %v91_v10 }
 0x155   :  { %v101_v13 = vadd.f32 %v100_v11, %v99_v12 }
 0x157   :  { %v119_v14 = vmul.f32 -1.442695, %v101_v13 }
 0x159   :  { %137 = vpow2.f32 %v119_v14 }
 0x163   :  { %v138_v15 = vpop.eup %137 }
 0x164   :  { %v105_v16 = vadd.f32 1.0, %v138_v15 }
 0x166   :  { %139 = vrcp.f32 %v105_v16 }
 0x170   :  { %v140_v17 = vpop.eup %139 }
 0x171   :  { %v108_v18 = vmul.f32 %v140_v17, %v101_v13 }
 0x173   :  { %109 = vst [vmem:[%s191_s4] sm:$0xff] %v108_v18 }

// kernel: _lambda_.42
= control target key start
LH: loop header
LB: loop body
LE: loop exit
PB: predicated region body
PF: predicated region fallthrough
CT: control target
= control target key end

     0   :  { %vm65_vm0 = vcmask 588800   ;;  %vm72_vm1 = vcmask 1043456   ;;  %s777_s14 = smov 72   ;;  %s778_s15 = smov 32   ;;  %vm515_vm2 = vcmask 64512   ;;  %vm517_vm3 = vcmask 130048   ;;  %s918_s1 = inlined_call_operand.vmem [shape: bf16[4,72,8], index: 1, kind: input, shape index: {}]   ;;  %s919_s0 = inlined_call_operand.vmem [shape: bf16[4,32,72], index: 0, kind: input, shape index: {}]   ;;  %s920_s2 = inlined_call_operand.vmem [shape: f32[1,128], index: 2, kind: input, shape index: {}]   ;;  %s921_s3 = inlined_call_operand.vmem [shape: f32[8,128], index: 3, kind: output, shape index: {}]  }
   0x1   :  { %v744_v0 = vld [vmem:[%s918_s1] sm:$0xff]   ;;  %v746_v2 = vld [vmem:[%s918_s1 + $0x8] sm:$0xff]   ;;  %v748_v4 = vld [vmem:[%s918_s1 + $0x10] sm:$0xff]   ;;  %s780_s16 = smov 40   ;;  %s781_s17 = smov 80   ;;  %vm519_vm4 = vcmask 195584  }
   0x2   :  { %v745_v1 = vld [vmem:[%s918_s1 + $0x24] sm:$0xff]   ;;  %669 = vmatprep.subr.bf16.mxu0 %v744_v0  ;;  %v747_v3 = vld [vmem:[%s918_s1 + $0x2c] sm:$0xff]   ;;  %v749_v5 = vld [vmem:[%s918_s1 + $0x34] sm:$0xff]   ;;  %s782_s18 = smov 16   ;;  %s783_s19 = smov 24   ;;  %vm521_vm5 = vcmask 261120  }
   0x3   :  { %683 = vmatprep.subr.bf16.mxu1 %v745_v1  ;;  %670 = vmatpush3.bf16.msra.mxu0 %v744_v0  ;;  %v750_v6 = vld [vmem:[%s918_s1 + $0x18] sm:$0xff]   ;;  %v754_v8 = vld [vmem:[%s919_s0] sm:$0xff]   ;;  %v755_v9 = vld [vmem:[%s919_s0 + $0x10] sm:$0xff]   ;;  %s784_s20 = smov 88   ;;  %s785_s21 = smov 48   ;;  %vm523_vm6 = vcmask 326656  }
   0x4   :  { %684 = vmatpush3.bf16.msra.mxu1 %v745_v1  ;;  %671 = vmatprep.subr.bf16.mxu0 %v746_v2  ;;  %v751_v7 = vld [vmem:[%s918_s1 + $0x3c] sm:$0xff]   ;;  %v753_v11 = vld [vmem:[%s918_s1 + $0x44] ss:$0 sps:$4 sm:$0xff]   ;;  %v758_v13 = vld [vmem:[%s918_s1 + $0x48] sm:$0xff]   ;;  %s786_s22 = smov 56   ;;  %s787_s23 = smov 96  }
   0x5   :  { %685 = vmatprep.subr.bf16.mxu1 %v747_v3  ;;  %v752_v10 = vld [vmem:[%s918_s1 + $0x20] ss:$0 sps:$4 sm:$0xff]   ;;  %679 = vmatprep.mubr.msk.bf16.mxu0 %vm65_vm0, %v754_v8  ;;  %v184_v14 = vsel %vm72_vm1, %v753_v11, 0  ;;  %v759_v15 = vld [vmem:[%s918_s1 + $0x6c] sm:$0xff]   ;;  %v757_v17 = vld [vmem:[%s919_s0 + $0x18] sm:$0xff]   ;;  %s788_s24 = smov 104  }
   0x6   :  { %693 = vmatprep.mubr.msk.bf16.mxu1 %vm65_vm0, %v755_v9  ;;  %v74_v12 = vsel %vm72_vm1, %v752_v10, 0  ;;  %v756_v16 = vld [vmem:[%s919_s0 + $0x8] sm:$0xff]   ;;  %v760_v18 = vld [vmem:[%s918_s1 + $0x50] sm:$0xff]   ;;  %v762_v20 = vld [vmem:[%s918_s1 + $0x58] sm:$0xff]   ;;  %s789_s25 = smov 112   ;;  %s790_s26 = smov 120  }
   0x7   :  { %672 = vmatpush3.bf16.msra.mxu0 %v746_v2  ;;  %v761_v19 = vld [vmem:[%s918_s1 + $0x74] sm:$0xff]   ;;  %v768_v21 = vld [vmem:[%s919_s0 + $0x20] sm:$0xff]   ;;  %v766_v26 = vld [vmem:[%s918_s1 + $0x68] ss:$0 sps:$4 sm:$0xff]   ;;  %vm525_vm7 = vcmask 392192   ;;  %vm527_vm8 = vcmask 457728  }
   0x8   :  { %686 = vmatpush3.bf16.msra.mxu1 %v747_v3  ;;  %673 = vmatprep.subr.bf16.mxu0 %v748_v4  ;;  %v769_v22 = vld [vmem:[%s919_s0 + $0x30] sm:$0xff]   ;;  %v763_v23 = vld [vmem:[%s918_s1 + $0x7c] sm:$0xff]   ;;  %v765_v25 = vld [vmem:[%s918_s1 + $0x84] sm:$0xff]   ;;  %v294_v28 = vsel %vm72_vm1, %v766_v26, 0  ;;  %vm529_vm9 = vcmask 523264   ;;  %vm532_vm10 = vcmask 654336  }
   0x9   :  { %687 = vmatprep.subr.bf16.mxu1 %v749_v5  ;;  %v764_v24 = vld [vmem:[%s918_s1 + $0x60] sm:$0xff]   ;;  %v767_v27 = vld [vmem:[%s918_s1 + $0x8c] ss:$0 sps:$4 sm:$0xff]   ;;  %v771_v31 = vld [vmem:[%s919_s0 + $0x38] sm:$0xff]   ;;  %s776_s1 = smov 64   ;;  %vm534_vm11 = vcmask 719872  }
   0xa   :  { %v404_v29 = vsel %vm72_vm1, %v767_v27, 0  ;;  %v770_v30 = vld [vmem:[%s919_s0 + $0x28] sm:$0xff]   ;;  %s779_s0 = smov 8   ;;  %vm536_vm12 = vcmask 785408   ;;  %vm538_vm13 = vcmask 850944   ;;  %vm540_vm14 = vcmask 916480  }
   0xb   :  { %674 = vmatpush3.bf16.msra.mxu0 %v748_v4  ;;  %vm542_vm15 = vcmask 982016  }
   0xc   :  { %688 = vmatpush3.bf16.msra.mxu1 %v749_v5  ;;  %675 = vmatprep.subr.bf16.mxu0 %v750_v6 }
   0xd   :  { %689 = vmatprep.subr.bf16.mxu1 %v751_v7 }
   0xf   :  { %676 = vmatpush3.bf16.msra.mxu0 %v750_v6 }
  0x10   :  { %690 = vmatpush3.bf16.msra.mxu1 %v751_v7  ;;  %725 = vmatprep.subr.msk.bf16.mxu0 %vm72_vm1, %v752_v10 }
  0x11   :  { %726 = vmatprep.subr.msk.bf16.mxu1 %vm72_vm1, %v753_v11  ;;  %v639_v11 = vld [vmem:[%s920_s2] ss:$0 sm:$0xff] }
  0x13   :  { %678 = vmatpush3.bf16.msra.mxu0 %v74_v12 }
  0x14   :  { %692 = vmatpush3.bf16.msra.mxu1 %v184_v14  ;;  %697 = vmatprep.subr.bf16.mxu0 %v758_v13 }
  0x15   :  { %711 = vmatprep.subr.bf16.mxu1 %v759_v15 }
  0x16   :  { %680 = vmatmul.mubr.msk.bf16.vlgmr.msra.gmra.mrb[0].mxu0 %vm65_vm0, %v756_v16 }
  0x17   :  { %694 = vmatmul.mubr.msk.bf16.vlgmr.msra.gmra.mrb[0].mxu1 %vm65_vm0, %v757_v17  ;;  %698 = vmatpush3.bf16.msra.mxu0 %v758_v13 }
  0x18   :  { %712 = vmatpush3.bf16.msra.mxu1 %v759_v15  ;;  %699 = vmatprep.subr.bf16.mxu0 %v760_v18 }
  0x19   :  { %713 = vmatprep.subr.bf16.mxu1 %v761_v19  ;;  %707 = vmatprep.mubr.msk.bf16.mxu0 %vm65_vm0, %v768_v21 }
  0x1a   :  { %721 = vmatprep.mubr.msk.bf16.mxu1 %vm65_vm0, %v769_v22 }
  0x1b   :  { %700 = vmatpush3.bf16.msra.mxu0 %v760_v18 }
  0x1c   :  { %714 = vmatpush3.bf16.msra.mxu1 %v761_v19  ;;  %701 = vmatprep.subr.bf16.mxu0 %v762_v20 }
  0x1d   :  { %715 = vmatprep.subr.bf16.mxu1 %v763_v23 }
  0x1f   :  { %702 = vmatpush3.bf16.msra.mxu0 %v762_v20 }
  0x20   :  { %716 = vmatpush3.bf16.msra.mxu1 %v763_v23  ;;  %703 = vmatprep.subr.bf16.mxu0 %v764_v24 }
  0x21   :  { %717 = vmatprep.subr.bf16.mxu1 %v765_v25 }
  0x23   :  { %704 = vmatpush3.bf16.msra.mxu0 %v764_v24 }
  0x24   :  { %718 = vmatpush3.bf16.msra.mxu1 %v765_v25  ;;  %727 = vmatprep.subr.msk.bf16.mxu0 %vm72_vm1, %v766_v26 }
  0x25   :  { %728 = vmatprep.subr.msk.bf16.mxu1 %vm72_vm1, %v767_v27 }
  0x27   :  { %706 = vmatpush3.bf16.msra.mxu0 %v294_v28 }
  0x28   :  { %720 = vmatpush3.bf16.msra.mxu1 %v404_v29 }
  0x2a   :  { %708 = vmatmul.mubr.msk.bf16.vlgmr.msra.gmra.mrb[4].mxu0 %vm65_vm0, %v770_v30 }
  0x2b   :  { %722 = vmatmul.mubr.msk.bf16.vlgmr.msra.gmra.mrb[4].mxu1 %vm65_vm0, %v771_v31 }
  0xe9   :  { %v681_v32 = vpop.f32.mrb[0].mxu0 }
  0xea   :  { %v695_v33 = vpop.f32.mrb[0].mxu1  ;;  %484 = vrot.lane.b32.xlu1 %v681_v32, %s776_s1  ;;  %v110_v34 = vpop.f32.mrb[1].mxu0 }
  0xeb   :  { %488 = vrot.lane.b32.xlu0 %v695_v33, %s777_s14  ;;  %v682_v35 = vpop.f32.mrb[2].mxu0  ;;  %v220_v36 = vpop.f32.mrb[1].mxu1 }
  0xec   :  { %v113_v37 = vpop.f32.mrb[3].mxu0  ;;  %v696_v38 = vpop.f32.mrb[2].mxu1 }
  0xed   :  { %v223_v39 = vpop.f32.mrb[3].mxu1 }
  0xee   :  { %468 = vrot.lane.b32.xlu1 %v113_v37, %s778_s15 }
  0xef   :  { %456 = vrot.lane.b32.xlu0 %v220_v36, %s779_s0 }
  0xf3   :  { %472 = vrot.lane.b32.xlu0 %v223_v39, %s780_s16 }
  0xfd   :  { %v709_v40 = vpop.f32.mrb[4].mxu0 }
  0xfe   :  { %v723_v41 = vpop.f32.mrb[4].mxu1  ;;  %492 = vrot.lane.b32.xlu1 %v709_v40, %s781_s17  ;;  %v330_v42 = vpop.f32.mrb[5].mxu0 }
  0xff   :  { %v440_v43 = vpop.f32.mrb[5].mxu1  ;;  %460 = vrot.lane.b32.xlu0 %v330_v42, %s782_s18  ;;  %v710_v44 = vpop.f32.mrb[6].mxu0 }
 0x100   :  { %v724_v45 = vpop.f32.mrb[6].mxu1  ;;  %v333_v46 = vpop.f32.mrb[7].mxu0 }
 0x101   :  { %v443_v47 = vpop.f32.mrb[7].mxu1 }
 0x102   :  { %464 = vrot.lane.b32.xlu1 %v440_v43, %s783_s19 }
 0x103   :  { %496 = vrot.lane.b32.xlu0 %v723_v41, %s784_s20 }
 0x106   :  { %476 = vrot.lane.b32.xlu1 %v333_v46, %s785_s21 }
 0x107   :  { %480 = vrot.lane.b32.xlu0 %v443_v47, %s786_s22 }
 0x10a   :  { %500 = vrot.lane.b32.xlu1 %v682_v35, %s787_s23 }
 0x10b   :  { %504 = vrot.lane.b32.xlu0 %v696_v38, %s788_s24 }
 0x10e   :  { %508 = vrot.lane.b32.xlu1 %v710_v44, %s789_s25 }
 0x10f   :  { %512 = vrot.lane.b32.xlu0 %v724_v45, %s790_s26 }
 0x15c   :  { %v485_v49 = vpop.permute.xlu1 %484 }
 0x15d   :  { %v489_v48 = vpop.permute.xlu0 %488 }
 0x160   :  { %v469_v51 = vpop.permute.xlu1 %468 }
 0x161   :  { %v457_v50 = vpop.permute.xlu0 %456 }
 0x162   :  { %v516_v55 = vsel %vm515_vm2, %v110_v34, %v457_v50 }
 0x165   :  { %v473_v52 = vpop.permute.xlu0 %472 }
 0x170   :  { %v493_v53 = vpop.permute.xlu1 %492 }
 0x171   :  { %v461_v54 = vpop.permute.xlu0 %460 }
 0x172   :  { %v518_v56 = vsel %vm517_vm3, %v516_v55, %v461_v54 }
 0x174   :  { %v465_v57 = vpop.permute.xlu1 %464 }
 0x175   :  { %v520_v58 = vsel %vm519_vm4, %v518_v56, %v465_v57  ;;  %v497_v59 = vpop.permute.xlu0 %496 }
 0x176   :  { %v522_v60 = vsel %vm521_vm5, %v520_v58, %v469_v51 }
 0x177   :  { %v524_v61 = vsel %vm523_vm6, %v522_v60, %v473_v52 }
 0x178   :  { %v477_v62 = vpop.permute.xlu1 %476 }
 0x179   :  { %v526_v63 = vsel %vm525_vm7, %v524_v61, %v477_v62  ;;  %v481_v0 = vpop.permute.xlu0 %480 }
 0x17a   :  { %v528_v1 = vsel %vm527_vm8, %v526_v63, %v481_v0 }
 0x17b   :  { %v530_v2 = vsel %vm529_vm9, %v528_v1, %v485_v49 }
 0x17c   :  { %v531_v3 = vsel %vm65_vm0, %v530_v2, %v489_v48  ;;  %v501_v4 = vpop.permute.xlu1 %500 }
 0x17d   :  { %v533_v5 = vsel %vm532_vm10, %v531_v3, %v493_v53  ;;  %v505_v6 = vpop.permute.xlu0 %504 }
 0x17e   :  { %v535_v7 = vsel %vm534_vm11, %v533_v5, %v497_v59 }
 0x17f   :  { %v537_v8 = vsel %vm536_vm12, %v535_v7, %v501_v4 }
 0x180   :  { %v539_v9 = vsel %vm538_vm13, %v537_v8, %v505_v6  ;;  %v509_v10 = vpop.permute.xlu1 %508 }
 0x181   :  { %v541_v12 = vsel %vm540_vm14, %v539_v9, %v509_v10  ;;  %v513_v13 = vpop.permute.xlu0 %512 }
 0x182   :  { %v543_v14 = vsel %vm542_vm15, %v541_v12, %v513_v13 }
 0x183   :  { %v551_v15 = vadd.f32 %v639_v11, %v543_v14 }
 0x185   :  { %v640_v16 = vmul.f32 -1.442695, %v551_v15 }
 0x187   :  { %772 = vpow2.f32 %v640_v16 }
 0x191   :  { %v773_v17 = vpop.eup %772 }
 0x192   :  { %v555_v18 = vadd.f32 1.0, %v773_v17 }
 0x194   :  { %774 = vrcp.f32 %v555_v18 }
 0x19e   :  { %v775_v19 = vpop.eup %774 }
 0x19f   :  { %v558_v20 = vmul.f32 %v775_v19, %v551_v15 }
 0x1a1   :  { %559 = vst [vmem:[%s921_s3] sm:$0xff] %v558_v20 }

// kernel: _lambda_.46
= control target key start
LH: loop header
LB: loop body
LE: loop exit
PB: predicated region body
PF: predicated region fallthrough
CT: control target
= control target key end

     0   :  { %v134_v0 = vmov 0.0   ;;  %vm135_vm0 = vmmov 0   ;;  %vm55_vm1 = vcmask 523264   ;;  %vm99_vm2 = vcmask 80896   ;;  %s177_s1 = inlined_call_operand.vmem [shape: bf16[1,64,10], index: 1, kind: input, shape index: {}]   ;;  %s178_s0 = inlined_call_operand.vmem [shape: bf16[1,8,64], index: 0, kind: input, shape index: {}]   ;;  %s179_s2 = inlined_call_operand.vmem [shape: f32[1,10], index: 2, kind: input, shape index: {}]   ;;  %s180_s3 = inlined_call_operand.vmem [shape: f32[8,10], index: 3, kind: output, shape index: {}]  }
   0x1   :  { %116 = vmatprep.subr.bf16.mxu0 %v134_v0  ;;  %v130_v1 = vld [vmem:[%s177_s1] sm:$0xff]   ;;  %124 = vmatprep.mubr.msk.bf16.mxu0 %vm135_vm0, %v134_v0  ;;  %v131_v2 = vld [vmem:[%s177_s1 + $0x8] sm:$0xff]   ;;  %v132_v3 = vld [vmem:[%s177_s1 + $0x10] sm:$0xff]  }
   0x2   :  { %117 = vmatpush3.bf16.msra.mxu0 %v130_v1  ;;  %v133_v4 = vld [vmem:[%s177_s1 + $0x18] sm:$0xff]   ;;  %v15_v5 = vld [vmem:[%s178_s0] sm:$0xf] }
   0x3   :  { %118 = vmatprep.subr.bf16.mxu0 %v134_v0  ;;  %v105_v6 = vld [vmem:[%s179_s2] ss:$0 sm:$0xff] }
   0x6   :  { %119 = vmatpush3.bf16.msra.mxu0 %v131_v2 }
   0x7   :  { %120 = vmatprep.subr.bf16.mxu0 %v134_v0 }
   0xa   :  { %121 = vmatpush3.bf16.msra.mxu0 %v132_v3 }
   0xb   :  { %122 = vmatprep.subr.bf16.mxu0 %v134_v0 }
   0xe   :  { %123 = vmatpush3.bf16.msra.mxu0 %v133_v4 }
  0x11   :  { %125 = vmatmul.mubr.msk.bf16.vlgmr.msra.gmra.mrb[0].mxu0 %vm55_vm1, %v15_v5 }
  0xe4   :  { %v93_v7 = vpop.f32.mrb[0].mxu0 }
  0xe5   :  { %v94_v8 = vadd.f32 %v105_v6, %v93_v7  ;;  %v126_v9 = vpop.f32.mrb[1].mxu0 }
  0xe6   :  { %v96_v10 = vpop.f32.mrb[2].mxu0 }
  0xe7   :  { %100 = vst.msk [vmem:[%s180_s3] sm:$0xff] %vm99_vm2, %v94_v8  ;;  %v127_v11 = vpop.f32.mrb[3].mxu0 }

</bundles_post_ra>
